<compile_context>
chip_gen: v7x
topology: tpu7x:2x2x1
jax: 0.10.0
libtpu: 0.0.40
codegen_flags: <defaults>
</compile_context>

<pallas_src>
import jax
import jax.numpy as jnp
from jax import lax
from jax.experimental import pallas as pl
from jax.experimental.pallas import tpu as pltpu


def _resblock_kernel(x_ref, w1_ref, b1_ref, w2_ref, b2_ref, o_ref, pad_ref):
    """Fused ResBlock for one batch-block.

    x_ref  : (nb, H, W, C)      input activations (C lane-padded)
    w1_ref : (3, 3*C, C)        conv1 weights, BN1 scale folded, (ky, kx*ci, co)
    b1_ref : (1, C)             folded bias for stage 1 (f32)
    w2_ref : (3, 3*C, C)        conv2 weights, BN2 scale folded
    b2_ref : (1, C)             folded bias for stage 2 (f32)
    o_ref  : (nb, H, W, C)      output (f32)
    pad_ref: (nb, H+2, W+2, C)  VMEM scratch: spatially padded activation buffer
    """
    nb, H, W, C = o_ref.shape
    M = nb * H * W
    cdt = pad_ref.dtype

    # In-kernel 'same' padding: zero only the 1-pixel halo of the padded VMEM
    # scratch; the interior is overwritten below.  (Done every step so it is
    # megacore-safe; cost is negligible.)
    pad_ref[:, 0:1, :, :] = jnp.zeros((nb, 1, W + 2, C), cdt)
    pad_ref[:, H + 1:H + 2, :, :] = jnp.zeros((nb, 1, W + 2, C), cdt)
    pad_ref[:, :, 0:1, :] = jnp.zeros((nb, H + 2, 1, C), cdt)
    pad_ref[:, :, W + 1:W + 2, :] = jnp.zeros((nb, H + 2, 1, C), cdt)

    def conv3x3(w_ref):
        # 3 MXU matmuls with K = 3*C: the three kx taps of each kernel row are
        # packed along the contraction axis (im2col along W) instead of nine
        # K = C matmuls.  Accumulate in f32.
        acc = jnp.zeros((M, C), jnp.float32)
        for dy in range(3):
            rows = pad_ref[:, dy:dy + H, :, :]                   # (nb, H, W+2, C)
            taps = jnp.concatenate(
                [rows[:, :, 0:W, :],
                 rows[:, :, 1:W + 1, :],
                 rows[:, :, 2:W + 2, :]], axis=-1)               # (nb, H, W, 3C)
            acc = acc + jnp.dot(taps.reshape(M, 3 * C), w_ref[dy],
                                preferred_element_type=jnp.float32)
        return acc

    # Stage 1: h = relu(bn1(conv1(x)))  (BN scale folded into w1, bias only).
    pad_ref[:, 1:H + 1, 1:W + 1, :] = x_ref[...]
    h = jnp.maximum(conv3x3(w1_ref) + b1_ref[...], 0.0)          # (M, C) f32

    # Stage 2: out = relu(bn2(conv2(h)) + x).  `h` only ever lives in VMEM (the
    # scratch interior is reused in place); the residual is the still-resident
    # input block, so no HBM traffic for h, zeros, or a separate residual.
    pad_ref[:, 1:H + 1, 1:W + 1, :] = h.reshape(nb, H, W, C).astype(cdt)
    y = (conv3x3(w2_ref) + b2_ref[...]
         + x_ref[...].reshape(M, C).astype(jnp.float32))
    o_ref[...] = jnp.maximum(y, 0.0).reshape(nb, H, W, C).astype(o_ref.dtype)


def _round_up(x, m):
    return (x + m - 1) // m * m


def _fold_bn_into_weights(w_hwio, conv_b, gamma, beta, mean, var, eps=1e-5):
    """Fold eval-mode BN into conv: w' = w * scale (over out-channels),
    b' = (conv_b - mean) * scale + beta."""
    scale = gamma / jnp.sqrt(var + eps)
    return w_hwio * scale, (conv_b - mean) * scale + beta


def resblock_forward(x_nchw, params, *, compute_dtype=jnp.float32,
                     batch_block=None, lane_multiple=128):
    """Pallas ResBlock forward.  Input/output in NCHW (f32) to match PyTorch."""
    x = jnp.transpose(x_nchw, (0, 2, 3, 1)).astype(jnp.float32)  # NCHW -> NHWC
    N, H, W, C = x.shape
    Cp = _round_up(C, lane_multiple)
    pad_c = Cp - C

    w1, b1 = _fold_bn_into_weights(
        jnp.transpose(params["conv1_w"], (2, 3, 1, 0)), params["conv1_b"],
        params["bn1_gamma"], params["bn1_beta"],
        params["bn1_mean"], params["bn1_var"])
    w2, b2 = _fold_bn_into_weights(
        jnp.transpose(params["conv2_w"], (2, 3, 1, 0)), params["conv2_b"],
        params["bn2_gamma"], params["bn2_beta"],
        params["bn2_mean"], params["bn2_var"])

    # Lane-align the channel dim; padded in/out channels are exact zeros
    # everywhere (zero weight rows/cols, zero bias, zero residual).
    if pad_c:
        x = jnp.pad(x, ((0, 0), (0, 0), (0, 0), (0, pad_c)))
        w1 = jnp.pad(w1, ((0, 0), (0, 0), (0, pad_c), (0, pad_c)))
        w2 = jnp.pad(w2, ((0, 0), (0, 0), (0, pad_c), (0, pad_c)))
        b1 = jnp.pad(b1, (0, pad_c))
        b2 = jnp.pad(b2, (0, pad_c))

    # (3, 3, Cp, Cp) -> (3, 3*Cp, Cp): pack the kx taps along the contraction
    # axis so the kernel's matmuls have K = 3*Cp.
    w1 = w1.reshape(3, 3 * Cp, Cp)
    w2 = w2.reshape(3, 3 * Cp, Cp)

    nb = N if batch_block is None else batch_block
    assert N % nb == 0, (N, nb)

    out = pl.pallas_call(
        _resblock_kernel,
        out_shape=jax.ShapeDtypeStruct((N, H, W, Cp), jnp.float32),
        grid_spec=pltpu.PrefetchScalarGridSpec(
            num_scalar_prefetch=0,
            grid=(N // nb,),
            in_specs=[
                pl.BlockSpec((nb, H, W, Cp), lambda n: (n, 0, 0, 0)),
                pl.BlockSpec((3, 3 * Cp, Cp), lambda n: (0, 0, 0)),
                pl.BlockSpec((1, Cp), lambda n: (0, 0)),
                pl.BlockSpec((3, 3 * Cp, Cp), lambda n: (0, 0, 0)),
                pl.BlockSpec((1, Cp), lambda n: (0, 0)),
            ],
            out_specs=pl.BlockSpec((nb, H, W, Cp), lambda n: (n, 0, 0, 0)),
            scratch_shapes=[
                pltpu.VMEM((nb, H + 2, W + 2, Cp), compute_dtype),
            ],
        ),
        compiler_params=pltpu.CompilerParams(
            dimension_semantics=("parallel",),
            vmem_limit_bytes=32 * 1024 * 1024,
        ),
    )(x.astype(compute_dtype),
      w1.astype(compute_dtype), b1.reshape(1, Cp).astype(jnp.float32),
      w2.astype(compute_dtype), b2.reshape(1, Cp).astype(jnp.float32))

    return jnp.transpose(out[..., :C], (0, 3, 1, 2))  # NHWC -> NCHW


def _reference_forward(x_nchw, params):
    """Plain-JAX reference (eval-mode BN) for correctness checking."""
    def conv(x, w, b):
        y = lax.conv_general_dilated(
            x, w, window_strides=(1, 1), padding="SAME",
            dimension_numbers=("NCHW", "OIHW", "NCHW"))
        return y + b[None, :, None, None]

    def bn(x, g, bta, m, v, eps=1e-5):
        g, bta, m, v = (a[None, :, None, None] for a in (g, bta, m, v))
        return (x - m) / jnp.sqrt(v + eps) * g + bta

    h = jax.nn.relu(bn(conv(x_nchw, params["conv1_w"], params["conv1_b"]),
                       params["bn1_gamma"], params["bn1_beta"],
                       params["bn1_mean"], params["bn1_var"]))
    y = bn(conv(h, params["conv2_w"], params["conv2_b"]),
           params["bn2_gamma"], params["bn2_beta"],
           params["bn2_mean"], params["bn2_var"])
    return jax.nn.relu(y + x_nchw)


def init_params(key, num_hidden):
    ks = jax.random.split(key, 12)
    fan_in = num_hidden * 3 * 3
    bound = 1.0 / jnp.sqrt(fan_in)
    return {
        "conv1_w": jax.random.uniform(ks[0], (num_hidden, num_hidden, 3, 3),
                                      jnp.float32, -bound, bound),
        "conv1_b": jax.random.uniform(ks[1], (num_hidden,), jnp.float32, -bound, bound),
        "conv2_w": jax.random.uniform(ks[2], (num_hidden, num_hidden, 3, 3),
                                      jnp.float32, -bound, bound),
        "conv2_b": jax.random.uniform(ks[3], (num_hidden,), jnp.float32, -bound, bound),
        "bn1_gamma": 1.0 + 0.1 * jax.random.normal(ks[4], (num_hidden,), jnp.float32),
        "bn1_beta": 0.1 * jax.random.normal(ks[5], (num_hidden,), jnp.float32),
        "bn1_mean": 0.05 * jax.random.normal(ks[6], (num_hidden,), jnp.float32),
        "bn1_var": jnp.abs(1.0 + 0.1 * jax.random.normal(ks[7], (num_hidden,), jnp.float32)),
        "bn2_gamma": 1.0 - 0.05 * jax.random.normal(ks[8], (num_hidden,), jnp.float32),
        "bn2_beta": -0.1 * jax.random.normal(ks[9], (num_hidden,), jnp.float32),
        "bn2_mean": -0.05 * jax.random.normal(ks[10], (num_hidden,), jnp.float32),
        "bn2_var": jnp.abs(0.8 + 0.1 * jax.random.normal(ks[11], (num_hidden,), jnp.float32)),
    }


if __name__ == "__main__":
    num_hidden, size, batch = 8, 16, 2
    key = jax.random.PRNGKey(0)
    kx, kp = jax.random.split(key)
    x = jax.random.normal(kx, (batch, num_hidden, size, size), jnp.float32)  # NCHW
    params = init_params(kp, num_hidden)

    ref = jax.block_until_ready(_reference_forward(x, params))

    # f32 path (exact semantics vs. the PyTorch module in eval mode).
    out = jax.block_until_ready(resblock_forward(x, params))
    assert out.shape == x.shape, (out.shape, x.shape)
    err = float(jnp.max(jnp.abs(out - ref)))
    assert err < 1e-4, err

    # bf16 MXU path (halved activation/weight DMA bytes; f32 accumulate/epilogue).
    out_bf16 = jax.block_until_ready(
        resblock_forward(x, params, compute_dtype=jnp.bfloat16))
    err_bf16 = float(jnp.max(jnp.abs(out_bf16 - ref)))
    assert err_bf16 < 2e-1, err_bf16

    print("KERNEL_OK")
</pallas_src>

<mosaic_0001>
module attributes {stable_mosaic.version = 11 : i64} {
  func.func @_resblock_kernel(%arg0: i32, %arg1: memref<2x16x16x128xf32, #tpu.memory_space<vmem>>, %arg2: memref<3x384x128xf32, #tpu.memory_space<vmem>>, %arg3: memref<1x128xf32, #tpu.memory_space<vmem>>, %arg4: memref<3x384x128xf32, #tpu.memory_space<vmem>>, %arg5: memref<1x128xf32, #tpu.memory_space<vmem>>, %arg6: memref<2x16x16x128xf32, #tpu.memory_space<vmem>>, %arg7: memref<2x18x18x128xf32, #tpu.memory_space<vmem>>) attributes {dimension_semantics = [#tpu.dimension_semantics<parallel>], iteration_bounds = array<i64: 1>, scalar_prefetch = 0 : i64, scratch_operands = 1 : i64, tpu.core_type = #tpu.core_type<tc>, window_params = [{transform_indices = @transform_0, window_bounds = array<i64: 2, 16, 16, 128>}, {pipeline_mode = #tpu.pipeline_mode<synchronous>, transform_indices = @transform_1, window_bounds = array<i64: 3, 384, 128>}, {pipeline_mode = #tpu.pipeline_mode<synchronous>, transform_indices = @transform_2, window_bounds = array<i64: 1, 128>}, {pipeline_mode = #tpu.pipeline_mode<synchronous>, transform_indices = @transform_3, window_bounds = array<i64: 3, 384, 128>}, {pipeline_mode = #tpu.pipeline_mode<synchronous>, transform_indices = @transform_4, window_bounds = array<i64: 1, 128>}, {transform_indices = @transform_5, window_bounds = array<i64: 2, 16, 16, 128>}]} {
    %cst = arith.constant 0.000000e+00 : f32
    %0 = vector.broadcast %cst : f32 to vector<2x1x18x128xf32>
    %c0 = arith.constant 0 : index
    %c0_0 = arith.constant 0 : index
    %c0_1 = arith.constant 0 : index
    %c0_2 = arith.constant 0 : index
    %1 = vector.load %arg7[%c0, %c0_0, %c0_1, %c0_2] : memref<2x18x18x128xf32, #tpu.memory_space<vmem>>, vector<2x1x18x128xf32>
    tpu.vector_store %arg7[%c0, %c0_0, %c0_1, %c0_2], %0 {strides = array<i32>} : memref<2x18x18x128xf32, #tpu.memory_space<vmem>>, vector<2x1x18x128xf32>,
    %cst_3 = arith.constant 0.000000e+00 : f32
    %2 = vector.broadcast %cst_3 : f32 to vector<2x1x18x128xf32>
    %c0_4 = arith.constant 0 : index
    %c17 = arith.constant 17 : index
    %c0_5 = arith.constant 0 : index
    %c0_6 = arith.constant 0 : index
    %3 = vector.load %arg7[%c0_4, %c17, %c0_5, %c0_6] : memref<2x18x18x128xf32, #tpu.memory_space<vmem>>, vector<2x1x18x128xf32>
    tpu.vector_store %arg7[%c0_4, %c17, %c0_5, %c0_6], %2 {strides = array<i32>} : memref<2x18x18x128xf32, #tpu.memory_space<vmem>>, vector<2x1x18x128xf32>,
    %cst_7 = arith.constant 0.000000e+00 : f32
    %4 = vector.broadcast %cst_7 : f32 to vector<2x18x1x128xf32>
    %c0_8 = arith.constant 0 : index
    %c0_9 = arith.constant 0 : index
    %c0_10 = arith.constant 0 : index
    %c0_11 = arith.constant 0 : index
    %5 = vector.load %arg7[%c0_8, %c0_9, %c0_10, %c0_11] : memref<2x18x18x128xf32, #tpu.memory_space<vmem>>, vector<2x18x1x128xf32>
    tpu.vector_store %arg7[%c0_8, %c0_9, %c0_10, %c0_11], %4 {strides = array<i32>} : memref<2x18x18x128xf32, #tpu.memory_space<vmem>>, vector<2x18x1x128xf32>,
    %cst_12 = arith.constant 0.000000e+00 : f32
    %6 = vector.broadcast %cst_12 : f32 to vector<2x18x1x128xf32>
    %c0_13 = arith.constant 0 : index
    %c0_14 = arith.constant 0 : index
    %c17_15 = arith.constant 17 : index
    %c0_16 = arith.constant 0 : index
    %7 = vector.load %arg7[%c0_13, %c0_14, %c17_15, %c0_16] : memref<2x18x18x128xf32, #tpu.memory_space<vmem>>, vector<2x18x1x128xf32>
    tpu.vector_store %arg7[%c0_13, %c0_14, %c17_15, %c0_16], %6 {strides = array<i32>} : memref<2x18x18x128xf32, #tpu.memory_space<vmem>>, vector<2x18x1x128xf32>,
    %c0_17 = arith.constant 0 : index
    %c0_18 = arith.constant 0 : index
    %c0_19 = arith.constant 0 : index
    %c0_20 = arith.constant 0 : index
    %8 = vector.load %arg1[%c0_17, %c0_18, %c0_19, %c0_20] : memref<2x16x16x128xf32, #tpu.memory_space<vmem>>, vector<2x16x16x128xf32>
    %c0_21 = arith.constant 0 : index
    %c1 = arith.constant 1 : index
    %c1_22 = arith.constant 1 : index
    %c0_23 = arith.constant 0 : index
    %9 = vector.load %arg7[%c0_21, %c1, %c1_22, %c0_23] : memref<2x18x18x128xf32, #tpu.memory_space<vmem>>, vector<2x16x16x128xf32>
    tpu.vector_store %arg7[%c0_21, %c1, %c1_22, %c0_23], %8 {strides = array<i32>} : memref<2x18x18x128xf32, #tpu.memory_space<vmem>>, vector<2x16x16x128xf32>,
    %cst_24 = arith.constant 0.000000e+00 : f32
    %10 = vector.broadcast %cst_24 : f32 to vector<512x128xf32>
    %c0_25 = arith.constant 0 : index
    %c0_26 = arith.constant 0 : index
    %c0_27 = arith.constant 0 : index
    %c0_28 = arith.constant 0 : index
    %11 = vector.load %arg7[%c0_25, %c0_26, %c0_27, %c0_28] : memref<2x18x18x128xf32, #tpu.memory_space<vmem>>, vector<2x16x18x128xf32>
    %12 = vector.extract_strided_slice %11 {offsets = [0, 0, 0, 0], sizes = [2, 16, 16, 128], strides = [1, 1, 1, 1]} : vector<2x16x18x128xf32> to vector<2x16x16x128xf32>
    %13 = vector.extract_strided_slice %11 {offsets = [0, 0, 1, 0], sizes = [2, 16, 16, 128], strides = [1, 1, 1, 1]} : vector<2x16x18x128xf32> to vector<2x16x16x128xf32>
    %14 = vector.extract_strided_slice %11 {offsets = [0, 0, 2, 0], sizes = [2, 16, 16, 128], strides = [1, 1, 1, 1]} : vector<2x16x18x128xf32> to vector<2x16x16x128xf32>
    %15 = tpu.concatenate %12, %13, %14 in 3 : vector<2x16x16x128xf32>, vector<2x16x16x128xf32>, vector<2x16x16x128xf32> -> vector<2x16x16x384xf32>
    %16 = vector.shape_cast %15 : vector<2x16x16x384xf32> to vector<512x384xf32>
    %c0_29 = arith.constant 0 : index
    %c0_30 = arith.constant 0 : index
    %c0_31 = arith.constant 0 : index
    %17 = vector.load %arg2[%c0_29, %c0_30, %c0_31] : memref<3x384x128xf32, #tpu.memory_space<vmem>>, vector<1x384x128xf32>
    %18 = vector.shape_cast %17 : vector<1x384x128xf32> to vector<384x128xf32>
    %cst_32 = arith.constant dense<0.000000e+00> : vector<512x128xf32>
    %19 = tpu.matmul %16, %18, %cst_32 {dimension_numbers = #tpu.dot_dimension_numbers<[1], [0], [0], [1], [0, 0, 1, 1], [], []>} : vector<512x384xf32>, vector<384x128xf32>, vector<512x128xf32> -> vector<512x128xf32>
    %20 = arith.addf %10, %19 : vector<512x128xf32>
    %c0_33 = arith.constant 0 : index
    %c1_34 = arith.constant 1 : index
    %c0_35 = arith.constant 0 : index
    %c0_36 = arith.constant 0 : index
    %21 = vector.load %arg7[%c0_33, %c1_34, %c0_35, %c0_36] : memref<2x18x18x128xf32, #tpu.memory_space<vmem>>, vector<2x16x18x128xf32>
    %22 = vector.extract_strided_slice %21 {offsets = [0, 0, 0, 0], sizes = [2, 16, 16, 128], strides = [1, 1, 1, 1]} : vector<2x16x18x128xf32> to vector<2x16x16x128xf32>
    %23 = vector.extract_strided_slice %21 {offsets = [0, 0, 1, 0], sizes = [2, 16, 16, 128], strides = [1, 1, 1, 1]} : vector<2x16x18x128xf32> to vector<2x16x16x128xf32>
    %24 = vector.extract_strided_slice %21 {offsets = [0, 0, 2, 0], sizes = [2, 16, 16, 128], strides = [1, 1, 1, 1]} : vector<2x16x18x128xf32> to vector<2x16x16x128xf32>
    %25 = tpu.concatenate %22, %23, %24 in 3 : vector<2x16x16x128xf32>, vector<2x16x16x128xf32>, vector<2x16x16x128xf32> -> vector<2x16x16x384xf32>
    %26 = vector.shape_cast %25 : vector<2x16x16x384xf32> to vector<512x384xf32>
    %c1_37 = arith.constant 1 : index
    %c0_38 = arith.constant 0 : index
    %c0_39 = arith.constant 0 : index
    %27 = vector.load %arg2[%c1_37, %c0_38, %c0_39] : memref<3x384x128xf32, #tpu.memory_space<vmem>>, vector<1x384x128xf32>
    %28 = vector.shape_cast %27 : vector<1x384x128xf32> to vector<384x128xf32>
    %cst_40 = arith.constant dense<0.000000e+00> : vector<512x128xf32>
    %29 = tpu.matmul %26, %28, %cst_40 {dimension_numbers = #tpu.dot_dimension_numbers<[1], [0], [0], [1], [0, 0, 1, 1], [], []>} : vector<512x384xf32>, vector<384x128xf32>, vector<512x128xf32> -> vector<512x128xf32>
    %30 = arith.addf %20, %29 : vector<512x128xf32>
    %c0_41 = arith.constant 0 : index
    %c2 = arith.constant 2 : index
    %c0_42 = arith.constant 0 : index
    %c0_43 = arith.constant 0 : index
    %31 = vector.load %arg7[%c0_41, %c2, %c0_42, %c0_43] : memref<2x18x18x128xf32, #tpu.memory_space<vmem>>, vector<2x16x18x128xf32>
    %32 = vector.extract_strided_slice %31 {offsets = [0, 0, 0, 0], sizes = [2, 16, 16, 128], strides = [1, 1, 1, 1]} : vector<2x16x18x128xf32> to vector<2x16x16x128xf32>
    %33 = vector.extract_strided_slice %31 {offsets = [0, 0, 1, 0], sizes = [2, 16, 16, 128], strides = [1, 1, 1, 1]} : vector<2x16x18x128xf32> to vector<2x16x16x128xf32>
    %34 = vector.extract_strided_slice %31 {offsets = [0, 0, 2, 0], sizes = [2, 16, 16, 128], strides = [1, 1, 1, 1]} : vector<2x16x18x128xf32> to vector<2x16x16x128xf32>
    %35 = tpu.concatenate %32, %33, %34 in 3 : vector<2x16x16x128xf32>, vector<2x16x16x128xf32>, vector<2x16x16x128xf32> -> vector<2x16x16x384xf32>
    %36 = vector.shape_cast %35 : vector<2x16x16x384xf32> to vector<512x384xf32>
    %c2_44 = arith.constant 2 : index
    %c0_45 = arith.constant 0 : index
    %c0_46 = arith.constant 0 : index
    %37 = vector.load %arg2[%c2_44, %c0_45, %c0_46] : memref<3x384x128xf32, #tpu.memory_space<vmem>>, vector<1x384x128xf32>
    %38 = vector.shape_cast %37 : vector<1x384x128xf32> to vector<384x128xf32>
    %cst_47 = arith.constant dense<0.000000e+00> : vector<512x128xf32>
    %39 = tpu.matmul %36, %38, %cst_47 {dimension_numbers = #tpu.dot_dimension_numbers<[1], [0], [0], [1], [0, 0, 1, 1], [], []>} : vector<512x384xf32>, vector<384x128xf32>, vector<512x128xf32> -> vector<512x128xf32>
    %40 = arith.addf %30, %39 : vector<512x128xf32>
    %c0_48 = arith.constant 0 : index
    %c0_49 = arith.constant 0 : index
    %41 = vector.load %arg3[%c0_48, %c0_49] : memref<1x128xf32, #tpu.memory_space<vmem>>, vector<1x128xf32>
    %42 = vector.broadcast %41 : vector<1x128xf32> to vector<512x128xf32>
    %43 = arith.addf %40, %42 : vector<512x128xf32>
    %cst_50 = arith.constant 0.000000e+00 : f32
    %44 = vector.broadcast %cst_50 : f32 to vector<512x128xf32>
    %45 = arith.maximumf %43, %44 : vector<512x128xf32>
    %46 = vector.shape_cast %45 : vector<512x128xf32> to vector<2x16x16x128xf32>
    %c0_51 = arith.constant 0 : index
    %c1_52 = arith.constant 1 : index
    %c1_53 = arith.constant 1 : index
    %c0_54 = arith.constant 0 : index
    %47 = vector.load %arg7[%c0_51, %c1_52, %c1_53, %c0_54] : memref<2x18x18x128xf32, #tpu.memory_space<vmem>>, vector<2x16x16x128xf32>
    tpu.vector_store %arg7[%c0_51, %c1_52, %c1_53, %c0_54], %46 {strides = array<i32>} : memref<2x18x18x128xf32, #tpu.memory_space<vmem>>, vector<2x16x16x128xf32>,
    %cst_55 = arith.constant 0.000000e+00 : f32
    %48 = vector.broadcast %cst_55 : f32 to vector<512x128xf32>
    %c0_56 = arith.constant 0 : index
    %c0_57 = arith.constant 0 : index
    %c0_58 = arith.constant 0 : index
    %c0_59 = arith.constant 0 : index
    %49 = vector.load %arg7[%c0_56, %c0_57, %c0_58, %c0_59] : memref<2x18x18x128xf32, #tpu.memory_space<vmem>>, vector<2x16x18x128xf32>
    %50 = vector.extract_strided_slice %49 {offsets = [0, 0, 0, 0], sizes = [2, 16, 16, 128], strides = [1, 1, 1, 1]} : vector<2x16x18x128xf32> to vector<2x16x16x128xf32>
    %51 = vector.extract_strided_slice %49 {offsets = [0, 0, 1, 0], sizes = [2, 16, 16, 128], strides = [1, 1, 1, 1]} : vector<2x16x18x128xf32> to vector<2x16x16x128xf32>
    %52 = vector.extract_strided_slice %49 {offsets = [0, 0, 2, 0], sizes = [2, 16, 16, 128], strides = [1, 1, 1, 1]} : vector<2x16x18x128xf32> to vector<2x16x16x128xf32>
    %53 = tpu.concatenate %50, %51, %52 in 3 : vector<2x16x16x128xf32>, vector<2x16x16x128xf32>, vector<2x16x16x128xf32> -> vector<2x16x16x384xf32>
    %54 = vector.shape_cast %53 : vector<2x16x16x384xf32> to vector<512x384xf32>
    %c0_60 = arith.constant 0 : index
    %c0_61 = arith.constant 0 : index
    %c0_62 = arith.constant 0 : index
    %55 = vector.load %arg4[%c0_60, %c0_61, %c0_62] : memref<3x384x128xf32, #tpu.memory_space<vmem>>, vector<1x384x128xf32>
    %56 = vector.shape_cast %55 : vector<1x384x128xf32> to vector<384x128xf32>
    %cst_63 = arith.constant dense<0.000000e+00> : vector<512x128xf32>
    %57 = tpu.matmul %54, %56, %cst_63 {dimension_numbers = #tpu.dot_dimension_numbers<[1], [0], [0], [1], [0, 0, 1, 1], [], []>} : vector<512x384xf32>, vector<384x128xf32>, vector<512x128xf32> -> vector<512x128xf32>
    %58 = arith.addf %48, %57 : vector<512x128xf32>
    %c0_64 = arith.constant 0 : index
    %c1_65 = arith.constant 1 : index
    %c0_66 = arith.constant 0 : index
    %c0_67 = arith.constant 0 : index
    %59 = vector.load %arg7[%c0_64, %c1_65, %c0_66, %c0_67] : memref<2x18x18x128xf32, #tpu.memory_space<vmem>>, vector<2x16x18x128xf32>
    %60 = vector.extract_strided_slice %59 {offsets = [0, 0, 0, 0], sizes = [2, 16, 16, 128], strides = [1, 1, 1, 1]} : vector<2x16x18x128xf32> to vector<2x16x16x128xf32>
    %61 = vector.extract_strided_slice %59 {offsets = [0, 0, 1, 0], sizes = [2, 16, 16, 128], strides = [1, 1, 1, 1]} : vector<2x16x18x128xf32> to vector<2x16x16x128xf32>
    %62 = vector.extract_strided_slice %59 {offsets = [0, 0, 2, 0], sizes = [2, 16, 16, 128], strides = [1, 1, 1, 1]} : vector<2x16x18x128xf32> to vector<2x16x16x128xf32>
    %63 = tpu.concatenate %60, %61, %62 in 3 : vector<2x16x16x128xf32>, vector<2x16x16x128xf32>, vector<2x16x16x128xf32> -> vector<2x16x16x384xf32>
    %64 = vector.shape_cast %63 : vector<2x16x16x384xf32> to vector<512x384xf32>
    %c1_68 = arith.constant 1 : index
    %c0_69 = arith.constant 0 : index
    %c0_70 = arith.constant 0 : index
    %65 = vector.load %arg4[%c1_68, %c0_69, %c0_70] : memref<3x384x128xf32, #tpu.memory_space<vmem>>, vector<1x384x128xf32>
    %66 = vector.shape_cast %65 : vector<1x384x128xf32> to vector<384x128xf32>
    %cst_71 = arith.constant dense<0.000000e+00> : vector<512x128xf32>
    %67 = tpu.matmul %64, %66, %cst_71 {dimension_numbers = #tpu.dot_dimension_numbers<[1], [0], [0], [1], [0, 0, 1, 1], [], []>} : vector<512x384xf32>, vector<384x128xf32>, vector<512x128xf32> -> vector<512x128xf32>
    %68 = arith.addf %58, %67 : vector<512x128xf32>
    %c0_72 = arith.constant 0 : index
    %c2_73 = arith.constant 2 : index
    %c0_74 = arith.constant 0 : index
    %c0_75 = arith.constant 0 : index
    %69 = vector.load %arg7[%c0_72, %c2_73, %c0_74, %c0_75] : memref<2x18x18x128xf32, #tpu.memory_space<vmem>>, vector<2x16x18x128xf32>
    %70 = vector.extract_strided_slice %69 {offsets = [0, 0, 0, 0], sizes = [2, 16, 16, 128], strides = [1, 1, 1, 1]} : vector<2x16x18x128xf32> to vector<2x16x16x128xf32>
    %71 = vector.extract_strided_slice %69 {offsets = [0, 0, 1, 0], sizes = [2, 16, 16, 128], strides = [1, 1, 1, 1]} : vector<2x16x18x128xf32> to vector<2x16x16x128xf32>
    %72 = vector.extract_strided_slice %69 {offsets = [0, 0, 2, 0], sizes = [2, 16, 16, 128], strides = [1, 1, 1, 1]} : vector<2x16x18x128xf32> to vector<2x16x16x128xf32>
    %73 = tpu.concatenate %70, %71, %72 in 3 : vector<2x16x16x128xf32>, vector<2x16x16x128xf32>, vector<2x16x16x128xf32> -> vector<2x16x16x384xf32>
    %74 = vector.shape_cast %73 : vector<2x16x16x384xf32> to vector<512x384xf32>
    %c2_76 = arith.constant 2 : index
    %c0_77 = arith.constant 0 : index
    %c0_78 = arith.constant 0 : index
    %75 = vector.load %arg4[%c2_76, %c0_77, %c0_78] : memref<3x384x128xf32, #tpu.memory_space<vmem>>, vector<1x384x128xf32>
    %76 = vector.shape_cast %75 : vector<1x384x128xf32> to vector<384x128xf32>
    %cst_79 = arith.constant dense<0.000000e+00> : vector<512x128xf32>
    %77 = tpu.matmul %74, %76, %cst_79 {dimension_numbers = #tpu.dot_dimension_numbers<[1], [0], [0], [1], [0, 0, 1, 1], [], []>} : vector<512x384xf32>, vector<384x128xf32>, vector<512x128xf32> -> vector<512x128xf32>
    %78 = arith.addf %68, %77 : vector<512x128xf32>
    %c0_80 = arith.constant 0 : index
    %c0_81 = arith.constant 0 : index
    %79 = vector.load %arg5[%c0_80, %c0_81] : memref<1x128xf32, #tpu.memory_space<vmem>>, vector<1x128xf32>
    %80 = vector.broadcast %79 : vector<1x128xf32> to vector<512x128xf32>
    %81 = arith.addf %78, %80 : vector<512x128xf32>
    %c0_82 = arith.constant 0 : index
    %c0_83 = arith.constant 0 : index
    %c0_84 = arith.constant 0 : index
    %c0_85 = arith.constant 0 : index
    %82 = vector.load %arg1[%c0_82, %c0_83, %c0_84, %c0_85] : memref<2x16x16x128xf32, #tpu.memory_space<vmem>>, vector<2x16x16x128xf32>
    %83 = vector.shape_cast %82 : vector<2x16x16x128xf32> to vector<512x128xf32>
    %84 = arith.addf %81, %83 : vector<512x128xf32>
    %cst_86 = arith.constant 0.000000e+00 : f32
    %85 = vector.broadcast %cst_86 : f32 to vector<512x128xf32>
    %86 = arith.maximumf %84, %85 : vector<512x128xf32>
    %87 = vector.shape_cast %86 : vector<512x128xf32> to vector<2x16x16x128xf32>
    %c0_87 = arith.constant 0 : index
    %c0_88 = arith.constant 0 : index
    %c0_89 = arith.constant 0 : index
    %c0_90 = arith.constant 0 : index
    %88 = vector.load %arg6[%c0_87, %c0_88, %c0_89, %c0_90] : memref<2x16x16x128xf32, #tpu.memory_space<vmem>>, vector<2x16x16x128xf32>
    tpu.vector_store %arg6[%c0_87, %c0_88, %c0_89, %c0_90], %87 {strides = array<i32>} : memref<2x16x16x128xf32, #tpu.memory_space<vmem>>, vector<2x16x16x128xf32>,
    return
  }
  func.func @transform_0(%arg0: i32) -> (i32, i32, i32, i32) {
    %c0_i32 = arith.constant 0 : i32
    %c0_i32_0 = arith.constant 0 : i32
    %c0_i32_1 = arith.constant 0 : i32
    %c0_i32_2 = arith.constant 0 : i32
    return %arg0, %c0_i32, %c0_i32_0, %c0_i32_1 : i32, i32, i32, i32
  }
  func.func @transform_1(%arg0: i32) -> (i32, i32, i32) {
    %c0_i32 = arith.constant 0 : i32
    %c0_i32_0 = arith.constant 0 : i32
    %c0_i32_1 = arith.constant 0 : i32
    %c0_i32_2 = arith.constant 0 : i32
    return %c0_i32, %c0_i32_0, %c0_i32_1 : i32, i32, i32
  }
  func.func @transform_2(%arg0: i32) -> (i32, i32) {
    %c0_i32 = arith.constant 0 : i32
    %c0_i32_0 = arith.constant 0 : i32
    %c0_i32_1 = arith.constant 0 : i32
    return %c0_i32, %c0_i32_0 : i32, i32
  }
  func.func @transform_3(%arg0: i32) -> (i32, i32, i32) {
    %c0_i32 = arith.constant 0 : i32
    %c0_i32_0 = arith.constant 0 : i32
    %c0_i32_1 = arith.constant 0 : i32
    %c0_i32_2 = arith.constant 0 : i32
    return %c0_i32, %c0_i32_0, %c0_i32_1 : i32, i32, i32
  }
  func.func @transform_4(%arg0: i32) -> (i32, i32) {
    %c0_i32 = arith.constant 0 : i32
    %c0_i32_0 = arith.constant 0 : i32
    %c0_i32_1 = arith.constant 0 : i32
    return %c0_i32, %c0_i32_0 : i32, i32
  }
  func.func @transform_5(%arg0: i32) -> (i32, i32, i32, i32) {
    %c0_i32 = arith.constant 0 : i32
    %c0_i32_0 = arith.constant 0 : i32
    %c0_i32_1 = arith.constant 0 : i32
    %c0_i32_2 = arith.constant 0 : i32
    return %arg0, %c0_i32, %c0_i32_0, %c0_i32_1 : i32, i32, i32, i32
  }
}

</mosaic_0001>

<bundles_post_ra>
// kernel: tpu_custom_call.1
= control target key start
LH: loop header
LB: loop body
LE: loop exit
PB: predicated region body
PF: predicated region fallthrough
CT: control target
= control target key end

     0   :  { %10 = vsyncpa [#allocation4], 0  ;;  %s17186_s0 = inlined_call_operand.hbm [shape: f32[2,16,16,128], index: 0, kind: input, shape index: {}]   ;;  %s17187_s1 = inlined_call_operand.hbm [shape: f32[3,384,128], index: 1, kind: input, shape index: {}]   ;;  %s17188_s2 = inlined_call_operand.vmem [shape: f32[1,128], index: 2, kind: input, shape index: {}]   ;;  %s17189_s3 = inlined_call_operand.hbm [shape: f32[3,384,128], index: 3, kind: input, shape index: {}]   ;;  %s17190_s4 = inlined_call_operand.vmem [shape: f32[1,128], index: 4, kind: input, shape index: {}]   ;;  %s17191_s5 = inlined_call_operand.hbm [shape: f32[2,16,16,128], index: 5, kind: output, shape index: {}]  }
   0x1   :  { %11 = vsyncpa [#allocation7], 0 }
   0x2   :  { %12 = vsyncpa [#allocation5], 0  ;;  %s11590_s18 = smov [#allocation6]   ;;  %s11591_s20 = smov [#allocation3]  }
   0x3   :  { %s30_s19 = sshll.u32 %s11590_s18, 4  ;;  %s18_s21 = sshll.u32 %s11591_s20, 4  ;;  %s31_s19 = int_to_ptr.vmem [resolvable:$true] %s30_s19  ;;  %s11628_s21 = int_to_ptr.vmem [resolvable:$true] %s18_s21 }
   0x4   :  { %s11496_s24 = scalar_lea.hbm %s17187_s1, 18432 }
   0x5   :  { %p11497_p0 = scmp.ne.s32.totalorder %s17187_s1, %s11496_s24  ;;  %p11500_p1 = scmp.lt.u32.totalorder %s11496_s24, %s17187_s1 }
   0x7   :  { %p11502_p2 = pnand %p11500_p1, %p11497_p0 }
   0x9   :  { %11505 = shalt.err (!%p11502_p2)
}
   0xa   :  { %s11506_s29 = scalar_lea.vmem %s31_s19, 18432  ;;  %p11511_p4 = scmp.lt.s32.totalorder %s31_s19, %s31_s19 }
   0xb   :  { %p11507_p3 = scmp.ne.s32.totalorder %s31_s19, %s11506_s29  ;;  %p11512_p5 = scmp.lt.s32.totalorder %s11506_s29, %s11506_s29 }
   0xd   :  { %p11513_p6 = por %p11512_p5, %p11511_p4 }
   0xf   :  { %p11514_p7 = pnand %p11513_p6, %p11507_p3 }
  0x11   :  { %11517 = shalt.err (!%p11514_p7)
}
  0x12   :  { %s11592_s30 = smov 128   ;;  %s11593_s6 = smov 8  }
  0x13   :  { %36 = dma.hbm_to_vmem [thread:$0]  %s17187_s1, 18432, %s31_s19, [#allocation7], %s11592_s30, %s11592_s30, %s11593_s6  }
  0x14   :  { %s11518_s11 = scalar_lea.hbm %s17186_s0, 8192 }
  0x15   :  { %p11519_p8 = scmp.ne.s32.totalorder %s17186_s0, %s11518_s11  ;;  %p11522_p9 = scmp.lt.u32.totalorder %s11518_s11, %s17186_s0 }
  0x17   :  { %p11524_p10 = pnand %p11522_p9, %p11519_p8 }
  0x19   :  { %11527 = shalt.err (!%p11524_p10)
}
  0x1a   :  { %s11528_s16 = scalar_lea.vmem %s11628_s21, 8192  ;;  %p11533_p12 = scmp.lt.s32.totalorder %s11628_s21, %s11628_s21 }
  0x1b   :  { %p11529_p11 = scmp.ne.s32.totalorder %s11628_s21, %s11528_s16  ;;  %p11534_p13 = scmp.lt.s32.totalorder %s11528_s16, %s11528_s16 }
  0x1d   :  { %p11535_p0 = por %p11534_p13, %p11533_p12 }
  0x1f   :  { %p11536_p1 = pnand %p11535_p0, %p11529_p11 }
  0x21   :  { %11539 = shalt.err (!%p11536_p1)
}
  0x22   :  { %24 = dma.hbm_to_vmem [thread:$0]  %s17186_s0, 8192, %s11628_s21, [#allocation4], %s11592_s30, %s11592_s30, %s11593_s6  }
  0x23   :  { %s11594_s18 = smov [#allocation8]   ;;  %s11540_s23 = scalar_lea.hbm %s17189_s3, 18432 }
  0x24   :  { %s44_s19 = sshll.u32 %s11594_s18, 4  ;;  %p11541_p2 = scmp.ne.s32.totalorder %s17189_s3, %s11540_s23  ;;  %s45_s19 = int_to_ptr.vmem [resolvable:$true] %s44_s19 }
  0x25   :  { %p11544_p3 = scmp.lt.u32.totalorder %s11540_s23, %s17189_s3 }
  0x27   :  { %p11546_p4 = pnand %p11544_p3, %p11541_p2 }
  0x29   :  { %11549 = shalt.err (!%p11546_p4)
}
  0x2a   :  { %s11550_s28 = scalar_lea.vmem %s45_s19, 18432  ;;  %p11555_p6 = scmp.lt.s32.totalorder %s45_s19, %s45_s19 }
  0x2b   :  { %p11551_p5 = scmp.ne.s32.totalorder %s45_s19, %s11550_s28  ;;  %p11556_p7 = scmp.lt.s32.totalorder %s11550_s28, %s11550_s28 }
  0x2d   :  { %p11557_p8 = por %p11556_p7, %p11555_p6 }
  0x2f   :  { %p11558_p9 = pnand %p11557_p8, %p11551_p5 }
  0x31   :  { %11561 = shalt.err (!%p11558_p9)
}
  0x32   :  { %50 = dma.hbm_to_vmem [thread:$0]  %s17189_s3, 18432, %s45_s19, [#allocation7], %s11592_s30, %s11592_s30, %s11593_s6  }
  0x33   :  { %11584 = dma.done.wait [#allocation4], 8192  }
  0x34   :  { %11585 = vsyncadd [#allocation4], 4294959104 }
  0x35   :  { %11586 = dma.done.wait [#allocation7], 36864  }
  0x36   :  { %11587 = vsyncadd [#allocation7], 4294930432  ;;  %v17192_v0 = vmov 0.0|0.0   ;;  %v11596_v1 = vmov 0.0   ;;  %v1607_v2 = vld [vmem:[#allocation6 + $0x180] sm:$0xff]  ;;  %v1608_v3 = vld [vmem:[#allocation6 + $0x188] sm:$0xff] }
  0x37   :  { %10953 = vmatprep.subr.bf16.mxu0 %v17192_v0  ;;  %76 = vst [vmem:[#allocation2 + $0x18] sm:$0x1] %v11596_v1  ;;  %62 = vst [vmem:[#allocation2] sm:$0xff] %v11596_v1  ;;  %v1639_v4 = vld [vmem:[#allocation6 + $0x280] sm:$0xff]  ;;  %v10954_v5 = vpack.c.bf16 %v1608_v3, %v1607_v2  ;;  %v1640_v6 = vld [vmem:[#allocation6 + $0x288] sm:$0xff]  ;;  %vm693_vm0 = vcmask 1045504  }
  0x38   :  { %63 = vst [vmem:[#allocation2 + $0x8] sm:$0xff] %v11596_v1  ;;  %64 = vst [vmem:[#allocation2 + $0x10] sm:$0x3] %v11596_v1  ;;  %v1609_v7 = vld [vmem:[#allocation6 + $0x190] sm:$0xff]  ;;  %v1610_v8 = vld [vmem:[#allocation6 + $0x198] sm:$0xff]  ;;  %v11001_v9 = vpack.c.bf16 %v1640_v6, %v1639_v4  ;;  %vm468_vm1 = vcmask 1046528  }
  0x39   :  { %65 = vst [vmem:[#allocation2 + $0x1b0] sm:$0xff] %v11596_v1  ;;  %67 = vst [vmem:[#allocation2 + $0x1c0] sm:$0x3] %v11596_v1  ;;  %v1641_v10 = vld [vmem:[#allocation6 + $0x290] sm:$0xff]  ;;  %v1642_v11 = vld [vmem:[#allocation6 + $0x298] sm:$0xff]  ;;  %10955 = vmatpush1.bf16.msra.mxu0 %v10954_v5  ;;  %v10957_v12 = vpack.c.bf16 %v1610_v8, %v1609_v7 }
  0x3a   :  { %69 = vst [vmem:[#allocation2 + $0x198] sm:$0xff] %v11596_v1  ;;  %71 = vst [vmem:[#allocation2 + $0x1a8] sm:$0x3] %v11596_v1  ;;  %v11005_v13 = vpack.c.bf16 %v1642_v11, %v1641_v10  ;;  %v1643_v14 = vld [vmem:[#allocation6 + $0x2a0] sm:$0xff]  ;;  %v1644_v15 = vld [vmem:[#allocation6 + $0x2a8] sm:$0xff]  ;;  %11002 = vmatprep.subr.bf16.mxu1 %v11001_v9  ;;  %10956 = vmatprep.subr.bf16.mxu0 %v17192_v0 }
  0x3b   :  { %72 = vst [vmem:[#allocation2 + $0x348] sm:$0xff] %v11596_v1  ;;  %74 = vst [vmem:[#allocation2 + $0x358] sm:$0x3] %v11596_v1  ;;  %v1611_v16 = vld [vmem:[#allocation6 + $0x1a0] sm:$0xff]  ;;  %v1612_v17 = vld [vmem:[#allocation6 + $0x1a8] sm:$0xff]  ;;  %11004 = vmatpush3.bf16.msra.mxu1 %v11001_v9  ;;  %v11009_v18 = vpack.c.bf16 %v1644_v15, %v1643_v14 }
  0x3c   :  { %77 = vst [vmem:[#allocation2 + $0x30] sm:$0x1] %v11596_v1  ;;  %78 = vst [vmem:[#allocation2 + $0x48] sm:$0x1] %v11596_v1  ;;  %11006 = vmatprep.subr.bf16.mxu1 %v11005_v13  ;;  %v10960_v19 = vpack.c.bf16 %v1612_v17, %v1611_v16  ;;  %v1645_v20 = vld [vmem:[#allocation6 + $0x2b0] sm:$0xff]  ;;  %v1646_v21 = vld [vmem:[#allocation6 + $0x2b8] sm:$0xff] }
  0x3d   :  { %79 = vst [vmem:[#allocation2 + $0x60] sm:$0x1] %v11596_v1  ;;  %80 = vst [vmem:[#allocation2 + $0x78] sm:$0x1] %v11596_v1  ;;  %10958 = vmatpush1.bf16.msra.mxu0 %v10957_v12  ;;  %v1613_v22 = vld [vmem:[#allocation6 + $0x1b0] sm:$0xff]  ;;  %v1614_v23 = vld [vmem:[#allocation6 + $0x1b8] sm:$0xff]  ;;  %v11013_v24 = vpack.c.bf16 %v1646_v21, %v1645_v20 }
  0x3e   :  { %81 = vst [vmem:[#allocation2 + $0x90] sm:$0x1] %v11596_v1  ;;  %82 = vst [vmem:[#allocation2 + $0xa8] sm:$0x1] %v11596_v1  ;;  %10959 = vmatprep.subr.bf16.mxu0 %v17192_v0  ;;  %v1615_v25 = vld [vmem:[#allocation6 + $0x1c0] sm:$0xff]  ;;  %v10963_v27 = vpack.c.bf16 %v1614_v23, %v1613_v22  ;;  %v1648_v29 = vld [vmem:[#allocation6 + $0x2c8] sm:$0xff] }
  0x3f   :  { %83 = vst [vmem:[#allocation2 + $0xc0] sm:$0x1] %v11596_v1  ;;  %84 = vst [vmem:[#allocation2 + $0xd8] sm:$0x1] %v11596_v1  ;;  %11008 = vmatpush3.bf16.msra.mxu1 %v11005_v13  ;;  %v147_v26 = vld [vmem:[#allocation3] sm:$0xff]  ;;  %v148_v30 = vld [vmem:[#allocation3 + $0x8] sm:$0xff] }
  0x40   :  { %85 = vst [vmem:[#allocation2 + $0xf0] sm:$0x1] %v11596_v1  ;;  %86 = vst [vmem:[#allocation2 + $0x108] sm:$0x1] %v11596_v1  ;;  %11010 = vmatprep.subr.bf16.mxu1 %v11009_v18  ;;  %v1647_v28 = vld [vmem:[#allocation6 + $0x2c0] sm:$0xff]  ;;  %v1616_v31 = vld [vmem:[#allocation6 + $0x1c8] sm:$0xff] }
  0x41   :  { %87 = vst [vmem:[#allocation2 + $0x120] sm:$0x1] %v11596_v1  ;;  %88 = vst [vmem:[#allocation2 + $0x138] sm:$0x1] %v11596_v1  ;;  %10961 = vmatpush1.bf16.msra.mxu0 %v10960_v19  ;;  %v149_v32 = vld [vmem:[#allocation3 + $0x10] sm:$0xff]  ;;  %v150_v33 = vld [vmem:[#allocation3 + $0x18] sm:$0xff]  ;;  %v11017_v36 = vpack.c.bf16 %v1648_v29, %v1647_v28  ;;  %v10966_v39 = vpack.c.bf16 %v1616_v31, %v1615_v25 }
  0x42   :  { %89 = vst [vmem:[#allocation2 + $0x150] sm:$0x1] %v11596_v1  ;;  %90 = vst [vmem:[#allocation2 + $0x168] sm:$0x1] %v11596_v1  ;;  %10962 = vmatprep.subr.bf16.mxu0 %v17192_v0  ;;  %v151_v34 = vld [vmem:[#allocation3 + $0x20] sm:$0xff]  ;;  %v152_v35 = vld [vmem:[#allocation3 + $0x28] sm:$0xff] }
  0x43   :  { %91 = vst [vmem:[#allocation2 + $0x180] sm:$0x1] %v11596_v1  ;;  %94 = vst [vmem:[#allocation2 + $0x1c8] sm:$0x1] %v11596_v1  ;;  %11012 = vmatpush3.bf16.msra.mxu1 %v11009_v18  ;;  %v1617_v37 = vld [vmem:[#allocation6 + $0x1d0] sm:$0xff]  ;;  %v1650_v41 = vld [vmem:[#allocation6 + $0x2d8] sm:$0xff] }
  0x44   :  { %95 = vst [vmem:[#allocation2 + $0x1e0] sm:$0x1] %v11596_v1  ;;  %96 = vst [vmem:[#allocation2 + $0x1f8] sm:$0x1] %v11596_v1  ;;  %11014 = vmatprep.subr.bf16.mxu1 %v11013_v24  ;;  %v153_v38 = vld [vmem:[#allocation3 + $0x30] sm:$0xff]  ;;  %v154_v42 = vld [vmem:[#allocation3 + $0x38] sm:$0xff] }
  0x45   :  { %97 = vst [vmem:[#allocation2 + $0x210] sm:$0x1] %v11596_v1  ;;  %98 = vst [vmem:[#allocation2 + $0x228] sm:$0x1] %v11596_v1  ;;  %10964 = vmatpush1.bf16.msra.mxu0 %v10963_v27  ;;  %v1649_v40 = vld [vmem:[#allocation6 + $0x2d0] sm:$0xff]  ;;  %v1618_v43 = vld [vmem:[#allocation6 + $0x1d8] sm:$0xff] }
  0x46   :  { %99 = vst [vmem:[#allocation2 + $0x240] sm:$0x1] %v11596_v1  ;;  %100 = vst [vmem:[#allocation2 + $0x258] sm:$0x1] %v11596_v1  ;;  %10965 = vmatprep.subr.bf16.mxu0 %v17192_v0  ;;  %v155_v44 = vld [vmem:[#allocation3 + $0x40] sm:$0xff]  ;;  %v156_v45 = vld [vmem:[#allocation3 + $0x48] sm:$0xff]  ;;  %v11021_v48 = vpack.c.bf16 %v1650_v41, %v1649_v40  ;;  %v10969_v51 = vpack.c.bf16 %v1618_v43, %v1617_v37 }
  0x47   :  { %101 = vst [vmem:[#allocation2 + $0x270] sm:$0x1] %v11596_v1  ;;  %102 = vst [vmem:[#allocation2 + $0x288] sm:$0x1] %v11596_v1  ;;  %11016 = vmatpush3.bf16.msra.mxu1 %v11013_v24  ;;  %v157_v46 = vld [vmem:[#allocation3 + $0x50] sm:$0xff]  ;;  %v158_v47 = vld [vmem:[#allocation3 + $0x58] sm:$0xff] }
  0x48   :  { %103 = vst [vmem:[#allocation2 + $0x2a0] sm:$0x1] %v11596_v1  ;;  %104 = vst [vmem:[#allocation2 + $0x2b8] sm:$0x1] %v11596_v1  ;;  %11018 = vmatprep.subr.bf16.mxu1 %v11017_v36  ;;  %v1651_v49 = vld [vmem:[#allocation6 + $0x2e0] sm:$0xff]  ;;  %v1652_v52 = vld [vmem:[#allocation6 + $0x2e8] sm:$0xff] }
  0x49   :  { %105 = vst [vmem:[#allocation2 + $0x2d0] sm:$0x1] %v11596_v1  ;;  %106 = vst [vmem:[#allocation2 + $0x2e8] sm:$0x1] %v11596_v1  ;;  %10967 = vmatpush1.bf16.msra.mxu0 %v10966_v39  ;;  %v159_v55 = vld [vmem:[#allocation3 + $0x60] sm:$0xff]  ;;  %v1620_v57 = vld [vmem:[#allocation6 + $0x1e8] sm:$0xff]  ;;  %v11025_v60 = vpack.c.bf16 %v1652_v52, %v1651_v49 }
  0x4a   :  { %107 = vst [vmem:[#allocation2 + $0x300] sm:$0x1] %v11596_v1  ;;  %108 = vst [vmem:[#allocation2 + $0x318] sm:$0x1] %v11596_v1  ;;  %10968 = vmatprep.subr.bf16.mxu0 %v17192_v0  ;;  %v1619_v56 = vld [vmem:[#allocation6 + $0x1e0] sm:$0xff]  ;;  %v160_v59 = vld [vmem:[#allocation3 + $0x68] sm:$0xff] }
  0x4b   :  { %109 = vst [vmem:[#allocation2 + $0x330] sm:$0x1] %v11596_v1  ;;  %112 = vst [vmem:[#allocation2 + $0x29] sm:$0x1] %v11596_v1  ;;  %11020 = vmatpush3.bf16.msra.mxu1 %v11017_v36  ;;  %v10972_v62 = vpack.c.bf16 %v1620_v57, %v1619_v56  ;;  %v1653_v63 = vld [vmem:[#allocation6 + $0x2f0] sm:$0xff]  ;;  %v1622_v3 = vld [vmem:[#allocation6 + $0x1f8] sm:$0xff] }
  0x4c   :  { %113 = vst [vmem:[#allocation2 + $0x41] sm:$0x1] %v11596_v1  ;;  %114 = vst [vmem:[#allocation2 + $0x59] sm:$0x1] %v11596_v1  ;;  %11022 = vmatprep.subr.bf16.mxu1 %v11021_v48  ;;  %v1621_v2 = vld [vmem:[#allocation6 + $0x1f0] sm:$0xff]  ;;  %v162_v8 = vld [vmem:[#allocation3 + $0x78] sm:$0xff] }
  0x4d   :  { %115 = vst [vmem:[#allocation2 + $0x71] sm:$0x1] %v11596_v1  ;;  %116 = vst [vmem:[#allocation2 + $0x89] sm:$0x1] %v11596_v1  ;;  %10970 = vmatpush1.bf16.msra.mxu0 %v10969_v51  ;;  %v161_v4 = vld [vmem:[#allocation3 + $0x70] sm:$0xff]  ;;  %v10975_v9 = vpack.c.bf16 %v1622_v3, %v1621_v2  ;;  %v1623_v10 = vld [vmem:[#allocation6 + $0x200] sm:$0xff] }
  0x4e   :  { %117 = vst [vmem:[#allocation2 + $0xa1] sm:$0x1] %v11596_v1  ;;  %118 = vst [vmem:[#allocation2 + $0xb9] sm:$0x1] %v11596_v1  ;;  %10971 = vmatprep.subr.bf16.mxu0 %v17192_v0  ;;  %v1624_v14 = vld [vmem:[#allocation6 + $0x208] sm:$0xff]  ;;  %v163_v15 = vld [vmem:[#allocation3 + $0x80] sm:$0xff] }
  0x4f   :  { %119 = vst [vmem:[#allocation2 + $0xd1] sm:$0x1] %v11596_v1  ;;  %120 = vst [vmem:[#allocation2 + $0xe9] sm:$0x1] %v11596_v1  ;;  %11024 = vmatpush3.bf16.msra.mxu1 %v11021_v48  ;;  %v164_v16 = vld [vmem:[#allocation3 + $0x88] sm:$0xff]  ;;  %v918_v19 = vld [vmem:[#allocation6] sm:$0xff]  ;;  %v10978_v28 = vpack.c.bf16 %v1624_v14, %v1623_v10 }
  0x50   :  { %121 = vst [vmem:[#allocation2 + $0x101] sm:$0x1] %v11596_v1  ;;  %122 = vst [vmem:[#allocation2 + $0x119] sm:$0x1] %v11596_v1  ;;  %11026 = vmatprep.subr.bf16.mxu1 %v11025_v60  ;;  %v11794_v23 = vld [vmem:[#allocation6 + $0x210] sm:$0xff]  ;;  %v1626_v24 = vld [vmem:[#allocation6 + $0x218] sm:$0xff] }
  0x51   :  { %123 = vst [vmem:[#allocation2 + $0x131] sm:$0x1] %v11596_v1  ;;  %124 = vst [vmem:[#allocation2 + $0x149] sm:$0x1] %v11596_v1  ;;  %10973 = vmatpush1.bf16.msra.mxu0 %v10972_v62  ;;  %v919_v25 = vld [vmem:[#allocation6 + $0x8] sm:$0xff]  ;;  %v166_v27 = vld [vmem:[#allocation3 + $0x98] sm:$0xff] }
  0x52   :  { %125 = vst [vmem:[#allocation2 + $0x161] sm:$0x1] %v11596_v1  ;;  %126 = vst [vmem:[#allocation2 + $0x179] sm:$0x1] %v11596_v1  ;;  %10974 = vmatprep.subr.bf16.mxu0 %v17192_v0  ;;  %v167_v31 = vld [vmem:[#allocation3 + $0xa0] sm:$0xff]  ;;  %v11034_v40 = vpack.c.bf16 %v919_v25, %v918_v19  ;;  %v172_v48 = vld [vmem:[#allocation3 + $0xc8] sm:$0xff] }
  0x53   :  { %127 = vst [vmem:[#allocation2 + $0x191] sm:$0x1] %v11596_v1  ;;  %130 = vst [vmem:[#allocation2 + $0x1d9] sm:$0x1] %v11596_v1  ;;  %11028 = vmatpush3.bf16.msra.mxu1 %v11025_v60  ;;  %v173_v49 = vld [vmem:[#allocation3 + $0xd0] sm:$0xff]  ;;  %v174_v51 = vld [vmem:[#allocation3 + $0xd8] sm:$0xff] }
  0x54   :  { %131 = vst [vmem:[#allocation2 + $0x1f1] sm:$0x1] %v11596_v1  ;;  %132 = vst [vmem:[#allocation2 + $0x209] sm:$0x1] %v11596_v1  ;;  %v1627_v52 = vld [vmem:[#allocation6 + $0x220] sm:$0xff]  ;;  %v923_v2 = vld [vmem:[#allocation6 + $0x28] sm:$0xff] }
  0x55   :  { %133 = vst [vmem:[#allocation2 + $0x221] sm:$0x1] %v11596_v1  ;;  %134 = vst [vmem:[#allocation2 + $0x239] sm:$0x1] %v11596_v1  ;;  %10976 = vmatpush1.bf16.msra.mxu0 %v10975_v9  ;;  %v1630_v9 = vld [vmem:[#allocation6 + $0x238] sm:$0xff] }
  0x56   :  { %135 = vst [vmem:[#allocation2 + $0x251] sm:$0x1] %v11596_v1  ;;  %136 = vst [vmem:[#allocation2 + $0x269] sm:$0x1] %v11596_v1  ;;  %10977 = vmatprep.subr.bf16.mxu0 %v17192_v0 }
  0x57   :  { %137 = vst [vmem:[#allocation2 + $0x281] sm:$0x1] %v11596_v1  ;;  %138 = vst [vmem:[#allocation2 + $0x299] sm:$0x1] %v11596_v1 }
  0x58   :  { %139 = vst [vmem:[#allocation2 + $0x2b1] sm:$0x1] %v11596_v1  ;;  %140 = vst [vmem:[#allocation2 + $0x2c9] sm:$0x1] %v11596_v1 }
  0x59   :  { %141 = vst [vmem:[#allocation2 + $0x2e1] sm:$0x1] %v11596_v1  ;;  %142 = vst [vmem:[#allocation2 + $0x2f9] sm:$0x1] %v11596_v1  ;;  %10979 = vmatpush1.bf16.msra.mxu0 %v10978_v28  ;;  %v1632_v28 = vld [vmem:[#allocation6 + $0x248] sm:$0xff] }
  0x5a   :  { %143 = vst [vmem:[#allocation2 + $0x311] sm:$0x1] %v11596_v1  ;;  %144 = vst [vmem:[#allocation2 + $0x329] sm:$0x1] %v11596_v1  ;;  %10980 = vmatprep.subr.bf16.mxu0 %v17192_v0 }
  0x5b   :  { %145 = vst [vmem:[#allocation2 + $0x341] sm:$0x1] %v11596_v1  ;;  %75 = vst [vmem:[#allocation2] sm:$0x1] %v11596_v1 }
  0x5c   :  { %92 = vst [vmem:[#allocation2 + $0x198] sm:$0x1] %v11596_v1  ;;  %93 = vst [vmem:[#allocation2 + $0x1b0] sm:$0x1] %v11596_v1 }
  0x5d   :  { %110 = vst [vmem:[#allocation2 + $0x348] sm:$0x1] %v11596_v1  ;;  %111 = vst [vmem:[#allocation2 + $0x11] sm:$0x1] %v11596_v1 }
  0x5e   :  { %128 = vst [vmem:[#allocation2 + $0x1a9] sm:$0x1] %v11596_v1  ;;  %129 = vst [vmem:[#allocation2 + $0x1c1] sm:$0x1] %v11596_v1 }
  0x5f   :  { %146 = vst [vmem:[#allocation2 + $0x359] sm:$0x1] %v11596_v1  ;;  %212 = vst [vmem:[#allocation2 + $0x19] sm:$0xff] %v147_v26  ;;  %v1654_v1 = vld [vmem:[#allocation6 + $0x2f8] sm:$0xff]  ;;  %v165_v26 = vld [vmem:[#allocation3 + $0x90] sm:$0xff] }
  0x60   :  { %213 = vst [vmem:[#allocation2 + $0x21] sm:$0xff] %v148_v30  ;;  %214 = vst [vmem:[#allocation2 + $0x31] sm:$0xff] %v149_v32  ;;  %v11029_v6 = vpack.c.bf16 %v1654_v1, %v1653_v63  ;;  %v168_v32 = vld [vmem:[#allocation3 + $0xa8] sm:$0xff]  ;;  %v922_v1 = vld [vmem:[#allocation6 + $0x20] sm:$0xff] }
  0x61   :  { %215 = vst [vmem:[#allocation2 + $0x39] sm:$0xff] %v150_v33  ;;  %216 = vst [vmem:[#allocation2 + $0x49] sm:$0xff] %v151_v34  ;;  %v169_v33 = vld [vmem:[#allocation3 + $0xb0] sm:$0xff]  ;;  %v170_v34 = vld [vmem:[#allocation3 + $0xb8] sm:$0xff] }
  0x62   :  { %217 = vst [vmem:[#allocation2 + $0x51] sm:$0xff] %v152_v35  ;;  %218 = vst [vmem:[#allocation2 + $0x61] sm:$0xff] %v153_v38  ;;  %11030 = vmatprep.subr.bf16.mxu1 %v11029_v6 }
  0x63   :  { %219 = vst [vmem:[#allocation2 + $0x69] sm:$0xff] %v154_v42  ;;  %220 = vst [vmem:[#allocation2 + $0x79] sm:$0xff] %v155_v44  ;;  %11032 = vmatpush3.bf16.msra.mxu1 %v11029_v6  ;;  %v920_v44 = vld [vmem:[#allocation6 + $0x10] sm:$0xff] }
  0x64   :  { %221 = vst [vmem:[#allocation2 + $0x81] sm:$0xff] %v156_v45  ;;  %222 = vst [vmem:[#allocation2 + $0x91] sm:$0xff] %v157_v46  ;;  %11033 = vmatprep.subr.bf16.mxu1 %v17192_v0  ;;  %v921_v45 = vld [vmem:[#allocation6 + $0x18] sm:$0xff]  ;;  %v171_v46 = vld [vmem:[#allocation3 + $0xc0] sm:$0xff] }
  0x65   :  { %223 = vst [vmem:[#allocation2 + $0x99] sm:$0xff] %v158_v47  ;;  %224 = vst [vmem:[#allocation2 + $0xa9] sm:$0xff] %v159_v55  ;;  %v10981_v47 = vpack.c.bf16 %v1626_v24, %v11794_v23  ;;  %v177_v6 = vld [vmem:[#allocation3 + $0xf0] sm:$0xff]  ;;  %v925_v23 = vld [vmem:[#allocation6 + $0x38] sm:$0xff] }
  0x66   :  { %v11766_v50 = vld [vmem:[#allocation2 + $0x18] sm:$0xff]  ;;  %225 = vst [vmem:[#allocation2 + $0xb1] sm:$0xff] %v160_v59  ;;  %226 = vst [vmem:[#allocation2 + $0xc1] sm:$0xff] %v161_v4  ;;  %v175_v59 = vld [vmem:[#allocation3 + $0xe0] sm:$0xff] }
  0x67   :  { %v11768_v53 = vld [vmem:[#allocation2 + $0x20] sm:$0xff]  ;;  %v1382_v54 = vrot.slane %v11766_v50, 2  ;;  %v1158_v5 = vrot.slane %v11766_v50, 1  ;;  %v11778_v7 = vld [vmem:[#allocation2 + $0x28] sm:$0x3]  ;;  %v11780_v11 = vld [vmem:[#allocation2 + $0x30] sm:$0xff]  ;;  %10982 = vmatpush1.bf16.msra.mxu0 %v10981_v47 }
  0x68   :  { %v1383_v58 = vrot.slane %v11768_v53, 2  ;;  %v11782_v12 = vld [vmem:[#allocation2 + $0x38] sm:$0xff]  ;;  %227 = vst [vmem:[#allocation2 + $0xc9] sm:$0xff] %v162_v8  ;;  %v1159_v13 = vrot.slane %v11768_v53, 1  ;;  %v1385_v17 = vrot.slane %v11778_v7, 2  ;;  %228 = vst [vmem:[#allocation2 + $0xd9] sm:$0xff] %v163_v15  ;;  %10983 = vmatprep.subr.bf16.mxu0 %v17192_v0  ;;  %v11040_v15 = vpack.c.bf16 %v923_v2, %v922_v1 }
  0x69   :  { %v11787_v18 = vld [vmem:[#allocation2 + $0x40] sm:$0x3]  ;;  %229 = vst [vmem:[#allocation2 + $0xe1] sm:$0xff] %v164_v16  ;;  %v1387_v21 = vrot.slane %v11780_v11, 2  ;;  %v1388_v22 = vrot.slane %v11782_v12, 2  ;;  %v11796_v29 = vld [vmem:[#allocation2 + $0x48] sm:$0xff] }
  0x6a   :  { %v1384_v61 = vsel %vm693_vm0, %v1382_v54, %v1383_v58  ;;  %v1160_v20 = vsel %vm468_vm1, %v1158_v5, %v1159_v13  ;;  %v11798_v30 = vld [vmem:[#allocation2 + $0x50] sm:$0xff]  ;;  %230 = vst [vmem:[#allocation2 + $0xf1] sm:$0xff] %v165_v26  ;;  %231 = vst [vmem:[#allocation2 + $0xf9] sm:$0xff] %v166_v27  ;;  %v1386_v35 = vsel %vm693_vm0, %v1383_v58, %v1385_v17  ;;  %v1390_v36 = vrot.slane %v11787_v18, 2  ;;  %v11805_v37 = vld [vmem:[#allocation2 + $0x58] sm:$0x3] }
  0x6b   :  { %10217 = vmatprep.mubr.f32.mxu1 %v1384_v61  ;;  %1719 = vmatprep.mubr.f32.mxu0 %v1160_v20  ;;  %232 = vst [vmem:[#allocation2 + $0x109] sm:$0xff] %v167_v31  ;;  %v11807_v38 = vld [vmem:[#allocation2 + $0x60] sm:$0xff]  ;;  %v11809_v39 = vld [vmem:[#allocation2 + $0x68] sm:$0xff]  ;;  %233 = vst [vmem:[#allocation2 + $0x111] sm:$0xff] %v168_v32  ;;  %v1389_v41 = vsel %vm693_vm0, %v1387_v21, %v1388_v22  ;;  %v1392_v42 = vrot.slane %v11796_v29, 2  ;;  %v1393_v43 = vrot.slane %v11798_v30, 2 }
  0x6c   :  { %234 = vst [vmem:[#allocation2 + $0x121] sm:$0xff] %v169_v33  ;;  %235 = vst [vmem:[#allocation2 + $0x129] sm:$0xff] %v170_v34  ;;  %10218 = vmatmul.mubr.f32.vlgmr.msra.gmra.mrb[0].mxu1 %v1386_v35  ;;  %v1628_v54 = vld [vmem:[#allocation6 + $0x228] sm:$0xff]  ;;  %v1391_v55 = vsel %vm693_vm0, %v1388_v22, %v1390_v36  ;;  %v1395_v56 = vrot.slane %v11805_v37, 2  ;;  %v11819_v57 = vld [vmem:[#allocation2 + $0x70] sm:$0x3]  ;;  %v11037_v58 = vpack.c.bf16 %v921_v45, %v920_v44 }
  0x6d   :  { %236 = vst [vmem:[#allocation2 + $0x139] sm:$0xff] %v171_v46  ;;  %237 = vst [vmem:[#allocation2 + $0x141] sm:$0xff] %v172_v48  ;;  %10220 = vmatprep.mubr.f32.mxu1 %v1389_v41  ;;  %11035 = vmatpush1.bf16.msra.mxu1 %v11034_v40  ;;  %v1394_v60 = vsel %vm693_vm0, %v1392_v42, %v1393_v43  ;;  %v1397_v61 = vrot.slane %v11807_v38, 2  ;;  %v1398_v62 = vrot.slane %v11809_v39, 2  ;;  %v11824_v63 = vld [vmem:[#allocation2 + $0x78] sm:$0xff]  ;;  %v11827_v4 = vld [vmem:[#allocation2 + $0x80] sm:$0xff] }
  0x6e   :  { %238 = vst [vmem:[#allocation2 + $0x151] sm:$0xff] %v173_v49  ;;  %239 = vst [vmem:[#allocation2 + $0x159] sm:$0xff] %v174_v51  ;;  %11036 = vmatprep.subr.bf16.mxu1 %v17192_v0  ;;  %v10984_v3 = vpack.c.bf16 %v1628_v54, %v1627_v52  ;;  %v176_v5 = vld [vmem:[#allocation3 + $0xe8] sm:$0xff]  ;;  %v1629_v8 = vld [vmem:[#allocation6 + $0x230] sm:$0xff]  ;;  %v1396_v10 = vsel %vm693_vm0, %v1393_v43, %v1395_v56  ;;  %v1400_v14 = vrot.slane %v11819_v57, 2  ;;  %v1402_v19 = vrot.slane %v11824_v63, 2 }
  0x6f   :  { %240 = vst [vmem:[#allocation2 + $0x169] sm:$0xff] %v175_v59  ;;  %241 = vst [vmem:[#allocation2 + $0x171] sm:$0xff] %v176_v5  ;;  %v178_v16 = vld [vmem:[#allocation3 + $0xf8] sm:$0xff]  ;;  %v1399_v17 = vsel %vm693_vm0, %v1397_v61, %v1398_v62  ;;  %v1403_v20 = vrot.slane %v11827_v4, 2  ;;  %v11835_v21 = vld [vmem:[#allocation2 + $0x88] sm:$0x3]  ;;  %v10987_v24 = vpack.c.bf16 %v1630_v9, %v1629_v8 }
  0x70   :  { %10221 = vmatmul.mubr.f32.gmra.mrb[2].mxu1 %v1391_v55  ;;  %242 = vst [vmem:[#allocation2 + $0x181] sm:$0xff] %v177_v6  ;;  %v924_v22 = vld [vmem:[#allocation6 + $0x30] sm:$0xff]  ;;  %243 = vst [vmem:[#allocation2 + $0x189] sm:$0xff] %v178_v16  ;;  %10985 = vmatpush1.bf16.msra.mxu0 %v10984_v3  ;;  %v11840_v26 = vld [vmem:[#allocation2 + $0x98] sm:$0xff]  ;;  %v1401_v32 = vsel %vm693_vm0, %v1398_v62, %v1400_v14  ;;  %v1405_v33 = vrot.slane %v11835_v21, 2 }
  0x71   :  { %10223 = vmatprep.mubr.f32.mxu1 %v1394_v60  ;;  %11038 = vmatpush1.bf16.msra.mxu1 %v11037_v58  ;;  %v11838_v25 = vld [vmem:[#allocation2 + $0x90] sm:$0xff]  ;;  %v1631_v27 = vld [vmem:[#allocation6 + $0x240] sm:$0xff]  ;;  %v11043_v35 = vpack.c.bf16 %v925_v23, %v924_v22  ;;  %v180_v40 = vld [vmem:[#allocation3 + $0x108] sm:$0xff]  ;;  %v1404_v41 = vsel %vm693_vm0, %v1402_v19, %v1403_v20  ;;  %v1408_v43 = vrot.slane %v11840_v26, 2 }
  0x72   :  { %11039 = vmatprep.subr.bf16.mxu1 %v17192_v0  ;;  %10986 = vmatprep.subr.bf16.mxu0 %v17192_v0  ;;  %v179_v31 = vld [vmem:[#allocation3 + $0x100] sm:$0xff]  ;;  %v1407_v42 = vrot.slane %v11838_v25, 2  ;;  %v927_v44 = vld [vmem:[#allocation6 + $0x48] sm:$0xff]  ;;  %245 = vst [vmem:[#allocation2 + $0x1d1] sm:$0xff] %v180_v40  ;;  %v181_v45 = vld [vmem:[#allocation3 + $0x110] sm:$0xff]  ;;  %v10990_v47 = vpack.c.bf16 %v1632_v28, %v1631_v27  ;;  %v1406_v56 = vsel %vm693_vm0, %v1403_v20, %v1405_v33 }
  0x73   :  { %v11845_v34 = vld [vmem:[#allocation2 + $0xa0] sm:$0x3]  ;;  %244 = vst [vmem:[#allocation2 + $0x1c9] sm:$0xff] %v179_v31  ;;  %v182_v46 = vld [vmem:[#allocation3 + $0x118] sm:$0xff]  ;;  %v1633_v48 = vld [vmem:[#allocation6 + $0x250] sm:$0xff] }
  0x74   :  { %10224 = vmatmul.mubr.f32.gmra.mrb[4].mxu1 %v1396_v10  ;;  %v926_v36 = vld [vmem:[#allocation6 + $0x40] sm:$0xff]  ;;  %10988 = vmatpush1.bf16.msra.mxu0 %v10987_v24  ;;  %v11851_v49 = vld [vmem:[#allocation2 + $0xa8] sm:$0xff]  ;;  %v11853_v51 = vld [vmem:[#allocation2 + $0xb0] sm:$0xff]  ;;  %246 = vst [vmem:[#allocation2 + $0x1e1] sm:$0xff] %v181_v45  ;;  %v1410_v58 = vrot.slane %v11845_v34, 2  ;;  %v1409_v1 = vsel %vm693_vm0, %v1407_v42, %v1408_v43 }
  0x75   :  { %10226 = vmatprep.mubr.f32.mxu1 %v1399_v17  ;;  %11041 = vmatpush1.bf16.msra.mxu1 %v11040_v15  ;;  %247 = vst [vmem:[#allocation2 + $0x1e9] sm:$0xff] %v182_v46  ;;  %v1634_v52 = vld [vmem:[#allocation6 + $0x258] sm:$0xff]  ;;  %v183_v55 = vld [vmem:[#allocation3 + $0x120] sm:$0xff]  ;;  %v11046_v60 = vpack.c.bf16 %v927_v44, %v926_v36  ;;  %v928_v61 = vld [vmem:[#allocation6 + $0x50] sm:$0xff]  ;;  %v1412_v2 = vrot.slane %v11851_v49, 2  ;;  %v1413_v3 = vrot.slane %v11853_v51, 2 }
  0x76   :  { %11042 = vmatprep.subr.bf16.mxu1 %v17192_v0  ;;  %10989 = vmatprep.subr.bf16.mxu0 %v17192_v0  ;;  %v11856_v54 = vld [vmem:[#allocation2 + $0xb8] sm:$0x3]  ;;  %v11860_v59 = vld [vmem:[#allocation2 + $0xc0] sm:$0xff]  ;;  %v184_v62 = vld [vmem:[#allocation3 + $0x128] sm:$0xff]  ;;  %248 = vst [vmem:[#allocation2 + $0x1f9] sm:$0xff] %v183_v55  ;;  %v10993_v10 = vpack.c.bf16 %v1634_v52, %v1633_v48  ;;  %v1411_v22 = vsel %vm693_vm0, %v1408_v43, %v1410_v58 }
  0x77   :  { %v11865_v5 = vld [vmem:[#allocation6 + $0x260] sm:$0xff]  ;;  %v929_v6 = vld [vmem:[#allocation6 + $0x58] sm:$0xff]  ;;  %249 = vst [vmem:[#allocation2 + $0x201] sm:$0xff] %v184_v62  ;;  %v185_v8 = vld [vmem:[#allocation3 + $0x130] sm:$0xff]  ;;  %v1415_v23 = vrot.slane %v11856_v54, 2  ;;  %v1414_v28 = vsel %vm693_vm0, %v1412_v2, %v1413_v3  ;;  %v1417_v31 = vrot.slane %v11860_v59, 2 }
  0x78   :  { %10227 = vmatmul.mubr.f32.gmra.mrb[6].mxu1 %v1401_v32  ;;  %v186_v9 = vld [vmem:[#allocation3 + $0x138] sm:$0xff]  ;;  %10991 = vmatpush1.bf16.msra.mxu0 %v10990_v47  ;;  %v11868_v14 = vld [vmem:[#allocation2 + $0xc8] sm:$0xff]  ;;  %250 = vst [vmem:[#allocation2 + $0x211] sm:$0xff] %v185_v8  ;;  %v187_v15 = vld [vmem:[#allocation3 + $0x140] sm:$0xff]  ;;  %v11049_v27 = vpack.c.bf16 %v929_v6, %v928_v61 }
  0x79   :  { %10229 = vmatprep.mubr.f32.mxu1 %v1404_v41  ;;  %11044 = vmatpush1.bf16.msra.mxu1 %v11043_v35  ;;  %251 = vst [vmem:[#allocation2 + $0x219] sm:$0xff] %v186_v9  ;;  %v188_v16 = vld [vmem:[#allocation3 + $0x148] sm:$0xff]  ;;  %252 = vst [vmem:[#allocation2 + $0x229] sm:$0xff] %v187_v15  ;;  %v189_v19 = vld [vmem:[#allocation3 + $0x150] sm:$0xff]  ;;  %v1418_v32 = vrot.slane %v11868_v14, 2  ;;  %v1416_v48 = vsel %vm693_vm0, %v1413_v3, %v1415_v23 }
  0x7a   :  { %11045 = vmatprep.subr.bf16.mxu1 %v17192_v0  ;;  %10992 = vmatprep.subr.bf16.mxu0 %v17192_v0  ;;  %v1636_v17 = vld [vmem:[#allocation6 + $0x268] sm:$0xff]  ;;  %253 = vst [vmem:[#allocation2 + $0x231] sm:$0xff] %v188_v16  ;;  %v190_v20 = vld [vmem:[#allocation3 + $0x158] sm:$0xff]  ;;  %v11873_v24 = vld [vmem:[#allocation2 + $0xd0] sm:$0x3] }
  0x7b   :  { %254 = vst [vmem:[#allocation2 + $0x241] sm:$0xff] %v189_v19  ;;  %255 = vst [vmem:[#allocation2 + $0x249] sm:$0xff] %v190_v20  ;;  %v1637_v33 = vld [vmem:[#allocation6 + $0x270] sm:$0xff]  ;;  %v11878_v35 = vld [vmem:[#allocation2 + $0xd8] sm:$0xff]  ;;  %v10996_v41 = vpack.c.bf16 %v1636_v17, %v11865_v5  ;;  %v1420_v52 = vrot.slane %v11873_v24, 2 }
  0x7c   :  { %10230 = vmatmul.mubr.f32.gmra.mrb[8].mxu1 %v1406_v56  ;;  %v930_v36 = vld [vmem:[#allocation6 + $0x60] sm:$0xff]  ;;  %v931_v40 = vld [vmem:[#allocation6 + $0x68] sm:$0xff]  ;;  %10994 = vmatpush1.bf16.msra.mxu0 %v10993_v10  ;;  %v1638_v45 = vld [vmem:[#allocation6 + $0x278] sm:$0xff]  ;;  %v1422_v61 = vrot.slane %v11878_v35, 2  ;;  %v1161_v10 = vrot.slane %v11778_v7, 1 }
  0x7d   :  { %10232 = vmatprep.mubr.f32.mxu1 %v1409_v1  ;;  %11047 = vmatpush1.bf16.msra.mxu1 %v11046_v60  ;;  %v11882_v42 = vld [vmem:[#allocation2 + $0xe0] sm:$0xff]  ;;  %v192_v44 = vld [vmem:[#allocation3 + $0x168] sm:$0xff]  ;;  %v193_v46 = vld [vmem:[#allocation3 + $0x170] sm:$0xff]  ;;  %v11052_v58 = vpack.c.bf16 %v931_v40, %v930_v36  ;;  %v1419_v60 = vsel %vm693_vm0, %v1417_v31, %v1418_v32  ;;  %v10999_v5 = vpack.c.bf16 %v1638_v45, %v1637_v33  ;;  %v1164_v45 = vrot.slane %v11782_v12, 1 }
  0x7e   :  { %11048 = vmatprep.subr.bf16.mxu1 %v17192_v0  ;;  %v191_v43 = vld [vmem:[#allocation3 + $0x160] sm:$0xff]  ;;  %10995 = vmatprep.subr.bf16.mxu0 %v17192_v0  ;;  %257 = vst [vmem:[#allocation2 + $0x261] sm:$0xff] %v192_v44  ;;  %v194_v47 = vld [vmem:[#allocation3 + $0x178] sm:$0xff]  ;;  %v951_v56 = vld [vmem:[#allocation6 + $0x108] sm:$0xff]  ;;  %v1423_v62 = vrot.slane %v11882_v42, 2  ;;  %v1421_v17 = vsel %vm693_vm0, %v1418_v32, %v1420_v52  ;;  %v1163_v44 = vrot.slane %v11780_v11, 1 }
  0x7f   :  { %256 = vst [vmem:[#allocation2 + $0x259] sm:$0xff] %v191_v43  ;;  %v950_v55 = vld [vmem:[#allocation6 + $0x100] sm:$0xff]  ;;  %258 = vst [vmem:[#allocation2 + $0x271] sm:$0xff] %v193_v46  ;;  %v11890_v1 = vld [vmem:[#allocation2 + $0xe8] sm:$0x3]  ;;  %v1162_v43 = vsel %vm468_vm1, %v1159_v13, %v1161_v10 }
  0x80   :  { %10233 = vmatmul.mubr.f32.gmra.mrb[10].mxu1 %v1411_v22  ;;  %259 = vst [vmem:[#allocation2 + $0x279] sm:$0xff] %v194_v47  ;;  %v932_v2 = vld [vmem:[#allocation6 + $0x70] sm:$0xff]  ;;  %v933_v3 = vld [vmem:[#allocation6 + $0x78] sm:$0xff]  ;;  %10997 = vmatpush1.bf16.msra.mxu0 %v10996_v41  ;;  %v11081_v9 = vpack.c.bf16 %v951_v56, %v950_v55  ;;  %v11899_v15 = vld [vmem:[#allocation2 + $0x100] sm:$0x3]  ;;  %v1425_v19 = vrot.slane %v11890_v1, 2 }
  0x81   :  { %10235 = vmatprep.mubr.f32.mxu1 %v1414_v28  ;;  %11050 = vmatpush1.bf16.msra.mxu1 %v11049_v27  ;;  %v11893_v6 = vld [vmem:[#allocation2 + $0xf0] sm:$0xff]  ;;  %v11895_v8 = vld [vmem:[#allocation2 + $0xf8] sm:$0xff]  ;;  %v11055_v22 = vpack.c.bf16 %v933_v3, %v932_v2  ;;  %v195_v23 = vld [vmem:[#allocation3 + $0x180] sm:$0xff]  ;;  %v1424_v28 = vsel %vm693_vm0, %v1422_v61, %v1423_v62  ;;  %v1430_v55 = vrot.slane %v11899_v15, 2 }
  0x82   :  { %11051 = vmatprep.subr.bf16.mxu1 %v17192_v0  ;;  %10998 = vmatprep.subr.bf16.mxu0 %v17192_v0  ;;  %v952_v16 = vld [vmem:[#allocation6 + $0x110] sm:$0xff]  ;;  %v953_v20 = vld [vmem:[#allocation6 + $0x118] sm:$0xff]  ;;  %v196_v27 = vld [vmem:[#allocation3 + $0x188] sm:$0xff]  ;;  %v1427_v31 = vrot.slane %v11893_v6, 2  ;;  %v1428_v33 = vrot.slane %v11895_v8, 2  ;;  %260 = vst [vmem:[#allocation2 + $0x289] sm:$0xff] %v195_v23  ;;  %v1426_v52 = vsel %vm693_vm0, %v1423_v62, %v1425_v19  ;;  %v1165_v19 = vsel %vm468_vm1, %v1163_v44, %v1164_v45 }
  0x83   :  { %v934_v7 = vld [vmem:[#allocation6 + $0x80] sm:$0xff]  ;;  %v935_v36 = vld [vmem:[#allocation6 + $0x88] sm:$0xff]  ;;  %261 = vst [vmem:[#allocation2 + $0x291] sm:$0xff] %v196_v27  ;;  %v197_v32 = vld [vmem:[#allocation3 + $0x190] sm:$0xff]  ;;  %v11085_v47 = vpack.c.bf16 %v953_v20, %v952_v16  ;;  %v1166_v20 = vrot.slane %v11787_v18, 1 }
  0x84   :  { %10236 = vmatmul.mubr.f32.gmra.mrb[12].mxu1 %v1416_v48  ;;  %11000 = vmatpush1.bf16.msra.mxu0 %v10999_v5  ;;  %v11907_v40 = vld [vmem:[#allocation2 + $0x108] sm:$0xff]  ;;  %v11909_v41 = vld [vmem:[#allocation2 + $0x110] sm:$0xff]  ;;  %262 = vst [vmem:[#allocation2 + $0x2a1] sm:$0xff] %v197_v32  ;;  %v11916_v46 = vld [vmem:[#allocation2 + $0x118] sm:$0x3]  ;;  %v11058_v56 = vpack.c.bf16 %v935_v36, %v934_v7  ;;  %v1429_v13 = vsel %vm693_vm0, %v1427_v31, %v1428_v33 }
  0x85   :  { %10238 = vmatprep.mubr.f32.mxu1 %v1419_v60  ;;  %11053 = vmatpush1.bf16.msra.mxu1 %v11052_v58  ;;  %v954_v48 = vld [vmem:[#allocation6 + $0x120] sm:$0xff]  ;;  %v955_v58 = vld [vmem:[#allocation6 + $0x128] sm:$0xff]  ;;  %v198_v60 = vld [vmem:[#allocation3 + $0x198] sm:$0xff]  ;;  %v1432_v2 = vrot.slane %v11907_v40, 2  ;;  %v1433_v3 = vrot.slane %v11909_v41, 2  ;;  %v1435_v27 = vrot.slane %v11916_v46, 2 }
  0x86   :  { %11054 = vmatprep.subr.bf16.mxu1 %v17192_v0  ;;  %11082 = vmatprep.subr.bf16.mxu0 %v11081_v9  ;;  %v936_v61 = vld [vmem:[#allocation6 + $0x90] sm:$0xff]  ;;  %263 = vst [vmem:[#allocation2 + $0x2a9] sm:$0xff] %v198_v60  ;;  %v937_v5 = vld [vmem:[#allocation6 + $0x98] sm:$0xff]  ;;  %v199_v62 = vld [vmem:[#allocation3 + $0x1a0] sm:$0xff] }
  0x87   :  { %1720 = vmatmul.mubr.f32.vlgmr.msra.gmra.mrb[0].mxu0 %v11766_v50  ;;  %v200_v10 = vld [vmem:[#allocation3 + $0x1a8] sm:$0xff]  ;;  %v11925_v16 = vld [vmem:[#allocation2 + $0x120] sm:$0xff]  ;;  %264 = vst [vmem:[#allocation2 + $0x2b9] sm:$0xff] %v199_v62  ;;  %v201_v50 = vld [vmem:[#allocation3 + $0x1b0] sm:$0xff]  ;;  %v11061_v31 = vpack.c.bf16 %v937_v5, %v936_v61  ;;  %v1434_v36 = vsel %vm693_vm0, %v1432_v2, %v1433_v3  ;;  %v1436_v61 = vsel %vm693_vm0, %v1433_v3, %v1435_v27 }
  0x88   :  { %10239 = vmatmul.mubr.f32.gmra.mrb[14].mxu1 %v1421_v17  ;;  %11084 = vmatpush3.bf16.msra.mxu0 %v11081_v9  ;;  %v11927_v17 = vld [vmem:[#allocation2 + $0x128] sm:$0xff]  ;;  %265 = vst [vmem:[#allocation2 + $0x2c1] sm:$0xff] %v200_v10  ;;  %v202_v23 = vld [vmem:[#allocation3 + $0x1b8] sm:$0xff]  ;;  %266 = vst [vmem:[#allocation2 + $0x2d1] sm:$0xff] %v201_v50  ;;  %v1431_v9 = vsel %vm693_vm0, %v1428_v33, %v1430_v55  ;;  %v1437_v18 = vrot.slane %v11925_v16, 2  ;;  %v1167_v55 = vsel %vm468_vm1, %v1164_v45, %v1166_v20 }
  0x89   :  { %10241 = vmatprep.mubr.f32.mxu1 %v1424_v28  ;;  %11056 = vmatpush1.bf16.msra.mxu1 %v11055_v22  ;;  %v11089_v22 = vpack.c.bf16 %v955_v58, %v954_v48  ;;  %v11933_v28 = vld [vmem:[#allocation2 + $0x130] sm:$0x3]  ;;  %v938_v7 = vld [vmem:[#allocation6 + $0xa0] sm:$0xff]  ;;  %267 = vst [vmem:[#allocation2 + $0x2d9] sm:$0xff] %v202_v23  ;;  %v1438_v32 = vrot.slane %v11927_v17, 2  ;;  %v204_v44 = vld [vmem:[#allocation3 + $0x1c8] sm:$0xff] }
  0x8a   :  { %11057 = vmatprep.subr.bf16.mxu1 %v17192_v0  ;;  %1724 = vmatprep.mubr.f32.mxu0 %v1162_v43  ;;  %v939_v43 = vld [vmem:[#allocation6 + $0xa8] sm:$0xff]  ;;  %v203_v33 = vld [vmem:[#allocation3 + $0x1c0] sm:$0xff]  ;;  %v11940_v48 = vld [vmem:[#allocation2 + $0x138] sm:$0xff]  ;;  %269 = vst [vmem:[#allocation2 + $0x2f1] sm:$0xff] %v204_v44  ;;  %v1169_v58 = vrot.slane %v11798_v30, 1 }
  0x8b   :  { %11086 = vmatprep.subr.bf16.mxu0 %v11085_v47  ;;  %1725 = vmatmul.mubr.f32.gmra.mrb[2].mxu0 %v11768_v53  ;;  %268 = vst [vmem:[#allocation2 + $0x2e9] sm:$0xff] %v203_v33  ;;  %v205_v53 = vld [vmem:[#allocation3 + $0x1d0] sm:$0xff]  ;;  %v206_v60 = vld [vmem:[#allocation3 + $0x1d8] sm:$0xff]  ;;  %v207_v2 = vld [vmem:[#allocation3 + $0x1e0] sm:$0xff]  ;;  %v1439_v45 = vsel %vm693_vm0, %v1437_v18, %v1438_v32  ;;  %v1442_v5 = vrot.slane %v11940_v48, 2 }
  0x8c   :  { %10242 = vmatmul.mubr.f32.gmra.mrb[16].mxu1 %v1426_v52  ;;  %1729 = vmatprep.mubr.f32.mxu0 %v1165_v19  ;;  %v11942_v52 = vld [vmem:[#allocation2 + $0x140] sm:$0xff]  ;;  %270 = vst [vmem:[#allocation2 + $0x301] sm:$0xff] %v205_v53  ;;  %271 = vst [vmem:[#allocation2 + $0x309] sm:$0xff] %v206_v60  ;;  %v11953_v10 = vld [vmem:[#allocation2 + $0x148] sm:$0x3]  ;;  %v1174_v60 = vrot.slane %v11809_v39, 1 }
  0x8d   :  { %10244 = vmatprep.mubr.f32.mxu1 %v1429_v13  ;;  %11059 = vmatpush1.bf16.msra.mxu1 %v11058_v56  ;;  %v1168_v56 = vrot.slane %v11796_v29, 1  ;;  %v1440_v13 = vrot.slane %v11933_v28, 2  ;;  %v1443_v62 = vrot.slane %v11942_v52, 2  ;;  %v940_v50 = vld [vmem:[#allocation6 + $0xb0] sm:$0xff]  ;;  %v941_v3 = vld [vmem:[#allocation6 + $0xb8] sm:$0xff]  ;;  %272 = vst [vmem:[#allocation2 + $0x319] sm:$0xff] %v207_v2 }
  0x8e   :  { %11060 = vmatprep.subr.bf16.mxu1 %v17192_v0  ;;  %11088 = vmatpush3.bf16.msra.mxu0 %v11085_v47  ;;  %v11064_v47 = vpack.c.bf16 %v939_v43, %v938_v7  ;;  %v11956_v19 = vld [vmem:[#allocation2 + $0x150] sm:$0xff]  ;;  %v11958_v20 = vld [vmem:[#allocation2 + $0x158] sm:$0xff]  ;;  %v11067_v7 = vpack.c.bf16 %v941_v3, %v940_v50  ;;  %v11968_v44 = vld [vmem:[#allocation2 + $0x160] sm:$0x3] }
  0x8f   :  { %11090 = vmatprep.subr.bf16.mxu0 %v11089_v22  ;;  %1730 = vmatmul.mubr.f32.gmra.mrb[4].mxu0 %v11780_v11  ;;  %v208_v11 = vld [vmem:[#allocation3 + $0x1e8] sm:$0xff]  ;;  %v1170_v23 = vsel %vm468_vm1, %v1168_v56, %v1169_v58  ;;  %v1441_v27 = vsel %vm693_vm0, %v1438_v32, %v1440_v13  ;;  %v210_v18 = vld [vmem:[#allocation3 + $0x1f8] sm:$0xff]  ;;  %v1447_v43 = vrot.slane %v11956_v19, 2  ;;  %v1448_v33 = vrot.slane %v11958_v20, 2  ;;  %v956_v2 = vld [vmem:[#allocation6 + $0x130] sm:$0xff] }
  0x90   :  { %10245 = vmatmul.mubr.f32.gmra.mrb[18].mxu1 %v1431_v9  ;;  %1734 = vmatprep.mubr.f32.mxu0 %v1167_v55  ;;  %v1171_v9 = vrot.slane %v11805_v37, 1  ;;  %273 = vst [vmem:[#allocation2 + $0x321] sm:$0xff] %v208_v11  ;;  %v942_v37 = vld [vmem:[#allocation6 + $0xc0] sm:$0xff]  ;;  %v943_v32 = vld [vmem:[#allocation6 + $0xc8] sm:$0xff]  ;;  %275 = vst [vmem:[#allocation2 + $0x339] sm:$0xff] %v210_v18  ;;  %v1173_v56 = vrot.slane %v11807_v38, 1 }
  0x91   :  { %10247 = vmatprep.mubr.f32.mxu1 %v1434_v36  ;;  %11062 = vmatpush1.bf16.msra.mxu1 %v11061_v31  ;;  %v1445_v31 = vrot.slane %v11953_v10, 2  ;;  %v209_v36 = vld [vmem:[#allocation3 + $0x1f0] sm:$0xff]  ;;  %v11971_v53 = vld [vmem:[#allocation2 + $0x168] sm:$0xff]  ;;  %v1450_v13 = vrot.slane %v11968_v44, 2  ;;  %v11984_v3 = vld [vmem:[#allocation2 + $0x178] sm:$0x3] }
  0x92   :  { %11063 = vmatprep.subr.bf16.mxu1 %v17192_v0  ;;  %11092 = vmatpush3.bf16.msra.mxu0 %v11089_v22  ;;  %v1444_v22 = vsel %vm693_vm0, %v1442_v5, %v1443_v62  ;;  %274 = vst [vmem:[#allocation2 + $0x331] sm:$0xff] %v209_v36  ;;  %v11973_v55 = vld [vmem:[#allocation2 + $0x170] sm:$0xff]  ;;  %v1449_v5 = vsel %vm693_vm0, %v1447_v43, %v1448_v33  ;;  %v1452_v50 = vrot.slane %v11971_v53, 2  ;;  %v1455_v36 = vrot.slane %v11984_v3, 2 }
  0x93   :  { %1735 = vmatmul.mubr.f32.gmra.mrb[6].mxu0 %v11782_v12  ;;  %v1172_v12 = vsel %vm468_vm1, %v1169_v58, %v1171_v9  ;;  %v1453_v58 = vrot.slane %v11973_v55, 2  ;;  %v944_v11 = vld [vmem:[#allocation6 + $0xd0] sm:$0xff]  ;;  %v11987_v9 = vld [vmem:[#allocation2 + $0x180] sm:$0xff] }
  0x94   :  { %10248 = vmatmul.mubr.f32.gmra.mrb[20].mxu1 %v1436_v61  ;;  %1739 = vmatprep.mubr.f32.mxu0 %v1170_v23  ;;  %v1446_v61 = vsel %vm693_vm0, %v1443_v62, %v1445_v31  ;;  %v945_v62 = vld [vmem:[#allocation6 + $0xd8] sm:$0xff]  ;;  %v1176_v31 = vrot.slane %v11819_v57, 1  ;;  %v1457_v43 = vrot.slane %v11987_v9, 2  ;;  %v946_v57 = vld [vmem:[#allocation6 + $0xe0] sm:$0xff] }
  0x95   :  { %10250 = vmatprep.mubr.f32.mxu1 %v1439_v45  ;;  %11065 = vmatpush1.bf16.msra.mxu1 %v11064_v47  ;;  %v11070_v47 = vpack.c.bf16 %v943_v32, %v942_v37  ;;  %v957_v45 = vld [vmem:[#allocation6 + $0x138] sm:$0xff]  ;;  %v11073_v18 = vpack.c.bf16 %v945_v62, %v944_v11  ;;  %v11999_v32 = vld [vmem:[#allocation2 + $0x190] sm:$0x3] }
  0x96   :  { %11066 = vmatprep.subr.bf16.mxu1 %v17192_v0  ;;  %v11093_v23 = vpack.c.bf16 %v957_v45, %v956_v2  ;;  %v1460_v2 = vrot.slane %v11999_v32, 2  ;;  %v948_v62 = vld [vmem:[#allocation6 + $0xf0] sm:$0xff] }
  0x97   :  { %1740 = vmatmul.mubr.f32.gmra.mrb[8].mxu0 %v11796_v29  ;;  %v1175_v29 = vsel %vm468_vm1, %v1173_v56, %v1174_v60  ;;  %v12004_v56 = vld [vmem:[#allocation2 + $0x1d0] sm:$0xff] }
  0x98   :  { %10251 = vmatmul.mubr.f32.gmra.mrb[22].mxu1 %v1441_v27  ;;  %1744 = vmatprep.mubr.f32.mxu0 %v1172_v12  ;;  %v11989_v27 = vld [vmem:[#allocation2 + $0x188] sm:$0xff]  ;;  %v1463_v11 = vrot.slane %v12004_v56, 2 }
  0x99   :  { %10253 = vmatprep.mubr.f32.mxu1 %v1444_v22  ;;  %11068 = vmatpush1.bf16.msra.mxu1 %v11067_v7  ;;  %v1451_v7 = vsel %vm693_vm0, %v1448_v33, %v1450_v13  ;;  %v1454_v22 = vsel %vm693_vm0, %v1452_v50, %v1453_v58  ;;  %v1458_v37 = vrot.slane %v11989_v27, 2  ;;  %v947_v12 = vld [vmem:[#allocation6 + $0xe8] sm:$0xff]  ;;  %v1179_v13 = vrot.slane %v11827_v4, 1 }
  0x9a   :  { %11069 = vmatprep.subr.bf16.mxu1 %v17192_v0  ;;  %11094 = vmatprep.subr.bf16.mxu0 %v11093_v23  ;;  %v12002_v33 = vld [vmem:[#allocation2 + $0x1c8] sm:$0xff]  ;;  %v11076_v45 = vpack.c.bf16 %v947_v12, %v946_v57 }
  0x9b   :  { %1745 = vmatmul.mubr.f32.gmra.mrb[10].mxu0 %v11798_v30  ;;  %v1177_v30 = vsel %vm468_vm1, %v1174_v60, %v1176_v31  ;;  %v1462_v50 = vrot.slane %v12002_v33, 2  ;;  %v12015_v60 = vld [vmem:[#allocation2 + $0x1d8] sm:$0x3]  ;;  %v1181_v31 = vrot.slane %v11835_v21, 1 }
  0x9c   :  { %10254 = vmatmul.mubr.f32.gmra.mrb[24].mxu1 %v1446_v61  ;;  %1749 = vmatprep.mubr.f32.mxu0 %v1175_v29  ;;  %v1178_v61 = vrot.slane %v11824_v63, 1  ;;  %v12020_v29 = vld [vmem:[#allocation2 + $0x1e8] sm:$0xff]  ;;  %v12033_v21 = vld [vmem:[#allocation2 + $0x1f8] sm:$0xff] }
  0x9d   :  { %10256 = vmatprep.mubr.f32.mxu1 %v1449_v5  ;;  %11071 = vmatpush1.bf16.msra.mxu1 %v11070_v47  ;;  %v1456_v47 = vsel %vm693_vm0, %v1453_v58, %v1455_v36  ;;  %v1459_v5 = vsel %vm693_vm0, %v1457_v43, %v1458_v37  ;;  %v12018_v58 = vld [vmem:[#allocation2 + $0x1e0] sm:$0xff]  ;;  %v959_v36 = vld [vmem:[#allocation6 + $0x148] sm:$0xff]  ;;  %v1464_v57 = vsel %vm693_vm0, %v1462_v50, %v1463_v11 }
  0x9e   :  { %11072 = vmatprep.subr.bf16.mxu1 %v17192_v0  ;;  %11096 = vmatpush3.bf16.msra.mxu0 %v11093_v23  ;;  %v949_v23 = vld [vmem:[#allocation6 + $0xf8] sm:$0xff]  ;;  %v1467_v12 = vrot.slane %v12018_v58, 2 }
  0x9f   :  { %1750 = vmatmul.mubr.f32.gmra.mrb[12].mxu0 %v11807_v38  ;;  %v1180_v38 = vsel %vm468_vm1, %v1178_v61, %v1179_v13  ;;  %v11079_v43 = vpack.c.bf16 %v949_v23, %v948_v62  ;;  %v12030_v61 = vld [vmem:[#allocation2 + $0x1f0] sm:$0x3]  ;;  %v1472_v23 = vrot.slane %v12033_v21, 2 }
  0xa0   :  { %10257 = vmatmul.mubr.f32.gmra.mrb[26].mxu1 %v1451_v7  ;;  %1754 = vmatprep.mubr.f32.mxu0 %v1177_v30  ;;  %v958_v7 = vld [vmem:[#allocation6 + $0x140] sm:$0xff]  ;;  %v1468_v30 = vrot.slane %v12020_v29, 2  ;;  %v1470_v50 = vrot.slane %v12030_v61, 2 }
  0xa1   :  { %10259 = vmatprep.mubr.f32.mxu1 %v1454_v22  ;;  %11074 = vmatpush1.bf16.msra.mxu1 %v11073_v18  ;;  %v1461_v18 = vsel %vm693_vm0, %v1458_v37, %v1460_v2  ;;  %v1465_v22 = vrot.slane %v12015_v60, 2  ;;  %v12035_v37 = vld [vmem:[#allocation2 + $0x200] sm:$0xff]  ;;  %v1182_v2 = vsel %vm468_vm1, %v1179_v13, %v1181_v31  ;;  %v12049_v13 = vld [vmem:[#allocation2 + $0x210] sm:$0xff]  ;;  %v12051_v31 = vld [vmem:[#allocation2 + $0x218] sm:$0xff] }
  0xa2   :  { %11075 = vmatprep.subr.bf16.mxu1 %v17192_v0  ;;  %v1469_v62 = vsel %vm693_vm0, %v1467_v12, %v1468_v30  ;;  %17253 = vst [vmem:[#allocation13_spill] sm:$0xff] %v12051_v31  ;;  %v12061_v12 = vld [vmem:[#allocation2 + $0x220] sm:$0x3] }
  0xa3   :  { %1755 = vmatmul.mubr.f32.gmra.mrb[14].mxu0 %v11809_v39  ;;  %v1183_v39 = vrot.slane %v11838_v25, 1 }
  0xa4   :  { %10260 = vmatmul.mubr.f32.gmra.mrb[28].mxu1 %v1456_v47  ;;  %1759 = vmatprep.mubr.f32.mxu0 %v1180_v38  ;;  %v11097_v47 = vpack.c.bf16 %v959_v36, %v958_v7  ;;  %v1473_v38 = vrot.slane %v12035_v37, 2  ;;  %v12046_v7 = vld [vmem:[#allocation2 + $0x208] sm:$0x3]  ;;  %v1471_v36 = vsel %vm693_vm0, %v1468_v30, %v1470_v50 }
  0xa5   :  { %10262 = vmatprep.mubr.f32.mxu1 %v1459_v5  ;;  %11077 = vmatpush1.bf16.msra.mxu1 %v11076_v45  ;;  %v1184_v45 = vrot.slane %v11840_v26, 1  ;;  %v1466_v5 = vsel %vm693_vm0, %v1463_v11, %v1465_v22 }
  0xa6   :  { %11078 = vmatprep.subr.bf16.mxu1 %v17192_v0  ;;  %11098 = vmatprep.subr.bf16.mxu0 %v11097_v47  ;;  %v1474_v22 = vsel %vm693_vm0, %v1472_v23, %v1473_v38 }
  0xa7   :  { %1760 = vmatmul.mubr.f32.gmra.mrb[16].mxu0 %v11824_v63  ;;  %v1185_v11 = vsel %vm468_vm1, %v1183_v39, %v1184_v45  ;;  %v1186_v63 = vrot.slane %v11845_v34, 1  ;;  %v12065_v34 = vld [vmem:[#allocation2 + $0x230] sm:$0xff]  ;;  %v961_v39 = vld [vmem:[#allocation6 + $0x158] sm:$0xff] }
  0xa8   :  { %10263 = vmatmul.mubr.f32.gmra.mrb[30].mxu1 %v1461_v18  ;;  %1764 = vmatprep.mubr.f32.mxu0 %v1182_v2  ;;  %v1475_v18 = vrot.slane %v12046_v7, 2  ;;  %v12063_v2 = vld [vmem:[#allocation2 + $0x228] sm:$0xff] }
  0xa9   :  { %10265 = vmatprep.mubr.f32.mxu1 %v1464_v57  ;;  %11080 = vmatpush1.bf16.msra.mxu1 %v11079_v43  ;;  %v1477_v43 = vrot.slane %v12049_v13, 2  ;;  %v1478_v57 = vrot.slane %v12051_v31, 2  ;;  %v1187_v30 = vsel %vm468_vm1, %v1184_v45, %v1186_v63  ;;  %v12078_v63 = vld [vmem:[#allocation2 + $0x240] sm:$0xff]  ;;  %v12080_v31 = vld [vmem:[#allocation2 + $0x248] sm:$0xff] }
  0xaa   :  { %11113 = vmatprep.subr.bf16.mxu1 %v17192_v0  ;;  %11100 = vmatpush3.bf16.msra.mxu0 %v11097_v47  ;;  %v960_v47 = vld [vmem:[#allocation6 + $0x150] sm:$0xff]  ;;  %v1476_v50 = vsel %vm693_vm0, %v1473_v38, %v1475_v18  ;;  %v1483_v0 = vrot.slane %v12065_v34, 2  ;;  %v1191_v18 = vrot.slane %v11856_v54, 1  ;;  %v12094_v54 = vld [vmem:[#allocation2 + $0x260] sm:$0xff] }
  0xab   :  { %1765 = vmatmul.mubr.f32.gmra.mrb[18].mxu0 %v11827_v4  ;;  %v1188_v4 = vrot.slane %v11851_v49, 1  ;;  %v1479_v23 = vsel %vm693_vm0, %v1477_v43, %v1478_v57  ;;  %v11101_v45 = vpack.c.bf16 %v961_v39, %v960_v47  ;;  %v1487_v47 = vrot.slane %v12078_v63, 2  ;;  %17255 = vst [vmem:[#allocation15_spill] sm:$0xff] %v12094_v54 }
  0xac   :  { %10266 = vmatmul.mubr.f32.gmra.mrb[32].mxu1 %v1466_v5  ;;  %1769 = vmatprep.mubr.f32.mxu0 %v1185_v11  ;;  %v1189_v5 = vrot.slane %v11853_v51, 1  ;;  %v1482_v11 = vrot.slane %v12063_v2, 2  ;;  %v1488_v39 = vrot.slane %v12080_v31, 2 }
  0xad   :  { %10268 = vmatprep.mubr.f32.mxu1 %v1469_v62  ;;  %v1480_v62 = vrot.slane %v12061_v12, 2  ;;  %11102 = vmatprep.subr.bf16.mxu0 %v11101_v45 }
  0xae   :  { %v1190_v38 = vsel %vm468_vm1, %v1188_v4, %v1189_v5  ;;  %11104 = vmatpush3.bf16.msra.mxu0 %v11101_v45  ;;  %v1484_v43 = vsel %vm693_vm0, %v1482_v11, %v1483_v0  ;;  %v12092_v4 = vld [vmem:[#allocation2 + $0x258] sm:$0xff]  ;;  %v1489_v11 = vsel %vm693_vm0, %v1487_v47, %v1488_v39 }
  0xaf   :  { %1770 = vmatmul.mubr.f32.gmra.mrb[20].mxu0 %v11838_v25  ;;  %v1481_v25 = vsel %vm693_vm0, %v1478_v57, %v1480_v62  ;;  %17254 = vst [vmem:[#allocation14_spill] sm:$0xff] %v12092_v4  ;;  %v1192_v57 = vsel %vm468_vm1, %v1189_v5, %v1191_v18  ;;  %v1492_v45 = vrot.slane %v12092_v4, 2  ;;  %v12107_v5 = vld [vmem:[#allocation2 + $0x270] sm:$0xff]  ;;  %v12109_v18 = vld [vmem:[#allocation2 + $0x278] sm:$0xff]  ;;  %v12119_v4 = vld [vmem:[#allocation2 + $0x280] sm:$0x3] }
  0xb0   :  { %10269 = vmatmul.mubr.f32.gmra.mrb[34].mxu1 %v1471_v36  ;;  %v12076_v36 = vld [vmem:[#allocation2 + $0x238] sm:$0x3]  ;;  %1774 = vmatprep.mubr.f32.mxu0 %v1187_v30  ;;  %v12090_v30 = vld [vmem:[#allocation2 + $0x250] sm:$0x3]  ;;  %17256 = vst [vmem:[#allocation16_spill] sm:$0xff] %v12109_v18 }
  0xb1   :  { %10271 = vmatprep.mubr.f32.mxu1 %v1474_v22  ;;  %v1485_v22 = vrot.slane %v12076_v36, 2 }
  0xb3   :  { %1775 = vmatmul.mubr.f32.gmra.mrb[22].mxu0 %v11840_v26  ;;  %v1194_v26 = vrot.slane %v11868_v14, 1  ;;  %v1486_v62 = vsel %vm693_vm0, %v1483_v0, %v1485_v22  ;;  %v1196_v22 = vrot.slane %v11873_v24, 1 }
  0xb4   :  { %10272 = vmatmul.mubr.f32.gmra.mrb[36].mxu1 %v1476_v50  ;;  %1779 = vmatprep.mubr.f32.mxu0 %v1190_v38  ;;  %v1193_v50 = vrot.slane %v11860_v59, 1  ;;  %v1493_v38 = vrot.slane %v12094_v54, 2  ;;  %v1498_v54 = vrot.slane %v12109_v18, 2 }
  0xb5   :  { %10274 = vmatprep.mubr.f32.mxu1 %v1479_v23  ;;  %v1490_v23 = vrot.slane %v12090_v30, 2  ;;  %v1197_v24 = vsel %vm468_vm1, %v1194_v26, %v1196_v22  ;;  %v12138_v22 = vld [vmem:[#allocation2 + $0x2a8] sm:$0xff] }
  0xb6   :  { %v1195_v0 = vsel %vm468_vm1, %v1193_v50, %v1194_v26  ;;  %v1494_v47 = vsel %vm693_vm0, %v1492_v45, %v1493_v38  ;;  %v12123_v50 = vld [vmem:[#allocation2 + $0x290] sm:$0xff]  ;;  %v12136_v26 = vld [vmem:[#allocation2 + $0x2a0] sm:$0xff]  ;;  %17260 = vst [vmem:[#allocation20_spill] sm:$0xff] %v12138_v22 }
  0xb7   :  { %1780 = vmatmul.mubr.f32.gmra.mrb[24].mxu0 %v11851_v49  ;;  %v1491_v49 = vsel %vm693_vm0, %v1488_v39, %v1490_v23  ;;  %17258 = vst [vmem:[#allocation18_spill] sm:$0xff] %v12123_v50  ;;  %v1198_v39 = vrot.slane %v11878_v35, 1  ;;  %v1503_v18 = vrot.slane %v12123_v50, 2  ;;  %17259 = vst [vmem:[#allocation19_spill] sm:$0xff] %v12136_v26  ;;  %v1508_v50 = vrot.slane %v12138_v22, 2 }
  0xb8   :  { %10275 = vmatmul.mubr.f32.gmra.mrb[38].mxu1 %v1481_v25  ;;  %v12105_v25 = vld [vmem:[#allocation2 + $0x268] sm:$0x3]  ;;  %1784 = vmatprep.mubr.f32.mxu0 %v1192_v57  ;;  %v1497_v57 = vrot.slane %v12107_v5, 2 }
  0xb9   :  { %10277 = vmatprep.mubr.f32.mxu1 %v1484_v43  ;;  %v1495_v43 = vrot.slane %v12105_v25, 2 }
  0xba   :  { %v1499_v45 = vsel %vm693_vm0, %v1497_v57, %v1498_v54 }
  0xbb   :  { %1785 = vmatmul.mubr.f32.gmra.mrb[26].mxu0 %v11853_v51  ;;  %v1199_v51 = vrot.slane %v11882_v42, 1  ;;  %v1496_v23 = vsel %vm693_vm0, %v1493_v38, %v1495_v43  ;;  %v1201_v43 = vrot.slane %v11890_v1, 1 }
  0xbc   :  { %10278 = vmatmul.mubr.f32.gmra.mrb[40].mxu1 %v1486_v62  ;;  %1789 = vmatprep.mubr.f32.mxu0 %v1195_v0  ;;  %v12121_v62 = vld [vmem:[#allocation2 + $0x288] sm:$0xff] }
  0xbd   :  { %10280 = vmatprep.mubr.f32.mxu1 %v1489_v11  ;;  %17257 = vst [vmem:[#allocation17_spill] sm:$0xff] %v12121_v62  ;;  %v1500_v11 = vrot.slane %v12119_v4, 2  ;;  %v1502_v0 = vrot.slane %v12121_v62, 2  ;;  %v1200_v38 = vsel %vm468_vm1, %v1198_v39, %v1199_v51  ;;  %v12148_v62 = vld [vmem:[#allocation2 + $0x2b0] sm:$0x3]  ;;  %v12152_v39 = vld [vmem:[#allocation2 + $0x2c0] sm:$0xff]  ;;  %v1202_v1 = vsel %vm468_vm1, %v1199_v51, %v1201_v43 }
  0xbe   :  { %17261 = vst [vmem:[#allocation21_spill] sm:$0xff] %v12148_v62  ;;  %17263 = vst [vmem:[#allocation23_spill] sm:$0xff] %v12152_v39  ;;  %v1513_v22 = vrot.slane %v12152_v39, 2  ;;  %v962_v51 = vld [vmem:[#allocation6 + $0x160] sm:$0xff]  ;;  %v963_v43 = vld [vmem:[#allocation6 + $0x168] sm:$0xff] }
  0xbf   :  { %1790 = vmatmul.mubr.f32.gmra.mrb[28].mxu0 %v11860_v59  ;;  %v1501_v59 = vsel %vm693_vm0, %v1498_v54, %v1500_v11  ;;  %v1504_v57 = vsel %vm693_vm0, %v1502_v0, %v1503_v18  ;;  %v1203_v54 = vrot.slane %v11893_v6, 1 }
  0xc0   :  { %10281 = vmatmul.mubr.f32.gmra.mrb[42].mxu1 %v1491_v49  ;;  %v12134_v49 = vld [vmem:[#allocation2 + $0x298] sm:$0x3]  ;;  %1794 = vmatprep.mubr.f32.mxu0 %v1197_v24  ;;  %v1507_v24 = vrot.slane %v12136_v26, 2  ;;  %v12165_v26 = vld [vmem:[#allocation2 + $0x2d0] sm:$0xff] }
  0xc1   :  { %10283 = vmatprep.mubr.f32.mxu1 %v1494_v47  ;;  %v1505_v47 = vrot.slane %v12134_v49, 2 }
  0xc2   :  { %v1509_v0 = vsel %vm693_vm0, %v1507_v24, %v1508_v50 }
  0xc3   :  { %1795 = vmatmul.mubr.f32.gmra.mrb[30].mxu0 %v11868_v14  ;;  %v1204_v14 = vrot.slane %v11895_v8, 1  ;;  %v1506_v11 = vsel %vm693_vm0, %v1503_v18, %v1505_v47  ;;  %v11105_v18 = vpack.c.bf16 %v963_v43, %v962_v51  ;;  %v12177_v51 = vld [vmem:[#allocation2 + $0x2e0] sm:$0x3] }
  0xc4   :  { %10284 = vmatmul.mubr.f32.gmra.mrb[44].mxu1 %v1496_v23  ;;  %1799 = vmatprep.mubr.f32.mxu0 %v1200_v38  ;;  %v12150_v23 = vld [vmem:[#allocation2 + $0x2b8] sm:$0xff]  ;;  %17264 = vst [vmem:[#allocation24_spill] sm:$0xff] %v12177_v51 }
  0xc5   :  { %10286 = vmatprep.mubr.f32.mxu1 %v1499_v45  ;;  %17262 = vst [vmem:[#allocation22_spill] sm:$0xff] %v12150_v23  ;;  %v1510_v45 = vrot.slane %v12148_v62, 2  ;;  %v1512_v38 = vrot.slane %v12150_v23, 2  ;;  %v1205_v47 = vsel %vm468_vm1, %v1203_v54, %v1204_v14  ;;  %11106 = vmatprep.subr.bf16.mxu0 %v11105_v18  ;;  %v1517_v23 = vrot.slane %v12165_v26, 2  ;;  %v12179_v54 = vld [vmem:[#allocation2 + $0x2e8] sm:$0xff] }
  0xc6   :  { %17265 = vst [vmem:[#allocation25_spill] sm:$0xff] %v12179_v54  ;;  %11108 = vmatpush3.bf16.msra.mxu0 %v11105_v18  ;;  %v1522_v43 = vrot.slane %v12179_v54, 2  ;;  %v1055_v54 = vld [vmem:[#allocation2 + $0x310] sm:$0x3] }
  0xc7   :  { %1800 = vmatmul.mubr.f32.gmra.mrb[32].mxu0 %v11878_v35  ;;  %v1206_v35 = vrot.slane %v11899_v15, 1  ;;  %v1511_v24 = vsel %vm693_vm0, %v1508_v50, %v1510_v45  ;;  %v12181_v15 = vld [vmem:[#allocation2 + $0x2f0] sm:$0xff] }
  0xc8   :  { %10287 = vmatmul.mubr.f32.gmra.mrb[46].mxu1 %v1501_v59  ;;  %v12163_v59 = vld [vmem:[#allocation2 + $0x2c8] sm:$0x3]  ;;  %1804 = vmatprep.mubr.f32.mxu0 %v1202_v1  ;;  %v1514_v1 = vsel %vm693_vm0, %v1512_v38, %v1513_v22  ;;  %17266 = vst [vmem:[#allocation26_spill] sm:$0xff] %v12181_v15  ;;  %v1523_v18 = vrot.slane %v12181_v15, 2 }
  0xc9   :  { %10289 = vmatprep.mubr.f32.mxu1 %v1504_v57  ;;  %v12167_v57 = vld [vmem:[#allocation2 + $0x2d8] sm:$0xff]  ;;  %v1515_v39 = vrot.slane %v12163_v59, 2  ;;  %v1207_v50 = vsel %vm468_vm1, %v1204_v14, %v1206_v35  ;;  %v1053_v14 = vld [vmem:[#allocation2 + $0x300] sm:$0xff]  ;;  %v1054_v35 = vld [vmem:[#allocation2 + $0x308] sm:$0xff] }
  0xca   :  { %v1518_v62 = vrot.slane %v12167_v57, 2  ;;  %v1528_v15 = vrot.slane %v1054_v35, 2  ;;  %v1059_v35 = vld [vmem:[#allocation2 + $0x330] sm:$0xff] }
  0xcb   :  { %1805 = vmatmul.mubr.f32.gmra.mrb[34].mxu0 %v11882_v42  ;;  %v1209_v42 = vrot.slane %v11909_v41, 1  ;;  %v1516_v45 = vsel %vm693_vm0, %v1513_v22, %v1515_v39  ;;  %v1211_v22 = vrot.slane %v11916_v46, 1  ;;  %v1213_v46 = vrot.slane %v11925_v16, 1 }
  0xcc   :  { %10290 = vmatmul.mubr.f32.gmra.mrb[48].mxu1 %v1506_v11  ;;  %1809 = vmatprep.mubr.f32.mxu0 %v1205_v47  ;;  %v1208_v11 = vrot.slane %v11907_v40, 1  ;;  %v1519_v38 = vsel %vm693_vm0, %v1517_v23, %v1518_v62  ;;  %v12192_v47 = vld [vmem:[#allocation2 + $0x2f8] sm:$0x3]  ;;  %v1524_v23 = vsel %vm693_vm0, %v1522_v43, %v1523_v18 }
  0xcd   :  { %10292 = vmatprep.mubr.f32.mxu1 %v1509_v0  ;;  %v1520_v0 = vrot.slane %v12177_v51, 2  ;;  %v1057_v51 = vld [vmem:[#allocation2 + $0x320] sm:$0xff] }
  0xce   :  { %v1533_v43 = vrot.slane %v1057_v51, 2  ;;  %v1061_v51 = vld [vmem:[#allocation2 + $0x340] sm:$0x3] }
  0xcf   :  { %1810 = vmatmul.mubr.f32.gmra.mrb[36].mxu0 %v11893_v6  ;;  %v1521_v39 = vsel %vm693_vm0, %v1518_v62, %v1520_v0  ;;  %v1525_v6 = vrot.slane %v12192_v47, 2  ;;  %v1530_v0 = vrot.slane %v1055_v54, 2  ;;  %v1537_v54 = vrot.slane %v1059_v35, 2  ;;  %v3837_v35 = vld [vmem:[#allocation6 + $0x300] sm:$0xff] }
  0xd0   :  { %10293 = vmatmul.mubr.f32.gmra.mrb[50].mxu1 %v1511_v24  ;;  %1814 = vmatprep.mubr.f32.mxu0 %v1207_v50  ;;  %v1210_v24 = vsel %vm468_vm1, %v1208_v11, %v1209_v42  ;;  %v1056_v50 = vld [vmem:[#allocation2 + $0x318] sm:$0xff]  ;;  %v1212_v11 = vsel %vm468_vm1, %v1209_v42, %v1211_v22  ;;  %v1216_v22 = vrot.slane %v11933_v28, 1  ;;  %v1219_v28 = vrot.slane %v11942_v52, 1 }
  0xd1   :  { %10295 = vmatprep.mubr.f32.mxu1 %v1514_v1  ;;  %v1527_v1 = vrot.slane %v1053_v14, 2  ;;  %v1526_v62 = vsel %vm693_vm0, %v1523_v18, %v1525_v6  ;;  %v1058_v14 = vld [vmem:[#allocation2 + $0x328] sm:$0x3] }
  0xd2   :  { %v1535_v18 = vrot.slane %v1058_v14, 2 }
  0xd3   :  { %1815 = vmatmul.mubr.f32.gmra.mrb[38].mxu0 %v11895_v8  ;;  %v1529_v8 = vsel %vm693_vm0, %v1527_v1, %v1528_v15 }
  0xd4   :  { %10296 = vmatmul.mubr.f32.gmra.mrb[52].mxu1 %v1516_v45  ;;  %1819 = vmatprep.mubr.f32.mxu0 %v1210_v24  ;;  %v1214_v45 = vrot.slane %v11927_v17, 1  ;;  %v1060_v24 = vld [vmem:[#allocation2 + $0x338] sm:$0xff] }
  0xd5   :  { %10298 = vmatprep.mubr.f32.mxu1 %v1519_v38  ;;  %v1532_v38 = vrot.slane %v1056_v50, 2  ;;  %v1538_v6 = vrot.slane %v1060_v24, 2  ;;  %v1218_v50 = vrot.slane %v11940_v48, 1  ;;  %v3838_v24 = vld [vmem:[#allocation6 + $0x308] sm:$0xff] }
  0xd6   :  { %v1215_v42 = vsel %vm468_vm1, %v1213_v46, %v1214_v45  ;;  %v1217_v1 = vsel %vm468_vm1, %v1214_v45, %v1216_v22  ;;  %v278_v45 = vld [vmem:[#allocation2 + $0x10] sm:$0x3]  ;;  %v12228_v22 = vld [vmem:[#allocation2 + $0x20] sm:$0xff] }
  0xd7   :  { %1820 = vmatmul.mubr.f32.gmra.mrb[40].mxu0 %v11907_v40  ;;  %v1534_v40 = vsel %vm693_vm0, %v1532_v38, %v1533_v43  ;;  %v1221_v38 = vrot.slane %v11953_v10, 1  ;;  %v472_v14 = vrot.slane %v278_v45, 1  ;;  %v1223_v10 = vrot.slane %v11956_v19, 1 }
  0xd8   :  { %10299 = vmatmul.mubr.f32.gmra.mrb[54].mxu1 %v1521_v39  ;;  %1824 = vmatprep.mubr.f32.mxu0 %v1212_v11  ;;  %v1531_v39 = vsel %vm693_vm0, %v1528_v15, %v1530_v0  ;;  %v1536_v15 = vsel %vm693_vm0, %v1533_v43, %v1535_v18  ;;  %v1540_v11 = vrot.slane %v1061_v51, 2  ;;  %v1224_v18 = vrot.slane %v11958_v20, 1 }
  0xd9   :  { %10301 = vmatprep.mubr.f32.mxu1 %v1524_v23  ;;  %v276_v23 = vld [vmem:[#allocation2] sm:$0xff]  ;;  %v475_v51 = vrot.slane %v12228_v22, 1 }
  0xda   :  { %v469_v46 = vrot.slane %v276_v23, 1  ;;  %v1541_v43 = vsel %vm693_vm0, %v1538_v6, %v1540_v11 }
  0xdb   :  { %1825 = vmatmul.mubr.f32.gmra.mrb[42].mxu0 %v11909_v41  ;;  %v1539_v41 = vsel %vm693_vm0, %v1537_v54, %v1538_v6 }
  0xdc   :  { %10302 = vmatmul.mubr.f32.gmra.mrb[56].mxu1 %v1526_v62  ;;  %1829 = vmatprep.mubr.f32.mxu0 %v1215_v42  ;;  %v12217_v62 = vld [vmem:[#allocation2 + $0x8] sm:$0xff]  ;;  %v279_v42 = vld [vmem:[#allocation2 + $0x18] sm:$0xff] }
  0xdd   :  { %10304 = vmatprep.mubr.f32.mxu1 %v1529_v8  ;;  %v12220_v0 = vrot.slane %v12217_v62, 1  ;;  %v1220_v8 = vsel %vm468_vm1, %v1218_v50, %v1219_v28  ;;  %v474_v6 = vrot.slane %v279_v42, 1  ;;  %v964_v50 = vld [vmem:[#allocation6 + $0x170] sm:$0xff] }
  0xdf   :  { %1830 = vmatmul.mubr.f32.gmra.mrb[44].mxu0 %v11925_v16  ;;  %v471_v16 = vsel %vm468_vm1, %v469_v46, %v12220_v0  ;;  %v473_v54 = vsel %vm468_vm1, %v12220_v0, %v472_v14  ;;  %v1226_v46 = vrot.slane %v11968_v44, 1  ;;  %v476_v45 = vsel %vm468_vm1, %v474_v6, %v475_v51  ;;  %v282_v14 = vld [vmem:[#allocation2 + $0x30] sm:$0xff] }
  0xe0   :  { %10305 = vmatmul.mubr.f32.gmra.mrb[58].mxu1 %v1531_v39  ;;  %1834 = vmatprep.mubr.f32.mxu0 %v1217_v1  ;;  %v1222_v39 = vsel %vm468_vm1, %v1219_v28, %v1221_v38  ;;  %v3840_v1 = vld [vmem:[#allocation6 + $0x318] sm:$0xff]  ;;  %v281_v28 = vld [vmem:[#allocation2 + $0x28] sm:$0x3]  ;;  %v17267_v38 = vmov 0.0|0.0  }
  0xe1   :  { %10307 = vmatprep.mubr.f32.mxu1 %v1534_v40  ;;  %v11114_v40 = vpack.c.bf16 %v3838_v24, %v3837_v35  ;;  %v12242_v35 = vld [vmem:[#allocation2 + $0x38] sm:$0xff]  ;;  %v1227_v44 = vsel %vm468_vm1, %v1224_v18, %v1226_v46  ;;  %v1234_v46 = vrot.slane %v11989_v27, 1 }
  0xe3   :  { %1835 = vmatmul.mubr.f32.gmra.mrb[46].mxu0 %v11927_v17  ;;  %v3839_v17 = vld [vmem:[#allocation6 + $0x310] sm:$0xff] }
  0xe4   :  { %10308 = vmatmul.mubr.f32.gmra.mrb[60].mxu1 %v1536_v15  ;;  %1839 = vmatprep.mubr.f32.mxu0 %v1220_v8  ;;  %v965_v15 = vld [vmem:[#allocation6 + $0x178] sm:$0xff]  ;;  %v477_v8 = vrot.slane %v281_v28, 1  ;;  %v3846_v28 = vld [vmem:[#allocation6 + $0x348] sm:$0xff] }
  0xe5   :  { %10310 = vmatprep.mubr.f32.mxu1 %v1539_v41  ;;  %v11109_v11 = vpack.c.bf16 %v965_v15, %v964_v50  ;;  %v1225_v41 = vsel %vm468_vm1, %v1223_v10, %v1224_v18  ;;  %v479_v10 = vrot.slane %v282_v14, 1  ;;  %v284_v18 = vld [vmem:[#allocation2 + $0x40] sm:$0x3] }
  0xe6   :  { %v3845_v15 = vld [vmem:[#allocation6 + $0x340] sm:$0xff] }
  0xe7   :  { %1840 = vmatmul.mubr.f32.gmra.mrb[48].mxu0 %v11940_v48  ;;  %v11117_v48 = vpack.c.bf16 %v3840_v1, %v3839_v17  ;;  %11110 = vmatprep.subr.bf16.mxu0 %v11109_v11  ;;  %v3843_v17 = vld [vmem:[#allocation6 + $0x330] sm:$0xff]  ;;  %v1231_v1 = vrot.slane %v11984_v3, 1  ;;  %v1233_v3 = vrot.slane %v11987_v9, 1 }
  0xe8   :  { %10311 = vmatmul.mubr.f32.gmra.mrb[62].mxu1 %v1541_v43  ;;  %1844 = vmatprep.mubr.f32.mxu0 %v1222_v39  ;;  %v3841_v43 = vld [vmem:[#allocation6 + $0x320] sm:$0xff]  ;;  %v478_v39 = vsel %vm468_vm1, %v475_v51, %v477_v8  ;;  %v482_v51 = vrot.slane %v284_v18, 1 }
  0xe9   :  { %2489 = vmatprep.mubr.f32.mxu1 %v471_v16  ;;  %v3842_v16 = vld [vmem:[#allocation6 + $0x328] sm:$0xff]  ;;  %11112 = vmatpush3.bf16.msra.mxu0 %v11109_v11 }
  0xea   :  { %v11120_v24 = vpack.c.bf16 %v3842_v16, %v3841_v43  ;;  %v285_v11 = vld [vmem:[#allocation2 + $0x48] sm:$0xff]  ;;  %v3847_v43 = vld [vmem:[#allocation6 + $0x350] sm:$0xff]  ;;  %v3848_v16 = vld [vmem:[#allocation6 + $0x358] sm:$0xff] }
  0xeb   :  { %1845 = vmatmul.mubr.f32.gmra.mrb[50].mxu0 %v11942_v52  ;;  %v1229_v52 = vrot.slane %v11973_v55, 1 }
  0xec   :  { %2490 = vmatmul.mubr.f32.vlgmr.msra.gmra.mrb[64].mxu1 %v276_v23  ;;  %1849 = vmatprep.mubr.f32.mxu0 %v1225_v41  ;;  %v1228_v23 = vrot.slane %v11971_v53, 1  ;;  %v286_v41 = vld [vmem:[#allocation2 + $0x50] sm:$0xff] }
  0xed   :  { %2494 = vmatprep.mubr.f32.mxu1 %v473_v54  ;;  %11115 = vmatpush1.bf16.msra.mxu1 %v11114_v40  ;;  %v480_v40 = vrot.slane %v12242_v35, 1  ;;  %v3844_v54 = vld [vmem:[#allocation6 + $0x338] sm:$0xff]  ;;  %v485_v8 = vrot.slane %v286_v41, 1 }
  0xee   :  { %11116 = vmatprep.subr.bf16.mxu1 %v17267_v38  ;;  %v1230_v6 = vsel %vm468_vm1, %v1228_v23, %v1229_v52  ;;  %v11123_v50 = vpack.c.bf16 %v3844_v54, %v3843_v17  ;;  %v1236_v23 = vrot.slane %v11999_v32, 1  ;;  %v289_v17 = vld [vmem:[#allocation2 + $0x68] sm:$0xff]  ;;  %v1238_v32 = vrot.slane %v12002_v33, 1 }
  0xef   :  { %1850 = vmatmul.mubr.f32.gmra.mrb[52].mxu0 %v11956_v19  ;;  %v481_v19 = vsel %vm468_vm1, %v479_v10, %v480_v40  ;;  %v3850_v10 = vld [vmem:[#allocation6 + $0x368] sm:$0xff]  ;;  %v1239_v54 = vrot.slane %v12004_v56, 1 }
  0xf0   :  { %2495 = vmatmul.mubr.f32.gmra.mrb[66].mxu1 %v12217_v62  ;;  %1854 = vmatprep.mubr.f32.mxu0 %v1227_v44  ;;  %v1235_v44 = vsel %vm468_vm1, %v1233_v3, %v1234_v46  ;;  %v291_v3 = vld [vmem:[#allocation2 + $0x78] sm:$0xff] }
  0xf1   :  { %2499 = vmatprep.mubr.f32.mxu1 %v476_v45  ;;  %11118 = vmatpush1.bf16.msra.mxu1 %v11117_v48  ;;  %v483_v48 = vsel %vm468_vm1, %v480_v40, %v482_v51  ;;  %v484_v45 = vrot.slane %v285_v11, 1  ;;  %v288_v40 = vld [vmem:[#allocation2 + $0x60] sm:$0xff]  ;;  %v1240_v51 = vsel %vm468_vm1, %v1238_v32, %v1239_v54 }
  0xf2   :  { %11119 = vmatprep.subr.bf16.mxu1 %v17267_v38 }
  0xf3   :  { %1855 = vmatmul.mubr.f32.gmra.mrb[54].mxu0 %v11958_v20  ;;  %v11126_v20 = vpack.c.bf16 %v3846_v28, %v3845_v15  ;;  %v1241_v15 = vrot.slane %v12015_v60, 1  ;;  %v1244_v60 = vrot.slane %v12020_v29, 1 }
  0xf4   :  { %2500 = vmatmul.mubr.f32.gmra.mrb[68].mxu1 %v279_v42  ;;  %1859 = vmatprep.mubr.f32.mxu0 %v1230_v6  ;;  %v1232_v42 = vsel %vm468_vm1, %v1229_v52, %v1231_v1  ;;  %v11129_v52 = vpack.c.bf16 %v3848_v16, %v3847_v43  ;;  %v489_v6 = vrot.slane %v288_v40, 1  ;;  %v490_v1 = vrot.slane %v289_v17, 1 }
  0xf5   :  { %2504 = vmatprep.mubr.f32.mxu1 %v478_v39  ;;  %11121 = vmatpush1.bf16.msra.mxu1 %v11120_v24  ;;  %v3849_v39 = vld [vmem:[#allocation6 + $0x360] sm:$0xff]  ;;  %v494_v43 = vrot.slane %v291_v3, 1 }
  0xf6   :  { %11122 = vmatprep.subr.bf16.mxu1 %v17267_v38 }
  0xf7   :  { %1860 = vmatmul.mubr.f32.gmra.mrb[56].mxu0 %v11971_v53  ;;  %v486_v53 = vsel %vm468_vm1, %v484_v45, %v485_v8  ;;  %v3854_v45 = vld [vmem:[#allocation6 + $0x388] sm:$0xff] }
  0xf8   :  { %2505 = vmatmul.mubr.f32.gmra.mrb[70].mxu1 %v12228_v22  ;;  %1864 = vmatprep.mubr.f32.mxu0 %v1232_v42  ;;  %v287_v22 = vld [vmem:[#allocation2 + $0x58] sm:$0x3] }
  0xf9   :  { %2509 = vmatprep.mubr.f32.mxu1 %v481_v19  ;;  %11124 = vmatpush1.bf16.msra.mxu1 %v11123_v50  ;;  %v487_v24 = vrot.slane %v287_v22, 1  ;;  %v3851_v50 = vld [vmem:[#allocation6 + $0x370] sm:$0xff]  ;;  %v3852_v19 = vld [vmem:[#allocation6 + $0x378] sm:$0xff]  ;;  %v3870_v22 = vld [vmem:[#allocation6 + $0x408] sm:$0xff] }
  0xfa   :  { %11125 = vmatprep.subr.bf16.mxu1 %v17267_v38  ;;  %v11135_v28 = vpack.c.bf16 %v3852_v19, %v3851_v50  ;;  %v297_v50 = vld [vmem:[#allocation2 + $0xa8] sm:$0xff] }
  0xfb   :  { %1865 = vmatmul.mubr.f32.gmra.mrb[58].mxu0 %v11973_v55  ;;  %v11132_v55 = vpack.c.bf16 %v3850_v10, %v3849_v39  ;;  %v488_v18 = vsel %vm468_vm1, %v485_v8, %v487_v24  ;;  %v294_v39 = vld [vmem:[#allocation2 + $0x90] sm:$0xff]  ;;  %v295_v10 = vld [vmem:[#allocation2 + $0x98] sm:$0xff] }
  0xfc   :  { %2510 = vmatmul.mubr.f32.gmra.mrb[72].mxu1 %v282_v14  ;;  %1869 = vmatprep.mubr.f32.mxu0 %v1235_v44  ;;  %v1237_v14 = vsel %vm468_vm1, %v1234_v46, %v1236_v23  ;;  %v292_v46 = vld [vmem:[#allocation2 + $0x80] sm:$0xff]  ;;  %v293_v44 = vld [vmem:[#allocation2 + $0x88] sm:$0x3]  ;;  %v499_v32 = vrot.slane %v294_v39, 1 }
  0xfd   :  { %2514 = vmatprep.mubr.f32.mxu1 %v483_v48  ;;  %11127 = vmatpush1.bf16.msra.mxu1 %v11126_v20  ;;  %v1243_v20 = vrot.slane %v12018_v58, 1  ;;  %v3853_v48 = vld [vmem:[#allocation6 + $0x380] sm:$0xff]  ;;  %v495_v16 = vrot.slane %v292_v46, 1  ;;  %v497_v24 = vrot.slane %v293_v44, 1  ;;  %v1261_v44 = vrot.slane %v12076_v36, 1 }
  0xfe   :  { %11128 = vmatprep.subr.bf16.mxu1 %v17267_v38 }
  0xff   :  { %1870 = vmatmul.mubr.f32.gmra.mrb[60].mxu0 %v11987_v9  ;;  %v491_v9 = vsel %vm468_vm1, %v489_v6, %v490_v1 }
 0x100   :  { %2515 = vmatmul.mubr.f32.gmra.mrb[74].mxu1 %v12242_v35  ;;  %1874 = vmatprep.mubr.f32.mxu0 %v1237_v14  ;;  %v290_v35 = vld [vmem:[#allocation2 + $0x70] sm:$0x3]  ;;  %v1248_v14 = vrot.slane %v12033_v21, 1 }
 0x101   :  { %2519 = vmatprep.mubr.f32.mxu1 %v486_v53  ;;  %11130 = vmatpush1.bf16.msra.mxu1 %v11129_v52  ;;  %v492_v42 = vrot.slane %v290_v35, 1  ;;  %v1245_v52 = vsel %vm468_vm1, %v1243_v20, %v1244_v60  ;;  %v1246_v53 = vrot.slane %v12030_v61, 1  ;;  %v1249_v61 = vrot.slane %v12035_v37, 1 }
 0x102   :  { %11131 = vmatprep.subr.bf16.mxu1 %v17267_v38  ;;  %v1253_v35 = vrot.slane %v12049_v13, 1  ;;  %v1256_v20 = vrot.slane %v12061_v12, 1 }
 0x103   :  { %1875 = vmatmul.mubr.f32.gmra.mrb[62].mxu0 %v11989_v27  ;;  %v11138_v27 = vpack.c.bf16 %v3854_v45, %v3853_v48  ;;  %v493_v8 = vsel %vm468_vm1, %v490_v1, %v492_v42  ;;  %v504_v42 = vrot.slane %v297_v50, 1  ;;  %v300_v48 = vld [vmem:[#allocation2 + $0xc0] sm:$0xff]  ;;  %v301_v45 = vld [vmem:[#allocation2 + $0xc8] sm:$0xff] }
 0x104   :  { %2520 = vmatmul.mubr.f32.gmra.mrb[76].mxu1 %v285_v11  ;;  %1879 = vmatprep.mubr.f32.mxu0 %v1240_v51  ;;  %v1242_v11 = vsel %vm468_vm1, %v1239_v54, %v1241_v15  ;;  %v500_v54 = vrot.slane %v295_v10, 1  ;;  %v17268_v51 = vld [vmem:[#allocation13_spill] sm:$0xff] }
 0x105   :  { %2524 = vmatprep.mubr.f32.mxu1 %v488_v18  ;;  %11133 = vmatpush1.bf16.msra.mxu1 %v11132_v55  ;;  %v296_v55 = vld [vmem:[#allocation2 + $0xa0] sm:$0x3]  ;;  %v1250_v18 = vsel %vm468_vm1, %v1248_v14, %v1249_v61  ;;  %v1254_v15 = vrot.slane %v17268_v51, 1  ;;  %v3858_v14 = vld [vmem:[#allocation6 + $0x3a8] sm:$0xff] }
 0x106   :  { %11134 = vmatprep.subr.bf16.mxu1 %v17267_v38  ;;  %v501_v6 = vsel %vm468_vm1, %v499_v32, %v500_v54  ;;  %v502_v1 = vrot.slane %v296_v55, 1 }
 0x107   :  { %1880 = vmatmul.mubr.f32.gmra.mrb[64].mxu0 %v12002_v33  ;;  %v496_v33 = vsel %vm468_vm1, %v494_v43, %v495_v16  ;;  %v1259_v43 = vrot.slane %v12065_v34, 1 }
 0x108   :  { %2525 = vmatmul.mubr.f32.gmra.mrb[78].mxu1 %v286_v41  ;;  %v3869_v41 = vld [vmem:[#allocation6 + $0x400] sm:$0xff]  ;;  %1884 = vmatprep.mubr.f32.mxu0 %v1242_v11  ;;  %v299_v11 = vld [vmem:[#allocation2 + $0xb8] sm:$0x3] }
 0x109   :  { %2529 = vmatprep.mubr.f32.mxu1 %v491_v9  ;;  %11136 = vmatpush1.bf16.msra.mxu1 %v11135_v28  ;;  %v12287_v23 = vpack.c.bf16 %v3870_v22, %v3869_v41  ;;  %v3855_v28 = vld [vmem:[#allocation6 + $0x390] sm:$0xff]  ;;  %v3856_v9 = vld [vmem:[#allocation6 + $0x398] sm:$0xff] }
 0x10a   :  { %11137 = vmatprep.subr.bf16.mxu1 %v17267_v38  ;;  %v302_v41 = vld [vmem:[#allocation2 + $0xd0] sm:$0x3] }
 0x10b   :  { %1885 = vmatmul.mubr.f32.gmra.mrb[66].mxu0 %v12004_v56  ;;  %11162 = vmatprep.subr.bf16.mxu0 %v12287_v23  ;;  %v498_v56 = vsel %vm468_vm1, %v495_v16, %v497_v24  ;;  %v509_v16 = vrot.slane %v300_v48, 1  ;;  %v1262_v24 = vsel %vm468_vm1, %v1259_v43, %v1261_v44 }
 0x10c   :  { %2530 = vmatmul.mubr.f32.gmra.mrb[80].mxu1 %v288_v40  ;;  %1889 = vmatprep.mubr.f32.mxu0 %v1245_v52  ;;  %v1247_v40 = vsel %vm468_vm1, %v1244_v60, %v1246_v53  ;;  %v512_v53 = vrot.slane %v302_v41, 1  ;;  %v12368_v41 = vld [vmem:[#allocation2 + $0x120] sm:$0xff] }
 0x10d   :  { %2534 = vmatprep.mubr.f32.mxu1 %v493_v8  ;;  %11139 = vmatpush1.bf16.msra.mxu1 %v11138_v27  ;;  %v1257_v27 = vsel %vm468_vm1, %v1254_v15, %v1256_v20  ;;  %v1258_v8 = vrot.slane %v12063_v2, 1  ;;  %v17271_v20 = vld [vmem:[#allocation16_spill] sm:$0xff] }
 0x10e   :  { %11140 = vmatprep.subr.bf16.mxu1 %v17267_v38 }
 0x10f   :  { %1890 = vmatmul.mubr.f32.gmra.mrb[68].mxu0 %v12018_v58  ;;  %v298_v58 = vld [vmem:[#allocation2 + $0xb0] sm:$0xff]  ;;  %v1260_v22 = vsel %vm468_vm1, %v1258_v8, %v1259_v43  ;;  %v12359_v8 = vld [vmem:[#allocation2 + $0x118] sm:$0x3] }
 0x110   :  { %2535 = vmatmul.mubr.f32.gmra.mrb[82].mxu1 %v289_v17  ;;  %1894 = vmatprep.mubr.f32.mxu0 %v1247_v40  ;;  %v1251_v17 = vrot.slane %v12046_v7, 1  ;;  %v11141_v7 = vpack.c.bf16 %v3856_v9, %v3855_v28  ;;  %v3857_v40 = vld [vmem:[#allocation6 + $0x3a0] sm:$0xff] }
 0x111   :  { %2539 = vmatprep.mubr.f32.mxu1 %v496_v33  ;;  %v303_v33 = vld [vmem:[#allocation2 + $0xd8] sm:$0xff]  ;;  %v11144_v36 = vpack.c.bf16 %v3858_v14, %v3857_v40  ;;  %v308_v28 = vld [vmem:[#allocation2 + $0x100] sm:$0x3]  ;;  %v12384_v14 = vld [vmem:[#allocation2 + $0x130] sm:$0x3] }
 0x112   :  { %v1252_v19 = vsel %vm468_vm1, %v1249_v61, %v1251_v17  ;;  %11142 = vmatpush1.bf16.msra.mxu1 %v11141_v7  ;;  %v1271_v7 = vrot.slane %v12105_v25, 1  ;;  %v3860_v25 = vld [vmem:[#allocation6 + $0x3b8] sm:$0xff] }
 0x113   :  { %1895 = vmatmul.mubr.f32.gmra.mrb[70].mxu0 %v12020_v29  ;;  %v503_v29 = vsel %vm468_vm1, %v500_v54, %v502_v1  ;;  %11143 = vmatprep.subr.bf16.mxu1 %v17267_v38  ;;  %v305_v54 = vld [vmem:[#allocation2 + $0xe8] sm:$0x3]  ;;  %v12335_v1 = vld [vmem:[#allocation2 + $0xf8] sm:$0xff] }
 0x114   :  { %2540 = vmatmul.mubr.f32.gmra.mrb[84].mxu1 %v291_v3  ;;  %1899 = vmatprep.mubr.f32.mxu0 %v1250_v18  ;;  %v505_v3 = vrot.slane %v298_v58, 1  ;;  %v1266_v18 = vrot.slane %v12090_v30, 1 }
 0x115   :  { %2544 = vmatprep.mubr.f32.mxu1 %v498_v56  ;;  %v514_v56 = vrot.slane %v303_v33, 1 }
 0x116   :  { %v506_v60 = vsel %vm468_vm1, %v504_v42, %v505_v3  ;;  %11145 = vmatpush1.bf16.msra.mxu1 %v11144_v36  ;;  %v522_v42 = vrot.slane %v308_v28, 1 }
 0x117   :  { %1900 = vmatmul.mubr.f32.gmra.mrb[72].mxu0 %v12033_v21  ;;  %v507_v21 = vrot.slane %v299_v11, 1  ;;  %11146 = vmatprep.subr.bf16.mxu1 %v17267_v38 }
 0x118   :  { %2545 = vmatmul.mubr.f32.gmra.mrb[86].mxu1 %v292_v46  ;;  %1904 = vmatprep.mubr.f32.mxu0 %v1252_v19  ;;  %v1255_v46 = vsel %vm468_vm1, %v1253_v35, %v1254_v15  ;;  %v17270_v35 = vld [vmem:[#allocation15_spill] sm:$0xff]  ;;  %v520_v15 = vrot.slane %v12335_v1, 1 }
 0x119   :  { %2549 = vmatprep.mubr.f32.mxu1 %v501_v6  ;;  %v508_v12 = vsel %vm468_vm1, %v505_v3, %v507_v21  ;;  %v12333_v6 = vld [vmem:[#allocation2 + $0xf0] sm:$0xff]  ;;  %v1269_v30 = vrot.slane %v17270_v35, 1 }
 0x11a   :  { %v12350_v3 = vld [vmem:[#allocation2 + $0x110] sm:$0xff] }
 0x11b   :  { %1905 = vmatmul.mubr.f32.gmra.mrb[74].mxu0 %v12035_v37  ;;  %v510_v37 = vrot.slane %v301_v45, 1  ;;  %v1272_v11 = vsel %vm468_vm1, %v1269_v30, %v1271_v7  ;;  %v3859_v21 = vld [vmem:[#allocation6 + $0x3b0] sm:$0xff]  ;;  %v12412_v7 = vld [vmem:[#allocation2 + $0x148] sm:$0x3] }
 0x11c   :  { %2550 = vmatmul.mubr.f32.gmra.mrb[88].mxu1 %v294_v39  ;;  %1909 = vmatprep.mubr.f32.mxu0 %v1255_v46  ;;  %v1263_v39 = vrot.slane %v12078_v63, 1  ;;  %v1273_v46 = vrot.slane %v12107_v5, 1 }
 0x11d   :  { %2554 = vmatprep.mubr.f32.mxu1 %v503_v29  ;;  %v511_v52 = vsel %vm468_vm1, %v509_v16, %v510_v37  ;;  %v513_v61 = vsel %vm468_vm1, %v510_v37, %v512_v53  ;;  %v527_v37 = vrot.slane %v12359_v8, 1 }
 0x11f   :  { %1910 = vmatmul.mubr.f32.gmra.mrb[76].mxu0 %v12049_v13  ;;  %v304_v13 = vld [vmem:[#allocation2 + $0xe0] sm:$0xff] }
 0x120   :  { %2555 = vmatmul.mubr.f32.gmra.mrb[90].mxu1 %v295_v10  ;;  %1914 = vmatprep.mubr.f32.mxu0 %v1257_v27  ;;  %v1264_v10 = vrot.slane %v12080_v31, 1  ;;  %v515_v32 = vrot.slane %v304_v13, 1  ;;  %v525_v27 = vrot.slane %v12350_v3, 1 }
 0x121   :  { %2559 = vmatprep.mubr.f32.mxu1 %v506_v60  ;;  %v1274_v60 = vrot.slane %v17271_v20, 1 }
 0x122   :  { %v1265_v55 = vsel %vm468_vm1, %v1263_v39, %v1264_v10  ;;  %v516_v17 = vsel %vm468_vm1, %v514_v56, %v515_v32  ;;  %v528_v39 = vsel %vm468_vm1, %v525_v27, %v527_v37  ;;  %v1281_v56 = vrot.slane %v12134_v49, 1 }
 0x123   :  { %1915 = vmatmul.mubr.f32.gmra.mrb[78].mxu0 %v17268_v51  ;;  %v519_v51 = vrot.slane %v12333_v6, 1  ;;  %v1275_v43 = vsel %vm468_vm1, %v1273_v46, %v1274_v60 }
 0x124   :  { %2560 = vmatmul.mubr.f32.gmra.mrb[92].mxu1 %v297_v50  ;;  %1919 = vmatprep.mubr.f32.mxu0 %v1260_v22  ;;  %v1267_v50 = vsel %vm468_vm1, %v1264_v10, %v1266_v18  ;;  %v12370_v22 = vld [vmem:[#allocation2 + $0x128] sm:$0xff]  ;;  %v529_v10 = vrot.slane %v12368_v41, 1  ;;  %v12398_v18 = vld [vmem:[#allocation2 + $0x140] sm:$0xff] }
 0x125   :  { %2564 = vmatprep.mubr.f32.mxu1 %v508_v12  ;;  %v521_v29 = vsel %vm468_vm1, %v519_v51, %v520_v15  ;;  %v1276_v12 = vrot.slane %v12119_v4, 1  ;;  %v530_v40 = vrot.slane %v12370_v22, 1 }
 0x127   :  { %1920 = vmatmul.mubr.f32.gmra.mrb[80].mxu0 %v12063_v2  ;;  %v517_v2 = vrot.slane %v305_v54, 1  ;;  %v1277_v4 = vsel %vm468_vm1, %v1274_v60, %v1276_v12  ;;  %v532_v54 = vrot.slane %v12384_v14, 1  ;;  %v17278_v12 = vld [vmem:[#allocation23_spill] sm:$0xff] }
 0x128   :  { %2565 = vmatmul.mubr.f32.gmra.mrb[94].mxu1 %v298_v58  ;;  %1924 = vmatprep.mubr.f32.mxu0 %v1262_v24  ;;  %v17269_v58 = vld [vmem:[#allocation14_spill] sm:$0xff] }
 0x129   :  { %2569 = vmatprep.mubr.f32.mxu1 %v511_v52  ;;  %v1268_v19 = vrot.slane %v17269_v58, 1  ;;  %v17272_v52 = vld [vmem:[#allocation17_spill] sm:$0xff] }
 0x12a   :  { %v1278_v53 = vrot.slane %v17272_v52, 1 }
 0x12b   :  { %1925 = vmatmul.mubr.f32.gmra.mrb[82].mxu0 %v12065_v34  ;;  %v518_v34 = vsel %vm468_vm1, %v515_v32, %v517_v2  ;;  %v1270_v9 = vsel %vm468_vm1, %v1268_v19, %v1269_v30  ;;  %v17274_v2 = vld [vmem:[#allocation19_spill] sm:$0xff]  ;;  %v3861_v30 = vld [vmem:[#allocation6 + $0x3c0] sm:$0xff] }
 0x12c   :  { %2570 = vmatmul.mubr.f32.gmra.mrb[96].mxu1 %v300_v48  ;;  %1929 = vmatprep.mubr.f32.mxu0 %v1265_v55  ;;  %v11147_v48 = vpack.c.bf16 %v3860_v25, %v3859_v21  ;;  %v12396_v55 = vld [vmem:[#allocation2 + $0x138] sm:$0xff]  ;;  %v537_v21 = vrot.slane %v12412_v7, 1  ;;  %v12425_v25 = vld [vmem:[#allocation2 + $0x150] sm:$0xff] }
 0x12d   :  { %2574 = vmatprep.mubr.f32.mxu1 %v513_v61  ;;  %v534_v28 = vrot.slane %v12396_v55, 1 }
 0x12e   :  { %11148 = vmatpush1.bf16.msra.mxu1 %v11147_v48  ;;  %v12427_v48 = vld [vmem:[#allocation2 + $0x158] sm:$0xff] }
 0x12f   :  { %1930 = vmatmul.mubr.f32.gmra.mrb[84].mxu0 %v12078_v63  ;;  %v12348_v63 = vld [vmem:[#allocation2 + $0x108] sm:$0xff]  ;;  %11149 = vmatprep.subr.bf16.mxu1 %v17267_v38 }
 0x130   :  { %2575 = vmatmul.mubr.f32.gmra.mrb[98].mxu1 %v301_v45  ;;  %1934 = vmatprep.mubr.f32.mxu0 %v1267_v50  ;;  %v524_v45 = vrot.slane %v12348_v63, 1  ;;  %v1283_v50 = vrot.slane %v17274_v2, 1 }
 0x131   :  { %2579 = vmatprep.mubr.f32.mxu1 %v516_v17 }
 0x132   :  { %v526_v16 = vsel %vm468_vm1, %v524_v45, %v525_v27  ;;  %v17277_v27 = vld [vmem:[#allocation22_spill] sm:$0xff] }
 0x133   :  { %1935 = vmatmul.mubr.f32.gmra.mrb[86].mxu0 %v12080_v31  ;;  %v523_v31 = vsel %vm468_vm1, %v520_v15, %v522_v42  ;;  %v533_v15 = vsel %vm468_vm1, %v530_v40, %v532_v54  ;;  %v12455_v54 = vld [vmem:[#allocation2 + $0x170] sm:$0xff] }
 0x134   :  { %2580 = vmatmul.mubr.f32.gmra.mrb[100].mxu1 %v303_v33  ;;  %1939 = vmatprep.mubr.f32.mxu0 %v1270_v9  ;;  %v17273_v33 = vld [vmem:[#allocation18_spill] sm:$0xff]  ;;  %v535_v9 = vrot.slane %v12398_v18, 1 }
 0x135   :  { %2584 = vmatprep.mubr.f32.mxu1 %v518_v34  ;;  %v3862_v34 = vld [vmem:[#allocation6 + $0x3c8] sm:$0xff] }
 0x136   :  { %v11150_v51 = vpack.c.bf16 %v3862_v34, %v3861_v30  ;;  %v536_v60 = vsel %vm468_vm1, %v534_v28, %v535_v9  ;;  %v3864_v30 = vld [vmem:[#allocation6 + $0x3d8] sm:$0xff]  ;;  %v545_v28 = vrot.slane %v12455_v54, 1 }
 0x137   :  { %1940 = vmatmul.mubr.f32.gmra.mrb[88].mxu0 %v17269_v58  ;;  %v17275_v58 = vld [vmem:[#allocation20_spill] sm:$0xff] }
 0x138   :  { %2585 = vmatmul.mubr.f32.gmra.mrb[102].mxu1 %v304_v13  ;;  %1944 = vmatprep.mubr.f32.mxu0 %v1272_v11  ;;  %v1279_v13 = vrot.slane %v17273_v33, 1  ;;  %v1284_v19 = vrot.slane %v17275_v58, 1  ;;  %v17276_v11 = vld [vmem:[#allocation21_spill] sm:$0xff] }
 0x139   :  { %2589 = vmatprep.mubr.f32.mxu1 %v521_v29  ;;  %11151 = vmatpush1.bf16.msra.mxu1 %v11150_v51  ;;  %v1286_v46 = vrot.slane %v17276_v11, 1 }
 0x13a   :  { %v1280_v61 = vsel %vm468_vm1, %v1278_v53, %v1279_v13  ;;  %v1282_v49 = vsel %vm468_vm1, %v1279_v13, %v1281_v56  ;;  %v1285_v42 = vsel %vm468_vm1, %v1283_v50, %v1284_v19  ;;  %11152 = vmatprep.subr.bf16.mxu1 %v17267_v38  ;;  %v540_v53 = vrot.slane %v12427_v48, 1 }
 0x13b   :  { %1945 = vmatmul.mubr.f32.gmra.mrb[90].mxu0 %v17270_v35  ;;  %v1287_v45 = vsel %vm468_vm1, %v1284_v19, %v1286_v46  ;;  %v1294_v50 = vrot.slane %v12167_v57, 1  ;;  %v3863_v19 = vld [vmem:[#allocation6 + $0x3d0] sm:$0xff] }
 0x13c   :  { %2590 = vmatmul.mubr.f32.gmra.mrb[104].mxu1 %v12333_v6  ;;  %1949 = vmatprep.mubr.f32.mxu0 %v1275_v43  ;;  %v1288_v43 = vrot.slane %v17277_v27, 1  ;;  %v11153_v34 = vpack.c.bf16 %v3864_v30, %v3863_v19  ;;  %v11443_v19 = vld [vmem:[#allocation2 + $0x2d0] sm:$0xff] }
 0x13d   :  { %2594 = vmatprep.mubr.f32.mxu1 %v523_v31 }
 0x13e   :  { %11154 = vmatpush1.bf16.msra.mxu1 %v11153_v34 }
 0x13f   :  { %v12372_v44 = vpop.f32.mrb[0].mxu1  ;;  %1950 = vmatmul.mubr.f32.gmra.mrb[92].mxu0 %v12107_v5  ;;  %v531_v5 = vsel %vm468_vm1, %v529_v10, %v530_v40  ;;  %v1291_v10 = vrot.slane %v12163_v59, 1  ;;  %11155 = vmatprep.subr.bf16.mxu1 %v17267_v38 }
 0x140   :  { %2595 = vmatmul.mubr.f32.gmra.mrb[106].mxu1 %v12335_v1  ;;  %v12378_v24 = vpop.f32.mrb[1].mxu1  ;;  %1954 = vmatprep.mubr.f32.mxu0 %v1277_v4  ;;  %v538_v4 = vsel %vm468_vm1, %v535_v9, %v537_v21  ;;  %v12469_v9 = vld [vmem:[#allocation2 + $0x178] sm:$0x3] }
 0x141   :  { %2599 = vmatprep.mubr.f32.mxu1 %v526_v16  ;;  %v1289_v16 = vrot.slane %v17278_v12, 1  ;;  %v547_v12 = vrot.slane %v12469_v9, 1 }
 0x143   :  { %v12386_v36 = vpop.f32.mrb[2].mxu1  ;;  %1955 = vmatmul.mubr.f32.gmra.mrb[94].mxu0 %v17271_v20  ;;  %v1292_v59 = vsel %vm468_vm1, %v1289_v16, %v1291_v10  ;;  %v548_v30 = vsel %vm468_vm1, %v545_v28, %v547_v12 }
 0x144   :  { %2600 = vmatmul.mubr.f32.gmra.mrb[108].mxu1 %v12348_v63  ;;  %v12391_v32 = vpop.f32.mrb[3].mxu1  ;;  %1959 = vmatprep.mubr.f32.mxu0 %v1280_v61 }
 0x145   :  { %2604 = vmatprep.mubr.f32.mxu1 %v528_v39  ;;  %v1290_v39 = vsel %vm468_vm1, %v1288_v43, %v1289_v16  ;;  %v12484_v16 = vld [vmem:[#allocation2 + $0x1b0] sm:$0xff] }
 0x146   :  { %v549_v34 = vrot.slane %v12484_v16, 1 }
 0x147   :  { %v12400_v17 = vpop.f32.mrb[4].mxu1  ;;  %1960 = vmatmul.mubr.f32.gmra.mrb[96].mxu0 %v17272_v52  ;;  %v539_v52 = vrot.slane %v12425_v25, 1 }
 0x148   :  { %2605 = vmatmul.mubr.f32.gmra.mrb[110].mxu1 %v12350_v3  ;;  %v12406_v35 = vpop.f32.mrb[5].mxu1  ;;  %1964 = vmatprep.mubr.f32.mxu0 %v1282_v49  ;;  %v551_v12 = vsel %vm468_vm1, %v549_v34, %v12220_v0  ;;  %v11446_v34 = vld [vmem:[#allocation2 + $0x308] sm:$0xff] }
 0x149   :  { %2609 = vmatprep.mubr.f32.mxu1 %v531_v5  ;;  %v541_v61 = vsel %vm468_vm1, %v539_v52, %v540_v53  ;;  %v12453_v5 = vld [vmem:[#allocation2 + $0x168] sm:$0xff] }
 0x14b   :  { %v12414_v29 = vpop.f32.mrb[6].mxu1  ;;  %1965 = vmatmul.mubr.f32.gmra.mrb[98].mxu0 %v17273_v33  ;;  %v12441_v33 = vld [vmem:[#allocation2 + $0x160] sm:$0x3] }
 0x14c   :  { %2610 = vmatmul.mubr.f32.gmra.mrb[112].mxu1 %v12368_v41  ;;  %v12419_v20 = vpop.f32.mrb[7].mxu1  ;;  %1969 = vmatprep.mubr.f32.mxu0 %v1285_v42  ;;  %v542_v56 = vrot.slane %v12441_v33, 1  ;;  %v17279_v42 = vld [vmem:[#allocation24_spill] sm:$0xff] }
 0x14d   :  { %2614 = vmatprep.mubr.f32.mxu1 %v533_v15  ;;  %v544_v15 = vrot.slane %v12453_v5, 1  ;;  %v1296_v11 = vrot.slane %v17279_v42, 1 }
 0x14e   :  { %v543_v51 = vsel %vm468_vm1, %v540_v53, %v542_v56  ;;  %v17280_v53 = vld [vmem:[#allocation25_spill] sm:$0xff] }
 0x14f   :  { %v12429_v31 = vpop.f32.mrb[8].mxu1  ;;  %1970 = vmatmul.mubr.f32.gmra.mrb[100].mxu0 %v17274_v2  ;;  %v1293_v2 = vrot.slane %v12165_v26, 1  ;;  %v546_v43 = vsel %vm468_vm1, %v544_v15, %v545_v28  ;;  %v1297_v52 = vsel %vm468_vm1, %v1294_v50, %v1296_v11  ;;  %v12499_v15 = vld [vmem:[#allocation2 + $0x1c0] sm:$0x3]  ;;  %v1301_v11 = vrot.slane %v12192_v47, 1  ;;  %v3868_v47 = vld [vmem:[#allocation6 + $0x3f8] sm:$0xff] }
 0x150   :  { %2615 = vmatmul.mubr.f32.gmra.mrb[114].mxu1 %v12370_v22  ;;  %v12435_v37 = vpop.f32.mrb[9].mxu1  ;;  %1974 = vmatprep.mubr.f32.mxu0 %v1287_v45  ;;  %17283 = vst [vmem:[#allocation14_spill] sm:$0xff] %v12499_v15 }
 0x151   :  { %2619 = vmatprep.mubr.f32.mxu1 %v536_v60  ;;  %v1295_v57 = vsel %vm468_vm1, %v1293_v2, %v1294_v50  ;;  %v3866_v50 = vld [vmem:[#allocation6 + $0x3e8] sm:$0xff] }
 0x153   :  { %v12443_v13 = vpop.f32.mrb[10].mxu1  ;;  %1975 = vmatmul.mubr.f32.gmra.mrb[102].mxu0 %v17275_v58 }
 0x154   :  { %2620 = vmatmul.mubr.f32.gmra.mrb[116].mxu1 %v12396_v55  ;;  %v12448_v40 = vpop.f32.mrb[11].mxu1  ;;  %1979 = vmatprep.mubr.f32.mxu0 %v1290_v39  ;;  %v1298_v39 = vrot.slane %v17280_v53, 1  ;;  %v3867_v53 = vld [vmem:[#allocation6 + $0x3f0] sm:$0xff] }
 0x155   :  { %2624 = vmatprep.mubr.f32.mxu1 %v538_v4 }
 0x157   :  { %v12457_v49 = vpop.f32.mrb[12].mxu1  ;;  %1980 = vmatmul.mubr.f32.gmra.mrb[104].mxu0 %v17277_v27  ;;  %v11442_v27 = vld [vmem:[#allocation2 + $0x2c0] sm:$0xff] }
 0x158   :  { %2625 = vmatmul.mubr.f32.gmra.mrb[118].mxu1 %v12398_v18  ;;  %v12463_v58 = vpop.f32.mrb[13].mxu1  ;;  %1984 = vmatprep.mubr.f32.mxu0 %v1292_v59 }
 0x159   :  { %2629 = vmatprep.mubr.f32.mxu1 %v541_v61 }
 0x15a   :  { %v1721_v60 = vpop.f32.mrb[0].mxu0 }
 0x15b   :  { %v12471_v26 = vpop.f32.mrb[14].mxu1  ;;  %v12480_v21 = vadd.f32 %v12378_v24, %v1721_v60  ;;  %v1723_v45 = vpop.f32.mrb[1].mxu0  ;;  %1985 = vmatmul.mubr.f32.gmra.mrb[106].mxu0 %v11442_v27  ;;  %v17281_v24 = vld [vmem:[#allocation26_spill] sm:$0xff] }
 0x15c   :  { %2630 = vmatmul.mubr.f32.gmra.mrb[120].mxu1 %v12425_v25  ;;  %v12476_v46 = vpop.f32.mrb[15].mxu1  ;;  %1989 = vmatprep.mubr.f32.mxu0 %v1295_v57  ;;  %v1299_v10 = vrot.slane %v17281_v24, 1  ;;  %v12517_v24 = vld [vmem:[#allocation2 + $0x1d0] sm:$0xff] }
 0x15d   :  { %2634 = vmatprep.mubr.f32.mxu1 %v543_v51  ;;  %v3865_v51 = vld [vmem:[#allocation6 + $0x3e0] sm:$0xff]  ;;  %17285 = vst [vmem:[#allocation16_spill] sm:$0xff] %v12517_v24 }
 0x15e   :  { %v1726_v56 = vpop.f32.mrb[2].mxu0  ;;  %v11156_v42 = vpack.c.bf16 %v3866_v50, %v3865_v51  ;;  %v1304_v51 = vrot.slane %v11446_v34, 1 }
 0x15f   :  { %v12486_v4 = vpop.f32.mrb[16].mxu1  ;;  %v12495_v59 = vadd.f32 %v12372_v44, %v1726_v56  ;;  %v1728_v2 = vpop.f32.mrb[3].mxu0  ;;  %1990 = vmatmul.mubr.f32.gmra.mrb[108].mxu0 %v11443_v19  ;;  %v1300_v44 = vsel %vm468_vm1, %v1298_v39, %v1299_v10  ;;  %v12515_v39 = vld [vmem:[#allocation2 + $0x1c8] sm:$0xff]  ;;  %v11445_v19 = vld [vmem:[#allocation2 + $0x300] sm:$0xff] }
 0x160   :  { %2635 = vmatmul.mubr.f32.gmra.mrb[122].mxu1 %v12427_v48  ;;  %v12492_v61 = vpop.f32.mrb[17].mxu1  ;;  %1994 = vmatprep.mubr.f32.mxu0 %v1297_v52  ;;  %v552_v52 = vrot.slane %v12499_v15, 1  ;;  %v1302_v2 = vsel %vm468_vm1, %v1299_v10, %v1301_v11  ;;  %v554_v10 = vrot.slane %v12515_v39, 1  ;;  %v555_v11 = vrot.slane %v12517_v24, 1 }
 0x161   :  { %2639 = vmatprep.mubr.f32.mxu1 %v546_v43  ;;  %17282 = vst [vmem:[#allocation13_spill] sm:$0xff] %v12495_v59  ;;  %11157 = vmatpush1.bf16.msra.mxu1 %v11156_v42  ;;  %v11444_v43 = vld [vmem:[#allocation2 + $0x2d8] sm:$0xff] }
 0x162   :  { %v1731_v45 = vpop.f32.mrb[4].mxu0  ;;  %11158 = vmatprep.subr.bf16.mxu1 %v17267_v38 }
 0x163   :  { %v12501_v57 = vpop.f32.mrb[18].mxu1  ;;  %v12509_v28 = vadd.f32 %v12391_v32, %v1731_v45  ;;  %v1733_v27 = vpop.f32.mrb[5].mxu0  ;;  %1995 = vmatmul.mubr.f32.gmra.mrb[110].mxu0 %v11444_v43  ;;  %v11159_v32 = vpack.c.bf16 %v3868_v47, %v3867_v53  ;;  %v553_v43 = vsel %vm468_vm1, %v12220_v0, %v552_v52  ;;  %v12532_v53 = vld [vmem:[#allocation2 + $0x1d8] sm:$0x3] }
 0x164   :  { %2640 = vmatmul.mubr.f32.gmra.mrb[124].mxu1 %v12453_v5  ;;  %v12506_v60 = vpop.f32.mrb[19].mxu1  ;;  %1999 = vmatprep.mubr.f32.mxu0 %v1300_v44  ;;  %v11447_v27 = vld [vmem:[#allocation2 + $0x2e8] sm:$0xff]  ;;  %17287 = vst [vmem:[#allocation18_spill] sm:$0xff] %v12532_v53 }
 0x165   :  { %2644 = vmatprep.mubr.f32.mxu1 %v548_v30  ;;  %17284 = vst [vmem:[#allocation15_spill] sm:$0xff] %v12509_v28  ;;  %v1303_v30 = vrot.slane %v11445_v19, 1  ;;  %11160 = vmatpush1.bf16.msra.mxu1 %v11159_v32  ;;  %v12545_v28 = vld [vmem:[#allocation2 + $0x1e0] sm:$0xff] }
 0x166   :  { %v1736_v42 = vpop.f32.mrb[6].mxu0  ;;  %17289 = vst [vmem:[#allocation20_spill] sm:$0xff] %v12545_v28  ;;  %v559_v15 = vrot.slane %v12545_v28, 1 }
 0x167   :  { %v12519_v56 = vpop.f32.mrb[20].mxu1  ;;  %v12526_v44 = vadd.f32 %v12386_v36, %v1736_v42  ;;  %v1738_v45 = vpop.f32.mrb[7].mxu0  ;;  %2000 = vmatmul.mubr.f32.gmra.mrb[112].mxu0 %v11447_v27  ;;  %v1305_v36 = vsel %vm468_vm1, %v1303_v30, %v1304_v51  ;;  %v11449_v27 = vld [vmem:[#allocation2 + $0x2f0] sm:$0xff]  ;;  %v12547_v30 = vld [vmem:[#allocation2 + $0x1e8] sm:$0xff] }
 0x168   :  { %2645 = vmatmul.mubr.f32.gmra.mrb[126].mxu1 %v12455_v54  ;;  %v12523_v50 = vpop.f32.mrb[21].mxu1  ;;  %2004 = vmatprep.mubr.f32.mxu0 %v1302_v2  ;;  %v556_v2 = vsel %vm468_vm1, %v554_v10, %v555_v11  ;;  %17290 = vst [vmem:[#allocation21_spill] sm:$0xff] %v12547_v30 }
 0x169   :  { %2649 = vmatprep.mubr.f32.mxu1 %v551_v12  ;;  %17286 = vst [vmem:[#allocation17_spill] sm:$0xff] %v12526_v44  ;;  %v11448_v12 = vld [vmem:[#allocation2 + $0x310] sm:$0x3]  ;;  %v557_v44 = vrot.slane %v12532_v53, 1 }
 0x16a   :  { %v1306_v32 = vrot.slane %v11448_v12, 1  ;;  %v1741_v45 = vpop.f32.mrb[8].mxu0 }
 0x16b   :  { %v12534_v47 = vpop.f32.mrb[22].mxu1  ;;  %v12541_v0 = vadd.f32 %v12406_v35, %v1741_v45  ;;  %v1743_v52 = vpop.f32.mrb[9].mxu0  ;;  %2005 = vmatmul.mubr.f32.gmra.mrb[114].mxu0 %v11449_v27  ;;  %v11450_v35 = vld [vmem:[#allocation2 + $0x318] sm:$0xff]  ;;  %v558_v59 = vsel %vm468_vm1, %v555_v11, %v557_v44 }
 0x16c   :  { %2650 = vmatmul.mubr.f32.gmra.mrb[128].mxu1 %v12484_v16  ;;  %v12538_v42 = vpop.f32.mrb[23].mxu1  ;;  %2009 = vmatprep.mubr.f32.mxu0 %v1305_v36  ;;  %v1308_v45 = vrot.slane %v11450_v35, 1  ;;  %v11451_v52 = vld [vmem:[#allocation2 + $0x320] sm:$0xff] }
 0x16d   :  { %2654 = vmatprep.mubr.f32.mxu1 %v553_v43  ;;  %17288 = vst [vmem:[#allocation19_spill] sm:$0xff] %v12541_v0  ;;  %v1307_v43 = vsel %vm468_vm1, %v1304_v51, %v1306_v32  ;;  %v1309_v0 = vrot.slane %v11451_v52, 1  ;;  %v12561_v51 = vld [vmem:[#allocation2 + $0x1f0] sm:$0x3] }
 0x16e   :  { %v1746_v10 = vpop.f32.mrb[10].mxu0  ;;  %17293 = vst [vmem:[#allocation24_spill] sm:$0xff] %v12561_v51 }
 0x16f   :  { %v12549_v12 = vpop.f32.mrb[24].mxu1  ;;  %v12556_v36 = vadd.f32 %v12400_v17, %v1746_v10  ;;  %v1748_v53 = vpop.f32.mrb[11].mxu0  ;;  %2010 = vmatmul.mubr.f32.gmra.mrb[116].mxu0 %v11445_v19 }
 0x170   :  { %17291 = vst [vmem:[#allocation22_spill] sm:$0xff] %v12549_v12  ;;  %2655 = vmatmul.mubr.f32.gmra.mrb[130].mxu1 %v12217_v62  ;;  %v12553_v27 = vpop.f32.mrb[25].mxu1  ;;  %v560_v62 = vrot.slane %v12547_v30, 1  ;;  %2014 = vmatprep.mubr.f32.mxu0 %v1307_v43  ;;  %v11452_v12 = vld [vmem:[#allocation2 + $0x328] sm:$0x3]  ;;  %v562_v43 = vrot.slane %v12561_v51, 1 }
 0x171   :  { %2659 = vmatprep.mubr.f32.mxu1 %v556_v2  ;;  %17292 = vst [vmem:[#allocation23_spill] sm:$0xff] %v12556_v36  ;;  %v1310_v2 = vsel %vm468_vm1, %v1308_v45, %v1309_v0  ;;  %v1311_v17 = vrot.slane %v11452_v12, 1  ;;  %v12574_v36 = vld [vmem:[#allocation2 + $0x1f8] sm:$0xff]  ;;  %v11453_v12 = vld [vmem:[#allocation2 + $0x330] sm:$0xff] }
 0x172   :  { %v1751_v19 = vpop.f32.mrb[12].mxu0  ;;  %v561_v53 = vsel %vm468_vm1, %v559_v15, %v560_v62  ;;  %17297 = vst [vmem:[#allocation28_spill] sm:$0xff] %v12574_v36  ;;  %v563_v51 = vsel %vm468_vm1, %v560_v62, %v562_v43 }
 0x173   :  { %v12563_v32 = vpop.f32.mrb[26].mxu1  ;;  %v12570_v44 = vadd.f32 %v12419_v20, %v1751_v19  ;;  %v1753_v11 = vpop.f32.mrb[13].mxu0  ;;  %2015 = vmatmul.mubr.f32.gmra.mrb[118].mxu0 %v11446_v34  ;;  %v1313_v20 = vrot.slane %v11453_v12, 1  ;;  %v11454_v19 = vld [vmem:[#allocation2 + $0x338] sm:$0xff] }
 0x174   :  { %17294 = vst [vmem:[#allocation25_spill] sm:$0xff] %v12563_v32  ;;  %2660 = vmatmul.mubr.f32.gmra.mrb[132].mxu1 %v12515_v39  ;;  %v12567_v10 = vpop.f32.mrb[27].mxu1  ;;  %2019 = vmatprep.mubr.f32.mxu0 %v1310_v2  ;;  %v12576_v32 = vld [vmem:[#allocation2 + $0x200] sm:$0xff]  ;;  %v1314_v11 = vrot.slane %v11454_v19, 1 }
 0x175   :  { %17295 = vst [vmem:[#allocation26_spill] sm:$0xff] %v12567_v10  ;;  %2664 = vmatprep.mubr.f32.mxu1 %v558_v59  ;;  %17296 = vst [vmem:[#allocation27_spill] sm:$0xff] %v12570_v44  ;;  %v1312_v59 = vsel %vm468_vm1, %v1309_v0, %v1311_v17  ;;  %v565_v10 = vrot.slane %v12576_v32, 1  ;;  %v12590_v0 = vld [vmem:[#allocation2 + $0x208] sm:$0x3] }
 0x176   :  { %v1756_v15 = vpop.f32.mrb[14].mxu0  ;;  %17301 = vst [vmem:[#allocation32_spill] sm:$0xff] %v12590_v0 }
 0x177   :  { %v12578_v45 = vpop.f32.mrb[28].mxu1  ;;  %v12585_v2 = vadd.f32 %v12414_v29, %v1756_v15  ;;  %v1758_v44 = vpop.f32.mrb[15].mxu0  ;;  %2020 = vmatmul.mubr.f32.gmra.mrb[120].mxu0 %v11450_v35 }
 0x178   :  { %17298 = vst [vmem:[#allocation29_spill] sm:$0xff] %v12578_v45  ;;  %2665 = vmatmul.mubr.f32.gmra.mrb[134].mxu1 %v12517_v24  ;;  %v12582_v34 = vpop.f32.mrb[29].mxu1  ;;  %v564_v45 = vrot.slane %v12574_v36, 1  ;;  %2024 = vmatprep.mubr.f32.mxu0 %v1312_v59  ;;  %v567_v59 = vrot.slane %v12590_v0, 1 }
 0x179   :  { %17299 = vst [vmem:[#allocation30_spill] sm:$0xff] %v12582_v34  ;;  %2669 = vmatprep.mubr.f32.mxu1 %v561_v53  ;;  %17300 = vst [vmem:[#allocation31_spill] sm:$0xff] %v12585_v2  ;;  %v1315_v53 = vsel %vm468_vm1, %v1313_v20, %v1314_v11  ;;  %v11455_v34 = vld [vmem:[#allocation2 + $0x340] sm:$0x3]  ;;  %v12603_v2 = vld [vmem:[#allocation2 + $0x210] sm:$0xff] }
 0x17a   :  { %v1316_v29 = vrot.slane %v11455_v34, 1  ;;  %v1761_v35 = vpop.f32.mrb[16].mxu0  ;;  %v566_v43 = vsel %vm468_vm1, %v564_v45, %v565_v10  ;;  %17305 = vst [vmem:[#allocation36_spill] sm:$0xff] %v12603_v2  ;;  %v11456_v34 = vld [vmem:[#allocation2] sm:$0xff] }
 0x17b   :  { %v12592_v17 = vpop.f32.mrb[30].mxu1  ;;  %v12599_v62 = vadd.f32 %v12435_v37, %v1761_v35  ;;  %v1763_v44 = vpop.f32.mrb[17].mxu0  ;;  %2025 = vmatmul.mubr.f32.gmra.mrb[122].mxu0 %v11451_v52  ;;  %v694_v37 = vrot.slane %v11456_v34, 2  ;;  %v11457_v35 = vld [vmem:[#allocation2 + $0x8] sm:$0xff] }
 0x17c   :  { %17302 = vst [vmem:[#allocation33_spill] sm:$0xff] %v12592_v17  ;;  %2670 = vmatmul.mubr.f32.gmra.mrb[136].mxu1 %v12545_v28  ;;  %v12596_v15 = vpop.f32.mrb[31].mxu1  ;;  %2029 = vmatprep.mubr.f32.mxu0 %v1315_v53  ;;  %v12605_v17 = vld [vmem:[#allocation2 + $0x218] sm:$0xff]  ;;  %v12611_v44 = vrot.slane %v11457_v35, 2  ;;  %v12621_v35 = vld [vmem:[#allocation2 + $0x220] sm:$0x3] }
 0x17d   :  { %17303 = vst [vmem:[#allocation34_spill] sm:$0xff] %v12596_v15  ;;  %2674 = vmatprep.mubr.f32.mxu1 %v563_v51  ;;  %17304 = vst [vmem:[#allocation35_spill] sm:$0xff] %v12599_v62  ;;  %v1317_v51 = vsel %vm468_vm1, %v1314_v11, %v1316_v29  ;;  %v569_v15 = vrot.slane %v12603_v2, 1  ;;  %v570_v11 = vrot.slane %v12605_v17, 1  ;;  %v11458_v29 = vld [vmem:[#allocation2 + $0x10] sm:$0x3] }
 0x17e   :  { %v1766_v45 = vpop.f32.mrb[18].mxu0  ;;  %v697_v34 = vrot.slane %v11458_v29, 2  ;;  %17309 = vst [vmem:[#allocation40_spill] sm:$0xff] %v12621_v35  ;;  %v3872_v29 = vld [vmem:[#allocation6 + $0x418] sm:$0xff] }
 0x17f   :  { %v12607_v20 = vpop.f32.mrb[32].mxu1  ;;  %v12616_v53 = vadd.f32 %v12429_v31, %v1766_v45  ;;  %v1768_v62 = vpop.f32.mrb[19].mxu0  ;;  %2030 = vmatmul.mubr.f32.gmra.mrb[124].mxu0 %v11453_v12  ;;  %v696_v31 = vsel %vm693_vm0, %v694_v37, %v12611_v44 }
 0x180   :  { %17306 = vst [vmem:[#allocation37_spill] sm:$0xff] %v12607_v20  ;;  %2675 = vmatmul.mubr.f32.gmra.mrb[138].mxu1 %v12547_v30  ;;  %v12613_v52 = vpop.f32.mrb[33].mxu1  ;;  %v568_v20 = vsel %vm468_vm1, %v565_v10, %v567_v59  ;;  %2034 = vmatprep.mubr.f32.mxu0 %v1317_v51  ;;  %v11459_v62 = vld [vmem:[#allocation2 + $0x18] sm:$0xff]  ;;  %v698_v37 = vsel %vm693_vm0, %v12611_v44, %v697_v34 }
 0x181   :  { %17307 = vst [vmem:[#allocation38_spill] sm:$0xff] %v12613_v52  ;;  %2679 = vmatprep.mubr.f32.mxu1 %v566_v43  ;;  %17308 = vst [vmem:[#allocation39_spill] sm:$0xff] %v12616_v53  ;;  %v699_v12 = vrot.slane %v11459_v62, 2  ;;  %v11460_v43 = vld [vmem:[#allocation2 + $0x20] sm:$0xff]  ;;  %v3871_v53 = vld [vmem:[#allocation6 + $0x410] sm:$0xff] }
 0x182   :  { %v700_v10 = vrot.slane %v11460_v43, 2  ;;  %v1771_v45 = vpop.f32.mrb[20].mxu0  ;;  %v11461_v62 = vld [vmem:[#allocation2 + $0x28] sm:$0x3] }
 0x183   :  { %v12623_v0 = vpop.f32.mrb[34].mxu1  ;;  %v12631_v51 = vadd.f32 %v12448_v40, %v1771_v45  ;;  %v1773_v52 = vpop.f32.mrb[21].mxu0  ;;  %2035 = vmatmul.mubr.f32.gmra.mrb[126].mxu0 %v11454_v19  ;;  %v702_v43 = vrot.slane %v11461_v62, 2  ;;  %v11462_v19 = vld [vmem:[#allocation2 + $0x30] sm:$0xff]  ;;  %v3873_v62 = vld [vmem:[#allocation6 + $0x420] sm:$0xff] }
 0x184   :  { %17310 = vst [vmem:[#allocation41_spill] sm:$0xff] %v12623_v0  ;;  %2680 = vmatmul.mubr.f32.gmra.mrb[140].mxu1 %v12574_v36  ;;  %v12628_v59 = vpop.f32.mrb[35].mxu1  ;;  %v571_v0 = vsel %vm468_vm1, %v569_v15, %v570_v11  ;;  %v572_v36 = vrot.slane %v12621_v35, 1  ;;  %10345 = vmatprep.mubr.f32.mxu0 %v696_v31  ;;  %v701_v40 = vsel %vm693_vm0, %v699_v12, %v700_v10  ;;  %v704_v15 = vrot.slane %v11462_v19, 2  ;;  %v11463_v52 = vld [vmem:[#allocation2 + $0x38] sm:$0xff]  ;;  %v3874_v35 = vld [vmem:[#allocation6 + $0x428] sm:$0xff] }
 0x185   :  { %17311 = vst [vmem:[#allocation42_spill] sm:$0xff] %v12628_v59  ;;  %2684 = vmatprep.mubr.f32.mxu1 %v568_v20  ;;  %17312 = vst [vmem:[#allocation43_spill] sm:$0xff] %v12631_v51  ;;  %v12637_v59 = vld [vmem:[#allocation2 + $0x228] sm:$0xff]  ;;  %v12639_v20 = vld [vmem:[#allocation2 + $0x230] sm:$0xff]  ;;  %v705_v45 = vrot.slane %v11463_v52, 2  ;;  %v11165_v31 = vpack.c.bf16 %v3872_v29, %v3871_v53  ;;  %v703_v53 = vsel %vm693_vm0, %v700_v10, %v702_v43 }
 0x186   :  { %v1776_v34 = vpop.f32.mrb[22].mxu0  ;;  %v574_v12 = vrot.slane %v12637_v59, 1  ;;  %v575_v19 = vrot.slane %v12639_v20, 1  ;;  %v11464_v29 = vld [vmem:[#allocation2 + $0x40] sm:$0x3]  ;;  %v3875_v10 = vld [vmem:[#allocation6 + $0x430] sm:$0xff] }
 0x187   :  { %v12641_v30 = vpop.f32.mrb[36].mxu1  ;;  %v12648_v28 = vadd.f32 %v12443_v13, %v1776_v34  ;;  %v1778_v24 = vpop.f32.mrb[23].mxu0  ;;  %10346 = vmatmul.mubr.f32.vlgmr.msra.gmra.mrb[128].mxu0 %v698_v37  ;;  %v12655_v52 = vld [vmem:[#allocation2 + $0x238] sm:$0x3]  ;;  %v706_v13 = vsel %vm693_vm0, %v704_v15, %v705_v45 }
 0x188   :  { %17313 = vst [vmem:[#allocation44_spill] sm:$0xff] %v12641_v30  ;;  %2685 = vmatmul.mubr.f32.gmra.mrb[142].mxu1 %v12576_v32  ;;  %v12645_v51 = vpop.f32.mrb[37].mxu1  ;;  %v573_v30 = vsel %vm468_vm1, %v570_v11, %v572_v36  ;;  %11164 = vmatpush3.bf16.msra.mxu0 %v12287_v23  ;;  %17316 = vst [vmem:[#allocation47_spill] sm:$0xff] %v12655_v52  ;;  %v11465_v24 = vld [vmem:[#allocation2 + $0x48] sm:$0xff]  ;;  %v11466_v11 = vld [vmem:[#allocation2 + $0x50] sm:$0xff]  ;;  %v11169_v23 = vpack.c.bf16 %v3874_v35, %v3873_v62  ;;  %v577_v15 = vrot.slane %v12655_v52, 1 }
 0x189   :  { %17314 = vst [vmem:[#allocation45_spill] sm:$0xff] %v12645_v51  ;;  %2689 = vmatprep.mubr.f32.mxu1 %v571_v0  ;;  %17315 = vst [vmem:[#allocation46_spill] sm:$0xff] %v12648_v28  ;;  %10348 = vmatprep.mubr.f32.mxu0 %v701_v40  ;;  %v707_v0 = vrot.slane %v11464_v29, 2  ;;  %v709_v36 = vrot.slane %v11465_v24, 2  ;;  %v710_v37 = vrot.slane %v11466_v11, 2  ;;  %v3876_v43 = vld [vmem:[#allocation6 + $0x438] sm:$0xff]  ;;  %v576_v28 = vsel %vm468_vm1, %v574_v12, %v575_v19 }
 0x18a   :  { %11166 = vmatprep.subr.bf16.mxu0 %v11165_v31  ;;  %v1781_v40 = vpop.f32.mrb[24].mxu0  ;;  %v11467_v11 = vld [vmem:[#allocation2 + $0x58] sm:$0x3]  ;;  %v12671_v35 = vld [vmem:[#allocation2 + $0x248] sm:$0xff] }
 0x18b   :  { %v12657_v51 = vpop.f32.mrb[38].mxu1  ;;  %v12664_v29 = vadd.f32 %v12463_v58, %v1781_v40  ;;  %10349 = vmatmul.mubr.f32.gmra.mrb[130].mxu0 %v703_v53  ;;  %v708_v24 = vsel %vm693_vm0, %v705_v45, %v707_v0  ;;  %v711_v58 = vsel %vm693_vm0, %v709_v36, %v710_v37  ;;  %v11469_v12 = vld [vmem:[#allocation2 + $0x68] sm:$0xff]  ;;  %v11173_v45 = vpack.c.bf16 %v3876_v43, %v3875_v10  ;;  %v3877_v40 = vld [vmem:[#allocation6 + $0x440] sm:$0xff]  ;;  %v12686_v43 = vld [vmem:[#allocation2 + $0x250] sm:$0x3] }
 0x18c   :  { %17317 = vst [vmem:[#allocation48_spill] sm:$0xff] %v12657_v51  ;;  %2690 = vmatmul.mubr.f32.gmra.mrb[144].mxu1 %v12603_v2  ;;  %v12661_v34 = vpop.f32.mrb[39].mxu1  ;;  %v1783_v51 = vpop.f32.mrb[25].mxu0  ;;  %10351 = vmatprep.mubr.f32.mxu0 %v706_v13  ;;  %v712_v2 = vrot.slane %v11467_v11, 2  ;;  %v715_v53 = vrot.slane %v11469_v12, 2  ;;  %v3878_v11 = vld [vmem:[#allocation6 + $0x448] sm:$0xff] }
 0x18d   :  { %17318 = vst [vmem:[#allocation49_spill] sm:$0xff] %v12661_v34  ;;  %2694 = vmatprep.mubr.f32.mxu1 %v573_v30  ;;  %17319 = vst [vmem:[#allocation50_spill] sm:$0xff] %v12664_v29  ;;  %v12669_v34 = vld [vmem:[#allocation2 + $0x240] sm:$0xff]  ;;  %11168 = vmatpush3.bf16.msra.mxu0 %v11165_v31  ;;  %v578_v29 = vsel %vm468_vm1, %v575_v19, %v577_v15  ;;  %v12700_v52 = vld [vmem:[#allocation2 + $0x258] sm:$0xff] }
 0x18e   :  { %v11468_v51 = vld [vmem:[#allocation2 + $0x60] sm:$0xff]  ;;  %11170 = vmatprep.subr.bf16.mxu0 %v11169_v23  ;;  %v1786_v0 = vpop.f32.mrb[26].mxu0  ;;  %v579_v36 = vrot.slane %v12669_v34, 1  ;;  %v713_v12 = vsel %vm693_vm0, %v710_v37, %v712_v2  ;;  %17323 = vst [vmem:[#allocation54_spill] sm:$0xff] %v12686_v43  ;;  %v3879_v37 = vld [vmem:[#allocation6 + $0x450] sm:$0xff] }
 0x18f   :  { %v12673_v30 = vpop.f32.mrb[40].mxu1  ;;  %v714_v62 = vrot.slane %v11468_v51, 2  ;;  %v12680_v31 = vadd.f32 %v12457_v49, %v1786_v0  ;;  %10352 = vmatmul.mubr.f32.gmra.mrb[132].mxu0 %v708_v24  ;;  %v580_v51 = vrot.slane %v12671_v35, 1  ;;  %v11471_v24 = vld [vmem:[#allocation2 + $0x78] sm:$0xff]  ;;  %v11472_v15 = vld [vmem:[#allocation2 + $0x80] sm:$0xff] }
 0x190   :  { %17320 = vst [vmem:[#allocation51_spill] sm:$0xff] %v12673_v30  ;;  %2695 = vmatmul.mubr.f32.gmra.mrb[146].mxu1 %v12605_v17  ;;  %v12677_v13 = vpop.f32.mrb[41].mxu1  ;;  %v1788_v30 = vpop.f32.mrb[27].mxu0  ;;  %10354 = vmatprep.mubr.f32.mxu0 %v711_v58  ;;  %v719_v19 = vrot.slane %v11471_v24, 2  ;;  %v11177_v58 = vpack.c.bf16 %v3878_v11, %v3877_v40  ;;  %v12702_v40 = vld [vmem:[#allocation2 + $0x260] sm:$0xff]  ;;  %v11474_v11 = vld [vmem:[#allocation2 + $0x90] sm:$0xff] }
 0x191   :  { %17321 = vst [vmem:[#allocation52_spill] sm:$0xff] %v12677_v13  ;;  %2699 = vmatprep.mubr.f32.mxu1 %v576_v28  ;;  %17322 = vst [vmem:[#allocation53_spill] sm:$0xff] %v12680_v31  ;;  %v11470_v13 = vld [vmem:[#allocation2 + $0x70] sm:$0x3]  ;;  %11172 = vmatpush3.bf16.msra.mxu0 %v11169_v23  ;;  %v716_v49 = vsel %vm693_vm0, %v714_v62, %v715_v53  ;;  %v720_v30 = vrot.slane %v11472_v15, 2  ;;  %v582_v62 = vrot.slane %v12686_v43, 1 }
 0x192   :  { %v717_v10 = vrot.slane %v11470_v13, 2  ;;  %11174 = vmatprep.subr.bf16.mxu0 %v11173_v45  ;;  %v1791_v2 = vpop.f32.mrb[28].mxu0  ;;  %v3880_v13 = vld [vmem:[#allocation6 + $0x458] sm:$0xff]  ;;  %v11473_v15 = vld [vmem:[#allocation2 + $0x88] sm:$0x3]  ;;  %v12731_v43 = vld [vmem:[#allocation2 + $0x270] sm:$0xff] }
 0x193   :  { %v12688_v28 = vpop.f32.mrb[42].mxu1  ;;  %v12695_v31 = vadd.f32 %v12476_v46, %v1791_v2  ;;  %v1793_v23 = vpop.f32.mrb[29].mxu0  ;;  %10355 = vmatmul.mubr.f32.gmra.mrb[134].mxu0 %v713_v12  ;;  %v721_v46 = vsel %vm693_vm0, %v719_v19, %v720_v30  ;;  %v11475_v12 = vld [vmem:[#allocation2 + $0x98] sm:$0xff]  ;;  %v584_v19 = vrot.slane %v12700_v52, 1 }
 0x194   :  { %17324 = vst [vmem:[#allocation55_spill] sm:$0xff] %v12688_v28  ;;  %2700 = vmatmul.mubr.f32.gmra.mrb[148].mxu1 %v12637_v59  ;;  %v12692_v0 = vpop.f32.mrb[43].mxu1  ;;  %v581_v28 = vsel %vm468_vm1, %v579_v36, %v580_v51  ;;  %10357 = vmatprep.mubr.f32.mxu0 %v716_v49  ;;  %v718_v24 = vsel %vm693_vm0, %v715_v53, %v717_v10  ;;  %v724_v36 = vrot.slane %v11474_v11, 2  ;;  %v725_v2 = vrot.slane %v11475_v12, 2  ;;  %v3881_v23 = vld [vmem:[#allocation6 + $0x460] sm:$0xff] }
 0x195   :  { %17325 = vst [vmem:[#allocation56_spill] sm:$0xff] %v12692_v0  ;;  %2704 = vmatprep.mubr.f32.mxu1 %v578_v29  ;;  %17326 = vst [vmem:[#allocation57_spill] sm:$0xff] %v12695_v31  ;;  %v722_v0 = vrot.slane %v11473_v15, 2  ;;  %11176 = vmatpush3.bf16.msra.mxu0 %v11173_v45  ;;  %v11181_v53 = vpack.c.bf16 %v3880_v13, %v3879_v37  ;;  %v3882_v15 = vld [vmem:[#allocation6 + $0x468] sm:$0xff]  ;;  %v585_v11 = vrot.slane %v12702_v40, 1 }
 0x196   :  { %11178 = vmatprep.subr.bf16.mxu0 %v11177_v58  ;;  %v1796_v10 = vpop.f32.mrb[30].mxu0  ;;  %v12717_v13 = vld [vmem:[#allocation2 + $0x268] sm:$0x3] }
 0x197   :  { %v12704_v29 = vpop.f32.mrb[44].mxu1  ;;  %v12711_v31 = vadd.f32 %v12471_v26, %v1796_v10  ;;  %v1798_v45 = vpop.f32.mrb[31].mxu0  ;;  %10358 = vmatmul.mubr.f32.gmra.mrb[136].mxu0 %v718_v24  ;;  %v723_v12 = vsel %vm693_vm0, %v720_v30, %v722_v0  ;;  %v726_v26 = vsel %vm693_vm0, %v724_v36, %v725_v2  ;;  %v11477_v24 = vld [vmem:[#allocation2 + $0xa8] sm:$0xff]  ;;  %v3883_v0 = vld [vmem:[#allocation6 + $0x470] sm:$0xff]  ;;  %v587_v36 = vrot.slane %v12717_v13, 1 }
 0x198   :  { %17327 = vst [vmem:[#allocation58_spill] sm:$0xff] %v12704_v29  ;;  %2705 = vmatmul.mubr.f32.gmra.mrb[150].mxu1 %v12639_v20  ;;  %v12708_v49 = vpop.f32.mrb[45].mxu1  ;;  %v583_v29 = vsel %vm468_vm1, %v580_v51, %v582_v62  ;;  %10360 = vmatprep.mubr.f32.mxu0 %v721_v46  ;;  %v729_v51 = vrot.slane %v11477_v24, 2  ;;  %v11478_v62 = vld [vmem:[#allocation2 + $0xb0] sm:$0xff]  ;;  %v11185_v46 = vpack.c.bf16 %v3882_v15, %v3881_v23  ;;  %v12733_v23 = vld [vmem:[#allocation2 + $0x278] sm:$0xff]  ;;  %v11480_v15 = vld [vmem:[#allocation2 + $0xc0] sm:$0xff] }
 0x199   :  { %17328 = vst [vmem:[#allocation59_spill] sm:$0xff] %v12708_v49  ;;  %2709 = vmatprep.mubr.f32.mxu1 %v581_v28  ;;  %17329 = vst [vmem:[#allocation60_spill] sm:$0xff] %v12711_v31  ;;  %v11476_v49 = vld [vmem:[#allocation2 + $0xa0] sm:$0x3]  ;;  %11180 = vmatpush3.bf16.msra.mxu0 %v11177_v58  ;;  %v730_v10 = vrot.slane %v11478_v62, 2 }
 0x19a   :  { %v727_v37 = vrot.slane %v11476_v49, 2  ;;  %11182 = vmatprep.subr.bf16.mxu0 %v11181_v53  ;;  %v1801_v30 = vpop.f32.mrb[32].mxu0  ;;  %v3884_v49 = vld [vmem:[#allocation6 + $0x478] sm:$0xff] }
 0x19b   :  { %v12719_v28 = vpop.f32.mrb[46].mxu1  ;;  %v12726_v31 = vadd.f32 %v12492_v61, %v1801_v30  ;;  %v1803_v58 = vpop.f32.mrb[33].mxu0  ;;  %10361 = vmatmul.mubr.f32.gmra.mrb[138].mxu0 %v723_v12  ;;  %v11479_v62 = vld [vmem:[#allocation2 + $0xb8] sm:$0x3]  ;;  %v731_v61 = vsel %vm693_vm0, %v729_v51, %v730_v10  ;;  %v11481_v12 = vld [vmem:[#allocation2 + $0xc8] sm:$0xff]  ;;  %v590_v51 = vrot.slane %v12733_v23, 1 }
 0x19c   :  { %17330 = vst [vmem:[#allocation61_spill] sm:$0xff] %v12719_v28  ;;  %2710 = vmatmul.mubr.f32.gmra.mrb[152].mxu1 %v12669_v34  ;;  %v12723_v45 = vpop.f32.mrb[47].mxu1  ;;  %v586_v28 = vsel %vm468_vm1, %v584_v19, %v585_v11  ;;  %10363 = vmatprep.mubr.f32.mxu0 %v726_v26  ;;  %v728_v24 = vsel %vm693_vm0, %v725_v2, %v727_v37  ;;  %v734_v19 = vrot.slane %v11480_v15, 2  ;;  %v735_v30 = vrot.slane %v11481_v12, 2  ;;  %v11482_v12 = vld [vmem:[#allocation2 + $0xd0] sm:$0x3] }
 0x19d   :  { %17331 = vst [vmem:[#allocation62_spill] sm:$0xff] %v12723_v45  ;;  %2714 = vmatprep.mubr.f32.mxu1 %v583_v29  ;;  %17332 = vst [vmem:[#allocation63_spill] sm:$0xff] %v12726_v31  ;;  %v732_v45 = vrot.slane %v11479_v62, 2  ;;  %11184 = vmatpush3.bf16.msra.mxu0 %v11181_v53  ;;  %v11189_v2 = vpack.c.bf16 %v3884_v49, %v3883_v0  ;;  %v588_v53 = vsel %vm468_vm1, %v585_v11, %v587_v36  ;;  %v12748_v31 = vld [vmem:[#allocation2 + $0x280] sm:$0x3] }
 0x19e   :  { %11186 = vmatprep.subr.bf16.mxu0 %v11185_v46  ;;  %v1806_v37 = vpop.f32.mrb[34].mxu0  ;;  %v11484_v49 = vld [vmem:[#allocation2 + $0xe0] sm:$0xff] }
 0x19f   :  { %v12735_v29 = vpop.f32.mrb[48].mxu1  ;;  %v12742_v58 = vadd.f32 %v12486_v4, %v1806_v37  ;;  %v1808_v62 = vpop.f32.mrb[35].mxu0  ;;  %10364 = vmatmul.mubr.f32.gmra.mrb[140].mxu0 %v728_v24  ;;  %v733_v15 = vsel %vm693_vm0, %v730_v10, %v732_v45  ;;  %v736_v4 = vsel %vm693_vm0, %v734_v19, %v735_v30  ;;  %v740_v36 = vrot.slane %v11484_v49, 2  ;;  %v12764_v49 = vld [vmem:[#allocation2 + $0x288] sm:$0xff] }
 0x1a0   :  { %17333 = vst [vmem:[#allocation64_spill] sm:$0xff] %v12735_v29  ;;  %2715 = vmatmul.mubr.f32.gmra.mrb[154].mxu1 %v12671_v35  ;;  %v12739_v26 = vpop.f32.mrb[49].mxu1  ;;  %v589_v29 = vrot.slane %v12731_v43, 1  ;;  %10366 = vmatprep.mubr.f32.mxu0 %v731_v61  ;;  %v592_v37 = vrot.slane %v12748_v31, 1  ;;  %v11485_v62 = vld [vmem:[#allocation2 + $0xe8] sm:$0x3] }
 0x1a1   :  { %17334 = vst [vmem:[#allocation65_spill] sm:$0xff] %v12739_v26  ;;  %2719 = vmatprep.mubr.f32.mxu1 %v586_v28  ;;  %v737_v26 = vrot.slane %v11482_v12, 2  ;;  %11188 = vmatpush3.bf16.msra.mxu0 %v11185_v46  ;;  %v11483_v28 = vld [vmem:[#allocation2 + $0xd8] sm:$0xff]  ;;  %v742_v12 = vrot.slane %v11485_v62, 2 }
 0x1a2   :  { %v739_v11 = vrot.slane %v11483_v28, 2  ;;  %11190 = vmatprep.subr.bf16.mxu0 %v11189_v2  ;;  %v1811_v61 = vpop.f32.mrb[36].mxu0  ;;  %v591_v46 = vsel %vm468_vm1, %v589_v29, %v590_v51  ;;  %v744_v29 = vrot.slane %v12333_v6, 2 }
 0x1a3   :  { %v12750_v0 = vpop.f32.mrb[50].mxu1  ;;  %v12757_v10 = vadd.f32 %v12506_v60, %v1811_v61  ;;  %v1813_v45 = vpop.f32.mrb[37].mxu0  ;;  %10367 = vmatmul.mubr.f32.gmra.mrb[142].mxu0 %v733_v15  ;;  %v738_v19 = vsel %vm693_vm0, %v735_v30, %v737_v26  ;;  %v594_v61 = vrot.slane %v12764_v49, 1  ;;  %v743_v6 = vsel %vm693_vm0, %v740_v36, %v742_v12 }
 0x1a4   :  { %17335 = vst [vmem:[#allocation66_spill] sm:$0xff] %v12750_v0  ;;  %2720 = vmatmul.mubr.f32.gmra.mrb[156].mxu1 %v12700_v52  ;;  %v12754_v24 = vpop.f32.mrb[51].mxu1  ;;  %10369 = vmatprep.mubr.f32.mxu0 %v736_v4  ;;  %v12766_v0 = vld [vmem:[#allocation2 + $0x290] sm:$0xff]  ;;  %v741_v60 = vsel %vm693_vm0, %v739_v11, %v740_v36 }
 0x1a5   :  { %2724 = vmatprep.mubr.f32.mxu1 %v588_v53  ;;  %11192 = vmatpush3.bf16.msra.mxu0 %v11189_v2  ;;  %v745_v53 = vrot.slane %v12335_v1, 2  ;;  %v593_v2 = vsel %vm468_vm1, %v590_v51, %v592_v37  ;;  %v595_v11 = vrot.slane %v12766_v0, 1  ;;  %v11486_v1 = vld [vmem:[#allocation2 + $0x100] sm:$0x3]  ;;  %v749_v51 = vrot.slane %v12348_v63, 2 }
 0x1a6   :  { %11193 = vmatprep.subr.bf16.mxu0 %v17267_v38  ;;  %v1816_v30 = vpop.f32.mrb[38].mxu0  ;;  %v747_v45 = vrot.slane %v11486_v1, 2  ;;  %v750_v37 = vrot.slane %v12350_v3, 2  ;;  %v752_v63 = vrot.slane %v12359_v8, 2  ;;  %v12801_v1 = vld [vmem:[#allocation2 + $0x2a0] sm:$0xff]  ;;  %v12803_v3 = vld [vmem:[#allocation2 + $0x2a8] sm:$0xff] }
 0x1a7   :  { %v12762_v28 = vpop.f32.mrb[52].mxu1  ;;  %v12776_v26 = vadd.f32 %v12501_v57, %v1816_v30  ;;  %v1818_v4 = vpop.f32.mrb[39].mxu0  ;;  %10370 = vmatmul.mubr.f32.gmra.mrb[144].mxu0 %v738_v19  ;;  %v746_v57 = vsel %vm693_vm0, %v744_v29, %v745_v53 }
 0x1a8   :  { %17336 = vst [vmem:[#allocation67_spill] sm:$0xff] %v12762_v28  ;;  %2725 = vmatmul.mubr.f32.gmra.mrb[158].mxu1 %v12702_v40  ;;  %v12772_v15 = vpop.f32.mrb[53].mxu1  ;;  %10372 = vmatprep.mubr.f32.mxu0 %v741_v60  ;;  %v12784_v28 = vld [vmem:[#allocation2 + $0x298] sm:$0x3]  ;;  %v596_v60 = vsel %vm468_vm1, %v594_v61, %v595_v11  ;;  %v748_v29 = vsel %vm693_vm0, %v745_v53, %v747_v45  ;;  %v754_v61 = vrot.slane %v12368_v41, 2  ;;  %v757_v41 = vrot.slane %v12384_v14, 2 }
 0x1a9   :  { %2729 = vmatprep.mubr.f32.mxu1 %v591_v46  ;;  %v597_v30 = vrot.slane %v12784_v28, 1 }
 0x1aa   :  { %v1821_v19 = vpop.f32.mrb[40].mxu0 }
 0x1ab   :  { %v12782_v62 = vpop.f32.mrb[54].mxu1  ;;  %v12793_v36 = vadd.f32 %v12523_v50, %v1821_v19  ;;  %v1823_v12 = vpop.f32.mrb[41].mxu0  ;;  %10373 = vmatmul.mubr.f32.gmra.mrb[146].mxu0 %v743_v6  ;;  %v751_v50 = vsel %vm693_vm0, %v749_v51, %v750_v37  ;;  %v755_v6 = vrot.slane %v12370_v22, 2  ;;  %v598_v45 = vsel %vm468_vm1, %v595_v11, %v597_v30  ;;  %v12821_v22 = vld [vmem:[#allocation2 + $0x2b0] sm:$0x3] }
 0x1ac   :  { %17337 = vst [vmem:[#allocation68_spill] sm:$0xff] %v12782_v62  ;;  %2730 = vmatmul.mubr.f32.gmra.mrb[160].mxu1 %v12731_v43  ;;  %v12788_v46 = vpop.f32.mrb[55].mxu1  ;;  %10375 = vmatprep.mubr.f32.mxu0 %v746_v57  ;;  %v599_v19 = vrot.slane %v12801_v1, 1  ;;  %v600_v12 = vrot.slane %v12803_v3, 1  ;;  %v753_v51 = vsel %vm693_vm0, %v750_v37, %v752_v63  ;;  %v759_v11 = vrot.slane %v12396_v55, 2 }
 0x1ad   :  { %17338 = vst [vmem:[#allocation69_spill] sm:$0xff] %v12788_v46  ;;  %2734 = vmatprep.mubr.f32.mxu1 %v593_v2  ;;  %v760_v30 = vrot.slane %v12398_v18, 2  ;;  %v762_v55 = vrot.slane %v12412_v7, 2  ;;  %v12840_v18 = vld [vmem:[#allocation2 + $0x2c0] sm:$0xff] }
 0x1ae   :  { %v1826_v57 = vpop.f32.mrb[42].mxu0  ;;  %v601_v14 = vsel %vm468_vm1, %v599_v19, %v600_v12  ;;  %v764_v19 = vrot.slane %v12425_v25, 2 }
 0x1af   :  { %v12798_v4 = vpop.f32.mrb[56].mxu1  ;;  %v12812_v53 = vadd.f32 %v12519_v56, %v1826_v57  ;;  %v1828_v8 = vpop.f32.mrb[43].mxu0  ;;  %10376 = vmatmul.mubr.f32.gmra.mrb[148].mxu0 %v748_v29  ;;  %v763_v25 = vsel %vm693_vm0, %v760_v30, %v762_v55 }
 0x1b0   :  { %17339 = vst [vmem:[#allocation70_spill] sm:$0xff] %v12798_v4  ;;  %2735 = vmatmul.mubr.f32.gmra.mrb[162].mxu1 %v12733_v23  ;;  %v12807_v2 = vpop.f32.mrb[57].mxu1  ;;  %10378 = vmatprep.mubr.f32.mxu0 %v751_v50  ;;  %v602_v50 = vrot.slane %v12821_v22, 1  ;;  %v12838_v8 = vld [vmem:[#allocation2 + $0x2b8] sm:$0xff] }
 0x1b1   :  { %17340 = vst [vmem:[#allocation71_spill] sm:$0xff] %v12807_v2  ;;  %2739 = vmatprep.mubr.f32.mxu1 %v596_v60  ;;  %v756_v60 = vsel %vm693_vm0, %v754_v61, %v755_v6  ;;  %v758_v61 = vsel %vm693_vm0, %v755_v6, %v757_v41 }
 0x1b2   :  { %v1831_v29 = vpop.f32.mrb[44].mxu0  ;;  %v603_v41 = vsel %vm468_vm1, %v600_v12, %v602_v50  ;;  %v769_v12 = vrot.slane %v12453_v5, 2  ;;  %v770_v50 = vrot.slane %v12455_v54, 2  ;;  %v12873_v5 = vld [vmem:[#allocation2 + $0x2d0] sm:$0xff]  ;;  %v12875_v54 = vld [vmem:[#allocation2 + $0x2d8] sm:$0xff] }
 0x1b3   :  { %v12818_v4 = vpop.f32.mrb[58].mxu1  ;;  %v12830_v37 = vadd.f32 %v12538_v42, %v1831_v29  ;;  %v1833_v63 = vpop.f32.mrb[45].mxu0  ;;  %10379 = vmatmul.mubr.f32.gmra.mrb[150].mxu0 %v753_v51  ;;  %v765_v51 = vrot.slane %v12427_v48, 2  ;;  %v604_v29 = vrot.slane %v12838_v8, 1  ;;  %v767_v48 = vrot.slane %v12441_v33, 2 }
 0x1b4   :  { %17341 = vst [vmem:[#allocation72_spill] sm:$0xff] %v12818_v4  ;;  %2740 = vmatmul.mubr.f32.gmra.mrb[164].mxu1 %v12764_v49  ;;  %v12824_v56 = vpop.f32.mrb[59].mxu1  ;;  %10381 = vmatprep.mubr.f32.mxu0 %v756_v60  ;;  %v605_v63 = vrot.slane %v12840_v18, 1 }
 0x1b5   :  { %17342 = vst [vmem:[#allocation73_spill] sm:$0xff] %v12824_v56  ;;  %2744 = vmatprep.mubr.f32.mxu1 %v598_v45  ;;  %v761_v45 = vsel %vm693_vm0, %v759_v11, %v760_v30  ;;  %v12858_v11 = vld [vmem:[#allocation2 + $0x2c8] sm:$0x3] }
 0x1b6   :  { %v1836_v60 = vpop.f32.mrb[46].mxu0  ;;  %v606_v33 = vsel %vm468_vm1, %v604_v29, %v605_v63  ;;  %v607_v55 = vrot.slane %v12858_v11, 1  ;;  %v771_v29 = vsel %vm693_vm0, %v769_v12, %v770_v50  ;;  %v17349_v12 = vld [vmem:[#allocation14_spill] sm:$0xff] }
 0x1b7   :  { %v12834_v57 = vpop.f32.mrb[60].mxu1  ;;  %v12849_v6 = vadd.f32 %v12534_v47, %v1836_v60  ;;  %v1838_v7 = vpop.f32.mrb[47].mxu0  ;;  %10382 = vmatmul.mubr.f32.gmra.mrb[152].mxu0 %v758_v61 }
 0x1b8   :  { %17343 = vst [vmem:[#allocation74_spill] sm:$0xff] %v12834_v57  ;;  %2745 = vmatmul.mubr.f32.gmra.mrb[166].mxu1 %v12766_v0  ;;  %v12843_v42 = vpop.f32.mrb[61].mxu1  ;;  %10384 = vmatprep.mubr.f32.mxu0 %v761_v45  ;;  %v768_v7 = vsel %vm693_vm0, %v765_v51, %v767_v48  ;;  %v608_v48 = vsel %vm468_vm1, %v605_v63, %v607_v55  ;;  %v779_v55 = vrot.slane %v12515_v39, 2 }
 0x1b9   :  { %17344 = vst [vmem:[#allocation75_spill] sm:$0xff] %v12843_v42  ;;  %2749 = vmatprep.mubr.f32.mxu1 %v601_v14  ;;  %v766_v14 = vsel %vm693_vm0, %v764_v19, %v765_v51  ;;  %v772_v19 = vrot.slane %v12469_v9, 2 }
 0x1ba   :  { %v1841_v61 = vpop.f32.mrb[48].mxu0 }
 0x1bb   :  { %v12854_v57 = vpop.f32.mrb[62].mxu1  ;;  %v12867_v45 = vadd.f32 %v12553_v27, %v1841_v61  ;;  %v1843_v30 = vpop.f32.mrb[49].mxu0  ;;  %10385 = vmatmul.mubr.f32.gmra.mrb[154].mxu0 %v763_v25  ;;  %v774_v25 = vrot.slane %v12484_v16, 2  ;;  %v12891_v16 = vld [vmem:[#allocation2 + $0x2e0] sm:$0x3] }
 0x1bc   :  { %17345 = vst [vmem:[#allocation76_spill] sm:$0xff] %v12854_v57  ;;  %2750 = vmatmul.mubr.f32.gmra.mrb[168].mxu1 %v12801_v1  ;;  %v12861_v47 = vpop.f32.mrb[63].mxu1  ;;  %10387 = vmatprep.mubr.f32.mxu0 %v766_v14  ;;  %v17348_v14 = vld [vmem:[#allocation22_spill] sm:$0xff]  ;;  %v609_v30 = vrot.slane %v12873_v5, 1 }
 0x1bd   :  { %17346 = vst [vmem:[#allocation77_spill] sm:$0xff] %v12861_v47  ;;  %2754 = vmatprep.mubr.f32.mxu1 %v603_v41  ;;  %v776_v63 = vsel %vm693_vm0, %v774_v25, %v12611_v44 }
 0x1be   :  { %v1846_v61 = vpop.f32.mrb[50].mxu0 }
 0x1bf   :  { %v2491_v60 = vpop.f32.mrb[64].mxu1  ;;  %v12884_v51 = vadd.f32 %v17348_v14, %v1846_v61  ;;  %v1848_v9 = vpop.f32.mrb[51].mxu0  ;;  %10388 = vmatmul.mubr.f32.gmra.mrb[156].mxu0 %v768_v7  ;;  %v17352_v61 = vld [vmem:[#allocation16_spill] sm:$0xff] }
 0x1c0   :  { %v12878_v41 = vadd.f32 %v2491_v60, %v12480_v21  ;;  %2755 = vmatmul.mubr.f32.gmra.mrb[170].mxu1 %v12803_v3  ;;  %v2493_v27 = vpop.f32.mrb[65].mxu1  ;;  %v610_v21 = vrot.slane %v12875_v54, 1  ;;  %10390 = vmatprep.mubr.f32.mxu0 %v771_v29  ;;  %v780_v14 = vrot.slane %v17352_v61, 2  ;;  %v12911_v61 = vld [vmem:[#allocation2 + $0x2f0] sm:$0xff] }
 0x1c1   :  { %2759 = vmatprep.mubr.f32.mxu1 %v606_v33  ;;  %v773_v27 = vsel %vm693_vm0, %v770_v50, %v772_v19  ;;  %v17350_v33 = vld [vmem:[#allocation13_spill] sm:$0xff]  ;;  %v17353_v50 = vld [vmem:[#allocation26_spill] sm:$0xff] }
 0x1c2   :  { %17347 = vst [vmem:[#allocation78_spill] sm:$0xff] %v12878_v41  ;;  %v777_v41 = vrot.slane %v17349_v12, 2  ;;  %v1851_v29 = vpop.f32.mrb[52].mxu0  ;;  %v612_v12 = vrot.slane %v12891_v16, 1 }
 0x1c3   :  { %v2496_v60 = vpop.f32.mrb[66].mxu1  ;;  %v12902_v19 = vadd.f32 %v17353_v50, %v1851_v29  ;;  %v1853_v9 = vpop.f32.mrb[53].mxu0  ;;  %10391 = vmatmul.mubr.f32.gmra.mrb[158].mxu0 %v773_v27  ;;  %v17357_v50 = vld [vmem:[#allocation20_spill] sm:$0xff] }
 0x1c4   :  { %v12894_v57 = vadd.f32 %v2496_v60, %v17350_v33  ;;  %2760 = vmatmul.mubr.f32.gmra.mrb[172].mxu1 %v12838_v8  ;;  %v2498_v7 = vpop.f32.mrb[67].mxu1  ;;  %v611_v60 = vsel %vm468_vm1, %v609_v30, %v610_v21  ;;  %10393 = vmatprep.mubr.f32.mxu0 %v776_v63  ;;  %v778_v25 = vsel %vm693_vm0, %v12611_v44, %v777_v41  ;;  %v784_v9 = vrot.slane %v17357_v50, 2  ;;  %v17358_v63 = vld [vmem:[#allocation21_spill] sm:$0xff]  ;;  %v17360_v50 = vld [vmem:[#allocation24_spill] sm:$0xff] }
 0x1c5   :  { %2764 = vmatprep.mubr.f32.mxu1 %v608_v48  ;;  %v17354_v7 = vld [vmem:[#allocation18_spill] sm:$0xff]  ;;  %v17355_v48 = vld [vmem:[#allocation15_spill] sm:$0xff]  ;;  %v781_v30 = vsel %vm693_vm0, %v779_v55, %v780_v14  ;;  %v785_v47 = vrot.slane %v17358_v63, 2  ;;  %v17359_v44 = vld [vmem:[#allocation25_spill] sm:$0xff]  ;;  %v613_v4 = vsel %vm468_vm1, %v610_v21, %v612_v12 }
 0x1c6   :  { %17351 = vst [vmem:[#allocation22_spill] sm:$0xff] %v12894_v57  ;;  %v782_v39 = vrot.slane %v17354_v7, 2  ;;  %v12909_v57 = vld [vmem:[#allocation2 + $0x2e8] sm:$0xff]  ;;  %v1856_v42 = vpop.f32.mrb[54].mxu0  ;;  %v12928_v63 = vld [vmem:[#allocation2 + $0x2f8] sm:$0x3] }
 0x1c7   :  { %v2501_v33 = vpop.f32.mrb[68].mxu1  ;;  %v12921_v41 = vadd.f32 %v17359_v44, %v1856_v42  ;;  %v1858_v7 = vpop.f32.mrb[55].mxu0  ;;  %10394 = vmatmul.mubr.f32.gmra.mrb[160].mxu0 %v778_v25  ;;  %v786_v21 = vsel %vm693_vm0, %v784_v9, %v785_v47  ;;  %v17363_v12 = vld [vmem:[#allocation28_spill] sm:$0xff]  ;;  %v790_v44 = vrot.slane %v12576_v32, 2  ;;  %v12946_v32 = vld [vmem:[#allocation2 + $0x308] sm:$0xff] }
 0x1c8   :  { %v12914_v29 = vadd.f32 %v2501_v33, %v17355_v48  ;;  %2765 = vmatmul.mubr.f32.gmra.mrb[174].mxu1 %v12840_v18  ;;  %v2503_v27 = vpop.f32.mrb[69].mxu1  ;;  %v614_v33 = vrot.slane %v12909_v57, 1  ;;  %v615_v48 = vrot.slane %v12911_v61, 1  ;;  %10396 = vmatprep.mubr.f32.mxu0 %v781_v30  ;;  %v783_v55 = vsel %vm693_vm0, %v780_v14, %v782_v39  ;;  %v17364_v30 = vld [vmem:[#allocation30_spill] sm:$0xff]  ;;  %v17365_v9 = vld [vmem:[#allocation32_spill] sm:$0xff] }
 0x1c9   :  { %2769 = vmatprep.mubr.f32.mxu1 %v611_v60  ;;  %v17361_v60 = vld [vmem:[#allocation17_spill] sm:$0xff]  ;;  %v789_v25 = vrot.slane %v17363_v12, 2 }
 0x1ca   :  { %17356 = vst [vmem:[#allocation14_spill] sm:$0xff] %v12914_v29  ;;  %v787_v29 = vrot.slane %v17360_v50, 2  ;;  %v1861_v7 = vpop.f32.mrb[56].mxu0  ;;  %v616_v50 = vsel %vm468_vm1, %v614_v33, %v615_v48  ;;  %v12944_v12 = vld [vmem:[#allocation2 + $0x300] sm:$0xff] }
 0x1cb   :  { %v2506_v27 = vpop.f32.mrb[70].mxu1  ;;  %v12938_v14 = vadd.f32 %v17364_v30, %v1861_v7  ;;  %v1863_v39 = vpop.f32.mrb[57].mxu0  ;;  %10397 = vmatmul.mubr.f32.gmra.mrb[162].mxu0 %v783_v55  ;;  %v791_v33 = vsel %vm693_vm0, %v789_v25, %v790_v44  ;;  %v17368_v7 = vld [vmem:[#allocation36_spill] sm:$0xff] }
 0x1cc   :  { %v12931_v56 = vadd.f32 %v2506_v27, %v17361_v60  ;;  %2770 = vmatmul.mubr.f32.gmra.mrb[176].mxu1 %v12873_v5  ;;  %v2508_v42 = vpop.f32.mrb[71].mxu1  ;;  %v617_v27 = vrot.slane %v12928_v63, 1  ;;  %10399 = vmatprep.mubr.f32.mxu0 %v786_v21  ;;  %v794_v30 = vrot.slane %v17368_v7, 2  ;;  %v795_v21 = vrot.slane %v12605_v17, 2  ;;  %v17370_v7 = vld [vmem:[#allocation40_spill] sm:$0xff] }
 0x1cd   :  { %2774 = vmatprep.mubr.f32.mxu1 %v613_v4  ;;  %v788_v42 = vsel %vm693_vm0, %v785_v47, %v787_v29  ;;  %v17366_v4 = vld [vmem:[#allocation19_spill] sm:$0xff]  ;;  %v17369_v47 = vld [vmem:[#allocation29_spill] sm:$0xff] }
 0x1ce   :  { %17362 = vst [vmem:[#allocation13_spill] sm:$0xff] %v12931_v56  ;;  %v792_v56 = vrot.slane %v17365_v9, 2  ;;  %v1866_v39 = vpop.f32.mrb[58].mxu0  ;;  %v618_v62 = vsel %vm468_vm1, %v615_v48, %v617_v27  ;;  %v12963_v17 = vld [vmem:[#allocation2 + $0x310] sm:$0x3]  ;;  %v796_v48 = vsel %vm693_vm0, %v794_v30, %v795_v21  ;;  %v799_v27 = vrot.slane %v12637_v59, 2 }
 0x1cf   :  { %v2511_v60 = vpop.f32.mrb[72].mxu1  ;;  %v12956_v29 = vadd.f32 %v17369_v47, %v1866_v39  ;;  %v1868_v9 = vpop.f32.mrb[59].mxu0  ;;  %10400 = vmatmul.mubr.f32.gmra.mrb[164].mxu0 %v788_v42  ;;  %v800_v39 = vrot.slane %v12639_v20, 2  ;;  %v17375_v30 = vld [vmem:[#allocation47_spill] sm:$0xff]  ;;  %v12979_v59 = vld [vmem:[#allocation2 + $0x318] sm:$0xff]  ;;  %v12981_v20 = vld [vmem:[#allocation2 + $0x320] sm:$0xff] }
 0x1d0   :  { %v12949_v2 = vadd.f32 %v2511_v60, %v17366_v4  ;;  %2775 = vmatmul.mubr.f32.gmra.mrb[178].mxu1 %v12875_v54  ;;  %v2513_v55 = vpop.f32.mrb[73].mxu1  ;;  %v619_v60 = vrot.slane %v12944_v12, 1  ;;  %v620_v4 = vrot.slane %v12946_v32, 1  ;;  %10402 = vmatprep.mubr.f32.mxu0 %v791_v33  ;;  %v793_v25 = vsel %vm693_vm0, %v790_v44, %v792_v56  ;;  %v17373_v33 = vld [vmem:[#allocation34_spill] sm:$0xff] }
 0x1d1   :  { %2779 = vmatprep.mubr.f32.mxu1 %v616_v50  ;;  %v17371_v50 = vld [vmem:[#allocation23_spill] sm:$0xff] }
 0x1d2   :  { %17367 = vst [vmem:[#allocation16_spill] sm:$0xff] %v12949_v2  ;;  %v797_v2 = vrot.slane %v17370_v7, 2  ;;  %v1871_v47 = vpop.f32.mrb[60].mxu0  ;;  %v621_v9 = vsel %vm468_vm1, %v619_v60, %v620_v4  ;;  %v801_v60 = vsel %vm693_vm0, %v799_v27, %v800_v39 }
 0x1d3   :  { %v2516_v55 = vpop.f32.mrb[74].mxu1  ;;  %v12973_v56 = vadd.f32 %v17373_v33, %v1871_v47  ;;  %v1873_v44 = vpop.f32.mrb[61].mxu0  ;;  %10403 = vmatmul.mubr.f32.gmra.mrb[166].mxu0 %v793_v25  ;;  %v804_v47 = vrot.slane %v12669_v34, 2  ;;  %v17379_v34 = vld [vmem:[#allocation54_spill] sm:$0xff] }
 0x1d4   :  { %v12966_v46 = vadd.f32 %v2516_v55, %v17371_v50  ;;  %2780 = vmatmul.mubr.f32.gmra.mrb[180].mxu1 %v12909_v57  ;;  %v2518_v42 = vpop.f32.mrb[75].mxu1  ;;  %v622_v55 = vrot.slane %v12963_v17, 1  ;;  %10405 = vmatprep.mubr.f32.mxu0 %v796_v48  ;;  %v798_v50 = vsel %vm693_vm0, %v795_v21, %v797_v2  ;;  %v805_v48 = vrot.slane %v12671_v35, 2  ;;  %v17378_v2 = vld [vmem:[#allocation33_spill] sm:$0xff]  ;;  %v12998_v35 = vld [vmem:[#allocation2 + $0x328] sm:$0x3] }
 0x1d5   :  { %2784 = vmatprep.mubr.f32.mxu1 %v618_v62  ;;  %17374 = vst [vmem:[#allocation18_spill] sm:$0xff] %v12973_v56  ;;  %v802_v42 = vrot.slane %v17375_v30, 2  ;;  %v17376_v62 = vld [vmem:[#allocation27_spill] sm:$0xff] }
 0x1d6   :  { %17372 = vst [vmem:[#allocation26_spill] sm:$0xff] %v12966_v46  ;;  %v1876_v33 = vpop.f32.mrb[62].mxu0  ;;  %v623_v30 = vsel %vm468_vm1, %v620_v4, %v622_v55  ;;  %v806_v4 = vsel %vm693_vm0, %v804_v47, %v805_v48  ;;  %v809_v55 = vrot.slane %v12700_v52, 2  ;;  %v812_v47 = vrot.slane %v12717_v13, 2  ;;  %v13014_v52 = vld [vmem:[#allocation2 + $0x30] sm:$0xff] }
 0x1d7   :  { %v2521_v7 = vpop.f32.mrb[76].mxu1  ;;  %v12991_v21 = vadd.f32 %v17378_v2, %v1876_v33  ;;  %v1878_v44 = vpop.f32.mrb[63].mxu0  ;;  %10406 = vmatmul.mubr.f32.gmra.mrb[168].mxu0 %v798_v50  ;;  %v803_v27 = vsel %vm693_vm0, %v800_v39, %v802_v42  ;;  %v810_v33 = vrot.slane %v12702_v40, 2  ;;  %v13016_v40 = vld [vmem:[#allocation2 + $0x38] sm:$0xff] }
 0x1d8   :  { %v12984_v46 = vadd.f32 %v2521_v7, %v17376_v62  ;;  %2785 = vmatmul.mubr.f32.gmra.mrb[182].mxu1 %v12911_v61  ;;  %v2523_v25 = vpop.f32.mrb[77].mxu1  ;;  %v624_v7 = vrot.slane %v12979_v59, 1  ;;  %v625_v62 = vrot.slane %v12981_v20, 1  ;;  %10408 = vmatprep.mubr.f32.mxu0 %v801_v60  ;;  %v17381_v60 = vld [vmem:[#allocation38_spill] sm:$0xff] }
 0x1d9   :  { %2789 = vmatprep.mubr.f32.mxu1 %v621_v9  ;;  %v17380_v9 = vld [vmem:[#allocation31_spill] sm:$0xff] }
 0x1da   :  { %17377 = vst [vmem:[#allocation15_spill] sm:$0xff] %v12984_v46  ;;  %v807_v46 = vrot.slane %v17379_v34, 2  ;;  %v1881_v2 = vpop.f32.mrb[64].mxu0  ;;  %v626_v44 = vsel %vm468_vm1, %v624_v7, %v625_v62  ;;  %v811_v7 = vsel %vm693_vm0, %v809_v55, %v810_v33  ;;  %v813_v55 = vsel %vm693_vm0, %v810_v33, %v812_v47 }
 0x1db   :  { %v2526_v25 = vpop.f32.mrb[78].mxu1  ;;  %v13008_v39 = vadd.f32 %v17381_v60, %v1881_v2  ;;  %v1883_v42 = vpop.f32.mrb[65].mxu0  ;;  %10409 = vmatmul.mubr.f32.gmra.mrb[170].mxu0 %v803_v27  ;;  %v814_v2 = vrot.slane %v12731_v43, 2  ;;  %v817_v43 = vrot.slane %v12748_v31, 2 }
 0x1dc   :  { %v13001_v56 = vadd.f32 %v2526_v25, %v17380_v9  ;;  %2790 = vmatmul.mubr.f32.gmra.mrb[184].mxu1 %v12944_v12  ;;  %v2528_v50 = vpop.f32.mrb[79].mxu1  ;;  %v627_v25 = vrot.slane %v12998_v35, 1  ;;  %10411 = vmatprep.mubr.f32.mxu0 %v806_v4  ;;  %v808_v9 = vsel %vm693_vm0, %v805_v48, %v807_v46  ;;  %v815_v4 = vrot.slane %v12733_v23, 2  ;;  %v17384_v46 = vld [vmem:[#allocation37_spill] sm:$0xff] }
 0x1dd   :  { %2794 = vmatprep.mubr.f32.mxu1 %v623_v30  ;;  %v17382_v30 = vld [vmem:[#allocation35_spill] sm:$0xff]  ;;  %v13033_v23 = vld [vmem:[#allocation2 + $0x40] sm:$0x3] }
 0x1de   :  { %v1886_v60 = vpop.f32.mrb[66].mxu0  ;;  %v628_v42 = vsel %vm468_vm1, %v625_v62, %v627_v25  ;;  %v816_v62 = vsel %vm693_vm0, %v814_v2, %v815_v4  ;;  %v819_v25 = vrot.slane %v12764_v49, 2  ;;  %v822_v2 = vrot.slane %v12784_v28, 2  ;;  %v13049_v49 = vld [vmem:[#allocation2 + $0x48] sm:$0xff] }
 0x1df   :  { %v2531_v34 = vpop.f32.mrb[80].mxu1  ;;  %v13026_v13 = vadd.f32 %v17384_v46, %v1886_v60  ;;  %v1888_v48 = vpop.f32.mrb[67].mxu0  ;;  %10412 = vmatmul.mubr.f32.gmra.mrb[172].mxu0 %v808_v9  ;;  %v820_v60 = vrot.slane %v12766_v0, 2  ;;  %v13051_v0 = vld [vmem:[#allocation2 + $0x50] sm:$0xff] }
 0x1e0   :  { %v13019_v50 = vadd.f32 %v2531_v34, %v17382_v30  ;;  %2795 = vmatmul.mubr.f32.gmra.mrb[186].mxu1 %v12946_v32  ;;  %v2533_v27 = vpop.f32.mrb[81].mxu1  ;;  %v3388_v34 = vrot.slane %v13014_v52, 1  ;;  %v3389_v30 = vrot.slane %v13016_v40, 1  ;;  %10414 = vmatprep.mubr.f32.mxu0 %v811_v7  ;;  %v17386_v7 = vld [vmem:[#allocation42_spill] sm:$0xff]  ;;  %v3391_v48 = vrot.slane %v13033_v23, 1 }
 0x1e1   :  { %2799 = vmatprep.mubr.f32.mxu1 %v626_v44  ;;  %v17385_v44 = vld [vmem:[#allocation39_spill] sm:$0xff] }
 0x1e2   :  { %17383 = vst [vmem:[#allocation20_spill] sm:$0xff] %v13019_v50  ;;  %v1891_v46 = vpop.f32.mrb[68].mxu0  ;;  %v3390_v47 = vsel %vm468_vm1, %v3388_v34, %v3389_v30  ;;  %v821_v34 = vsel %vm693_vm0, %v819_v25, %v820_v60  ;;  %v823_v25 = vsel %vm693_vm0, %v820_v60, %v822_v2 }
 0x1e3   :  { %v2536_v27 = vpop.f32.mrb[82].mxu1  ;;  %v13043_v33 = vadd.f32 %v17386_v7, %v1891_v46  ;;  %v1893_v31 = vpop.f32.mrb[69].mxu0  ;;  %10415 = vmatmul.mubr.f32.gmra.mrb[174].mxu0 %v813_v55  ;;  %v824_v46 = vrot.slane %v12801_v1, 2  ;;  %v827_v1 = vrot.slane %v12821_v22, 2 }
 0x1e4   :  { %v13036_v50 = vadd.f32 %v2536_v27, %v17385_v44  ;;  %2800 = vmatmul.mubr.f32.gmra.mrb[188].mxu1 %v12979_v59  ;;  %v2538_v9 = vpop.f32.mrb[83].mxu1  ;;  %10417 = vmatprep.mubr.f32.mxu0 %v816_v62  ;;  %v818_v44 = vsel %vm693_vm0, %v815_v4, %v817_v43  ;;  %v825_v62 = vrot.slane %v12803_v3, 2  ;;  %v17389_v4 = vld [vmem:[#allocation41_spill] sm:$0xff]  ;;  %v3392_v31 = vsel %vm468_vm1, %v3389_v30, %v3391_v48  ;;  %v13068_v3 = vld [vmem:[#allocation2 + $0x58] sm:$0x3] }
 0x1e5   :  { %2804 = vmatprep.mubr.f32.mxu1 %v628_v42  ;;  %v17387_v42 = vld [vmem:[#allocation43_spill] sm:$0xff]  ;;  %v829_v48 = vrot.slane %v12838_v8, 2  ;;  %v13084_v8 = vld [vmem:[#allocation2 + $0x60] sm:$0xff] }
 0x1e6   :  { %v1896_v7 = vpop.f32.mrb[70].mxu0  ;;  %v826_v30 = vsel %vm693_vm0, %v824_v46, %v825_v62  ;;  %v832_v46 = vrot.slane %v12858_v11, 2 }
 0x1e7   :  { %v2541_v27 = vpop.f32.mrb[84].mxu1  ;;  %v13061_v28 = vadd.f32 %v17389_v4, %v1896_v7  ;;  %v1898_v43 = vpop.f32.mrb[71].mxu0  ;;  %10418 = vmatmul.mubr.f32.gmra.mrb[176].mxu0 %v818_v44  ;;  %v830_v7 = vrot.slane %v12840_v18, 2  ;;  %v13086_v18 = vld [vmem:[#allocation2 + $0x68] sm:$0xff] }
 0x1e8   :  { %v13054_v9 = vadd.f32 %v2541_v27, %v17387_v42  ;;  %2805 = vmatmul.mubr.f32.gmra.mrb[190].mxu1 %v12981_v20  ;;  %v2543_v55 = vpop.f32.mrb[85].mxu1  ;;  %v3393_v27 = vrot.slane %v13049_v49, 1  ;;  %v3394_v42 = vrot.slane %v13051_v0, 1  ;;  %10420 = vmatprep.mubr.f32.mxu0 %v821_v34  ;;  %v17392_v34 = vld [vmem:[#allocation45_spill] sm:$0xff]  ;;  %v3396_v43 = vrot.slane %v13068_v3, 1 }
 0x1e9   :  { %3949 = vmatprep.mubr.f32.mxu1 %v3390_v47  ;;  %v17390_v47 = vld [vmem:[#allocation46_spill] sm:$0xff] }
 0x1ea   :  { %17388 = vst [vmem:[#allocation21_spill] sm:$0xff] %v13054_v9  ;;  %v1901_v4 = vpop.f32.mrb[72].mxu0  ;;  %v3395_v2 = vsel %vm468_vm1, %v3393_v27, %v3394_v42  ;;  %v831_v27 = vsel %vm693_vm0, %v829_v48, %v830_v7  ;;  %v833_v48 = vsel %vm693_vm0, %v830_v7, %v832_v46 }
 0x1eb   :  { %v2546_v55 = vpop.f32.mrb[86].mxu1  ;;  %v13078_v60 = vadd.f32 %v17392_v34, %v1901_v4  ;;  %v1903_v22 = vpop.f32.mrb[73].mxu0  ;;  %10421 = vmatmul.mubr.f32.gmra.mrb[178].mxu0 %v823_v25  ;;  %v834_v4 = vrot.slane %v12873_v5, 2  ;;  %v837_v5 = vrot.slane %v12891_v16, 2  ;;  %v17398_v16 = vld [vmem:[#allocation49_spill] sm:$0xff] }
 0x1ec   :  { %v13071_v9 = vadd.f32 %v2546_v55, %v17390_v47  ;;  %3950 = vmatmul.mubr.f32.vlgmr.msra.gmra.mrb[192].mxu1 %v13014_v52  ;;  %v2548_v44 = vpop.f32.mrb[87].mxu1  ;;  %10423 = vmatprep.mubr.f32.mxu0 %v826_v30  ;;  %v828_v47 = vsel %vm693_vm0, %v825_v62, %v827_v1  ;;  %v835_v30 = vrot.slane %v12875_v54, 2  ;;  %v17395_v62 = vld [vmem:[#allocation44_spill] sm:$0xff]  ;;  %v3397_v22 = vsel %vm468_vm1, %v3394_v42, %v3396_v43  ;;  %v13103_v54 = vld [vmem:[#allocation2 + $0x70] sm:$0x3] }
 0x1ed   :  { %3954 = vmatprep.mubr.f32.mxu1 %v3392_v31  ;;  %v17393_v31 = vld [vmem:[#allocation50_spill] sm:$0xff]  ;;  %v839_v43 = vrot.slane %v12909_v57, 2 }
 0x1ee   :  { %17391 = vst [vmem:[#allocation25_spill] sm:$0xff] %v13071_v9  ;;  %v1906_v34 = vpop.f32.mrb[74].mxu0  ;;  %v836_v42 = vsel %vm693_vm0, %v834_v4, %v835_v30  ;;  %v838_v57 = vsel %vm693_vm0, %v835_v30, %v837_v5  ;;  %v13119_v4 = vld [vmem:[#allocation2 + $0x78] sm:$0xff] }
 0x1ef   :  { %v2551_v55 = vpop.f32.mrb[88].mxu1  ;;  %v13096_v11 = vadd.f32 %v17395_v62, %v1906_v34  ;;  %v1908_v1 = vpop.f32.mrb[75].mxu0  ;;  %10424 = vmatmul.mubr.f32.gmra.mrb[180].mxu0 %v828_v47  ;;  %v840_v34 = vrot.slane %v12911_v61, 2  ;;  %v6279_v62 = vld [vmem:[#allocation8 + $0x280] sm:$0xff]  ;;  %v842_v61 = vrot.slane %v12928_v63, 2  ;;  %v17400_v63 = vld [vmem:[#allocation48_spill] sm:$0xff] }
 0x1f0   :  { %v13089_v44 = vadd.f32 %v2551_v55, %v17393_v31  ;;  %3955 = vmatmul.mubr.f32.gmra.mrb[194].mxu1 %v13016_v40  ;;  %v2553_v25 = vpop.f32.mrb[89].mxu1  ;;  %v3398_v55 = vrot.slane %v13084_v8, 1  ;;  %v3399_v31 = vrot.slane %v13086_v18, 1  ;;  %10426 = vmatprep.mubr.f32.mxu0 %v831_v27  ;;  %v6280_v27 = vld [vmem:[#allocation8 + $0x288] sm:$0xff] }
 0x1f1   :  { %3959 = vmatprep.mubr.f32.mxu1 %v3395_v2  ;;  %v17396_v2 = vld [vmem:[#allocation53_spill] sm:$0xff]  ;;  %v11241_v7 = vpack.c.bf16 %v6280_v27, %v6279_v62 }
 0x1f2   :  { %17394 = vst [vmem:[#allocation24_spill] sm:$0xff] %v13089_v44  ;;  %v1911_v1 = vpop.f32.mrb[76].mxu0 }
 0x1f3   :  { %v2556_v25 = vpop.f32.mrb[90].mxu1  ;;  %v13113_v46 = vadd.f32 %v17398_v16, %v1911_v1  ;;  %v1913_v9 = vpop.f32.mrb[77].mxu0  ;;  %10427 = vmatmul.mubr.f32.gmra.mrb[182].mxu0 %v833_v48  ;;  %11242 = vmatprep.subr.bf16.mxu1 %v11241_v7  ;;  %v844_v48 = vrot.slane %v12944_v12, 2  ;;  %v3403_v16 = vrot.slane %v13119_v4, 1  ;;  %v843_v12 = vsel %vm693_vm0, %v840_v34, %v842_v61 }
 0x1f4   :  { %v13106_v44 = vadd.f32 %v2556_v25, %v17396_v2  ;;  %3960 = vmatmul.mubr.f32.gmra.mrb[196].mxu1 %v13049_v49  ;;  %v2558_v47 = vpop.f32.mrb[91].mxu1  ;;  %v3400_v25 = vsel %vm468_vm1, %v3398_v55, %v3399_v31  ;;  %v3401_v2 = vrot.slane %v13103_v54, 1  ;;  %10429 = vmatprep.mubr.f32.mxu0 %v836_v42  ;;  %v841_v55 = vsel %vm693_vm0, %v839_v43, %v840_v34  ;;  %v13138_v43 = vld [vmem:[#allocation2 + $0x88] sm:$0x3] }
 0x1f5   :  { %3964 = vmatprep.mubr.f32.mxu1 %v3397_v22  ;;  %v17399_v22 = vld [vmem:[#allocation57_spill] sm:$0xff]  ;;  %v845_v42 = vrot.slane %v12946_v32, 2  ;;  %11244 = vmatpush3.bf16.msra.mxu1 %v11241_v7  ;;  %v847_v32 = vrot.slane %v12963_v17, 2  ;;  %v17401_v7 = vld [vmem:[#allocation60_spill] sm:$0xff] }
 0x1f6   :  { %17397 = vst [vmem:[#allocation17_spill] sm:$0xff] %v13106_v44  ;;  %v13121_v44 = vld [vmem:[#allocation2 + $0x80] sm:$0xff]  ;;  %v1916_v30 = vpop.f32.mrb[78].mxu0  ;;  %v3402_v1 = vsel %vm468_vm1, %v3399_v31, %v3401_v2  ;;  %v849_v2 = vrot.slane %v12979_v59, 2  ;;  %v13154_v59 = vld [vmem:[#allocation2 + $0x90] sm:$0xff] }
 0x1f7   :  { %v2561_v47 = vpop.f32.mrb[92].mxu1  ;;  %v13131_v5 = vadd.f32 %v17400_v63, %v1916_v30  ;;  %v1918_v27 = vpop.f32.mrb[79].mxu0  ;;  %10430 = vmatmul.mubr.f32.gmra.mrb[184].mxu0 %v838_v57  ;;  %v846_v31 = vsel %vm693_vm0, %v844_v48, %v845_v42  ;;  %v3406_v63 = vrot.slane %v13138_v43, 1  ;;  %v852_v48 = vrot.slane %v12998_v35, 2 }
 0x1f8   :  { %v13124_v62 = vadd.f32 %v2561_v47, %v17399_v22  ;;  %3965 = vmatmul.mubr.f32.gmra.mrb[198].mxu1 %v13051_v0  ;;  %v2563_v9 = vpop.f32.mrb[93].mxu1  ;;  %v3404_v47 = vrot.slane %v13121_v44, 1  ;;  %10432 = vmatprep.mubr.f32.mxu0 %v841_v55  ;;  %v17402_v55 = vld [vmem:[#allocation52_spill] sm:$0xff] }
 0x1f9   :  { %3969 = vmatprep.mubr.f32.mxu1 %v3400_v25  ;;  %v850_v9 = vrot.slane %v12981_v20, 2  ;;  %v13156_v20 = vld [vmem:[#allocation2 + $0x98] sm:$0xff] }
 0x1fa   :  { %v1921_v30 = vpop.f32.mrb[80].mxu0  ;;  %v3405_v61 = vsel %vm468_vm1, %v3403_v16, %v3404_v47 }
 0x1fb   :  { %v2566_v22 = vpop.f32.mrb[94].mxu1  ;;  %v13148_v34 = vadd.f32 %v17402_v55, %v1921_v30  ;;  %v1923_v17 = vpop.f32.mrb[81].mxu0  ;;  %10433 = vmatmul.mubr.f32.gmra.mrb[186].mxu0 %v843_v12  ;;  %v851_v16 = vsel %vm693_vm0, %v849_v2, %v850_v9  ;;  %v3407_v55 = vsel %vm468_vm1, %v3404_v47, %v3406_v63  ;;  %v853_v2 = vsel %vm693_vm0, %v850_v9, %v852_v48  ;;  %v17406_v9 = vld [vmem:[#allocation56_spill] sm:$0xff] }
 0x1fc   :  { %v13141_v25 = vadd.f32 %v2566_v22, %v17401_v7  ;;  %3970 = vmatmul.mubr.f32.gmra.mrb[200].mxu1 %v13084_v8  ;;  %v2568_v57 = vpop.f32.mrb[95].mxu1  ;;  %10435 = vmatprep.mubr.f32.mxu0 %v846_v31  ;;  %v848_v22 = vsel %vm693_vm0, %v845_v42, %v847_v32  ;;  %v3613_v31 = vrot.slane %v13016_v40, 2  ;;  %v17405_v42 = vld [vmem:[#allocation51_spill] sm:$0xff]  ;;  %v3408_v17 = vrot.slane %v13154_v59, 1  ;;  %v13173_v40 = vld [vmem:[#allocation2 + $0xa0] sm:$0x3] }
 0x1fd   :  { %3974 = vmatprep.mubr.f32.mxu1 %v3402_v1  ;;  %v17403_v1 = vld [vmem:[#allocation63_spill] sm:$0xff]  ;;  %v3612_v57 = vrot.slane %v13014_v52, 2  ;;  %v3615_v52 = vrot.slane %v13033_v23, 2  ;;  %v3617_v63 = vrot.slane %v13049_v49, 2  ;;  %v3620_v49 = vrot.slane %v13068_v3, 2 }
 0x1fe   :  { %v1926_v30 = vpop.f32.mrb[82].mxu0 }
 0x1ff   :  { %v2571_v27 = vpop.f32.mrb[96].mxu1  ;;  %v13166_v35 = vadd.f32 %v17405_v42, %v1926_v30  ;;  %v1928_v32 = vpop.f32.mrb[83].mxu0  ;;  %10436 = vmatmul.mubr.f32.gmra.mrb[188].mxu0 %v848_v22  ;;  %v3614_v47 = vsel %vm693_vm0, %v3612_v57, %v3613_v31  ;;  %v6247_v30 = vld [vmem:[#allocation8 + $0x180] sm:$0xff]  ;;  %v3616_v57 = vsel %vm693_vm0, %v3613_v31, %v3615_v52  ;;  %v6249_v31 = vld [vmem:[#allocation8 + $0x190] sm:$0xff]  ;;  %v6250_v52 = vld [vmem:[#allocation8 + $0x198] sm:$0xff] }
 0x200   :  { %v13159_v7 = vadd.f32 %v2571_v27, %v17403_v1  ;;  %3975 = vmatmul.mubr.f32.gmra.mrb[202].mxu1 %v13086_v18  ;;  %v2573_v12 = vpop.f32.mrb[97].mxu1  ;;  %v3409_v27 = vrot.slane %v13156_v20, 1  ;;  %10438 = vmatprep.mubr.f32.mxu0 %v851_v16  ;;  %v6248_v16 = vld [vmem:[#allocation8 + $0x188] sm:$0xff]  ;;  %v3411_v32 = vrot.slane %v13173_v40, 1 }
 0x201   :  { %3979 = vmatprep.mubr.f32.mxu1 %v3405_v61  ;;  %v3618_v12 = vrot.slane %v13051_v0, 2  ;;  %v13189_v0 = vld [vmem:[#allocation2 + $0xa8] sm:$0xff] }
 0x202   :  { %17404 = vst [vmem:[#allocation28_spill] sm:$0xff] %v13159_v7  ;;  %v1931_v42 = vpop.f32.mrb[84].mxu0 }
 0x203   :  { %v2576_v1 = vpop.f32.mrb[98].mxu1  ;;  %v13183_v23 = vadd.f32 %v17406_v9, %v1931_v42  ;;  %v1933_v48 = vpop.f32.mrb[85].mxu0  ;;  %10439 = vmatmul.mubr.f32.gmra.mrb[190].mxu0 %v853_v2  ;;  %v3622_v9 = vrot.slane %v13084_v8, 2  ;;  %v3621_v8 = vsel %vm693_vm0, %v3618_v12, %v3620_v49 }
 0x204   :  { %v13176_v61 = vadd.f32 %v2576_v1, %v12742_v58  ;;  %3980 = vmatmul.mubr.f32.gmra.mrb[204].mxu1 %v13119_v4  ;;  %v2578_v22 = vpop.f32.mrb[99].mxu1  ;;  %v3410_v58 = vsel %vm468_vm1, %v3408_v17, %v3409_v27  ;;  %10473 = vmatprep.mubr.f32.mxu0 %v3614_v47  ;;  %v3619_v17 = vsel %vm693_vm0, %v3617_v63, %v3618_v12  ;;  %v3623_v47 = vrot.slane %v13086_v18, 2  ;;  %v17408_v48 = vld [vmem:[#allocation55_spill] sm:$0xff]  ;;  %v6251_v12 = vld [vmem:[#allocation8 + $0x1a0] sm:$0xff] }
 0x205   :  { %3984 = vmatprep.mubr.f32.mxu1 %v3407_v55  ;;  %v13191_v22 = vld [vmem:[#allocation2 + $0xb0] sm:$0xff]  ;;  %v11194_v55 = vpack.c.bf16 %v6248_v16, %v6247_v30  ;;  %v3413_v16 = vrot.slane %v13189_v0, 1  ;;  %v3625_v18 = vrot.slane %v13103_v54, 2  ;;  %v6252_v54 = vld [vmem:[#allocation8 + $0x1a8] sm:$0xff] }
 0x206   :  { %v1936_v3 = vpop.f32.mrb[86].mxu0 }
 0x207   :  { %v2581_v1 = vpop.f32.mrb[100].mxu1  ;;  %v13201_v7 = vadd.f32 %v17408_v48, %v1936_v3  ;;  %v1938_v30 = vpop.f32.mrb[87].mxu0  ;;  %10474 = vmatmul.mubr.f32.vlgmr.msra.gmra.mrb[192].mxu0 %v3616_v57  ;;  %v3627_v57 = vrot.slane %v13119_v4, 2  ;;  %v3626_v4 = vsel %vm693_vm0, %v3623_v47, %v3625_v18  ;;  %v6254_v18 = vld [vmem:[#allocation8 + $0x1b8] sm:$0xff] }
 0x208   :  { %v13194_v42 = vadd.f32 %v2581_v1, %v12757_v10  ;;  %3985 = vmatmul.mubr.f32.gmra.mrb[206].mxu1 %v13121_v44  ;;  %v2583_v2 = vpop.f32.mrb[101].mxu1  ;;  %v3412_v10 = vsel %vm468_vm1, %v3409_v27, %v3411_v32  ;;  %v3414_v1 = vrot.slane %v13191_v22, 1  ;;  %10476 = vmatprep.mubr.f32.mxu0 %v3619_v17  ;;  %v3624_v32 = vsel %vm693_vm0, %v3622_v9, %v3623_v47  ;;  %v13225_v30 = vld [vmem:[#allocation2 + $0xc0] sm:$0xff] }
 0x209   :  { %3989 = vmatprep.mubr.f32.mxu1 %v3410_v58  ;;  %v13208_v2 = vld [vmem:[#allocation2 + $0xb8] sm:$0x3]  ;;  %11195 = vmatpush1.bf16.msra.mxu0 %v11194_v55  ;;  %v11197_v58 = vpack.c.bf16 %v6250_v52, %v6249_v31  ;;  %v3628_v17 = vrot.slane %v13121_v44, 2  ;;  %v17410_v55 = vld [vmem:[#allocation59_spill] sm:$0xff]  ;;  %v3630_v44 = vrot.slane %v13138_v43, 2  ;;  %v3633_v47 = vrot.slane %v13156_v20, 2 }
 0x20a   :  { %17407 = vst [vmem:[#allocation30_spill] sm:$0xff] %v13194_v42  ;;  %11196 = vmatprep.subr.bf16.mxu0 %v17267_v38  ;;  %v1941_v49 = vpop.f32.mrb[88].mxu0  ;;  %v3415_v52 = vsel %vm468_vm1, %v3413_v16, %v3414_v1  ;;  %v3416_v48 = vrot.slane %v13208_v2, 1  ;;  %v6253_v43 = vld [vmem:[#allocation8 + $0x1b0] sm:$0xff]  ;;  %v17435_v42 = vld [vmem:[#allocation18_spill] sm:$0xff] }
 0x20b   :  { %v2586_v63 = vpop.f32.mrb[102].mxu1  ;;  %v13219_v31 = vadd.f32 %v17410_v55, %v1941_v49  ;;  %10477 = vmatmul.mubr.f32.gmra.mrb[194].mxu0 %v3621_v8  ;;  %v3629_v8 = vsel %vm693_vm0, %v3627_v57, %v3628_v17  ;;  %v3418_v55 = vrot.slane %v13225_v30, 1 }
 0x20c   :  { %v13211_v3 = vadd.f32 %v2586_v63, %v12776_v26  ;;  %3990 = vmatmul.mubr.f32.gmra.mrb[208].mxu1 %v13154_v59  ;;  %v2588_v27 = vpop.f32.mrb[103].mxu1  ;;  %v1943_v26 = vpop.f32.mrb[89].mxu0  ;;  %10479 = vmatprep.mubr.f32.mxu0 %v3624_v32  ;;  %v13227_v63 = vld [vmem:[#allocation2 + $0xc8] sm:$0xff]  ;;  %v3632_v32 = vrot.slane %v13154_v59, 2 }
 0x20d   :  { %3994 = vmatprep.mubr.f32.mxu1 %v3412_v10  ;;  %11198 = vmatpush1.bf16.msra.mxu0 %v11197_v58  ;;  %v11200_v10 = vpack.c.bf16 %v6252_v54, %v6251_v12  ;;  %v17412_v58 = vld [vmem:[#allocation58_spill] sm:$0xff]  ;;  %v3417_v54 = vsel %vm468_vm1, %v3414_v1, %v3416_v48  ;;  %v3419_v57 = vrot.slane %v13227_v63, 1  ;;  %v3635_v26 = vrot.slane %v13173_v40, 2  ;;  %v6282_v40 = vld [vmem:[#allocation8 + $0x298] sm:$0xff] }
 0x20e   :  { %17409 = vst [vmem:[#allocation32_spill] sm:$0xff] %v13211_v3  ;;  %11199 = vmatprep.subr.bf16.mxu0 %v17267_v38  ;;  %v1946_v49 = vpop.f32.mrb[90].mxu0  ;;  %v3634_v48 = vsel %vm693_vm0, %v3632_v32, %v3633_v47 }
 0x20f   :  { %v2591_v9 = vpop.f32.mrb[104].mxu1  ;;  %v13238_v12 = vadd.f32 %v17412_v58, %v1946_v49  ;;  %10480 = vmatmul.mubr.f32.gmra.mrb[196].mxu0 %v3626_v4  ;;  %v3637_v4 = vrot.slane %v13189_v0, 2  ;;  %v3420_v32 = vsel %vm468_vm1, %v3418_v55, %v3419_v57 }
 0x210   :  { %v13230_v27 = vadd.f32 %v2591_v9, %v12793_v36  ;;  %3995 = vmatmul.mubr.f32.gmra.mrb[210].mxu1 %v13156_v20  ;;  %v2593_v16 = vpop.f32.mrb[105].mxu1  ;;  %v1948_v36 = vpop.f32.mrb[91].mxu0  ;;  %10482 = vmatprep.mubr.f32.mxu0 %v3629_v8  ;;  %v3631_v20 = vsel %vm693_vm0, %v3628_v17, %v3630_v44  ;;  %v13245_v9 = vld [vmem:[#allocation2 + $0xd0] sm:$0x3]  ;;  %v3638_v8 = vrot.slane %v13191_v22, 2  ;;  %v6255_v44 = vld [vmem:[#allocation8 + $0x1c0] sm:$0xff] }
 0x211   :  { %3999 = vmatprep.mubr.f32.mxu1 %v3415_v52  ;;  %11201 = vmatpush1.bf16.msra.mxu0 %v11200_v10  ;;  %v11203_v52 = vpack.c.bf16 %v6254_v18, %v6253_v43  ;;  %v6281_v17 = vld [vmem:[#allocation8 + $0x290] sm:$0xff]  ;;  %v6256_v43 = vld [vmem:[#allocation8 + $0x1c8] sm:$0xff] }
 0x212   :  { %17411 = vst [vmem:[#allocation19_spill] sm:$0xff] %v13230_v27  ;;  %11202 = vmatprep.subr.bf16.mxu0 %v17267_v38  ;;  %v1951_v49 = vpop.f32.mrb[92].mxu0  ;;  %v11245_v10 = vpack.c.bf16 %v6282_v40, %v6281_v17  ;;  %v13262_v27 = vld [vmem:[#allocation2 + $0xd8] sm:$0xff]  ;;  %v11206_v17 = vpack.c.bf16 %v6256_v43, %v6255_v44 }
 0x213   :  { %v2596_v59 = vpop.f32.mrb[106].mxu1  ;;  %v1953_v58 = vpop.f32.mrb[93].mxu0  ;;  %10483 = vmatmul.mubr.f32.gmra.mrb[198].mxu0 %v3631_v20  ;;  %v3639_v20 = vsel %vm693_vm0, %v3637_v4, %v3638_v8 }
 0x214   :  { %v13248_v16 = vadd.f32 %v2596_v59, %v12812_v53  ;;  %4000 = vmatmul.mubr.f32.gmra.mrb[212].mxu1 %v13189_v0  ;;  %v2598_v1 = vpop.f32.mrb[107].mxu1  ;;  %v17414_v53 = vld [vmem:[#allocation62_spill] sm:$0xff]  ;;  %v3421_v0 = vrot.slane %v13245_v9, 1  ;;  %10485 = vmatprep.mubr.f32.mxu0 %v3634_v48  ;;  %v3636_v59 = vsel %vm693_vm0, %v3633_v47, %v3635_v26  ;;  %v3642_v48 = vrot.slane %v13225_v30, 2  ;;  %v17416_v26 = vld [vmem:[#allocation61_spill] sm:$0xff] }
 0x215   :  { %4004 = vmatprep.mubr.f32.mxu1 %v3417_v54  ;;  %v13256_v18 = vadd.f32 %v17414_v53, %v1951_v49  ;;  %v3640_v1 = vrot.slane %v13208_v2, 2  ;;  %v13264_v54 = vld [vmem:[#allocation2 + $0xe0] sm:$0xff]  ;;  %11204 = vmatpush1.bf16.msra.mxu0 %v11203_v52  ;;  %v3643_v47 = vrot.slane %v13227_v63, 2  ;;  %v3645_v53 = vrot.slane %v13245_v9, 2  ;;  %v3219_v58 = vld [vmem:[#allocation2 + $0xe8] sm:$0x3] }
 0x216   :  { %17413 = vst [vmem:[#allocation36_spill] sm:$0xff] %v13248_v16  ;;  %11246 = vmatprep.subr.bf16.mxu1 %v11245_v10  ;;  %v1956_v2 = vpop.f32.mrb[94].mxu0  ;;  %11205 = vmatprep.subr.bf16.mxu0 %v17267_v38  ;;  %v3424_v4 = vrot.slane %v13264_v54, 1  ;;  %v13290_v9 = vld [vmem:[#allocation2 + $0xf0] sm:$0xff] }
 0x217   :  { %v2601_v36 = vpop.f32.mrb[108].mxu1  ;;  %v13275_v52 = vadd.f32 %v17416_v26, %v1956_v2  ;;  %v1958_v44 = vpop.f32.mrb[95].mxu0  ;;  %10486 = vmatmul.mubr.f32.gmra.mrb[200].mxu0 %v3636_v59  ;;  %11248 = vmatpush3.bf16.msra.mxu1 %v11245_v10  ;;  %v3641_v43 = vsel %vm693_vm0, %v3638_v8, %v3640_v1  ;;  %v3648_v10 = vrot.slane %v13264_v54, 2  ;;  %v6257_v59 = vld [vmem:[#allocation8 + $0x1d0] sm:$0xff]  ;;  %v6258_v8 = vld [vmem:[#allocation8 + $0x1d8] sm:$0xff]  ;;  %v3426_v2 = vrot.slane %v3219_v58, 1 }
 0x218   :  { %v13267_v40 = vadd.f32 %v2601_v36, %v12830_v37  ;;  %4005 = vmatmul.mubr.f32.gmra.mrb[214].mxu1 %v13191_v22  ;;  %v2603_v55 = vpop.f32.mrb[109].mxu1  ;;  %v3422_v37 = vsel %vm468_vm1, %v3419_v57, %v3421_v0  ;;  %v3423_v22 = vrot.slane %v13262_v27, 1  ;;  %10488 = vmatprep.mubr.f32.mxu0 %v3639_v20  ;;  %v3644_v57 = vsel %vm693_vm0, %v3642_v48, %v3643_v47 }
 0x219   :  { %4009 = vmatprep.mubr.f32.mxu1 %v3420_v32  ;;  %11207 = vmatpush1.bf16.msra.mxu0 %v11206_v17  ;;  %v3647_v0 = vrot.slane %v13262_v27, 2  ;;  %v13292_v17 = vld [vmem:[#allocation2 + $0xf8] sm:$0xff]  ;;  %v17418_v55 = vld [vmem:[#allocation65_spill] sm:$0xff]  ;;  %v3646_v44 = vsel %vm693_vm0, %v3643_v47, %v3645_v53  ;;  %v13309_v53 = vld [vmem:[#allocation2 + $0x110] sm:$0xff] }
 0x21a   :  { %17415 = vst [vmem:[#allocation29_spill] sm:$0xff] %v13267_v40  ;;  %11208 = vmatprep.subr.bf16.mxu0 %v17267_v38  ;;  %v1961_v1 = vpop.f32.mrb[96].mxu0  ;;  %v3425_v48 = vsel %vm468_vm1, %v3423_v22, %v3424_v4  ;;  %v3222_v22 = vld [vmem:[#allocation2 + $0x100] sm:$0x3] }
 0x21b   :  { %v2606_v49 = vpop.f32.mrb[110].mxu1  ;;  %v1963_v20 = vpop.f32.mrb[97].mxu0  ;;  %10489 = vmatmul.mubr.f32.gmra.mrb[202].mxu0 %v3641_v43  ;;  %v3653_v43 = vrot.slane %v13292_v17, 2 }
 0x21c   :  { %v13283_v32 = vadd.f32 %v2606_v49, %v12849_v6  ;;  %4010 = vmatmul.mubr.f32.gmra.mrb[216].mxu1 %v13225_v30  ;;  %v2608_v36 = vpop.f32.mrb[111].mxu1  ;;  %v11209_v6 = vpack.c.bf16 %v6258_v8, %v6257_v59  ;;  %v13295_v30 = vadd.f32 %v17418_v55, %v1961_v1  ;;  %10491 = vmatprep.mubr.f32.mxu0 %v3644_v57  ;;  %v3650_v49 = vrot.slane %v3219_v58, 2  ;;  %v13306_v1 = vld [vmem:[#allocation2 + $0x108] sm:$0xff] }
 0x21d   :  { %4014 = vmatprep.mubr.f32.mxu1 %v3422_v37  ;;  %v3649_v59 = vsel %vm693_vm0, %v3647_v0, %v3648_v10  ;;  %v3652_v8 = vrot.slane %v13290_v9, 2  ;;  %v3427_v57 = vsel %vm468_vm1, %v3424_v4, %v3426_v2  ;;  %v3428_v0 = vrot.slane %v13290_v9, 1  ;;  %v13325_v2 = vld [vmem:[#allocation2 + $0x118] sm:$0x3] }
 0x21e   :  { %17417 = vst [vmem:[#allocation40_spill] sm:$0xff] %v13283_v32  ;;  %11210 = vmatpush1.bf16.msra.mxu0 %v11209_v6  ;;  %v1966_v47 = vpop.f32.mrb[98].mxu0  ;;  %v3429_v6 = vrot.slane %v13292_v17, 1  ;;  %v3651_v20 = vsel %vm693_vm0, %v3648_v10, %v3650_v49  ;;  %v3658_v4 = vrot.slane %v13309_v53, 2  ;;  %v13327_v10 = vld [vmem:[#allocation2 + $0x120] sm:$0xff]  ;;  %v13329_v49 = vld [vmem:[#allocation2 + $0x128] sm:$0xff] }
 0x21f   :  { %v2611_v26 = vpop.f32.mrb[112].mxu1  ;;  %11211 = vmatprep.subr.bf16.mxu0 %v17267_v38  ;;  %10492 = vmatmul.mubr.f32.gmra.mrb[204].mxu0 %v3646_v44  ;;  %v3654_v44 = vsel %vm693_vm0, %v3652_v8, %v3653_v43  ;;  %v3660_v40 = vrot.slane %v13325_v2, 2 }
 0x220   :  { %v13300_v37 = vadd.f32 %v2611_v26, %v12867_v45  ;;  %4015 = vmatmul.mubr.f32.gmra.mrb[218].mxu1 %v13227_v63  ;;  %v2613_v36 = vpop.f32.mrb[113].mxu1  ;;  %v17420_v45 = vld [vmem:[#allocation64_spill] sm:$0xff]  ;;  %v1968_v63 = vpop.f32.mrb[99].mxu0  ;;  %10494 = vmatprep.mubr.f32.mxu0 %v3649_v59  ;;  %v3655_v26 = vrot.slane %v3222_v22, 2  ;;  %v3430_v8 = vsel %vm468_vm1, %v3428_v0, %v3429_v6  ;;  %v3663_v0 = vrot.slane %v13329_v49, 2 }
 0x221   :  { %4019 = vmatprep.mubr.f32.mxu1 %v3425_v48  ;;  %v13312_v58 = vadd.f32 %v17420_v45, %v1966_v47  ;;  %v3657_v48 = vrot.slane %v13306_v1, 2  ;;  %v6259_v45 = vld [vmem:[#allocation8 + $0x1e0] sm:$0xff]  ;;  %v6260_v63 = vld [vmem:[#allocation8 + $0x1e8] sm:$0xff] }
 0x222   :  { %17419 = vst [vmem:[#allocation23_spill] sm:$0xff] %v13300_v37  ;;  %v1971_v59 = vpop.f32.mrb[100].mxu0  ;;  %v11212_v37 = vpack.c.bf16 %v6260_v63, %v6259_v45  ;;  %v3433_v63 = vrot.slane %v13306_v1, 1 }
 0x223   :  { %17421 = vst [vmem:[#allocation34_spill] sm:$0xff] %v13312_v58  ;;  %v2616_v55 = vpop.f32.mrb[114].mxu1  ;;  %10495 = vmatmul.mubr.f32.gmra.mrb[206].mxu0 %v3651_v20  ;;  %v3662_v20 = vrot.slane %v13327_v10, 2 }
 0x224   :  { %v13320_v36 = vadd.f32 %v2616_v55, %v12884_v51  ;;  %4020 = vmatmul.mubr.f32.gmra.mrb[220].mxu1 %v13262_v27  ;;  %v2618_v47 = vpop.f32.mrb[115].mxu1  ;;  %v13332_v51 = vadd.f32 %v12754_v24, %v1971_v59  ;;  %v1973_v27 = vpop.f32.mrb[101].mxu0  ;;  %v3431_v55 = vrot.slane %v3222_v22, 1  ;;  %10497 = vmatprep.mubr.f32.mxu0 %v3654_v44  ;;  %v3659_v24 = vsel %vm693_vm0, %v3657_v48, %v3658_v4  ;;  %v13344_v22 = vld [vmem:[#allocation2 + $0x130] sm:$0x3]  ;;  %v13346_v44 = vld [vmem:[#allocation2 + $0x138] sm:$0xff] }
 0x225   :  { %4024 = vmatprep.mubr.f32.mxu1 %v3427_v57  ;;  %11213 = vmatpush1.bf16.msra.mxu0 %v11212_v37  ;;  %v13349_v37 = vld [vmem:[#allocation2 + $0x140] sm:$0xff]  ;;  %v3434_v59 = vrot.slane %v13309_v53, 1 }
 0x226   :  { %17422 = vst [vmem:[#allocation47_spill] sm:$0xff] %v13320_v36  ;;  %17423 = vst [vmem:[#allocation27_spill] sm:$0xff] %v13332_v51  ;;  %v3656_v36 = vsel %vm693_vm0, %v3653_v43, %v3655_v26  ;;  %11214 = vmatprep.subr.bf16.mxu0 %v17267_v38  ;;  %v1976_v43 = vpop.f32.mrb[102].mxu0  ;;  %v3432_v48 = vsel %vm468_vm1, %v3429_v6, %v3431_v55  ;;  %v3664_v6 = vsel %vm693_vm0, %v3662_v20, %v3663_v0 }
 0x227   :  { %v2621_v47 = vpop.f32.mrb[116].mxu1  ;;  %10498 = vmatmul.mubr.f32.gmra.mrb[208].mxu0 %v3656_v36  ;;  %v3668_v55 = vrot.slane %v13349_v37, 2  ;;  %v3436_v20 = vrot.slane %v13325_v2, 1  ;;  %v13386_v2 = vld [vmem:[#allocation2 + $0x160] sm:$0x3] }
 0x228   :  { %v13338_v57 = vadd.f32 %v2621_v47, %v12902_v19  ;;  %4025 = vmatmul.mubr.f32.gmra.mrb[222].mxu1 %v13264_v54  ;;  %v2623_v45 = vpop.f32.mrb[117].mxu1  ;;  %v17425_v19 = vld [vmem:[#allocation66_spill] sm:$0xff]  ;;  %v1978_v54 = vpop.f32.mrb[103].mxu0  ;;  %10500 = vmatprep.mubr.f32.mxu0 %v3659_v24  ;;  %v3661_v47 = vsel %vm693_vm0, %v3658_v4, %v3660_v40  ;;  %v6262_v24 = vld [vmem:[#allocation8 + $0x1f8] sm:$0xff]  ;;  %v13368_v40 = vld [vmem:[#allocation2 + $0x150] sm:$0xff] }
 0x229   :  { %4029 = vmatprep.mubr.f32.mxu1 %v3430_v8  ;;  %v13352_v26 = vadd.f32 %v17425_v19, %v1976_v43  ;;  %v3665_v45 = vrot.slane %v13344_v22, 2  ;;  %v3667_v8 = vrot.slane %v13346_v44, 2  ;;  %v13366_v43 = vld [vmem:[#allocation2 + $0x148] sm:$0x3]  ;;  %v6261_v19 = vld [vmem:[#allocation8 + $0x1f0] sm:$0xff]  ;;  %v13370_v4 = vld [vmem:[#allocation2 + $0x158] sm:$0xff] }
 0x22a   :  { %17424 = vst [vmem:[#allocation33_spill] sm:$0xff] %v13338_v57  ;;  %v1981_v54 = vpop.f32.mrb[104].mxu0 }
 0x22b   :  { %17426 = vst [vmem:[#allocation54_spill] sm:$0xff] %v13352_v26  ;;  %v2626_v27 = vpop.f32.mrb[118].mxu1  ;;  %v11215_v26 = vpack.c.bf16 %v6262_v24, %v6261_v19  ;;  %10501 = vmatmul.mubr.f32.gmra.mrb[210].mxu0 %v3661_v47  ;;  %v3669_v19 = vsel %vm693_vm0, %v3667_v8, %v3668_v55  ;;  %v3673_v47 = vrot.slane %v13370_v4, 2  ;;  %v3437_v8 = vsel %vm468_vm1, %v3434_v59, %v3436_v20 }
 0x22c   :  { %v13361_v57 = vadd.f32 %v2626_v27, %v12921_v41  ;;  %4030 = vmatmul.mubr.f32.gmra.mrb[224].mxu1 %v13290_v9  ;;  %v2628_v36 = vpop.f32.mrb[119].mxu1  ;;  %v13373_v41 = vadd.f32 %v12772_v15, %v1981_v54  ;;  %v1983_v9 = vpop.f32.mrb[105].mxu0  ;;  %v3435_v27 = vsel %vm468_vm1, %v3433_v63, %v3434_v59  ;;  %10503 = vmatprep.mubr.f32.mxu0 %v3664_v6  ;;  %v3672_v63 = vrot.slane %v13368_v40, 2 }
 0x22d   :  { %4034 = vmatprep.mubr.f32.mxu1 %v3432_v48  ;;  %v3670_v48 = vrot.slane %v13366_v43, 2  ;;  %11216 = vmatpush1.bf16.msra.mxu0 %v11215_v26  ;;  %v13391_v26 = vld [vmem:[#allocation2 + $0x170] sm:$0xff]  ;;  %v3438_v24 = vrot.slane %v13327_v10, 1  ;;  %v3439_v54 = vrot.slane %v13329_v49, 1 }
 0x22e   :  { %17427 = vst [vmem:[#allocation31_spill] sm:$0xff] %v13361_v57  ;;  %17428 = vst [vmem:[#allocation38_spill] sm:$0xff] %v13373_v41  ;;  %v3666_v57 = vsel %vm693_vm0, %v3663_v0, %v3665_v45  ;;  %11217 = vmatprep.subr.bf16.mxu0 %v17267_v38  ;;  %v1986_v0 = vpop.f32.mrb[106].mxu0  ;;  %v13389_v45 = vld [vmem:[#allocation2 + $0x168] sm:$0xff]  ;;  %v3674_v59 = vsel %vm693_vm0, %v3672_v63, %v3673_v47  ;;  %v3441_v41 = vrot.slane %v13344_v22, 1 }
 0x22f   :  { %v2631_v36 = vpop.f32.mrb[120].mxu1  ;;  %10504 = vmatmul.mubr.f32.gmra.mrb[212].mxu0 %v3666_v57  ;;  %v3677_v20 = vrot.slane %v13389_v45, 2  ;;  %v3678_v57 = vrot.slane %v13391_v26, 2  ;;  %v3440_v63 = vsel %vm468_vm1, %v3438_v24, %v3439_v54 }
 0x230   :  { %v13380_v32 = vadd.f32 %v2631_v36, %v12938_v14  ;;  %4035 = vmatmul.mubr.f32.gmra.mrb[226].mxu1 %v13292_v17  ;;  %v2633_v15 = vpop.f32.mrb[121].mxu1  ;;  %v17430_v14 = vld [vmem:[#allocation67_spill] sm:$0xff]  ;;  %v1988_v17 = vpop.f32.mrb[107].mxu0  ;;  %10506 = vmatprep.mubr.f32.mxu0 %v3669_v19  ;;  %v3671_v36 = vsel %vm693_vm0, %v3668_v55, %v3670_v48  ;;  %v6284_v19 = vld [vmem:[#allocation8 + $0x2a8] sm:$0xff]  ;;  %v13410_v48 = vld [vmem:[#allocation2 + $0x180] sm:$0xff] }
 0x231   :  { %4039 = vmatprep.mubr.f32.mxu1 %v3435_v27  ;;  %v13394_v6 = vadd.f32 %v17430_v14, %v1986_v0  ;;  %v3675_v27 = vrot.slane %v13386_v2, 2  ;;  %v13401_v15 = vld [vmem:[#allocation2 + $0x178] sm:$0x3]  ;;  %v6283_v14 = vld [vmem:[#allocation8 + $0x2a0] sm:$0xff]  ;;  %v3682_v24 = vrot.slane %v13410_v48, 2 }
 0x232   :  { %17429 = vst [vmem:[#allocation35_spill] sm:$0xff] %v13380_v32  ;;  %v6263_v17 = vld [vmem:[#allocation8 + $0x200] sm:$0xff]  ;;  %v1991_v55 = vpop.f32.mrb[108].mxu0  ;;  %v3680_v58 = vrot.slane %v13401_v15, 2 }
 0x233   :  { %17431 = vst [vmem:[#allocation37_spill] sm:$0xff] %v13394_v6  ;;  %v2636_v9 = vpop.f32.mrb[122].mxu1  ;;  %v13412_v6 = vld [vmem:[#allocation2 + $0x188] sm:$0xff]  ;;  %10507 = vmatmul.mubr.f32.gmra.mrb[214].mxu0 %v3671_v36  ;;  %v13428_v36 = vld [vmem:[#allocation2 + $0x190] sm:$0x3] }
 0x234   :  { %v13404_v32 = vadd.f32 %v2636_v9, %v12956_v29  ;;  %4040 = vmatmul.mubr.f32.gmra.mrb[228].mxu1 %v13306_v1  ;;  %v2638_v0 = vpop.f32.mrb[123].mxu1  ;;  %v11249_v29 = vpack.c.bf16 %v6284_v19, %v6283_v14  ;;  %v6264_v9 = vld [vmem:[#allocation8 + $0x208] sm:$0xff]  ;;  %10509 = vmatprep.mubr.f32.mxu0 %v3674_v59  ;;  %v3679_v19 = vsel %vm693_vm0, %v3677_v20, %v3678_v57  ;;  %v3683_v22 = vrot.slane %v13412_v6, 2  ;;  %v13430_v59 = vld [vmem:[#allocation2 + $0x198] sm:$0xff] }
 0x235   :  { %4044 = vmatprep.mubr.f32.mxu1 %v3437_v8  ;;  %v1993_v0 = vpop.f32.mrb[109].mxu0  ;;  %v11218_v51 = vpack.c.bf16 %v6264_v9, %v6263_v17  ;;  %v3676_v8 = vsel %vm693_vm0, %v3673_v47, %v3675_v27  ;;  %v17437_v27 = vld [vmem:[#allocation68_spill] sm:$0xff]  ;;  %v3443_v20 = vrot.slane %v13346_v44, 1  ;;  %v3444_v17 = vrot.slane %v13349_v37, 1 }
 0x236   :  { %17432 = vst [vmem:[#allocation39_spill] sm:$0xff] %v13404_v32  ;;  %v17433_v32 = vld [vmem:[#allocation69_spill] sm:$0xff]  ;;  %11250 = vmatprep.subr.bf16.mxu1 %v11249_v29  ;;  %v1996_v47 = vpop.f32.mrb[110].mxu0  ;;  %v3685_v9 = vrot.slane %v13428_v36, 2 }
 0x237   :  { %v13415_v1 = vadd.f32 %v17433_v32, %v1991_v55  ;;  %v2641_v16 = vpop.f32.mrb[124].mxu1  ;;  %11219 = vmatpush1.bf16.msra.mxu0 %v11218_v51  ;;  %11252 = vmatpush3.bf16.msra.mxu1 %v11249_v29  ;;  %v3681_v51 = vsel %vm693_vm0, %v3678_v57, %v3680_v58  ;;  %v3687_v29 = vrot.slane %v13430_v59, 2  ;;  %v6265_v58 = vld [vmem:[#allocation8 + $0x210] sm:$0xff]  ;;  %v6266_v57 = vld [vmem:[#allocation8 + $0x218] sm:$0xff] }
 0x238   :  { %v13422_v14 = vadd.f32 %v2641_v16, %v17435_v42  ;;  %4045 = vmatmul.mubr.f32.gmra.mrb[230].mxu1 %v13309_v53  ;;  %v2643_v32 = vpop.f32.mrb[125].mxu1  ;;  %v13433_v42 = vadd.f32 %v17437_v27, %v1996_v47  ;;  %v1998_v16 = vpop.f32.mrb[111].mxu0  ;;  %v3442_v53 = vsel %vm468_vm1, %v3439_v54, %v3441_v41  ;;  %10510 = vmatmul.mubr.f32.gmra.mrb[216].mxu0 %v3676_v8  ;;  %v13454_v47 = vld [vmem:[#allocation2 + $0x1e0] sm:$0xff] }
 0x239   :  { %17434 = vst [vmem:[#allocation42_spill] sm:$0xff] %v13415_v1  ;;  %4049 = vmatprep.mubr.f32.mxu1 %v3440_v63  ;;  %11220 = vmatprep.subr.bf16.mxu0 %v17267_v38  ;;  %v3684_v54 = vsel %vm693_vm0, %v3682_v24, %v3683_v22  ;;  %v13447_v63 = vld [vmem:[#allocation2 + $0x8] sm:$0xff]  ;;  %v11221_v27 = vpack.c.bf16 %v6266_v57, %v6265_v58 }
 0x23a   :  { %17436 = vst [vmem:[#allocation43_spill] sm:$0xff] %v13422_v14  ;;  %17438 = vst [vmem:[#allocation41_spill] sm:$0xff] %v13433_v42  ;;  %10512 = vmatprep.mubr.f32.mxu0 %v3679_v19  ;;  %v13450_v8 = vrot.slane %v13447_v63, 2  ;;  %v13452_v32 = vld [vmem:[#allocation2 + $0x1a8] sm:$0x3]  ;;  %v2001_v19 = vpop.f32.mrb[112].mxu0  ;;  %v3686_v14 = vsel %vm693_vm0, %v3683_v22, %v3685_v9 }
 0x23b   :  { %v2646_v55 = vpop.f32.mrb[126].mxu1  ;;  %v2003_v24 = vpop.f32.mrb[113].mxu0  ;;  %11222 = vmatpush1.bf16.msra.mxu0 %v11221_v27  ;;  %v3449_v27 = vrot.slane %v13370_v4, 1 }
 0x23c   :  { %v13443_v0 = vadd.f32 %v2646_v55, %v12991_v21  ;;  %4050 = vmatmul.mubr.f32.gmra.mrb[232].mxu1 %v13327_v10  ;;  %v2648_v41 = vpop.f32.mrb[127].mxu1  ;;  %17440 = vst [vmem:[#allocation45_spill] sm:$0xff] %v13450_v8  ;;  %v13456_v21 = vld [vmem:[#allocation2 + $0x1e8] sm:$0xff]  ;;  %v17441_v10 = vld [vmem:[#allocation71_spill] sm:$0xff]  ;;  %v3445_v55 = vsel %vm468_vm1, %v3443_v20, %v3444_v17  ;;  %10513 = vmatmul.mubr.f32.gmra.mrb[218].mxu0 %v3681_v51  ;;  %v3692_v20 = vrot.slane %v13454_v47, 2 }
 0x23d   :  { %4054 = vmatprep.mubr.f32.mxu1 %v3442_v53  ;;  %v13459_v16 = vadd.f32 %v17441_v10, %v2001_v19  ;;  %v3446_v41 = vrot.slane %v13366_v43, 1  ;;  %10515 = vmatprep.mubr.f32.mxu0 %v3684_v54  ;;  %v3690_v53 = vrot.slane %v13452_v32, 2  ;;  %v3689_v57 = vsel %vm693_vm0, %v3687_v29, %v13450_v8  ;;  %v13473_v51 = vld [vmem:[#allocation2 + $0x1f0] sm:$0x3]  ;;  %v13475_v54 = vld [vmem:[#allocation2 + $0x1f8] sm:$0xff] }
 0x23e   :  { %17439 = vst [vmem:[#allocation46_spill] sm:$0xff] %v13443_v0  ;;  %v3693_v43 = vrot.slane %v13456_v21, 2  ;;  %11223 = vmatprep.subr.bf16.mxu0 %v17267_v38  ;;  %v2006_v22 = vpop.f32.mrb[114].mxu0  ;;  %v3448_v19 = vrot.slane %v13368_v40, 1 }
 0x23f   :  { %17442 = vst [vmem:[#allocation50_spill] sm:$0xff] %v13459_v16  ;;  %v2651_v42 = vpop.f32.mrb[128].mxu1  ;;  %v2008_v9 = vpop.f32.mrb[115].mxu0  ;;  %v3447_v29 = vsel %vm468_vm1, %v3444_v17, %v3446_v41  ;;  %v3691_v24 = vsel %vm693_vm0, %v13450_v8, %v3690_v53  ;;  %v13498_v53 = vld [vmem:[#allocation2 + $0x210] sm:$0xff]  ;;  %v13500_v16 = vld [vmem:[#allocation2 + $0x218] sm:$0xff] }
 0x240   :  { %v13466_v0 = vadd.f32 %v2651_v42, %v13008_v39  ;;  %4055 = vmatmul.mubr.f32.gmra.mrb[234].mxu1 %v13329_v49  ;;  %v2653_v58 = vpop.f32.mrb[129].mxu1  ;;  %v13478_v39 = vld [vmem:[#allocation2 + $0x200] sm:$0xff]  ;;  %v17444_v42 = vld [vmem:[#allocation70_spill] sm:$0xff]  ;;  %10516 = vmatmul.mubr.f32.gmra.mrb[220].mxu0 %v3686_v14  ;;  %v3694_v41 = vsel %vm693_vm0, %v3692_v20, %v3693_v43  ;;  %v3451_v20 = vrot.slane %v13386_v2, 1  ;;  %v3703_v2 = vrot.slane %v13500_v16, 2 }
 0x241   :  { %4059 = vmatprep.mubr.f32.mxu1 %v3445_v55  ;;  %v13481_v49 = vadd.f32 %v17444_v42, %v2006_v22  ;;  %10518 = vmatprep.mubr.f32.mxu0 %v3689_v57  ;;  %v3695_v55 = vrot.slane %v13473_v51, 2  ;;  %v3697_v58 = vrot.slane %v13475_v54, 2  ;;  %v3698_v42 = vrot.slane %v13478_v39, 2  ;;  %v13496_v14 = vld [vmem:[#allocation2 + $0x208] sm:$0x3]  ;;  %v6267_v57 = vld [vmem:[#allocation8 + $0x220] sm:$0xff] }
 0x242   :  { %17443 = vst [vmem:[#allocation44_spill] sm:$0xff] %v13466_v0  ;;  %v6268_v9 = vld [vmem:[#allocation8 + $0x228] sm:$0xff] }
 0x243   :  { %17445 = vst [vmem:[#allocation53_spill] sm:$0xff] %v13481_v49  ;;  %v2656_v10 = vpop.f32.mrb[130].mxu1  ;;  %v2011_v49 = vpop.f32.mrb[116].mxu0  ;;  %v11224_v0 = vpack.c.bf16 %v6268_v9, %v6267_v57  ;;  %v3696_v1 = vsel %vm693_vm0, %v3693_v43, %v3695_v55  ;;  %v3699_v57 = vsel %vm693_vm0, %v3697_v58, %v3698_v42  ;;  %v3452_v58 = vsel %vm468_vm1, %v3449_v27, %v3451_v20 }
 0x244   :  { %v13491_v22 = vadd.f32 %v2656_v10, %v13026_v13  ;;  %4060 = vmatmul.mubr.f32.gmra.mrb[236].mxu1 %v13346_v44  ;;  %v2658_v17 = vpop.f32.mrb[131].mxu1  ;;  %v17447_v13 = vld [vmem:[#allocation73_spill] sm:$0xff]  ;;  %v2013_v44 = vpop.f32.mrb[117].mxu0  ;;  %10519 = vmatmul.mubr.f32.gmra.mrb[222].mxu0 %v3691_v24  ;;  %v3454_v9 = vrot.slane %v13391_v26, 1 }
 0x245   :  { %4064 = vmatprep.mubr.f32.mxu1 %v3447_v29  ;;  %v13503_v10 = vadd.f32 %v17447_v13, %v2011_v49  ;;  %v3450_v17 = vsel %vm468_vm1, %v3448_v19, %v3449_v27  ;;  %10521 = vmatprep.mubr.f32.mxu0 %v3694_v41  ;;  %v3700_v29 = vrot.slane %v13496_v14, 2  ;;  %v3702_v19 = vrot.slane %v13498_v53, 2  ;;  %v13516_v24 = vld [vmem:[#allocation2 + $0x220] sm:$0x3]  ;;  %v13518_v41 = vld [vmem:[#allocation2 + $0x228] sm:$0xff] }
 0x246   :  { %17446 = vst [vmem:[#allocation49_spill] sm:$0xff] %v13491_v22  ;;  %11225 = vmatpush1.bf16.msra.mxu0 %v11224_v0  ;;  %v2016_v43 = vpop.f32.mrb[118].mxu0  ;;  %v13521_v0 = vld [vmem:[#allocation2 + $0x230] sm:$0xff] }
 0x247   :  { %17448 = vst [vmem:[#allocation57_spill] sm:$0xff] %v13503_v10  ;;  %v2661_v22 = vpop.f32.mrb[132].mxu1  ;;  %11226 = vmatprep.subr.bf16.mxu0 %v17267_v38  ;;  %v3701_v44 = vsel %vm693_vm0, %v3698_v42, %v3700_v29  ;;  %v3704_v27 = vsel %vm693_vm0, %v3702_v19, %v3703_v2  ;;  %v3708_v20 = vrot.slane %v13521_v0, 2  ;;  %v13540_v42 = vld [vmem:[#allocation2 + $0x240] sm:$0xff]  ;;  %v13542_v29 = vld [vmem:[#allocation2 + $0x248] sm:$0xff]  ;;  %v3456_v19 = vrot.slane %v13401_v15, 1 }
 0x248   :  { %v13510_v3 = vadd.f32 %v2661_v22, %v13043_v33  ;;  %4065 = vmatmul.mubr.f32.gmra.mrb[238].mxu1 %v13349_v37  ;;  %v2663_v49 = vpop.f32.mrb[133].mxu1  ;;  %v17450_v33 = vld [vmem:[#allocation72_spill] sm:$0xff]  ;;  %v2018_v37 = vpop.f32.mrb[119].mxu0  ;;  %v3453_v22 = vrot.slane %v13389_v45, 1  ;;  %10522 = vmatmul.mubr.f32.gmra.mrb[224].mxu0 %v3696_v1  ;;  %v6269_v1 = vld [vmem:[#allocation8 + $0x230] sm:$0xff]  ;;  %v3713_v15 = vrot.slane %v13542_v29, 2 }
 0x249   :  { %4069 = vmatprep.mubr.f32.mxu1 %v3450_v17  ;;  %v13524_v55 = vadd.f32 %v17450_v33, %v2016_v43  ;;  %10524 = vmatprep.mubr.f32.mxu0 %v3699_v57  ;;  %v3705_v49 = vrot.slane %v13516_v24, 2  ;;  %v3707_v17 = vrot.slane %v13518_v41, 2  ;;  %v13538_v33 = vld [vmem:[#allocation2 + $0x238] sm:$0x3] }
 0x24a   :  { %17449 = vst [vmem:[#allocation48_spill] sm:$0xff] %v13510_v3  ;;  %v6270_v57 = vld [vmem:[#allocation8 + $0x238] sm:$0xff]  ;;  %v2021_v37 = vpop.f32.mrb[120].mxu0 }
 0x24b   :  { %17451 = vst [vmem:[#allocation60_spill] sm:$0xff] %v13524_v55  ;;  %v2666_v13 = vpop.f32.mrb[134].mxu1  ;;  %v11227_v55 = vpack.c.bf16 %v6270_v57, %v6269_v1  ;;  %v3709_v57 = vsel %vm693_vm0, %v3707_v17, %v3708_v20  ;;  %v3458_v17 = vrot.slane %v13410_v48, 1 }
 0x24c   :  { %v13533_v10 = vadd.f32 %v2666_v13, %v13061_v28  ;;  %4070 = vmatmul.mubr.f32.gmra.mrb[240].mxu1 %v13368_v40  ;;  %v2668_v43 = vpop.f32.mrb[135].mxu1  ;;  %v17453_v28 = vld [vmem:[#allocation75_spill] sm:$0xff]  ;;  %v2023_v40 = vpop.f32.mrb[121].mxu0  ;;  %10525 = vmatmul.mubr.f32.gmra.mrb[226].mxu0 %v3701_v44 }
 0x24d   :  { %4074 = vmatprep.mubr.f32.mxu1 %v3452_v58  ;;  %v13545_v13 = vadd.f32 %v17453_v28, %v2021_v37  ;;  %v3455_v43 = vsel %vm468_vm1, %v3453_v22, %v3454_v9  ;;  %10527 = vmatprep.mubr.f32.mxu0 %v3704_v27  ;;  %v3710_v58 = vrot.slane %v13538_v33, 2  ;;  %v3712_v22 = vrot.slane %v13540_v42, 2  ;;  %v13558_v44 = vld [vmem:[#allocation2 + $0x250] sm:$0x3]  ;;  %v13560_v27 = vld [vmem:[#allocation2 + $0x258] sm:$0xff] }
 0x24e   :  { %17452 = vst [vmem:[#allocation52_spill] sm:$0xff] %v13533_v10  ;;  %v3706_v10 = vsel %vm693_vm0, %v3703_v2, %v3705_v49  ;;  %11228 = vmatpush1.bf16.msra.mxu0 %v11227_v55  ;;  %17456 = vst [vmem:[#allocation56_spill] sm:$0xff] %v13560_v27  ;;  %v2026_v2 = vpop.f32.mrb[122].mxu0  ;;  %v13563_v55 = vld [vmem:[#allocation2 + $0x260] sm:$0xff]  ;;  %v3457_v49 = vsel %vm468_vm1, %v3454_v9, %v3456_v19  ;;  %v3459_v37 = vrot.slane %v13412_v6, 1 }
 0x24f   :  { %17454 = vst [vmem:[#allocation63_spill] sm:$0xff] %v13545_v13  ;;  %v2671_v3 = vpop.f32.mrb[136].mxu1  ;;  %11229 = vmatprep.subr.bf16.mxu0 %v17267_v38  ;;  %17457 = vst [vmem:[#allocation55_spill] sm:$0xff] %v13563_v55  ;;  %v3711_v40 = vsel %vm693_vm0, %v3708_v20, %v3710_v58  ;;  %v6285_v13 = vld [vmem:[#allocation8 + $0x2b0] sm:$0xff]  ;;  %v3714_v19 = vsel %vm693_vm0, %v3712_v22, %v3713_v15  ;;  %v6271_v20 = vld [vmem:[#allocation8 + $0x240] sm:$0xff] }
 0x250   :  { %v13552_v8 = vadd.f32 %v2671_v3, %v13078_v60  ;;  %4075 = vmatmul.mubr.f32.gmra.mrb[242].mxu1 %v13370_v4  ;;  %v2673_v1 = vpop.f32.mrb[137].mxu1  ;;  %v17458_v60 = vld [vmem:[#allocation74_spill] sm:$0xff]  ;;  %v2028_v4 = vpop.f32.mrb[123].mxu0  ;;  %10528 = vmatmul.mubr.f32.gmra.mrb[228].mxu0 %v3706_v10  ;;  %v3718_v10 = vrot.slane %v13563_v55, 2  ;;  %v3460_v22 = vsel %vm468_vm1, %v3458_v17, %v3459_v37 }
 0x251   :  { %4079 = vmatprep.mubr.f32.mxu1 %v3455_v43  ;;  %v13566_v3 = vadd.f32 %v17458_v60, %v2026_v2  ;;  %10530 = vmatprep.mubr.f32.mxu0 %v3709_v57  ;;  %v3715_v1 = vrot.slane %v13558_v44, 2  ;;  %v3717_v43 = vrot.slane %v13560_v27, 2  ;;  %v13580_v60 = vld [vmem:[#allocation2 + $0x268] sm:$0x3]  ;;  %v13584_v27 = vld [vmem:[#allocation2 + $0x278] sm:$0xff] }
 0x252   :  { %17455 = vst [vmem:[#allocation51_spill] sm:$0xff] %v13552_v8  ;;  %v6286_v8 = vld [vmem:[#allocation8 + $0x2b8] sm:$0xff]  ;;  %v6272_v58 = vld [vmem:[#allocation8 + $0x248] sm:$0xff]  ;;  %v2031_v4 = vpop.f32.mrb[124].mxu0 }
 0x253   :  { %17459 = vst [vmem:[#allocation59_spill] sm:$0xff] %v13566_v3  ;;  %v2676_v28 = vpop.f32.mrb[138].mxu1  ;;  %v11253_v57 = vpack.c.bf16 %v6286_v8, %v6285_v13  ;;  %v13582_v3 = vld [vmem:[#allocation2 + $0x270] sm:$0xff]  ;;  %v3716_v13 = vsel %vm693_vm0, %v3713_v15, %v3715_v1 }
 0x254   :  { %v13575_v2 = vadd.f32 %v2676_v28, %v13096_v11  ;;  %4080 = vmatmul.mubr.f32.gmra.mrb[244].mxu1 %v13389_v45  ;;  %v2678_v9 = vpop.f32.mrb[139].mxu1  ;;  %v11230_v11 = vpack.c.bf16 %v6272_v58, %v6271_v20  ;;  %v17461_v28 = vld [vmem:[#allocation77_spill] sm:$0xff]  ;;  %v2033_v45 = vpop.f32.mrb[125].mxu0  ;;  %10531 = vmatmul.mubr.f32.gmra.mrb[230].mxu0 %v3711_v40  ;;  %v3719_v58 = vsel %vm693_vm0, %v3717_v43, %v3718_v10  ;;  %v3722_v17 = vrot.slane %v13582_v3, 2  ;;  %v13604_v1 = vld [vmem:[#allocation2 + $0x290] sm:$0xff] }
 0x255   :  { %4084 = vmatprep.mubr.f32.mxu1 %v3457_v49  ;;  %v3461_v9 = vrot.slane %v13428_v36, 1  ;;  %11254 = vmatprep.subr.bf16.mxu1 %v11253_v57  ;;  %v3720_v49 = vrot.slane %v13580_v60, 2  ;;  %v3723_v36 = vrot.slane %v13584_v27, 2  ;;  %v13600_v40 = vld [vmem:[#allocation2 + $0x280] sm:$0x3]  ;;  %17464 = vst [vmem:[#allocation65_spill] sm:$0xff] %v13604_v1 }
 0x256   :  { %17460 = vst [vmem:[#allocation58_spill] sm:$0xff] %v13575_v2  ;;  %v13587_v2 = vadd.f32 %v17461_v28, %v2031_v4  ;;  %10533 = vmatprep.mubr.f32.mxu0 %v3714_v19  ;;  %11256 = vmatpush3.bf16.msra.mxu1 %v11253_v57  ;;  %v13602_v19 = vld [vmem:[#allocation2 + $0x288] sm:$0xff]  ;;  %v2036_v15 = vpop.f32.mrb[126].mxu0  ;;  %v3463_v4 = vrot.slane %v13430_v59, 1  ;;  %v3464_v28 = vrot.slane %v13447_v63, 1 }
 0x257   :  { %v2681_v8 = vpop.f32.mrb[140].mxu1  ;;  %11231 = vmatpush1.bf16.msra.mxu0 %v11230_v11  ;;  %v2038_v57 = vpop.f32.mrb[127].mxu0  ;;  %v3462_v43 = vsel %vm468_vm1, %v3459_v37, %v3461_v9  ;;  %v3721_v11 = vsel %vm693_vm0, %v3718_v10, %v3720_v49  ;;  %v3724_v37 = vsel %vm693_vm0, %v3722_v17, %v3723_v36  ;;  %v3728_v9 = vrot.slane %v13604_v1, 2  ;;  %v13625_v49 = vld [vmem:[#allocation2 + $0x2a0] sm:$0xff] }
 0x258   :  { %17462 = vst [vmem:[#allocation62_spill] sm:$0xff] %v13587_v2  ;;  %v13594_v55 = vadd.f32 %v2681_v8, %v13113_v46  ;;  %4085 = vmatmul.mubr.f32.gmra.mrb[246].mxu1 %v13391_v26  ;;  %v2683_v20 = vpop.f32.mrb[141].mxu1  ;;  %11232 = vmatprep.subr.bf16.mxu0 %v17267_v38  ;;  %v17465_v46 = vld [vmem:[#allocation76_spill] sm:$0xff]  ;;  %v3727_v8 = vrot.slane %v13602_v19, 2  ;;  %v3466_v10 = vrot.slane %v13452_v32, 1  ;;  %v3465_v17 = vsel %vm468_vm1, %v3463_v4, %v3464_v28 }
 0x259   :  { %4089 = vmatprep.mubr.f32.mxu1 %v3460_v22  ;;  %v13608_v26 = vadd.f32 %v17465_v46, %v2036_v15  ;;  %10534 = vmatmul.mubr.f32.gmra.mrb[232].mxu0 %v3716_v13  ;;  %v3725_v22 = vrot.slane %v13600_v40, 2  ;;  %v13622_v46 = vld [vmem:[#allocation2 + $0x298] sm:$0x3]  ;;  %v6273_v13 = vld [vmem:[#allocation8 + $0x250] sm:$0xff]  ;;  %v3732_v4 = vrot.slane %v13625_v49, 2 }
 0x25a   :  { %17463 = vst [vmem:[#allocation61_spill] sm:$0xff] %v13594_v55  ;;  %10536 = vmatprep.mubr.f32.mxu0 %v3719_v58  ;;  %v6274_v58 = vld [vmem:[#allocation8 + $0x258] sm:$0xff]  ;;  %v10347_v57 = vpop.f32.mrb[128].mxu0  ;;  %v17470_v55 = vld [vmem:[#allocation78_spill] sm:$0xff]  ;;  %v3730_v32 = vrot.slane %v13622_v46, 2 }
 0x25b   :  { %17466 = vst [vmem:[#allocation64_spill] sm:$0xff] %v13608_v26  ;;  %v2686_v45 = vpop.f32.mrb[142].mxu1  ;;  %v13627_v26 = vld [vmem:[#allocation2 + $0x2a8] sm:$0xff] }
 0x25c   :  { %v13617_v20 = vadd.f32 %v2686_v45, %v13131_v5  ;;  %4090 = vmatmul.mubr.f32.gmra.mrb[248].mxu1 %v13410_v48  ;;  %v2688_v15 = vpop.f32.mrb[143].mxu1  ;;  %v11233_v5 = vpack.c.bf16 %v6274_v58, %v6273_v13  ;;  %v17468_v45 = vld [vmem:[#allocation22_spill] sm:$0xff]  ;;  %v3729_v58 = vsel %vm693_vm0, %v3727_v8, %v3728_v9 }
 0x25d   :  { %4094 = vmatprep.mubr.f32.mxu1 %v3462_v43  ;;  %v13630_v48 = vadd.f32 %v10347_v57, %v17468_v45  ;;  %v2876_v15 = vpop.f32.mrb[129].mxu0  ;;  %10537 = vmatmul.mubr.f32.gmra.mrb[234].mxu0 %v3721_v11  ;;  %v3726_v43 = vsel %vm693_vm0, %v3723_v36, %v3725_v22  ;;  %v3733_v11 = vrot.slane %v13627_v26, 2  ;;  %v6288_v22 = vld [vmem:[#allocation8 + $0x2c8] sm:$0xff]  ;;  %v17474_v57 = vld [vmem:[#allocation13_spill] sm:$0xff]  ;;  %v3468_v45 = vrot.slane %v13454_v47, 1 }
 0x25e   :  { %17467 = vst [vmem:[#allocation66_spill] sm:$0xff] %v13617_v20  ;;  %v13634_v20 = vadd.f32 %v2876_v15, %v17470_v55  ;;  %10539 = vmatprep.mubr.f32.mxu0 %v3724_v37  ;;  %11234 = vmatpush1.bf16.msra.mxu0 %v11233_v5  ;;  %v13645_v55 = vld [vmem:[#allocation2 + $0x2b0] sm:$0x3]  ;;  %v13647_v37 = vld [vmem:[#allocation2 + $0x2b8] sm:$0xff]  ;;  %v10350_v36 = vpop.f32.mrb[130].mxu0  ;;  %v3469_v15 = vrot.slane %v13456_v21, 1 }
 0x25f   :  { %17469 = vst [vmem:[#allocation67_spill] sm:$0xff] %v13630_v48  ;;  %v2691_v2 = vpop.f32.mrb[144].mxu1  ;;  %11235 = vmatprep.subr.bf16.mxu0 %v17267_v38  ;;  %v13654_v8 = vadd.f32 %v10350_v36, %v17474_v57  ;;  %v2886_v5 = vpop.f32.mrb[131].mxu0  ;;  %v17476_v48 = vld [vmem:[#allocation14_spill] sm:$0xff]  ;;  %v3734_v57 = vsel %vm693_vm0, %v3732_v4, %v3733_v11 }
 0x260   :  { %17471 = vst [vmem:[#allocation69_spill] sm:$0xff] %v13634_v20  ;;  %v13639_v1 = vadd.f32 %v2691_v2, %v13148_v34  ;;  %4095 = vmatmul.mubr.f32.gmra.mrb[250].mxu1 %v13412_v6  ;;  %v2693_v13 = vpop.f32.mrb[145].mxu1  ;;  %v3467_v34 = vsel %vm468_vm1, %v3464_v28, %v3466_v10  ;;  %v13651_v2 = vld [vmem:[#allocation2 + $0x2c0] sm:$0xff]  ;;  %v3731_v28 = vsel %vm693_vm0, %v3728_v9, %v3730_v32  ;;  %v3735_v10 = vrot.slane %v13645_v55, 2 }
 0x261   :  { %4099 = vmatprep.mubr.f32.mxu1 %v3465_v17  ;;  %17473 = vst [vmem:[#allocation68_spill] sm:$0xff] %v13651_v2  ;;  %v6287_v6 = vld [vmem:[#allocation8 + $0x2c0] sm:$0xff]  ;;  %17475 = vst [vmem:[#allocation71_spill] sm:$0xff] %v13654_v8  ;;  %10540 = vmatmul.mubr.f32.gmra.mrb[236].mxu0 %v3726_v43  ;;  %v3737_v43 = vrot.slane %v13647_v37, 2  ;;  %v3471_v32 = vrot.slane %v13473_v51, 1 }
 0x262   :  { %17472 = vst [vmem:[#allocation18_spill] sm:$0xff] %v13639_v1  ;;  %v11257_v13 = vpack.c.bf16 %v6288_v22, %v6287_v6  ;;  %v13659_v1 = vadd.f32 %v2886_v5, %v17476_v48  ;;  %10542 = vmatprep.mubr.f32.mxu0 %v3729_v58  ;;  %v3738_v6 = vrot.slane %v13651_v2, 2  ;;  %v13670_v22 = vld [vmem:[#allocation2 + $0x2c8] sm:$0x3]  ;;  %v13672_v48 = vld [vmem:[#allocation2 + $0x2d0] sm:$0xff]  ;;  %v10353_v9 = vpop.f32.mrb[132].mxu0  ;;  %v3736_v51 = vsel %vm693_vm0, %v3733_v11, %v3735_v10 }
 0x263   :  { %v2696_v20 = vpop.f32.mrb[146].mxu1  ;;  %v17479_v58 = vld [vmem:[#allocation26_spill] sm:$0xff]  ;;  %v2896_v5 = vpop.f32.mrb[133].mxu0  ;;  %v3472_v10 = vsel %vm468_vm1, %v3469_v15, %v3471_v32 }
 0x264   :  { %17477 = vst [vmem:[#allocation70_spill] sm:$0xff] %v13659_v1  ;;  %v13664_v17 = vadd.f32 %v2696_v20, %v13166_v35  ;;  %4100 = vmatmul.mubr.f32.gmra.mrb[252].mxu1 %v13430_v59  ;;  %v2698_v36 = vpop.f32.mrb[147].mxu1  ;;  %11258 = vmatprep.subr.bf16.mxu1 %v11257_v13  ;;  %v13675_v35 = vld [vmem:[#allocation2 + $0x2d8] sm:$0xff]  ;;  %v6289_v59 = vld [vmem:[#allocation8 + $0x2d0] sm:$0xff]  ;;  %v13678_v4 = vadd.f32 %v10353_v9, %v17479_v58 }
 0x265   :  { %4104 = vmatprep.mubr.f32.mxu1 %v3467_v34  ;;  %11260 = vmatpush3.bf16.msra.mxu1 %v11257_v13  ;;  %v6290_v20 = vld [vmem:[#allocation8 + $0x2d8] sm:$0xff]  ;;  %v3470_v36 = vsel %vm468_vm1, %v3468_v45, %v3469_v15  ;;  %v3740_v34 = vrot.slane %v13670_v22, 2  ;;  %v3739_v58 = vsel %vm693_vm0, %v3737_v43, %v3738_v6  ;;  %v3742_v45 = vrot.slane %v13672_v48, 2 }
 0x266   :  { %17478 = vst [vmem:[#allocation73_spill] sm:$0xff] %v13664_v17  ;;  %17480 = vst [vmem:[#allocation72_spill] sm:$0xff] %v13678_v4  ;;  %10543 = vmatmul.mubr.f32.gmra.mrb[238].mxu0 %v3731_v28  ;;  %v11261_v1 = vpack.c.bf16 %v6290_v20, %v6289_v59  ;;  %v17481_v17 = vld [vmem:[#allocation16_spill] sm:$0xff]  ;;  %v3743_v28 = vrot.slane %v13675_v35, 2  ;;  %v13693_v59 = vld [vmem:[#allocation2 + $0x2e0] sm:$0x3] }
 0x267   :  { %v2701_v8 = vpop.f32.mrb[148].mxu1  ;;  %v13682_v2 = vadd.f32 %v2896_v5, %v17481_v17  ;;  %10545 = vmatprep.mubr.f32.mxu0 %v3734_v57  ;;  %v13695_v17 = vld [vmem:[#allocation2 + $0x2e8] sm:$0xff]  ;;  %v10356_v11 = vpop.f32.mrb[134].mxu0  ;;  %v3473_v20 = vrot.slane %v13475_v54, 1  ;;  %v3474_v5 = vrot.slane %v13478_v39, 1  ;;  %v3745_v32 = vrot.slane %v13693_v59, 2 }
 0x268   :  { %v13687_v13 = vadd.f32 %v2701_v8, %v13183_v23  ;;  %4105 = vmatmul.mubr.f32.gmra.mrb[254].mxu1 %v13447_v63  ;;  %v2703_v9 = vpop.f32.mrb[149].mxu1  ;;  %17484 = vst [vmem:[#allocation77_spill] sm:$0xff] %v13695_v17  ;;  %11262 = vmatprep.subr.bf16.mxu1 %v11261_v1  ;;  %v13698_v23 = vld [vmem:[#allocation2 + $0x2f0] sm:$0xff]  ;;  %v6291_v63 = vld [vmem:[#allocation8 + $0x2e0] sm:$0xff]  ;;  %v6292_v8 = vld [vmem:[#allocation8 + $0x2e8] sm:$0xff]  ;;  %v13701_v57 = vadd.f32 %v10356_v11, %v13001_v56  ;;  %v2906_v43 = vpop.f32.mrb[135].mxu0 }
 0x269   :  { %17482 = vst [vmem:[#allocation75_spill] sm:$0xff] %v13682_v2  ;;  %4109 = vmatprep.mubr.f32.mxu1 %v3470_v36  ;;  %17485 = vst [vmem:[#allocation76_spill] sm:$0xff] %v13698_v23  ;;  %11264 = vmatpush3.bf16.msra.mxu1 %v11261_v1  ;;  %v6275_v9 = vld [vmem:[#allocation8 + $0x260] sm:$0xff]  ;;  %v6276_v2 = vld [vmem:[#allocation8 + $0x268] sm:$0xff]  ;;  %v11265_v4 = vpack.c.bf16 %v6292_v8, %v6291_v63  ;;  %v3741_v1 = vsel %vm693_vm0, %v3738_v6, %v3740_v34  ;;  %v3747_v63 = vrot.slane %v13695_v17, 2 }
 0x26a   :  { %17483 = vst [vmem:[#allocation74_spill] sm:$0xff] %v13687_v13  ;;  %17486 = vst [vmem:[#allocation22_spill] sm:$0xff] %v13701_v57  ;;  %10546 = vmatmul.mubr.f32.gmra.mrb[240].mxu0 %v3736_v51  ;;  %v17487_v13 = vld [vmem:[#allocation15_spill] sm:$0xff]  ;;  %v11236_v56 = vpack.c.bf16 %v6276_v2, %v6275_v9  ;;  %v3744_v51 = vsel %vm693_vm0, %v3742_v45, %v3743_v28  ;;  %v3748_v8 = vrot.slane %v13698_v23, 2  ;;  %v10359_v6 = vpop.f32.mrb[136].mxu0  ;;  %v3476_v2 = vrot.slane %v13496_v14, 1 }
 0x26b   :  { %v2706_v36 = vpop.f32.mrb[150].mxu1  ;;  %v13706_v15 = vadd.f32 %v2906_v43, %v17487_v13  ;;  %10548 = vmatprep.mubr.f32.mxu0 %v3739_v58  ;;  %v13717_v13 = vld [vmem:[#allocation2 + $0x2f8] sm:$0x3]  ;;  %v13719_v58 = vld [vmem:[#allocation2 + $0x300] sm:$0xff]  ;;  %11266 = vmatprep.subr.bf16.mxu1 %v11265_v4  ;;  %v13725_v45 = vadd.f32 %v10359_v6, %v13036_v50  ;;  %v3475_v43 = vsel %vm468_vm1, %v3473_v20, %v3474_v5  ;;  %v6277_v9 = vld [vmem:[#allocation8 + $0x270] sm:$0xff] }
 0x26c   :  { %v13711_v11 = vadd.f32 %v2706_v36, %v13201_v7  ;;  %4110 = vmatmul.mubr.f32.gmra.mrb[0].mxu1 %v13454_v47  ;;  %v2708_v57 = vpop.f32.mrb[151].mxu1  ;;  %v13722_v7 = vld [vmem:[#allocation2 + $0x308] sm:$0xff]  ;;  %11237 = vmatpush1.bf16.msra.mxu0 %v11236_v56  ;;  %v6293_v47 = vld [vmem:[#allocation8 + $0x2f0] sm:$0xff]  ;;  %v6294_v34 = vld [vmem:[#allocation8 + $0x2f8] sm:$0xff]  ;;  %v3746_v56 = vsel %vm693_vm0, %v3743_v28, %v3745_v32  ;;  %v3750_v17 = vrot.slane %v13717_v13, 2  ;;  %v3477_v32 = vsel %vm468_vm1, %v3474_v5, %v3476_v2 }
 0x26d   :  { %17488 = vst [vmem:[#allocation78_spill] sm:$0xff] %v13706_v15  ;;  %4114 = vmatprep.mubr.f32.mxu1 %v3472_v10  ;;  %v2916_v57 = vpop.f32.mrb[137].mxu0  ;;  %11238 = vmatprep.subr.bf16.mxu0 %v17267_v38  ;;  %v6278_v36 = vld [vmem:[#allocation8 + $0x278] sm:$0xff]  ;;  %v11269_v15 = vpack.c.bf16 %v6294_v34, %v6293_v47  ;;  %v13734_v50 = vld [vmem:[#allocation2 + $0x310] sm:$0x3]  ;;  %v3749_v47 = vsel %vm693_vm0, %v3747_v63, %v3748_v8  ;;  %v3478_v63 = vrot.slane %v13498_v53, 1 }
 0x26e   :  { %10549 = vmatmul.mubr.f32.gmra.mrb[242].mxu0 %v3741_v1  ;;  %v17489_v23 = vld [vmem:[#allocation20_spill] sm:$0xff]  ;;  %v11239_v6 = vpack.c.bf16 %v6278_v36, %v6277_v9  ;;  %11268 = vmatpush3.bf16.msra.mxu1 %v11265_v4  ;;  %v10362_v28 = vpop.f32.mrb[138].mxu0  ;;  %v13746_v4 = vld [vmem:[#allocation2 + $0x320] sm:$0xff]  ;;  %v3479_v9 = vrot.slane %v13500_v16, 1  ;;  %v3755_v36 = vrot.slane %v13734_v50, 2  ;;  %v3751_v5 = vsel %vm693_vm0, %v3748_v8, %v3750_v17 }
 0x26f   :  { %v2711_v10 = vpop.f32.mrb[152].mxu1  ;;  %v13730_v14 = vadd.f32 %v2916_v57, %v17489_v23  ;;  %10551 = vmatprep.mubr.f32.mxu0 %v3744_v51  ;;  %v3752_v23 = vrot.slane %v13719_v58, 2  ;;  %v3753_v51 = vrot.slane %v13722_v7, 2  ;;  %v13743_v34 = vld [vmem:[#allocation2 + $0x318] sm:$0xff]  ;;  %11270 = vmatprep.subr.bf16.mxu1 %v11269_v15 }
 0x270   :  { %v13737_v20 = vadd.f32 %v2711_v10, %v13219_v31  ;;  %4115 = vmatmul.mubr.f32.gmra.mrb[2].mxu1 %v13456_v21  ;;  %v2713_v1 = vpop.f32.mrb[153].mxu1  ;;  %11240 = vmatpush1.bf16.msra.mxu0 %v11239_v6  ;;  %v17491_v31 = vld [vmem:[#allocation25_spill] sm:$0xff]  ;;  %v2926_v21 = vpop.f32.mrb[139].mxu0  ;;  %v3757_v2 = vrot.slane %v13743_v34, 2 }
 0x271   :  { %17490 = vst [vmem:[#allocation13_spill] sm:$0xff] %v13730_v14  ;;  %4119 = vmatprep.mubr.f32.mxu1 %v3475_v43  ;;  %v13749_v57 = vadd.f32 %v10362_v28, %v17491_v31  ;;  %v17492_v1 = vld [vmem:[#allocation21_spill] sm:$0xff]  ;;  %v3758_v28 = vrot.slane %v13746_v4, 2  ;;  %v13765_v31 = vld [vmem:[#allocation2 + $0x328] sm:$0x3] }
 0x272   :  { %10552 = vmatmul.mubr.f32.gmra.mrb[244].mxu0 %v3746_v56  ;;  %v13755_v14 = vadd.f32 %v2926_v21, %v17492_v1  ;;  %11272 = vmatpush3.bf16.msra.mxu1 %v11269_v15  ;;  %v3754_v56 = vsel %vm693_vm0, %v3752_v23, %v3753_v51  ;;  %v13767_v21 = vld [vmem:[#allocation2 + $0x330] sm:$0xff]  ;;  %v10365_v17 = vpop.f32.mrb[140].mxu0  ;;  %v17494_v15 = vld [vmem:[#allocation17_spill] sm:$0xff]  ;;  %v3481_v23 = vrot.slane %v13516_v24, 1 }
 0x273   :  { %v2716_v10 = vpop.f32.mrb[154].mxu1  ;;  %10554 = vmatprep.mubr.f32.mxu0 %v3749_v47  ;;  %v13769_v47 = vld [vmem:[#allocation2 + $0x338] sm:$0xff]  ;;  %11273 = vmatprep.subr.bf16.mxu1 %v17267_v38  ;;  %v2936_v8 = vpop.f32.mrb[141].mxu0  ;;  %v3760_v38 = vrot.slane %v13765_v31, 2 }
 0x274   :  { %17493 = vst [vmem:[#allocation14_spill] sm:$0xff] %v13755_v14  ;;  %v13760_v43 = vadd.f32 %v2716_v10, %v13238_v12  ;;  %4120 = vmatmul.mubr.f32.gmra.mrb[4].mxu1 %v13475_v54  ;;  %v2718_v6 = vpop.f32.mrb[155].mxu1  ;;  %v13773_v12 = vadd.f32 %v10365_v17, %v17494_v15  ;;  %v3480_v54 = vsel %vm468_vm1, %v3478_v63, %v3479_v9  ;;  %v3763_v17 = vrot.slane %v13769_v47, 2 }
 0x275   :  { %4124 = vmatprep.mubr.f32.mxu1 %v3477_v32  ;;  %v3756_v10 = vsel %vm693_vm0, %v3753_v51, %v3755_v36  ;;  %v17495_v6 = vld [vmem:[#allocation24_spill] sm:$0xff]  ;;  %v3762_v32 = vrot.slane %v13767_v21, 2  ;;  %v3759_v63 = vsel %vm693_vm0, %v3757_v2, %v3758_v28  ;;  %v13789_v51 = vld [vmem:[#allocation2 + $0x340] sm:$0x3] }
 0x276   :  { %10555 = vmatmul.mubr.f32.gmra.mrb[246].mxu0 %v3751_v5  ;;  %v13779_v14 = vadd.f32 %v2936_v8, %v17495_v6  ;;  %v10368_v36 = vpop.f32.mrb[142].mxu0  ;;  %v13791_v5 = vld [vmem:[#allocation2 + $0x348] sm:$0xff]  ;;  %v3482_v6 = vsel %vm468_vm1, %v3479_v9, %v3481_v23 }
 0x277   :  { %v2721_v1 = vpop.f32.mrb[156].mxu1  ;;  %10557 = vmatprep.mubr.f32.mxu0 %v3754_v56  ;;  %v13794_v56 = vadd.f32 %v10368_v36, %v13141_v25  ;;  %v2946_v8 = vpop.f32.mrb[143].mxu0  ;;  %v3765_v25 = vrot.slane %v13789_v51, 2  ;;  %v5590_v36 = vld [vmem:[#allocation8 + $0x100] sm:$0xff] }
 0x278   :  { %17496 = vst [vmem:[#allocation26_spill] sm:$0xff] %v13779_v14  ;;  %v13785_v15 = vadd.f32 %v2721_v1, %v13256_v18  ;;  %4125 = vmatmul.mubr.f32.gmra.mrb[6].mxu1 %v13478_v39  ;;  %v2723_v24 = vpop.f32.mrb[157].mxu1  ;;  %v3483_v18 = vrot.slane %v13518_v41, 1  ;;  %v3484_v1 = vrot.slane %v13521_v0, 1  ;;  %v13800_v2 = vadd.f32 %v2946_v8, %v13124_v62  ;;  %v13810_v14 = vld [vmem:[#allocation2 + $0x358] sm:$0x3] }
 0x279   :  { %4129 = vmatprep.mubr.f32.mxu1 %v3480_v54  ;;  %17497 = vst [vmem:[#allocation16_spill] sm:$0xff] %v13794_v56  ;;  %v3761_v54 = vsel %vm693_vm0, %v3758_v28, %v3760_v38  ;;  %v3764_v24 = vsel %vm693_vm0, %v3762_v32, %v3763_v17  ;;  %v5591_v56 = vld [vmem:[#allocation8 + $0x108] sm:$0xff]  ;;  %v17498_v8 = vld [vmem:[#allocation28_spill] sm:$0xff] }
 0x27a   :  { %10558 = vmatmul.mubr.f32.gmra.mrb[248].mxu0 %v3756_v10  ;;  %v3767_v10 = vrot.slane %v13791_v5, 2  ;;  %v13812_v62 = vpack.c.bf16 %v5591_v56, %v5590_v36  ;;  %v3485_v32 = vsel %vm468_vm1, %v3483_v18, %v3484_v1  ;;  %v3766_v56 = vsel %vm693_vm0, %v3763_v17, %v3765_v25  ;;  %v17499_v36 = vld [vmem:[#allocation45_spill] sm:$0xff] }
 0x27b   :  { %v2726_v39 = vpop.f32.mrb[158].mxu1  ;;  %10560 = vmatprep.mubr.f32.mxu0 %v3759_v63  ;;  %v10371_v63 = vpop.f32.mrb[144].mxu0  ;;  %v3488_v17 = vrot.slane %v13540_v42, 1  ;;  %v3489_v25 = vrot.slane %v13542_v29, 1 }
 0x27c   :  { %v13806_v9 = vadd.f32 %v2726_v39, %v13275_v52  ;;  %4130 = vmatmul.mubr.f32.gmra.mrb[8].mxu1 %v13498_v53  ;;  %v2728_v23 = vpop.f32.mrb[159].mxu1  ;;  %v13815_v38 = vadd.f32 %v10371_v63, %v13176_v61  ;;  %v2956_v28 = vpop.f32.mrb[145].mxu0  ;;  %v3486_v52 = vrot.slane %v13538_v33, 1  ;;  %11322 = vmatprep.subr.bf16.mxu0 %v13812_v62  ;;  %v3769_v33 = vsel %vm693_vm0, %v3767_v10, %v17499_v36 }
 0x27d   :  { %4134 = vmatprep.mubr.f32.mxu1 %v3482_v6  ;;  %v13821_v39 = vadd.f32 %v2956_v28, %v17498_v8  ;;  %v3770_v6 = vrot.slane %v13810_v14, 2  ;;  %v17500_v23 = vld [vmem:[#allocation32_spill] sm:$0xff] }
 0x27e   :  { %10561 = vmatmul.mubr.f32.gmra.mrb[250].mxu0 %v3761_v54  ;;  %v10374_v54 = vpop.f32.mrb[146].mxu0 }
 0x27f   :  { %v2731_v53 = vpop.f32.mrb[160].mxu1  ;;  %10563 = vmatprep.mubr.f32.mxu0 %v3764_v24  ;;  %v13832_v63 = vadd.f32 %v10374_v54, %v17500_v23  ;;  %v2966_v28 = vpop.f32.mrb[147].mxu0  ;;  %v3487_v24 = vsel %vm468_vm1, %v3484_v1, %v3486_v52  ;;  %v3771_v10 = vsel %vm693_vm0, %v17499_v36, %v3770_v6  ;;  %v17504_v52 = vld [vmem:[#allocation36_spill] sm:$0xff]  ;;  %v3490_v23 = vsel %vm468_vm1, %v3488_v17, %v3489_v25  ;;  %v17508_v36 = vld [vmem:[#allocation27_spill] sm:$0xff] }
 0x280   :  { %v13826_v61 = vadd.f32 %v2731_v53, %v13295_v30  ;;  %4135 = vmatmul.mubr.f32.gmra.mrb[10].mxu1 %v13500_v16  ;;  %v2733_v18 = vpop.f32.mrb[161].mxu1  ;;  %v17502_v53 = vld [vmem:[#allocation30_spill] sm:$0xff] }
 0x281   :  { %4139 = vmatprep.mubr.f32.mxu1 %v3485_v32  ;;  %17501 = vst [vmem:[#allocation15_spill] sm:$0xff] %v13832_v63  ;;  %v13838_v16 = vadd.f32 %v2966_v28, %v17502_v53  ;;  %v17503_v32 = vld [vmem:[#allocation34_spill] sm:$0xff]  ;;  %v3491_v28 = vrot.slane %v13558_v44, 1  ;;  %v17506_v53 = vld [vmem:[#allocation19_spill] sm:$0xff]  ;;  %v17511_v44 = vld [vmem:[#allocation56_spill] sm:$0xff] }
 0x282   :  { %10564 = vmatmul.mubr.f32.gmra.mrb[252].mxu0 %v3766_v56  ;;  %v10377_v1 = vpop.f32.mrb[148].mxu0  ;;  %v17517_v63 = vld [vmem:[#allocation23_spill] sm:$0xff] }
 0x283   :  { %v2736_v30 = vpop.f32.mrb[162].mxu1  ;;  %10566 = vmatprep.mubr.f32.mxu0 %v3769_v33  ;;  %v13847_v54 = vadd.f32 %v10377_v1, %v17504_v52  ;;  %v2976_v56 = vpop.f32.mrb[149].mxu0  ;;  %v3492_v17 = vsel %vm468_vm1, %v3489_v25, %v3491_v28  ;;  %v17512_v52 = vld [vmem:[#allocation55_spill] sm:$0xff] }
 0x284   :  { %v13843_v8 = vadd.f32 %v2736_v30, %v17503_v32  ;;  %4140 = vmatmul.mubr.f32.gmra.mrb[12].mxu1 %v13518_v41  ;;  %v2738_v18 = vpop.f32.mrb[163].mxu1  ;;  %v13852_v6 = vadd.f32 %v2976_v56, %v17506_v53  ;;  %v17509_v32 = vld [vmem:[#allocation40_spill] sm:$0xff]  ;;  %v17513_v53 = vld [vmem:[#allocation29_spill] sm:$0xff] }
 0x285   :  { %4144 = vmatprep.mubr.f32.mxu1 %v3487_v24  ;;  %17505 = vst [vmem:[#allocation20_spill] sm:$0xff] %v13847_v54  ;;  %v3494_v54 = vrot.slane %v17512_v52, 1 }
 0x286   :  { %10567 = vmatmul.mubr.f32.gmra.mrb[254].mxu0 %v3771_v10  ;;  %17507 = vst [vmem:[#allocation25_spill] sm:$0xff] %v13852_v6  ;;  %v10380_v24 = vpop.f32.mrb[150].mxu0  ;;  %v3493_v10 = vrot.slane %v17511_v44, 1 }
 0x287   :  { %v2741_v33 = vpop.f32.mrb[164].mxu1  ;;  %v13859_v18 = vadd.f32 %v10380_v24, %v17509_v32  ;;  %v2986_v1 = vpop.f32.mrb[151].mxu0  ;;  %v3496_v32 = vrot.slane %v13580_v60, 1  ;;  %v3498_v60 = vrot.slane %v13582_v3, 1 }
 0x288   :  { %v13855_v30 = vadd.f32 %v2741_v33, %v17508_v36  ;;  %4145 = vmatmul.mubr.f32.gmra.mrb[14].mxu1 %v13521_v0  ;;  %v2743_v41 = vpop.f32.mrb[165].mxu1  ;;  %v13865_v6 = vadd.f32 %v2986_v1, %v17513_v53  ;;  %v17514_v33 = vld [vmem:[#allocation54_spill] sm:$0xff]  ;;  %v3495_v28 = vsel %vm468_vm1, %v3493_v10, %v3494_v54 }
 0x289   :  { %4149 = vmatprep.mubr.f32.mxu1 %v3490_v23  ;;  %17510 = vst [vmem:[#allocation21_spill] sm:$0xff] %v13859_v18  ;;  %v17515_v41 = vld [vmem:[#allocation47_spill] sm:$0xff]  ;;  %v17519_v53 = vld [vmem:[#allocation38_spill] sm:$0xff]  ;;  %v3497_v10 = vsel %vm468_vm1, %v3494_v54, %v3496_v32 }
 0x28a   :  { %v10383_v23 = vpop.f32.mrb[152].mxu0 }
 0x28b   :  { %v2746_v56 = vpop.f32.mrb[166].mxu1  ;;  %v13872_v24 = vadd.f32 %v10383_v23, %v17515_v41  ;;  %v2996_v25 = vpop.f32.mrb[153].mxu0  ;;  %v3499_v41 = vrot.slane %v13584_v27, 1 }
 0x28c   :  { %v13868_v36 = vadd.f32 %v2746_v56, %v17514_v33  ;;  %4150 = vmatmul.mubr.f32.gmra.mrb[16].mxu1 %v13540_v42  ;;  %v2748_v0 = vpop.f32.mrb[167].mxu1  ;;  %v13877_v1 = vadd.f32 %v2996_v25, %v17517_v63  ;;  %v17522_v25 = vld [vmem:[#allocation33_spill] sm:$0xff] }
 0x28d   :  { %4154 = vmatprep.mubr.f32.mxu1 %v3492_v17  ;;  %17516 = vst [vmem:[#allocation17_spill] sm:$0xff] %v13872_v24  ;;  %v17520_v17 = vld [vmem:[#allocation31_spill] sm:$0xff]  ;;  %v3500_v32 = vsel %vm468_vm1, %v3498_v60, %v3499_v41 }
 0x28e   :  { %17518 = vst [vmem:[#allocation24_spill] sm:$0xff] %v13877_v1  ;;  %v10386_v33 = vpop.f32.mrb[154].mxu0  ;;  %v17527_v1 = vld [vmem:[#allocation35_spill] sm:$0xff] }
 0x28f   :  { %v2751_v18 = vpop.f32.mrb[168].mxu1  ;;  %v13884_v0 = vadd.f32 %v10386_v33, %v17520_v17  ;;  %v3006_v23 = vpop.f32.mrb[155].mxu0  ;;  %v3501_v17 = vrot.slane %v13600_v40, 1  ;;  %v3503_v40 = vrot.slane %v13602_v19, 1 }
 0x290   :  { %v13880_v56 = vadd.f32 %v2751_v18, %v17519_v53  ;;  %4155 = vmatmul.mubr.f32.gmra.mrb[18].mxu1 %v13542_v29  ;;  %v2753_v42 = vpop.f32.mrb[169].mxu1  ;;  %v13890_v24 = vadd.f32 %v3006_v23, %v17522_v25  ;;  %v17524_v18 = vld [vmem:[#allocation37_spill] sm:$0xff]  ;;  %v17529_v25 = vld [vmem:[#allocation42_spill] sm:$0xff] }
 0x291   :  { %4159 = vmatprep.mubr.f32.mxu1 %v3495_v28  ;;  %17521 = vst [vmem:[#allocation28_spill] sm:$0xff] %v13884_v0  ;;  %v17525_v42 = vld [vmem:[#allocation39_spill] sm:$0xff]  ;;  %v3502_v60 = vsel %vm468_vm1, %v3499_v41, %v3501_v17 }
 0x292   :  { %17523 = vst [vmem:[#allocation45_spill] sm:$0xff] %v13890_v24  ;;  %v10389_v28 = vpop.f32.mrb[156].mxu0  ;;  %v17537_v24 = vld [vmem:[#allocation44_spill] sm:$0xff] }
 0x293   :  { %v2756_v63 = vpop.f32.mrb[170].mxu1  ;;  %v13897_v33 = vadd.f32 %v10389_v28, %v17525_v42  ;;  %v3016_v54 = vpop.f32.mrb[157].mxu0  ;;  %v17532_v42 = vld [vmem:[#allocation65_spill] sm:$0xff] }
 0x294   :  { %v13893_v53 = vadd.f32 %v2756_v63, %v17524_v18  ;;  %4160 = vmatmul.mubr.f32.gmra.mrb[20].mxu1 %v17511_v44  ;;  %v2758_v29 = vpop.f32.mrb[171].mxu1  ;;  %v13902_v23 = vadd.f32 %v3016_v54, %v17527_v1  ;;  %v17533_v54 = vld [vmem:[#allocation43_spill] sm:$0xff] }
 0x295   :  { %4164 = vmatprep.mubr.f32.mxu1 %v3497_v10  ;;  %17526 = vst [vmem:[#allocation32_spill] sm:$0xff] %v13897_v33  ;;  %v17530_v10 = vld [vmem:[#allocation46_spill] sm:$0xff]  ;;  %v3504_v33 = vrot.slane %v17532_v42, 1 }
 0x296   :  { %17528 = vst [vmem:[#allocation30_spill] sm:$0xff] %v13902_v23  ;;  %v10392_v18 = vpop.f32.mrb[158].mxu0 }
 0x297   :  { %v2761_v0 = vpop.f32.mrb[172].mxu1  ;;  %v13909_v29 = vadd.f32 %v10392_v18, %v17530_v10  ;;  %v3026_v28 = vpop.f32.mrb[159].mxu0  ;;  %v3505_v17 = vsel %vm468_vm1, %v3503_v40, %v3504_v33  ;;  %v3506_v10 = vrot.slane %v13622_v46, 1  ;;  %v3508_v46 = vrot.slane %v13625_v49, 1 }
 0x298   :  { %v13905_v63 = vadd.f32 %v2761_v0, %v17529_v25  ;;  %4165 = vmatmul.mubr.f32.gmra.mrb[22].mxu1 %v17512_v52  ;;  %v2763_v44 = vpop.f32.mrb[173].mxu1  ;;  %v13915_v23 = vadd.f32 %v3026_v28, %v17533_v54  ;;  %v17534_v0 = vld [vmem:[#allocation41_spill] sm:$0xff]  ;;  %v17539_v54 = vld [vmem:[#allocation50_spill] sm:$0xff] }
 0x299   :  { %4169 = vmatprep.mubr.f32.mxu1 %v3500_v32  ;;  %17531 = vst [vmem:[#allocation34_spill] sm:$0xff] %v13909_v29  ;;  %v17535_v44 = vld [vmem:[#allocation49_spill] sm:$0xff]  ;;  %v3507_v40 = vsel %vm468_vm1, %v3504_v33, %v3506_v10 }
 0x29a   :  { %v10395_v32 = vpop.f32.mrb[160].mxu0 }
 0x29b   :  { %v2766_v1 = vpop.f32.mrb[174].mxu1  ;;  %v13922_v18 = vadd.f32 %v10395_v32, %v17535_v44  ;;  %v3036_v41 = vpop.f32.mrb[161].mxu0  ;;  %v3509_v44 = vrot.slane %v13627_v26, 1 }
 0x29c   :  { %v13918_v25 = vadd.f32 %v2766_v1, %v17534_v0  ;;  %4170 = vmatmul.mubr.f32.gmra.mrb[24].mxu1 %v13582_v3  ;;  %v2768_v52 = vpop.f32.mrb[175].mxu1  ;;  %v13927_v28 = vadd.f32 %v3036_v41, %v17537_v24  ;;  %v17542_v41 = vld [vmem:[#allocation48_spill] sm:$0xff] }
 0x29d   :  { %4174 = vmatprep.mubr.f32.mxu1 %v3502_v60  ;;  %17536 = vst [vmem:[#allocation36_spill] sm:$0xff] %v13922_v18  ;;  %v17540_v60 = vld [vmem:[#allocation52_spill] sm:$0xff]  ;;  %v3510_v10 = vsel %vm468_vm1, %v3508_v46, %v3509_v44 }
 0x29e   :  { %17538 = vst [vmem:[#allocation19_spill] sm:$0xff] %v13927_v28  ;;  %v10398_v0 = vpop.f32.mrb[162].mxu0  ;;  %v17547_v28 = vld [vmem:[#allocation51_spill] sm:$0xff] }
 0x29f   :  { %v2771_v29 = vpop.f32.mrb[176].mxu1  ;;  %v13934_v52 = vadd.f32 %v10398_v0, %v17540_v60  ;;  %v3046_v32 = vpop.f32.mrb[163].mxu0  ;;  %v3511_v60 = vrot.slane %v13645_v55, 1  ;;  %v3513_v55 = vrot.slane %v13647_v37, 1 }
 0x2a0   :  { %v13930_v1 = vadd.f32 %v2771_v29, %v17539_v54  ;;  %4175 = vmatmul.mubr.f32.gmra.mrb[26].mxu1 %v13584_v27  ;;  %v2773_v3 = vpop.f32.mrb[177].mxu1  ;;  %v13940_v18 = vadd.f32 %v3046_v32, %v17542_v41  ;;  %v17544_v29 = vld [vmem:[#allocation53_spill] sm:$0xff] }
 0x2a1   :  { %4179 = vmatprep.mubr.f32.mxu1 %v3505_v17  ;;  %17541 = vst [vmem:[#allocation27_spill] sm:$0xff] %v13934_v52  ;;  %v17545_v3 = vld [vmem:[#allocation58_spill] sm:$0xff]  ;;  %v17549_v41 = vld [vmem:[#allocation57_spill] sm:$0xff]  ;;  %v3512_v46 = vsel %vm468_vm1, %v3509_v44, %v3511_v60 }
 0x2a2   :  { %17543 = vst [vmem:[#allocation40_spill] sm:$0xff] %v13940_v18  ;;  %v10401_v17 = vpop.f32.mrb[164].mxu0  ;;  %v17556_v18 = vld [vmem:[#allocation18_spill] sm:$0xff] }
 0x2a3   :  { %v2776_v24 = vpop.f32.mrb[178].mxu1  ;;  %v13947_v0 = vadd.f32 %v10401_v17, %v17545_v3  ;;  %v3056_v33 = vpop.f32.mrb[165].mxu0  ;;  %v17552_v3 = vld [vmem:[#allocation68_spill] sm:$0xff] }
 0x2a4   :  { %v13943_v54 = vadd.f32 %v2776_v24, %v17544_v29  ;;  %4180 = vmatmul.mubr.f32.gmra.mrb[28].mxu1 %v13602_v19  ;;  %v2778_v27 = vpop.f32.mrb[179].mxu1  ;;  %v13952_v32 = vadd.f32 %v3056_v33, %v17547_v28  ;;  %v17553_v33 = vld [vmem:[#allocation61_spill] sm:$0xff] }
 0x2a5   :  { %4184 = vmatprep.mubr.f32.mxu1 %v3507_v40  ;;  %17546 = vst [vmem:[#allocation56_spill] sm:$0xff] %v13947_v0  ;;  %v17550_v40 = vld [vmem:[#allocation66_spill] sm:$0xff]  ;;  %v3514_v0 = vrot.slane %v17552_v3, 1 }
 0x2a6   :  { %17548 = vst [vmem:[#allocation55_spill] sm:$0xff] %v13952_v32  ;;  %v10404_v29 = vpop.f32.mrb[166].mxu0 }
 0x2a7   :  { %v2781_v52 = vpop.f32.mrb[180].mxu1  ;;  %v13959_v27 = vadd.f32 %v10404_v29, %v17550_v40  ;;  %v3066_v17 = vpop.f32.mrb[167].mxu0  ;;  %v3515_v60 = vsel %vm468_vm1, %v3513_v55, %v3514_v0  ;;  %v3516_v40 = vrot.slane %v13670_v22, 1  ;;  %v3518_v22 = vrot.slane %v13672_v48, 1 }
 0x2a8   :  { %v13955_v24 = vadd.f32 %v2781_v52, %v17549_v41  ;;  %4185 = vmatmul.mubr.f32.gmra.mrb[30].mxu1 %v17532_v42  ;;  %v2783_v19 = vpop.f32.mrb[181].mxu1  ;;  %v13965_v32 = vadd.f32 %v3066_v17, %v17553_v33  ;;  %v17554_v52 = vld [vmem:[#allocation60_spill] sm:$0xff]  ;;  %v17557_v33 = vld [vmem:[#allocation63_spill] sm:$0xff] }
 0x2a9   :  { %4189 = vmatprep.mubr.f32.mxu1 %v3510_v10  ;;  %17551 = vst [vmem:[#allocation29_spill] sm:$0xff] %v13959_v27  ;;  %v17555_v19 = vld [vmem:[#allocation73_spill] sm:$0xff]  ;;  %v3517_v55 = vsel %vm468_vm1, %v3514_v0, %v3516_v40 }
 0x2aa   :  { %v10407_v10 = vpop.f32.mrb[168].mxu0 }
 0x2ab   :  { %v2786_v28 = vpop.f32.mrb[182].mxu1  ;;  %v13972_v29 = vadd.f32 %v10407_v10, %v17555_v19  ;;  %v3076_v44 = vpop.f32.mrb[169].mxu0  ;;  %v3519_v10 = vrot.slane %v13675_v35, 1  ;;  %v17558_v19 = vld [vmem:[#allocation74_spill] sm:$0xff] }
 0x2ac   :  { %v13968_v41 = vadd.f32 %v2786_v28, %v17554_v52  ;;  %4190 = vmatmul.mubr.f32.gmra.mrb[32].mxu1 %v13625_v49  ;;  %v2788_v42 = vpop.f32.mrb[183].mxu1  ;;  %v13977_v17 = vadd.f32 %v3076_v44, %v17556_v18 }
 0x2ad   :  { %4194 = vmatprep.mubr.f32.mxu1 %v3512_v46  ;;  %v3520_v40 = vsel %vm468_vm1, %v3518_v22, %v3519_v10 }
 0x2ae   :  { %v10410_v52 = vpop.f32.mrb[170].mxu0 }
 0x2af   :  { %v2791_v27 = vpop.f32.mrb[184].mxu1  ;;  %v13984_v46 = vadd.f32 %v10410_v52, %v13711_v11  ;;  %v3086_v42 = vpop.f32.mrb[171].mxu0 }
 0x2b0   :  { %v13980_v28 = vadd.f32 %v2791_v27, %v17557_v33  ;;  %4195 = vmatmul.mubr.f32.gmra.mrb[34].mxu1 %v13627_v26  ;;  %v2793_v49 = vpop.f32.mrb[185].mxu1  ;;  %v13990_v44 = vadd.f32 %v3086_v42, %v17558_v19  ;;  %v17559_v27 = vld [vmem:[#allocation59_spill] sm:$0xff]  ;;  %v17561_v19 = vld [vmem:[#allocation62_spill] sm:$0xff] }
 0x2b1   :  { %4199 = vmatprep.mubr.f32.mxu1 %v3515_v60  ;;  %v3521_v49 = vrot.slane %v13693_v59, 1 }
 0x2b2   :  { %v10413_v60 = vpop.f32.mrb[172].mxu0 }
 0x2b3   :  { %v2796_v18 = vpop.f32.mrb[186].mxu1  ;;  %v13997_v11 = vadd.f32 %v10413_v60, %v13760_v43  ;;  %v3096_v0 = vpop.f32.mrb[173].mxu0  ;;  %v3522_v22 = vsel %vm468_vm1, %v3519_v10, %v3521_v49  ;;  %v17563_v60 = vld [vmem:[#allocation76_spill] sm:$0xff] }
 0x2b4   :  { %v13993_v33 = vadd.f32 %v2796_v18, %v17559_v27  ;;  %4200 = vmatmul.mubr.f32.gmra.mrb[36].mxu1 %v13647_v37  ;;  %v2798_v26 = vpop.f32.mrb[187].mxu1  ;;  %v14002_v42 = vadd.f32 %v3096_v0, %v13737_v20 }
 0x2b5   :  { %4204 = vmatprep.mubr.f32.mxu1 %v3517_v55  ;;  %17560 = vst [vmem:[#allocation54_spill] sm:$0xff] %v13997_v11  ;;  %v17562_v26 = vld [vmem:[#allocation77_spill] sm:$0xff]  ;;  %v3524_v11 = vrot.slane %v17563_v60, 1 }
 0x2b6   :  { %v10416_v27 = vpop.f32.mrb[174].mxu0  ;;  %v3523_v59 = vrot.slane %v17562_v26, 1 }
 0x2b7   :  { %v2801_v52 = vpop.f32.mrb[188].mxu1  ;;  %v14009_v43 = vadd.f32 %v10416_v27, %v13806_v9  ;;  %v3106_v55 = vpop.f32.mrb[175].mxu0 }
 0x2b8   :  { %v14005_v18 = vadd.f32 %v2801_v52, %v17561_v19  ;;  %4205 = vmatmul.mubr.f32.gmra.mrb[38].mxu1 %v17552_v3  ;;  %v2803_v37 = vpop.f32.mrb[189].mxu1  ;;  %v14015_v0 = vadd.f32 %v3106_v55, %v13785_v15  ;;  %v17564_v52 = vld [vmem:[#allocation64_spill] sm:$0xff]  ;;  %v3525_v49 = vsel %vm468_vm1, %v3523_v59, %v3524_v11  ;;  %v3528_v59 = vrot.slane %v13719_v58, 1 }
 0x2b9   :  { %4209 = vmatprep.mubr.f32.mxu1 %v3520_v40  ;;  %v3526_v37 = vrot.slane %v13717_v13, 1  ;;  %v3529_v13 = vrot.slane %v13722_v7, 1 }
 0x2ba   :  { %v10419_v40 = vpop.f32.mrb[176].mxu0 }
 0x2bb   :  { %v2806_v20 = vpop.f32.mrb[190].mxu1  ;;  %v14022_v9 = vadd.f32 %v10419_v40, %v13843_v8  ;;  %v3116_v10 = vpop.f32.mrb[177].mxu0 }
 0x2bc   :  { %v14018_v19 = vadd.f32 %v2806_v20, %v17564_v52  ;;  %4210 = vmatmul.mubr.f32.gmra.mrb[40].mxu1 %v13672_v48  ;;  %v2808_v3 = vpop.f32.mrb[191].mxu1  ;;  %v14027_v27 = vadd.f32 %v3116_v10, %v13826_v61  ;;  %v3527_v20 = vsel %vm468_vm1, %v3524_v11, %v3526_v37  ;;  %v3530_v11 = vsel %vm468_vm1, %v3528_v59, %v3529_v13 }
 0x2bd   :  { %4214 = vmatprep.mubr.f32.mxu1 %v3522_v22  ;;  %v3531_v10 = vrot.slane %v13734_v50, 1  ;;  %v3534_v50 = vrot.slane %v13746_v4, 1 }
 0x2be   :  { %v10422_v48 = vpop.f32.mrb[178].mxu0 }
 0x2bf   :  { %v14029_v15 = vpop.f32.mrb[192].mxu1  ;;  %v14033_v22 = vadd.f32 %v10422_v48, %v13868_v36  ;;  %v3126_v8 = vpop.f32.mrb[179].mxu0  ;;  %v3532_v48 = vsel %vm468_vm1, %v3529_v13, %v3531_v10  ;;  %v3536_v13 = vrot.slane %v13765_v31, 1  ;;  %v3539_v31 = vrot.slane %v13769_v47, 1 }
 0x2c0   :  { %4215 = vmatmul.mubr.f32.gmra.mrb[42].mxu1 %v13675_v35  ;;  %v3953_v55 = vpop.f32.mrb[193].mxu1  ;;  %v14039_v61 = vadd.f32 %v3126_v8, %v13855_v30  ;;  %v3533_v8 = vrot.slane %v13743_v34, 1 }
 0x2c1   :  { %4219 = vmatprep.mubr.f32.mxu1 %v3525_v49  ;;  %17565 = vst [vmem:[#allocation47_spill] sm:$0xff] %v14033_v22 }
 0x2c2   :  { %v10425_v3 = vpop.f32.mrb[180].mxu0 }
 0x2c3   :  { %v14041_v52 = vpop.f32.mrb[194].mxu1  ;;  %v14045_v36 = vadd.f32 %v10425_v3, %v13893_v53  ;;  %v3136_v40 = vpop.f32.mrb[181].mxu0  ;;  %v3535_v3 = vsel %vm468_vm1, %v3533_v8, %v3534_v50 }
 0x2c4   :  { %4220 = vmatmul.mubr.f32.gmra.mrb[44].mxu1 %v17562_v26  ;;  %v3958_v35 = vpop.f32.mrb[195].mxu1  ;;  %v14050_v49 = vadd.f32 %v3136_v40, %v13880_v56 }
 0x2c5   :  { %4224 = vmatprep.mubr.f32.mxu1 %v3527_v20  ;;  %17566 = vst [vmem:[#allocation23_spill] sm:$0xff] %v14045_v36 }
 0x2c6   :  { %17567 = vst [vmem:[#allocation38_spill] sm:$0xff] %v14050_v49  ;;  %v10428_v26 = vpop.f32.mrb[182].mxu0 }
 0x2c7   :  { %v14052_v30 = vpop.f32.mrb[196].mxu1  ;;  %v14056_v55 = vadd.f32 %v10428_v26, %v13918_v25  ;;  %v3146_v53 = vpop.f32.mrb[183].mxu0  ;;  %v3538_v26 = vrot.slane %v13767_v21, 1 }
 0x2c8   :  { %4225 = vmatmul.mubr.f32.gmra.mrb[46].mxu1 %v17563_v60  ;;  %v3963_v37 = vpop.f32.mrb[197].mxu1  ;;  %v14062_v56 = vadd.f32 %v3146_v53, %v13905_v63 }
 0x2c9   :  { %4229 = vmatprep.mubr.f32.mxu1 %v3530_v11  ;;  %17568 = vst [vmem:[#allocation31_spill] sm:$0xff] %v14056_v55  ;;  %v3537_v37 = vsel %vm468_vm1, %v3534_v50, %v3536_v13  ;;  %v3541_v50 = vrot.slane %v13789_v51, 1  ;;  %v17600_v55 = vld [vmem:[#allocation32_spill] sm:$0xff] }
 0x2ca   :  { %17569 = vst [vmem:[#allocation33_spill] sm:$0xff] %v14062_v56  ;;  %v10431_v59 = vpop.f32.mrb[184].mxu0 }
 0x2cb   :  { %v3966_v20 = vpop.f32.mrb[198].mxu1  ;;  %v14066_v35 = vadd.f32 %v10431_v59, %v13943_v54  ;;  %v3156_v25 = vpop.f32.mrb[185].mxu0  ;;  %v3542_v13 = vsel %vm468_vm1, %v3539_v31, %v3541_v50 }
 0x2cc   :  { %4230 = vmatmul.mubr.f32.gmra.mrb[48].mxu1 %v13719_v58  ;;  %v3968_v60 = vpop.f32.mrb[199].mxu1  ;;  %v14071_v40 = vadd.f32 %v3156_v25, %v13930_v1 }
 0x2cd   :  { %4234 = vmatprep.mubr.f32.mxu1 %v3532_v48  ;;  %17570 = vst [vmem:[#allocation37_spill] sm:$0xff] %v14066_v35  ;;  %v3540_v60 = vsel %vm468_vm1, %v3538_v26, %v3539_v31  ;;  %v3546_v31 = vrot.slane %v13810_v14, 1 }
 0x2ce   :  { %17571 = vst [vmem:[#allocation39_spill] sm:$0xff] %v14071_v40  ;;  %v10434_v58 = vpop.f32.mrb[186].mxu0 }
 0x2cf   :  { %v14073_v11 = vpop.f32.mrb[200].mxu1  ;;  %v14077_v10 = vadd.f32 %v10434_v58, %v13968_v41  ;;  %v3166_v54 = vpop.f32.mrb[187].mxu0  ;;  %v11488_v58 = vld [vmem:[#allocation2 + $0x8] sm:$0xff] }
 0x2d0   :  { %4235 = vmatmul.mubr.f32.gmra.mrb[50].mxu1 %v13722_v7  ;;  %v3973_v63 = vpop.f32.mrb[201].mxu1  ;;  %v14083_v1 = vadd.f32 %v3166_v54, %v13955_v24  ;;  %v3544_v51 = vrot.slane %v11488_v58, 1 }
 0x2d1   :  { %4239 = vmatprep.mubr.f32.mxu1 %v3535_v3  ;;  %17572 = vst [vmem:[#allocation35_spill] sm:$0xff] %v14077_v10  ;;  %v3543_v63 = vrot.slane %v13791_v5, 1  ;;  %v17594_v10 = vld [vmem:[#allocation21_spill] sm:$0xff] }
 0x2d2   :  { %17573 = vst [vmem:[#allocation42_spill] sm:$0xff] %v14083_v1  ;;  %v10437_v48 = vpop.f32.mrb[188].mxu0 }
 0x2d3   :  { %v3976_v53 = vpop.f32.mrb[202].mxu1  ;;  %v14087_v8 = vadd.f32 %v10437_v48, %v13993_v33  ;;  %v3176_v41 = vpop.f32.mrb[189].mxu0  ;;  %v14112_v48 = vld [vmem:[%s17188_s2] ss:$0 sm:$0xff] }
 0x2d4   :  { %4240 = vmatmul.mubr.f32.gmra.mrb[52].mxu1 %v13743_v34  ;;  %v3978_v7 = vpop.f32.mrb[203].mxu1  ;;  %v14092_v59 = vadd.f32 %v3176_v41, %v13980_v28 }
 0x2d5   :  { %4244 = vmatprep.mubr.f32.mxu1 %v3537_v37  ;;  %17574 = vst [vmem:[#allocation46_spill] sm:$0xff] %v14087_v8  ;;  %v3545_v7 = vsel %vm468_vm1, %v3543_v63, %v3544_v51  ;;  %v3547_v63 = vsel %vm468_vm1, %v3544_v51, %v3546_v31 }
 0x2d6   :  { %17575 = vst [vmem:[#allocation65_spill] sm:$0xff] %v14092_v59  ;;  %v10440_v34 = vpop.f32.mrb[190].mxu0  ;;  %v17590_v59 = vld [vmem:[#allocation15_spill] sm:$0xff] }
 0x2d7   :  { %v14094_v25 = vpop.f32.mrb[204].mxu1  ;;  %v14098_v3 = vadd.f32 %v10440_v34, %v14018_v19  ;;  %v3186_v33 = vpop.f32.mrb[191].mxu0 }
 0x2d8   :  { %4245 = vmatmul.mubr.f32.gmra.mrb[54].mxu1 %v13746_v4  ;;  %v3983_v24 = vpop.f32.mrb[205].mxu1  ;;  %v14103_v28 = vadd.f32 %v3186_v33, %v14005_v18 }
 0x2d9   :  { %4249 = vmatprep.mubr.f32.mxu1 %v3540_v60  ;;  %17576 = vst [vmem:[#allocation43_spill] sm:$0xff] %v14098_v3 }
 0x2da   :  { %17577 = vst [vmem:[#allocation41_spill] sm:$0xff] %v14103_v28  ;;  %v10475_v37 = vpop.f32.mrb[192].mxu0 }
 0x2db   :  { %v3986_v54 = vpop.f32.mrb[206].mxu1  ;;  %v4342_v26 = vadd.f32 %v10475_v37, %v14041_v52  ;;  %v4336_v19 = vpop.f32.mrb[193].mxu0  ;;  %v17579_v52 = vld [vmem:[#allocation69_spill] sm:$0xff] }
 0x2dc   :  { %4250 = vmatmul.mubr.f32.gmra.mrb[56].mxu1 %v13767_v21  ;;  %v3988_v4 = vpop.f32.mrb[207].mxu1  ;;  %v4337_v18 = vadd.f32 %v4336_v19, %v14029_v15  ;;  %v17578_v21 = vld [vmem:[#allocation67_spill] sm:$0xff] }
 0x2dd   :  { %4254 = vmatprep.mubr.f32.mxu1 %v3542_v13  ;;  %v4656_v60 = vadd.f32 %v4342_v26, %v17578_v21  ;;  %v17580_v26 = vld [vmem:[#allocation71_spill] sm:$0xff] }
 0x2de   :  { %v4655_v24 = vadd.f32 %v4337_v18, %v17579_v52  ;;  %v10478_v34 = vpop.f32.mrb[194].mxu0 }
 0x2df   :  { %v14115_v41 = vpop.f32.mrb[208].mxu1  ;;  %v4727_v14 = vadd.f32 %v14112_v48, %v4656_v60  ;;  %v4352_v33 = vadd.f32 %v10478_v34, %v3966_v20  ;;  %v4346_v13 = vpop.f32.mrb[195].mxu0 }
 0x2e0   :  { %4255 = vmatmul.mubr.f32.gmra.mrb[58].mxu1 %v13769_v47  ;;  %v3993_v50 = vpop.f32.mrb[209].mxu1  ;;  %v4726_v4 = vadd.f32 %v14112_v48, %v4655_v24  ;;  %v4347_v15 = vadd.f32 %v4346_v13, %v14052_v30 }
 0x2e1   :  { %4259 = vmatprep.mubr.f32.mxu1 %v3545_v7  ;;  %v4791_v19 = vmax.f32 %v4727_v14, 0.0  ;;  %v4658_v21 = vadd.f32 %v4352_v33, %v17580_v26  ;;  %v17581_v50 = vld [vmem:[#allocation70_spill] sm:$0xff]  ;;  %v5593_v26 = vld [vmem:[#allocation8 + $0x118] sm:$0xff] }
 0x2e2   :  { %v4790_v18 = vmax.f32 %v4726_v4, 0.0  ;;  %v4657_v7 = vadd.f32 %v4347_v15, %v17581_v50  ;;  %v10481_v52 = vpop.f32.mrb[196].mxu0  ;;  %v17583_v4 = vld [vmem:[#allocation75_spill] sm:$0xff] }
 0x2e3   :  { %v3996_v37 = vpop.f32.mrb[210].mxu1  ;;  %4855 = vst [vmem:[#allocation2 + $0x21] sm:$0xff] %v4791_v19  ;;  %v4729_v20 = vadd.f32 %v14112_v48, %v4658_v21  ;;  %v4362_v51 = vadd.f32 %v10481_v52, %v3976_v53  ;;  %v4356_v31 = vpop.f32.mrb[197].mxu0  ;;  %v5592_v19 = vld [vmem:[#allocation8 + $0x110] sm:$0xff]  ;;  %v5594_v53 = vld [vmem:[#allocation8 + $0x120] sm:$0xff] }
 0x2e4   :  { %4260 = vmatmul.mubr.f32.gmra.mrb[60].mxu1 %v13791_v5  ;;  %v3998_v47 = vpop.f32.mrb[211].mxu1  ;;  %4854 = vst [vmem:[#allocation2 + $0x19] sm:$0xff] %v4790_v18  ;;  %v4728_v30 = vadd.f32 %v14112_v48, %v4657_v7  ;;  %v4357_v60 = vadd.f32 %v4356_v31, %v14073_v11  ;;  %v17582_v5 = vld [vmem:[#allocation72_spill] sm:$0xff]  ;;  %v5595_v11 = vld [vmem:[#allocation8 + $0x128] sm:$0xff]  ;;  %v5596_v50 = vld [vmem:[#allocation8 + $0x130] sm:$0xff] }
 0x2e5   :  { %4264 = vmatprep.mubr.f32.mxu1 %v3547_v63  ;;  %v4793_v34 = vmax.f32 %v4729_v20, 0.0  ;;  %v4660_v14 = vadd.f32 %v4362_v51, %v17582_v5  ;;  %v5597_v7 = vld [vmem:[#allocation8 + $0x138] sm:$0xff]  ;;  %v17584_v31 = vld [vmem:[#allocation22_spill] sm:$0xff]  ;;  %v14138_v5 = vpack.c.bf16 %v5593_v26, %v5592_v19 }
 0x2e6   :  { %v4792_v13 = vmax.f32 %v4728_v30, 0.0  ;;  %v4659_v63 = vadd.f32 %v4357_v60, %v17583_v4  ;;  %v10484_v15 = vpop.f32.mrb[198].mxu0  ;;  %v14143_v3 = vpack.c.bf16 %v5597_v7, %v5596_v50 }
 0x2e7   :  { %v14130_v24 = vpop.f32.mrb[212].mxu1  ;;  %4857 = vst [vmem:[#allocation2 + $0x39] sm:$0xff] %v4793_v34  ;;  %v4731_v21 = vadd.f32 %v14112_v48, %v4660_v14  ;;  %v4372_v47 = vadd.f32 %v10484_v15, %v3986_v54  ;;  %v4366_v18 = vpop.f32.mrb[199].mxu0  ;;  %v14141_v15 = vpack.c.bf16 %v5595_v11, %v5594_v53 }
 0x2e8   :  { %4265 = vmatmul.mubr.f32.gmra.mrb[62].mxu1 %v11488_v58  ;;  %v4003_v33 = vpop.f32.mrb[213].mxu1  ;;  %4856 = vst [vmem:[#allocation2 + $0x31] sm:$0xff] %v4792_v13  ;;  %v4730_v52 = vadd.f32 %v14112_v48, %v4659_v63  ;;  %v4367_v58 = vadd.f32 %v4366_v18, %v14094_v25 }
 0x2e9   :  { %v4795_v51 = vmax.f32 %v4731_v21, 0.0  ;;  %v4662_v30 = vadd.f32 %v4372_v47, %v17584_v31  ;;  %v17585_v33 = vld [vmem:[#allocation78_spill] sm:$0xff] }
 0x2ea   :  { %v4794_v34 = vmax.f32 %v4730_v52, 0.0  ;;  %v4661_v14 = vadd.f32 %v4367_v58, %v17585_v33  ;;  %v10487_v54 = vpop.f32.mrb[200].mxu0  ;;  %v5608_v4 = vld [vmem:[#allocation2 + $0x28] sm:$0x3] }
 0x2eb   :  { %v4006_v20 = vpop.f32.mrb[214].mxu1  ;;  %4859 = vst [vmem:[#allocation2 + $0x51] sm:$0xff] %v4795_v51  ;;  %v4733_v13 = vadd.f32 %v14112_v48, %v4662_v30  ;;  %v4382_v25 = vadd.f32 %v10487_v54, %v3996_v37  ;;  %v4376_v63 = vpop.f32.mrb[201].mxu0  ;;  %v5606_v21 = vld [vmem:[#allocation2 + $0x18] sm:$0xff]  ;;  %v14146_v18 = vld [vmem:[#allocation2 + $0x20] sm:$0xff]  ;;  %v6025_v47 = vrot.slane %v5608_v4, 2 }
 0x2ec   :  { %v4008_v60 = vpop.f32.mrb[215].mxu1  ;;  %v5801_v19 = vrot.slane %v5608_v4, 1  ;;  %4858 = vst [vmem:[#allocation2 + $0x49] sm:$0xff] %v4794_v34  ;;  %v4732_v26 = vadd.f32 %v14112_v48, %v4661_v14  ;;  %v4377_v52 = vadd.f32 %v4376_v63, %v14115_v41  ;;  %v5798_v58 = vrot.slane %v5606_v21, 1 }
 0x2ed   :  { %v5799_v53 = vrot.slane %v14146_v18, 1  ;;  %v4797_v50 = vmax.f32 %v4733_v13, 0.0  ;;  %v4664_v7 = vadd.f32 %v4382_v25, %v13725_v45  ;;  %v6022_v51 = vrot.slane %v5606_v21, 2  ;;  %v17586_v60 = vld [vmem:[#allocation13_spill] sm:$0xff] }
 0x2ee   :  { %v6023_v37 = vrot.slane %v14146_v18, 2  ;;  %v4796_v30 = vmax.f32 %v4732_v26, 0.0  ;;  %v4663_v33 = vadd.f32 %v4377_v52, %v17586_v60  ;;  %v10490_v54 = vpop.f32.mrb[202].mxu0  ;;  %v14156_v41 = vld [vmem:[#allocation2 + $0x40] sm:$0x3]  ;;  %v17587_v60 = vld [vmem:[#allocation14_spill] sm:$0xff] }
 0x2ef   :  { %v4011_v11 = vpop.f32.mrb[216].mxu1  ;;  %v5800_v34 = vsel %vm468_vm1, %v5798_v58, %v5799_v53  ;;  %v5802_v14 = vsel %vm468_vm1, %v5799_v53, %v5801_v19  ;;  %4861 = vst [vmem:[#allocation2 + $0x69] sm:$0xff] %v4797_v50  ;;  %v4735_v4 = vadd.f32 %v14112_v48, %v4664_v7  ;;  %v4392_v13 = vadd.f32 %v10490_v54, %v4006_v20  ;;  %v4386_v63 = vpop.f32.mrb[203].mxu0  ;;  %v14161_v26 = vld [vmem:[#allocation2 + $0x30] sm:$0xff]  ;;  %v14163_v52 = vld [vmem:[#allocation2 + $0x38] sm:$0xff] }
 0x2f0   :  { %v4013_v31 = vpop.f32.mrb[217].mxu1  ;;  %6359 = vmatprep.mubr.f32.mxu0 %v5800_v34  ;;  %v6024_v45 = vsel %vm693_vm0, %v6022_v51, %v6023_v37  ;;  %v6026_v25 = vsel %vm693_vm0, %v6023_v37, %v6025_v47  ;;  %4860 = vst [vmem:[#allocation2 + $0x61] sm:$0xff] %v4796_v30  ;;  %v4734_v58 = vadd.f32 %v14112_v48, %v4663_v33  ;;  %v6027_v20 = vrot.slane %v14161_v26, 2 }
 0x2f1   :  { %v4387_v19 = vadd.f32 %v4386_v63, %v14130_v24  ;;  %10601 = vmatprep.mubr.f32.mxu1 %v6024_v45  ;;  %6360 = vmatmul.mubr.f32.vlgmr.msra.gmra.mrb[0].mxu0 %v5606_v21  ;;  %v6028_v50 = vrot.slane %v14163_v52, 2  ;;  %v4799_v7 = vmax.f32 %v4735_v4, 0.0  ;;  %v4666_v51 = vadd.f32 %v4392_v13, %v13749_v57 }
 0x2f2   :  { %10602 = vmatmul.mubr.f32.vlgmr.msra.gmra.mrb[64].mxu1 %v6026_v25  ;;  %6364 = vmatprep.mubr.f32.mxu0 %v5802_v14  ;;  %v6030_v37 = vrot.slane %v14156_v41, 2  ;;  %v5803_v31 = vrot.slane %v14161_v26, 1  ;;  %v4798_v30 = vmax.f32 %v4734_v58, 0.0  ;;  %v10493_v21 = vpop.f32.mrb[204].mxu0  ;;  %v5804_v54 = vrot.slane %v14163_v52, 1 }
 0x2f3   :  { %v4016_v53 = vpop.f32.mrb[218].mxu1  ;;  %v4665_v24 = vadd.f32 %v4387_v19, %v17587_v60  ;;  %11324 = vmatpush3.bf16.msra.mxu0 %v13812_v62  ;;  %v6029_v33 = vsel %vm693_vm0, %v6027_v20, %v6028_v50  ;;  %v14176_v34 = vld [vmem:[#allocation2 + $0x58] sm:$0x3]  ;;  %4863 = vst [vmem:[#allocation2 + $0x81] sm:$0xff] %v4799_v7  ;;  %v4737_v57 = vadd.f32 %v14112_v48, %v4666_v51  ;;  %v4396_v4 = vpop.f32.mrb[205].mxu0  ;;  %v14180_v63 = vld [vmem:[#allocation2 + $0x48] sm:$0xff] }
 0x2f4   :  { %v4018_v47 = vpop.f32.mrb[219].mxu1  ;;  %v4402_v14 = vadd.f32 %v10493_v21, %v4016_v53  ;;  %10604 = vmatprep.mubr.f32.mxu1 %v6029_v33  ;;  %v6031_v13 = vsel %vm693_vm0, %v6028_v50, %v6030_v37  ;;  %v14182_v45 = vld [vmem:[#allocation2 + $0x50] sm:$0xff]  ;;  %v6035_v62 = vrot.slane %v14176_v34, 2  ;;  %11326 = vmatprep.subr.bf16.mxu0 %v14138_v5  ;;  %4862 = vst [vmem:[#allocation2 + $0x79] sm:$0xff] %v4798_v30  ;;  %v6032_v20 = vrot.slane %v14180_v63, 2  ;;  %v17588_v60 = vld [vmem:[#allocation26_spill] sm:$0xff] }
 0x2f5   :  { %v4736_v25 = vadd.f32 %v14112_v48, %v4665_v24  ;;  %v4397_v58 = vadd.f32 %v4396_v4, %v4011_v11  ;;  %6365 = vmatmul.mubr.f32.gmra.mrb[2].mxu0 %v14146_v18  ;;  %v5805_v53 = vsel %vm468_vm1, %v5803_v31, %v5804_v54  ;;  %v4801_v50 = vmax.f32 %v4737_v57, 0.0 }
 0x2f6   :  { %v4668_v7 = vadd.f32 %v4402_v14, %v13773_v12  ;;  %10605 = vmatmul.mubr.f32.gmra.mrb[66].mxu1 %v6031_v13  ;;  %6369 = vmatprep.mubr.f32.mxu0 %v5805_v53  ;;  %v6033_v47 = vrot.slane %v14182_v45, 2  ;;  %v5806_v37 = vrot.slane %v14156_v41, 1  ;;  %v10496_v24 = vpop.f32.mrb[206].mxu0  ;;  %v14194_v18 = vld [vmem:[#allocation2 + $0x70] sm:$0x3]  ;;  %v5808_v31 = vrot.slane %v14180_v63, 1 }
 0x2f7   :  { %v4021_v19 = vpop.f32.mrb[220].mxu1  ;;  %v4800_v30 = vmax.f32 %v4736_v25, 0.0  ;;  %v4667_v11 = vadd.f32 %v4397_v58, %v17588_v60  ;;  %v5809_v21 = vrot.slane %v14182_v45, 1  ;;  %11328 = vmatpush3.bf16.msra.mxu0 %v14138_v5  ;;  %4865 = vst [vmem:[#allocation2 + $0x99] sm:$0xff] %v4801_v50  ;;  %v4406_v33 = vpop.f32.mrb[207].mxu0  ;;  %v14203_v4 = vld [vmem:[#allocation2 + $0x60] sm:$0xff] }
 0x2f8   :  { %v4023_v51 = vpop.f32.mrb[221].mxu1  ;;  %v4739_v12 = vadd.f32 %v14112_v48, %v4668_v7  ;;  %v6034_v57 = vsel %vm693_vm0, %v6032_v20, %v6033_v47  ;;  %v6036_v41 = vsel %vm693_vm0, %v6033_v47, %v6035_v62  ;;  %v5807_v14 = vsel %vm468_vm1, %v5804_v54, %v5806_v37  ;;  %v14205_v13 = vld [vmem:[#allocation2 + $0x68] sm:$0xff]  ;;  %11330 = vmatprep.subr.bf16.mxu0 %v14141_v15 }
 0x2f9   :  { %4864 = vst [vmem:[#allocation2 + $0x91] sm:$0xff] %v4800_v30  ;;  %v4738_v25 = vadd.f32 %v14112_v48, %v4667_v11  ;;  %v4407_v58 = vadd.f32 %v4406_v33, %v4021_v19  ;;  %10607 = vmatprep.mubr.f32.mxu1 %v6034_v57  ;;  %6370 = vmatmul.mubr.f32.gmra.mrb[4].mxu0 %v14161_v26  ;;  %v6037_v53 = vrot.slane %v14203_v4, 2  ;;  %v6038_v62 = vrot.slane %v14205_v13, 2  ;;  %v17589_v26 = vld [vmem:[#allocation16_spill] sm:$0xff] }
 0x2fa   :  { %v4803_v20 = vmax.f32 %v4739_v12, 0.0  ;;  %10608 = vmatmul.mubr.f32.gmra.mrb[68].mxu1 %v6036_v41  ;;  %6374 = vmatprep.mubr.f32.mxu0 %v5807_v14  ;;  %v6040_v7 = vrot.slane %v14194_v18, 2  ;;  %v10499_v37 = vpop.f32.mrb[208].mxu0  ;;  %v14215_v30 = vld [vmem:[#allocation2 + $0x88] sm:$0x3]  ;;  %v5810_v12 = vsel %vm468_vm1, %v5808_v31, %v5809_v21  ;;  %v5811_v31 = vrot.slane %v14176_v34, 1 }
 0x2fb   :  { %v4026_v5 = vpop.f32.mrb[222].mxu1  ;;  %v4802_v51 = vmax.f32 %v4738_v25, 0.0  ;;  %v4669_v47 = vadd.f32 %v4407_v58, %v13800_v2  ;;  %v6039_v19 = vsel %vm693_vm0, %v6037_v53, %v6038_v62  ;;  %11332 = vmatpush3.bf16.msra.mxu0 %v14141_v15  ;;  %v4416_v11 = vpop.f32.mrb[209].mxu0  ;;  %v14223_v33 = vld [vmem:[#allocation2 + $0x78] sm:$0xff]  ;;  %v14225_v2 = vld [vmem:[#allocation2 + $0x80] sm:$0xff]  ;;  %v6045_v57 = vrot.slane %v14215_v30, 2 }
 0x2fc   :  { %v4412_v54 = vadd.f32 %v10496_v24, %v4026_v5  ;;  %v4028_v50 = vpop.f32.mrb[223].mxu1  ;;  %4867 = vst [vmem:[#allocation2 + $0xb1] sm:$0xff] %v4803_v20  ;;  %10610 = vmatprep.mubr.f32.mxu1 %v6039_v19  ;;  %v6041_v24 = vsel %vm693_vm0, %v6038_v62, %v6040_v7  ;;  %11334 = vmatprep.subr.bf16.mxu0 %v14143_v3  ;;  %v6042_v14 = vrot.slane %v14223_v33, 2  ;;  %v6043_v25 = vrot.slane %v14225_v2, 2 }
 0x2fd   :  { %4866 = vst [vmem:[#allocation2 + $0xa9] sm:$0xff] %v4802_v51  ;;  %v4740_v15 = vadd.f32 %v14112_v48, %v4669_v47  ;;  %6375 = vmatmul.mubr.f32.gmra.mrb[6].mxu0 %v14163_v52 }
 0x2fe   :  { %v4670_v60 = vadd.f32 %v4412_v54, %v17589_v26  ;;  %10611 = vmatmul.mubr.f32.gmra.mrb[70].mxu1 %v6041_v24  ;;  %6379 = vmatprep.mubr.f32.mxu0 %v5810_v12  ;;  %v6044_v20 = vsel %vm693_vm0, %v6042_v14, %v6043_v25  ;;  %v6046_v54 = vsel %vm693_vm0, %v6043_v25, %v6045_v57  ;;  %v14237_v50 = vpop.f32.mrb[210].mxu0  ;;  %v14239_v52 = vld [vmem:[#allocation2 + $0xa0] sm:$0x3]  ;;  %v5814_v12 = vrot.slane %v14205_v13, 1 }
 0x2ff   :  { %v4031_v41 = vpop.f32.mrb[224].mxu1  ;;  %v4804_v62 = vmax.f32 %v4740_v15, 0.0  ;;  %11336 = vmatpush3.bf16.msra.mxu0 %v14143_v3  ;;  %10613 = vmatprep.mubr.f32.mxu1 %v6044_v20  ;;  %v4426_v51 = vpop.f32.mrb[211].mxu0  ;;  %v6050_v26 = vrot.slane %v14239_v52, 2  ;;  %v5812_v3 = vsel %vm468_vm1, %v5809_v21, %v5811_v31 }
 0x300   :  { %v4741_v5 = vadd.f32 %v14112_v48, %v4670_v60  ;;  %v4417_v58 = vadd.f32 %v4416_v11, %v4031_v41  ;;  %v4033_v53 = vpop.f32.mrb[225].mxu1  ;;  %v14243_v47 = vld [vmem:[#allocation2 + $0x90] sm:$0xff]  ;;  %v14245_v19 = vld [vmem:[#allocation2 + $0x98] sm:$0xff]  ;;  %v5813_v60 = vrot.slane %v14203_v4, 1 }
 0x301   :  { %4868 = vst [vmem:[#allocation2 + $0xc1] sm:$0xff] %v4804_v62  ;;  %6380 = vmatmul.mubr.f32.gmra.mrb[8].mxu0 %v14180_v63  ;;  %v6048_v24 = vrot.slane %v14245_v19, 2 }
 0x302   :  { %v4805_v7 = vmax.f32 %v4741_v5, 0.0  ;;  %v4671_v34 = vadd.f32 %v4417_v58, %v13821_v39  ;;  %v6047_v39 = vrot.slane %v14243_v47, 2  ;;  %10614 = vmatmul.mubr.f32.gmra.mrb[72].mxu1 %v6046_v54  ;;  %6384 = vmatprep.mubr.f32.mxu0 %v5812_v3  ;;  %v14261_v21 = vpop.f32.mrb[212].mxu0  ;;  %v5815_v54 = vsel %vm468_vm1, %v5813_v60, %v5814_v12 }
 0x303   :  { %v4036_v11 = vpop.f32.mrb[226].mxu1  ;;  %v6051_v63 = vsel %vm693_vm0, %v6048_v24, %v6050_v26  ;;  %v14259_v25 = vld [vmem:[#allocation2 + $0xb8] sm:$0x3]  ;;  %v14269_v62 = vpop.f32.mrb[213].mxu0  ;;  %v5558_v26 = vld [vmem:[#allocation8] sm:$0xff] }
 0x304   :  { %4869 = vst [vmem:[#allocation2 + $0xc9] sm:$0xff] %v4805_v7  ;;  %v4742_v57 = vadd.f32 %v14112_v48, %v4671_v34  ;;  %v4422_v15 = vadd.f32 %v10499_v37, %v4036_v11  ;;  %v4038_v41 = vpop.f32.mrb[227].mxu1  ;;  %v6049_v14 = vsel %vm693_vm0, %v6047_v39, %v6048_v24  ;;  %v14264_v58 = vld [vmem:[#allocation2 + $0xa8] sm:$0xff]  ;;  %v14266_v53 = vld [vmem:[#allocation2 + $0xb0] sm:$0xff]  ;;  %v6055_v37 = vrot.slane %v14259_v25, 2 }
 0x305   :  { %10616 = vmatprep.mubr.f32.mxu1 %v6049_v14  ;;  %6385 = vmatmul.mubr.f32.gmra.mrb[10].mxu0 %v14182_v45  ;;  %v6052_v7 = vrot.slane %v14264_v58, 2  ;;  %v6053_v34 = vrot.slane %v14266_v53, 2  ;;  %v5559_v11 = vld [vmem:[#allocation8 + $0x8] sm:$0xff]  ;;  %v5831_v1 = vrot.slane %v14259_v25, 1 }
 0x306   :  { %v4806_v31 = vmax.f32 %v4742_v57, 0.0  ;;  %v4672_v5 = vadd.f32 %v4422_v15, %v13815_v38  ;;  %v5816_v38 = vrot.slane %v14194_v18, 1  ;;  %10617 = vmatmul.mubr.f32.gmra.mrb[74].mxu1 %v6051_v63  ;;  %6389 = vmatprep.mubr.f32.mxu0 %v5815_v54  ;;  %v5598_v57 = vld [vmem:[#allocation8 + $0x140] sm:$0xff]  ;;  %v5599_v15 = vld [vmem:[#allocation8 + $0x148] sm:$0xff]  ;;  %v14279_v41 = vpop.f32.mrb[214].mxu0  ;;  %v11274_v63 = vpack.c.bf16 %v5559_v11, %v5558_v26 }
 0x307   :  { %v4041_v20 = vpop.f32.mrb[228].mxu1  ;;  %v6054_v45 = vsel %vm693_vm0, %v6052_v7, %v6053_v34  ;;  %v6056_v60 = vsel %vm693_vm0, %v6053_v34, %v6055_v37 }
 0x308   :  { %4870 = vst [vmem:[#allocation2 + $0xd9] sm:$0xff] %v4806_v31  ;;  %v4743_v3 = vadd.f32 %v14112_v48, %v4672_v5  ;;  %v4427_v39 = vadd.f32 %v4426_v51, %v4041_v20  ;;  %v4043_v24 = vpop.f32.mrb[229].mxu1  ;;  %10619 = vmatprep.mubr.f32.mxu1 %v6054_v45  ;;  %v14282_v28 = vld [vmem:[#allocation2 + $0xc0] sm:$0xff]  ;;  %v5818_v31 = vrot.slane %v14223_v33, 1  ;;  %v14285_v51 = vpop.f32.mrb[215].mxu0  ;;  %v5560_v5 = vld [vmem:[#allocation8 + $0x10] sm:$0xff]  ;;  %v5817_v37 = vsel %vm468_vm1, %v5814_v12, %v5816_v38 }
 0x309   :  { %v5561_v20 = vld [vmem:[#allocation8 + $0x18] sm:$0xff]  ;;  %6390 = vmatmul.mubr.f32.gmra.mrb[12].mxu0 %v14203_v4  ;;  %v6057_v34 = vrot.slane %v14282_v28, 2  ;;  %11275 = vmatpush1.bf16.msra.mxu1 %v11274_v63  ;;  %v5833_v25 = vrot.slane %v14282_v28, 1 }
 0x30a   :  { %v4807_v14 = vmax.f32 %v4743_v3, 0.0  ;;  %v4673_v18 = vadd.f32 %v4427_v39, %v13838_v16  ;;  %v5819_v3 = vrot.slane %v14225_v2, 1  ;;  %v11337_v39 = vpack.c.bf16 %v5599_v15, %v5598_v57  ;;  %10620 = vmatmul.mubr.f32.gmra.mrb[76].mxu1 %v6056_v60  ;;  %6394 = vmatprep.mubr.f32.mxu0 %v5817_v37 }
 0x30b   :  { %v4046_v54 = vpop.f32.mrb[230].mxu1  ;;  %v14289_v7 = vld [vmem:[#allocation2 + $0xc8] sm:$0xff]  ;;  %v14292_v16 = vld [vmem:[#allocation2 + $0xd0] sm:$0x3]  ;;  %v14299_v38 = vpop.f32.mrb[216].mxu0  ;;  %v11277_v45 = vpack.c.bf16 %v5561_v20, %v5560_v5  ;;  %v17591_v60 = vmov 0.0|0.0  }
 0x30c   :  { %4871 = vst [vmem:[#allocation2 + $0xe1] sm:$0xff] %v4807_v14  ;;  %v4744_v24 = vadd.f32 %v14112_v48, %v4673_v18  ;;  %v4432_v26 = vadd.f32 %v14237_v50, %v4046_v54  ;;  %v4048_v11 = vpop.f32.mrb[231].mxu1  ;;  %v6058_v4 = vrot.slane %v14289_v7, 2  ;;  %v6060_v12 = vrot.slane %v14292_v16, 2  ;;  %11338 = vmatprep.subr.bf16.mxu0 %v11337_v39  ;;  %v14304_v50 = vpop.f32.mrb[217].mxu0  ;;  %11276 = vmatprep.subr.bf16.mxu1 %v17591_v60  ;;  %v5562_v18 = vld [vmem:[#allocation8 + $0x20] sm:$0xff] }
 0x30d   :  { %11340 = vmatpush3.bf16.msra.mxu0 %v11337_v39  ;;  %v5563_v54 = vld [vmem:[#allocation8 + $0x28] sm:$0xff]  ;;  %v5820_v63 = vsel %vm468_vm1, %v5818_v31, %v5819_v3  ;;  %v5821_v5 = vrot.slane %v14215_v30, 1  ;;  %11278 = vmatpush1.bf16.msra.mxu1 %v11277_v45  ;;  %v5823_v31 = vrot.slane %v14243_v47, 1 }
 0x30e   :  { %v4808_v8 = vmax.f32 %v4744_v24, 0.0  ;;  %v4674_v57 = vadd.f32 %v4432_v26, %v17590_v59  ;;  %v6059_v15 = vsel %vm693_vm0, %v6057_v34, %v6058_v4  ;;  %v6061_v14 = vsel %vm693_vm0, %v6058_v4, %v6060_v12  ;;  %6395 = vmatmul.mubr.f32.gmra.mrb[14].mxu0 %v14205_v13  ;;  %v17592_v13 = vld [vmem:[#allocation25_spill] sm:$0xff]  ;;  %11279 = vmatprep.subr.bf16.mxu1 %v17591_v60 }
 0x30f   :  { %v4051_v37 = vpop.f32.mrb[232].mxu1  ;;  %10622 = vmatprep.mubr.f32.mxu1 %v6059_v15  ;;  %6399 = vmatprep.mubr.f32.mxu0 %v5820_v63  ;;  %v14312_v39 = vld [vmem:[#allocation2 + $0xd8] sm:$0xff]  ;;  %v14314_v24 = vpop.f32.mrb[218].mxu0  ;;  %v11280_v26 = vpack.c.bf16 %v5563_v54, %v5562_v18  ;;  %v5824_v15 = vrot.slane %v14245_v19, 1 }
 0x310   :  { %4872 = vst [vmem:[#allocation2 + $0xf1] sm:$0xff] %v4808_v8  ;;  %v4745_v59 = vadd.f32 %v14112_v48, %v4674_v57  ;;  %v4437_v20 = vadd.f32 %v14269_v62, %v4051_v37  ;;  %10623 = vmatmul.mubr.f32.gmra.mrb[78].mxu1 %v6061_v14  ;;  %v4053_v34 = vpop.f32.mrb[233].mxu1  ;;  %v14318_v30 = vpop.f32.mrb[219].mxu0  ;;  %v5822_v62 = vsel %vm468_vm1, %v5819_v3, %v5821_v5  ;;  %v6062_v57 = vrot.slane %v14312_v39, 2  ;;  %v5564_v3 = vld [vmem:[#allocation8 + $0x30] sm:$0xff]  ;;  %v5565_v63 = vld [vmem:[#allocation8 + $0x38] sm:$0xff] }
 0x311   :  { %11281 = vmatpush1.bf16.msra.mxu1 %v11280_v26  ;;  %v17593_v34 = vld [vmem:[#allocation20_spill] sm:$0xff]  ;;  %v5826_v26 = vrot.slane %v14239_v52, 1 }
 0x312   :  { %v4809_v11 = vmax.f32 %v4745_v59, 0.0  ;;  %v4675_v4 = vadd.f32 %v4437_v20, %v17592_v13  ;;  %6400 = vmatmul.mubr.f32.gmra.mrb[16].mxu0 %v14223_v33  ;;  %v11283_v59 = vpack.c.bf16 %v5565_v63, %v5564_v3  ;;  %11282 = vmatprep.subr.bf16.mxu1 %v17591_v60 }
 0x313   :  { %v4056_v8 = vpop.f32.mrb[234].mxu1  ;;  %v14323_v12 = vld [vmem:[#allocation2 + $0xe0] sm:$0xff]  ;;  %v14326_v45 = vld [vmem:[#allocation2 + $0xe8] sm:$0x3]  ;;  %6404 = vmatprep.mubr.f32.mxu0 %v5822_v62  ;;  %v14333_v5 = vpop.f32.mrb[220].mxu0  ;;  %v5825_v62 = vsel %vm468_vm1, %v5823_v31, %v5824_v15  ;;  %v5828_v31 = vrot.slane %v14264_v58, 1 }
 0x314   :  { %4873 = vst [vmem:[#allocation2 + $0xf9] sm:$0xff] %v4809_v11  ;;  %v4746_v14 = vadd.f32 %v14112_v48, %v4675_v4  ;;  %v4442_v18 = vadd.f32 %v14261_v21, %v4056_v8  ;;  %v4058_v54 = vpop.f32.mrb[235].mxu1  ;;  %v6063_v37 = vrot.slane %v14323_v12, 2  ;;  %v6065_v33 = vrot.slane %v14326_v45, 2  ;;  %v14338_v21 = vpop.f32.mrb[221].mxu0 }
 0x315   :  { %11284 = vmatpush1.bf16.msra.mxu1 %v11283_v59  ;;  %v5829_v59 = vrot.slane %v14266_v53, 1  ;;  %v5841_v40 = vrot.slane %v14326_v45, 1 }
 0x316   :  { %v4810_v20 = vmax.f32 %v4746_v14, 0.0  ;;  %v4676_v13 = vadd.f32 %v4442_v18, %v17593_v34  ;;  %v6064_v11 = vsel %vm693_vm0, %v6062_v57, %v6063_v37  ;;  %v6066_v4 = vsel %vm693_vm0, %v6063_v37, %v6065_v33  ;;  %6405 = vmatmul.mubr.f32.gmra.mrb[18].mxu0 %v14225_v2  ;;  %11285 = vmatprep.subr.bf16.mxu1 %v17591_v60 }
 0x317   :  { %v4061_v8 = vpop.f32.mrb[236].mxu1  ;;  %10625 = vmatprep.mubr.f32.mxu1 %v6064_v11  ;;  %6409 = vmatprep.mubr.f32.mxu0 %v5825_v62  ;;  %v14346_v54 = vld [vmem:[#allocation2 + $0xf0] sm:$0xff]  ;;  %v14348_v37 = vpop.f32.mrb[222].mxu0 }
 0x318   :  { %4874 = vst [vmem:[#allocation2 + $0x109] sm:$0xff] %v4810_v20  ;;  %v4747_v14 = vadd.f32 %v14112_v48, %v4676_v13  ;;  %v4447_v18 = vadd.f32 %v14285_v51, %v4061_v8  ;;  %10626 = vmatmul.mubr.f32.gmra.mrb[80].mxu1 %v6066_v4  ;;  %v4063_v57 = vpop.f32.mrb[237].mxu1  ;;  %v14352_v3 = vpop.f32.mrb[223].mxu0  ;;  %v5827_v51 = vsel %vm468_vm1, %v5824_v15, %v5826_v26  ;;  %v6067_v20 = vrot.slane %v14346_v54, 2  ;;  %v5566_v15 = vld [vmem:[#allocation8 + $0x40] sm:$0xff]  ;;  %v5567_v8 = vld [vmem:[#allocation8 + $0x48] sm:$0xff] }
 0x319   :  { %v5600_v62 = vld [vmem:[#allocation8 + $0x150] sm:$0xff] }
 0x31a   :  { %v4811_v33 = vmax.f32 %v4747_v14, 0.0  ;;  %v4677_v2 = vadd.f32 %v4447_v18, %v13865_v6  ;;  %6410 = vmatmul.mubr.f32.gmra.mrb[20].mxu0 %v14243_v47  ;;  %v11286_v14 = vpack.c.bf16 %v5567_v8, %v5566_v15  ;;  %v5601_v18 = vld [vmem:[#allocation8 + $0x158] sm:$0xff]  ;;  %v5832_v8 = vsel %vm468_vm1, %v5829_v59, %v5831_v1  ;;  %v5568_v1 = vld [vmem:[#allocation8 + $0x50] sm:$0xff] }
 0x31b   :  { %v4066_v52 = vpop.f32.mrb[238].mxu1  ;;  %v14357_v63 = vld [vmem:[#allocation2 + $0xf8] sm:$0xff]  ;;  %v14360_v34 = vld [vmem:[#allocation2 + $0x100] sm:$0x3]  ;;  %6414 = vmatprep.mubr.f32.mxu0 %v5827_v51  ;;  %v14367_v26 = vpop.f32.mrb[224].mxu0  ;;  %v11341_v35 = vpack.c.bf16 %v5601_v18, %v5600_v62 }
 0x31c   :  { %4875 = vst [vmem:[#allocation2 + $0x111] sm:$0xff] %v4811_v33  ;;  %v4748_v6 = vadd.f32 %v14112_v48, %v4677_v2  ;;  %v4452_v13 = vadd.f32 %v14279_v41, %v4066_v52  ;;  %v4068_v11 = vpop.f32.mrb[239].mxu1  ;;  %v6068_v4 = vrot.slane %v14357_v63, 2  ;;  %v6070_v47 = vrot.slane %v14360_v34, 2  ;;  %v14372_v52 = vpop.f32.mrb[225].mxu0  ;;  %11287 = vmatpush1.bf16.msra.mxu1 %v11286_v14 }
 0x31d   :  { %v5830_v11 = vsel %vm468_vm1, %v5828_v31, %v5829_v59  ;;  %11342 = vmatprep.subr.bf16.mxu0 %v11341_v35  ;;  %11288 = vmatprep.subr.bf16.mxu1 %v17591_v60  ;;  %v5569_v59 = vld [vmem:[#allocation8 + $0x58] sm:$0xff] }
 0x31e   :  { %v4812_v57 = vmax.f32 %v4748_v6, 0.0  ;;  %v4678_v33 = vadd.f32 %v4452_v13, %v17594_v10  ;;  %v6069_v2 = vsel %vm693_vm0, %v6067_v20, %v6068_v4  ;;  %v6071_v41 = vsel %vm693_vm0, %v6068_v4, %v6070_v47  ;;  %6415 = vmatmul.mubr.f32.gmra.mrb[22].mxu0 %v14245_v19  ;;  %v17595_v47 = vld [vmem:[#allocation24_spill] sm:$0xff] }
 0x31f   :  { %v4071_v51 = vpop.f32.mrb[240].mxu1  ;;  %10628 = vmatprep.mubr.f32.mxu1 %v6069_v2  ;;  %6419 = vmatprep.mubr.f32.mxu0 %v5830_v11  ;;  %v14379_v13 = vld [vmem:[#allocation2 + $0x108] sm:$0xff]  ;;  %v14381_v4 = vpop.f32.mrb[226].mxu0  ;;  %v11289_v11 = vpack.c.bf16 %v5569_v59, %v5568_v1  ;;  %v17597_v1 = vld [vmem:[#allocation45_spill] sm:$0xff] }
 0x320   :  { %4876 = vst [vmem:[#allocation2 + $0x121] sm:$0xff] %v4812_v57  ;;  %v4749_v6 = vadd.f32 %v14112_v48, %v4678_v33  ;;  %v4457_v10 = vadd.f32 %v14304_v50, %v4071_v51  ;;  %10629 = vmatmul.mubr.f32.gmra.mrb[82].mxu1 %v6071_v41  ;;  %v4073_v20 = vpop.f32.mrb[241].mxu1  ;;  %v14385_v15 = vpop.f32.mrb[227].mxu0  ;;  %11344 = vmatpush3.bf16.msra.mxu0 %v11341_v35  ;;  %v6072_v14 = vrot.slane %v14379_v13, 2  ;;  %v5834_v57 = vrot.slane %v14289_v7, 1 }
 0x321   :  { %11290 = vmatpush1.bf16.msra.mxu1 %v11289_v11  ;;  %v5839_v11 = vrot.slane %v14323_v12, 1 }
 0x322   :  { %v4813_v19 = vmax.f32 %v4749_v6, 0.0  ;;  %v4679_v31 = vadd.f32 %v4457_v10, %v17595_v47  ;;  %6420 = vmatmul.mubr.f32.gmra.mrb[24].mxu0 %v14264_v58  ;;  %v17596_v10 = vld [vmem:[#allocation17_spill] sm:$0xff]  ;;  %11291 = vmatprep.subr.bf16.mxu1 %v17591_v60 }
 0x323   :  { %v4076_v50 = vpop.f32.mrb[242].mxu1  ;;  %v14390_v62 = vld [vmem:[#allocation2 + $0x110] sm:$0xff]  ;;  %v14393_v18 = vld [vmem:[#allocation2 + $0x118] sm:$0x3]  ;;  %6424 = vmatprep.mubr.f32.mxu0 %v5832_v8  ;;  %v14400_v51 = vpop.f32.mrb[228].mxu0  ;;  %v5836_v8 = vrot.slane %v14292_v16, 1 }
 0x324   :  { %4877 = vst [vmem:[#allocation2 + $0x129] sm:$0xff] %v4813_v19  ;;  %v4750_v33 = vadd.f32 %v14112_v48, %v4679_v31  ;;  %v4462_v35 = vadd.f32 %v14299_v38, %v4076_v50  ;;  %v4078_v2 = vpop.f32.mrb[243].mxu1  ;;  %v6073_v41 = vrot.slane %v14390_v62, 2  ;;  %v6075_v58 = vrot.slane %v14393_v18, 2  ;;  %v14405_v31 = vpop.f32.mrb[229].mxu0 }
 0x325   :  { %v5835_v50 = vsel %vm468_vm1, %v5833_v25, %v5834_v57 }
 0x326   :  { %v4814_v6 = vmax.f32 %v4750_v33, 0.0  ;;  %v4680_v20 = vadd.f32 %v4462_v35, %v17596_v10  ;;  %v6074_v19 = vsel %vm693_vm0, %v6072_v14, %v6073_v41  ;;  %v6076_v47 = vsel %vm693_vm0, %v6073_v41, %v6075_v58  ;;  %6425 = vmatmul.mubr.f32.gmra.mrb[26].mxu0 %v14266_v53 }
 0x327   :  { %v4081_v38 = vpop.f32.mrb[244].mxu1  ;;  %10631 = vmatprep.mubr.f32.mxu1 %v6074_v19  ;;  %6429 = vmatprep.mubr.f32.mxu0 %v5835_v50  ;;  %v14412_v35 = vld [vmem:[#allocation2 + $0x120] sm:$0xff]  ;;  %v14414_v41 = vpop.f32.mrb[230].mxu0  ;;  %v5571_v50 = vld [vmem:[#allocation8 + $0x68] sm:$0xff] }
 0x328   :  { %4878 = vst [vmem:[#allocation2 + $0x139] sm:$0xff] %v4814_v6  ;;  %v4751_v2 = vadd.f32 %v14112_v48, %v4680_v20  ;;  %v4467_v33 = vadd.f32 %v14318_v30, %v4081_v38  ;;  %10632 = vmatmul.mubr.f32.gmra.mrb[84].mxu1 %v6076_v47  ;;  %v4083_v14 = vpop.f32.mrb[245].mxu1  ;;  %v14417_v59 = vpop.f32.mrb[231].mxu0  ;;  %v5837_v30 = vsel %vm468_vm1, %v5834_v57, %v5836_v8  ;;  %v6077_v6 = vrot.slane %v14412_v35, 2  ;;  %v5570_v57 = vld [vmem:[#allocation8 + $0x60] sm:$0xff] }
 0x329   :  { %v5838_v8 = vrot.slane %v14312_v39, 1 }
 0x32a   :  { %v4815_v58 = vmax.f32 %v4751_v2, 0.0  ;;  %v4681_v53 = vadd.f32 %v4467_v33, %v17597_v1  ;;  %6430 = vmatmul.mubr.f32.gmra.mrb[28].mxu0 %v14282_v28  ;;  %v11292_v33 = vpack.c.bf16 %v5571_v50, %v5570_v57  ;;  %v17598_v1 = vld [vmem:[#allocation28_spill] sm:$0xff]  ;;  %v17599_v50 = vld [vmem:[#allocation30_spill] sm:$0xff] }
 0x32b   :  { %v4086_v16 = vpop.f32.mrb[246].mxu1  ;;  %v14422_v25 = vld [vmem:[#allocation2 + $0x128] sm:$0xff]  ;;  %v14425_v10 = vld [vmem:[#allocation2 + $0x130] sm:$0x3]  ;;  %6434 = vmatprep.mubr.f32.mxu0 %v5837_v30 }
 0x32c   :  { %4879 = vst [vmem:[#allocation2 + $0x141] sm:$0xff] %v4815_v58  ;;  %v4752_v20 = vadd.f32 %v14112_v48, %v4681_v53  ;;  %v4472_v19 = vadd.f32 %v14314_v24, %v4086_v16  ;;  %v4088_v47 = vpop.f32.mrb[247].mxu1  ;;  %v6078_v38 = vrot.slane %v14422_v25, 2  ;;  %v6080_v28 = vrot.slane %v14425_v10, 2  ;;  %v14433_v2 = vpop.f32.mrb[232].mxu0  ;;  %11293 = vmatpush1.bf16.msra.mxu1 %v11292_v33 }
 0x32d   :  { %v14438_v16 = vpop.f32.mrb[233].mxu0  ;;  %v5840_v47 = vsel %vm468_vm1, %v5838_v8, %v5839_v11  ;;  %11294 = vmatprep.subr.bf16.mxu1 %v17591_v60  ;;  %v5844_v33 = vrot.slane %v14357_v63, 1 }
 0x32e   :  { %v4816_v14 = vmax.f32 %v4752_v20, 0.0  ;;  %v4682_v58 = vadd.f32 %v4472_v19, %v17598_v1  ;;  %v6079_v53 = vsel %vm693_vm0, %v6077_v6, %v6078_v38  ;;  %v6081_v24 = vsel %vm693_vm0, %v6078_v38, %v6080_v28  ;;  %6435 = vmatmul.mubr.f32.gmra.mrb[30].mxu0 %v14289_v7 }
 0x32f   :  { %v4091_v30 = vpop.f32.mrb[248].mxu1  ;;  %10634 = vmatprep.mubr.f32.mxu1 %v6079_v53  ;;  %6439 = vmatprep.mubr.f32.mxu0 %v5840_v47  ;;  %v14445_v19 = vld [vmem:[#allocation2 + $0x138] sm:$0xff] }
 0x330   :  { %4880 = vst [vmem:[#allocation2 + $0x151] sm:$0xff] %v4816_v14  ;;  %v4753_v57 = vadd.f32 %v14112_v48, %v4682_v58  ;;  %v4477_v20 = vadd.f32 %v14338_v21, %v4091_v30  ;;  %10635 = vmatmul.mubr.f32.gmra.mrb[86].mxu1 %v6081_v24  ;;  %v4093_v6 = vpop.f32.mrb[249].mxu1  ;;  %v14447_v38 = vpop.f32.mrb[234].mxu0  ;;  %v5842_v21 = vsel %vm468_vm1, %v5839_v11, %v5841_v40  ;;  %v6082_v14 = vrot.slane %v14445_v19, 2  ;;  %v5572_v40 = vld [vmem:[#allocation8 + $0x70] sm:$0xff]  ;;  %v5573_v11 = vld [vmem:[#allocation8 + $0x78] sm:$0xff] }
 0x331   :  { %v14450_v1 = vpop.f32.mrb[235].mxu0  ;;  %v11295_v6 = vpack.c.bf16 %v5573_v11, %v5572_v40 }
 0x332   :  { %v4817_v28 = vmax.f32 %v4753_v57, 0.0  ;;  %v4683_v7 = vadd.f32 %v4477_v20, %v17599_v50  ;;  %6440 = vmatmul.mubr.f32.gmra.mrb[32].mxu0 %v14312_v39  ;;  %v5843_v57 = vrot.slane %v14346_v54, 1 }
 0x333   :  { %v4096_v45 = vpop.f32.mrb[250].mxu1  ;;  %v14455_v8 = vld [vmem:[#allocation2 + $0x140] sm:$0xff]  ;;  %v14458_v58 = vld [vmem:[#allocation2 + $0x148] sm:$0x3]  ;;  %6444 = vmatprep.mubr.f32.mxu0 %v5842_v21  ;;  %11296 = vmatpush1.bf16.msra.mxu1 %v11295_v6  ;;  %v5849_v6 = vrot.slane %v14390_v62, 1 }
 0x334   :  { %4881 = vst [vmem:[#allocation2 + $0x159] sm:$0xff] %v4817_v28  ;;  %v4754_v53 = vadd.f32 %v14112_v48, %v4683_v7  ;;  %v4482_v24 = vadd.f32 %v14333_v5, %v4096_v45  ;;  %v4098_v30 = vpop.f32.mrb[251].mxu1  ;;  %v6083_v47 = vrot.slane %v14455_v8, 2  ;;  %v6085_v39 = vrot.slane %v14458_v58, 2  ;;  %v14466_v20 = vpop.f32.mrb[236].mxu0  ;;  %11297 = vmatprep.subr.bf16.mxu1 %v17591_v60 }
 0x335   :  { %v14471_v7 = vpop.f32.mrb[237].mxu0  ;;  %v5845_v21 = vsel %vm468_vm1, %v5843_v57, %v5844_v33  ;;  %v5846_v30 = vrot.slane %v14360_v34, 1 }
 0x336   :  { %v4818_v50 = vmax.f32 %v4754_v53, 0.0  ;;  %v4684_v28 = vadd.f32 %v4482_v24, %v17600_v55  ;;  %v6084_v48 = vsel %vm693_vm0, %v6082_v14, %v6083_v47  ;;  %v6086_v5 = vsel %vm693_vm0, %v6083_v47, %v6085_v39  ;;  %6445 = vmatmul.mubr.f32.gmra.mrb[34].mxu0 %v14323_v12  ;;  %v14479_v53 = vld [vmem:[%s17188_s2] ss:$0 sm:$0xff]  ;;  %v5575_v39 = vld [vmem:[#allocation8 + $0x88] sm:$0xff] }
 0x337   :  { %v4101_v45 = vpop.f32.mrb[252].mxu1  ;;  %10637 = vmatprep.mubr.f32.mxu1 %v6084_v48  ;;  %6449 = vmatprep.mubr.f32.mxu0 %v5845_v21  ;;  %v14483_v47 = vld [vmem:[#allocation2 + $0x150] sm:$0xff]  ;;  %v5574_v12 = vld [vmem:[#allocation8 + $0x80] sm:$0xff] }
 0x338   :  { %4882 = vst [vmem:[#allocation2 + $0x169] sm:$0xff] %v4818_v50  ;;  %v4755_v55 = vadd.f32 %v14479_v53, %v4684_v28  ;;  %v4487_v14 = vadd.f32 %v14352_v3, %v4101_v45  ;;  %10638 = vmatmul.mubr.f32.gmra.mrb[88].mxu1 %v6086_v5  ;;  %v4103_v24 = vpop.f32.mrb[253].mxu1  ;;  %v11298_v34 = vpack.c.bf16 %v5575_v39, %v5574_v12  ;;  %v6087_v5 = vrot.slane %v14483_v47, 2 }
 0x339   :  { %v14485_v40 = vpop.f32.mrb[238].mxu0  ;;  %v5847_v3 = vsel %vm468_vm1, %v5844_v33, %v5846_v30  ;;  %v5602_v33 = vld [vmem:[#allocation8 + $0x160] sm:$0xff]  ;;  %v5603_v30 = vld [vmem:[#allocation8 + $0x168] sm:$0xff]  ;;  %v5576_v24 = vld [vmem:[#allocation8 + $0x90] sm:$0xff]  ;;  %v5848_v12 = vrot.slane %v14379_v13, 1 }
 0x33a   :  { %v4819_v11 = vmax.f32 %v4755_v55, 0.0  ;;  %v4685_v57 = vadd.f32 %v4487_v14, %v13915_v23  ;;  %v14488_v50 = vpop.f32.mrb[239].mxu0  ;;  %6450 = vmatmul.mubr.f32.gmra.mrb[36].mxu0 %v14346_v54  ;;  %11299 = vmatpush1.bf16.msra.mxu1 %v11298_v34  ;;  %v11345_v56 = vpack.c.bf16 %v5603_v30, %v5602_v33  ;;  %v5851_v34 = vrot.slane %v14393_v18, 1  ;;  %v5579_v30 = vld [vmem:[#allocation8 + $0xa8] sm:$0xff]  ;;  %v17603_v18 = vld [vmem:[#allocation19_spill] sm:$0xff] }
 0x33b   :  { %v4106_v28 = vpop.f32.mrb[254].mxu1  ;;  %v14493_v48 = vld [vmem:[#allocation2 + $0x158] sm:$0xff]  ;;  %v14496_v45 = vld [vmem:[#allocation2 + $0x160] sm:$0x3]  ;;  %6454 = vmatprep.mubr.f32.mxu0 %v5847_v3  ;;  %11300 = vmatprep.subr.bf16.mxu1 %v17591_v60  ;;  %v5850_v22 = vsel %vm468_vm1, %v5848_v12, %v5849_v6 }
 0x33c   :  { %4883 = vst [vmem:[#allocation2 + $0x171] sm:$0xff] %v4819_v11  ;;  %v4756_v23 = vadd.f32 %v14479_v53, %v4685_v57  ;;  %v4492_v21 = vadd.f32 %v14348_v37, %v4106_v28  ;;  %v4108_v55 = vpop.f32.mrb[255].mxu1  ;;  %v6088_v14 = vrot.slane %v14493_v48, 2  ;;  %v6090_v54 = vrot.slane %v14496_v45, 2  ;;  %v5577_v11 = vld [vmem:[#allocation8 + $0x98] sm:$0xff]  ;;  %v17601_v57 = vld [vmem:[#allocation34_spill] sm:$0xff]  ;;  %11346 = vmatprep.subr.bf16.mxu0 %v11345_v56 }
 0x33d   :  { %v14504_v39 = vpop.f32.mrb[240].mxu0  ;;  %v11301_v33 = vpack.c.bf16 %v5577_v11, %v5576_v24  ;;  %11348 = vmatpush3.bf16.msra.mxu0 %v11345_v56 }
 0x33e   :  { %v4820_v36 = vmax.f32 %v4756_v23, 0.0  ;;  %v4686_v49 = vadd.f32 %v4492_v21, %v17601_v57  ;;  %v6089_v37 = vsel %vm693_vm0, %v6087_v5, %v6088_v14  ;;  %v6091_v28 = vsel %vm693_vm0, %v6088_v14, %v6090_v54  ;;  %v14509_v3 = vpop.f32.mrb[241].mxu0  ;;  %6455 = vmatmul.mubr.f32.gmra.mrb[38].mxu0 %v14357_v63  ;;  %v5578_v54 = vld [vmem:[#allocation8 + $0xa0] sm:$0xff] }
 0x33f   :  { %v4111_v55 = vpop.f32.mrb[0].mxu1  ;;  %10640 = vmatprep.mubr.f32.mxu1 %v6089_v37  ;;  %6459 = vmatprep.mubr.f32.mxu0 %v5850_v22  ;;  %v14517_v14 = vld [vmem:[#allocation2 + $0x168] sm:$0xff]  ;;  %v11304_v63 = vpack.c.bf16 %v5579_v30, %v5578_v54  ;;  %v5852_v22 = vsel %vm468_vm1, %v5849_v6, %v5851_v34  ;;  %v5580_v6 = vld [vmem:[#allocation8 + $0xb0] sm:$0xff]  ;;  %v5581_v34 = vld [vmem:[#allocation8 + $0xb8] sm:$0xff] }
 0x340   :  { %4884 = vst [vmem:[#allocation2 + $0x181] sm:$0xff] %v4820_v36  ;;  %v4757_v23 = vadd.f32 %v14479_v53, %v4686_v49  ;;  %v4497_v5 = vadd.f32 %v14372_v52, %v4111_v55  ;;  %10641 = vmatmul.mubr.f32.gmra.mrb[90].mxu1 %v6091_v28  ;;  %v4113_v21 = vpop.f32.mrb[1].mxu1  ;;  %v6092_v11 = vrot.slane %v14517_v14, 2  ;;  %v5854_v28 = vrot.slane %v14422_v25, 1 }
 0x341   :  { %v14519_v57 = vpop.f32.mrb[242].mxu0  ;;  %11302 = vmatpush1.bf16.msra.mxu1 %v11301_v33  ;;  %v11307_v54 = vpack.c.bf16 %v5581_v34, %v5580_v6 }
 0x342   :  { %17602 = vst [vmem:[#allocation49_spill] sm:$0xff] %v14519_v57  ;;  %v4821_v12 = vmax.f32 %v4757_v23, 0.0  ;;  %v4687_v24 = vadd.f32 %v4497_v5, %v17603_v18  ;;  %v14522_v36 = vpop.f32.mrb[243].mxu0  ;;  %11303 = vmatprep.subr.bf16.mxu1 %v17591_v60  ;;  %6460 = vmatmul.mubr.f32.gmra.mrb[40].mxu0 %v14379_v13  ;;  %v5853_v5 = vrot.slane %v14412_v35, 1 }
 0x343   :  { %v4116_v49 = vpop.f32.mrb[2].mxu1  ;;  %v14527_v52 = vld [vmem:[#allocation2 + $0x170] sm:$0xff]  ;;  %v14530_v37 = vld [vmem:[#allocation2 + $0x178] sm:$0x3]  ;;  %6464 = vmatprep.mubr.f32.mxu0 %v5852_v22  ;;  %v5582_v22 = vld [vmem:[#allocation8 + $0xc0] sm:$0xff] }
 0x344   :  { %4885 = vst [vmem:[#allocation2 + $0x189] sm:$0xff] %v4821_v12  ;;  %v4758_v55 = vadd.f32 %v14479_v53, %v4687_v24  ;;  %v4502_v56 = vadd.f32 %v14367_v26, %v4116_v49  ;;  %v4118_v33 = vpop.f32.mrb[3].mxu1  ;;  %v6093_v23 = vrot.slane %v14527_v52, 2  ;;  %v6095_v13 = vrot.slane %v14530_v37, 2  ;;  %v17604_v12 = vld [vmem:[#allocation36_spill] sm:$0xff] }
 0x345   :  { %v14538_v21 = vpop.f32.mrb[244].mxu0  ;;  %11305 = vmatpush1.bf16.msra.mxu1 %v11304_v63  ;;  %v5583_v33 = vld [vmem:[#allocation8 + $0xc8] sm:$0xff]  ;;  %v5855_v63 = vsel %vm468_vm1, %v5853_v5, %v5854_v28 }
 0x346   :  { %v4822_v30 = vmax.f32 %v4758_v55, 0.0  ;;  %v4688_v18 = vadd.f32 %v4502_v56, %v17604_v12  ;;  %v6094_v24 = vsel %vm693_vm0, %v6092_v11, %v6093_v23  ;;  %v6096_v26 = vsel %vm693_vm0, %v6093_v23, %v6095_v13  ;;  %v14543_v49 = vpop.f32.mrb[245].mxu0  ;;  %11306 = vmatprep.subr.bf16.mxu1 %v17591_v60  ;;  %6465 = vmatmul.mubr.f32.gmra.mrb[42].mxu0 %v14390_v62  ;;  %v17606_v62 = vld [vmem:[#allocation40_spill] sm:$0xff] }
 0x347   :  { %v4121_v57 = vpop.f32.mrb[4].mxu1  ;;  %10643 = vmatprep.mubr.f32.mxu1 %v6094_v24  ;;  %v5856_v55 = vrot.slane %v14425_v10, 1  ;;  %6469 = vmatprep.mubr.f32.mxu0 %v5855_v63  ;;  %v14551_v13 = vld [vmem:[#allocation2 + $0x180] sm:$0xff]  ;;  %v11310_v34 = vpack.c.bf16 %v5583_v33, %v5582_v22  ;;  %v5584_v10 = vld [vmem:[#allocation8 + $0xd0] sm:$0xff]  ;;  %v5859_v22 = vrot.slane %v14455_v8, 1 }
 0x348   :  { %4886 = vst [vmem:[#allocation2 + $0x1c9] sm:$0xff] %v4822_v30  ;;  %v4759_v56 = vadd.f32 %v14479_v53, %v4688_v18  ;;  %v4507_v11 = vadd.f32 %v14385_v15, %v4121_v57  ;;  %10644 = vmatmul.mubr.f32.gmra.mrb[92].mxu1 %v6096_v26  ;;  %v4123_v23 = vpop.f32.mrb[5].mxu1  ;;  %v5585_v30 = vld [vmem:[#allocation8 + $0xd8] sm:$0xff]  ;;  %v6097_v26 = vrot.slane %v14551_v13, 2 }
 0x349   :  { %v14553_v6 = vpop.f32.mrb[246].mxu0  ;;  %11308 = vmatpush1.bf16.msra.mxu1 %v11307_v54  ;;  %v5857_v15 = vsel %vm468_vm1, %v5854_v28, %v5856_v55  ;;  %v5858_v28 = vrot.slane %v14445_v19, 1  ;;  %v11313_v23 = vpack.c.bf16 %v5585_v30, %v5584_v10  ;;  %v5861_v10 = vrot.slane %v14458_v58, 1  ;;  %v5588_v58 = vld [vmem:[#allocation8 + $0xf0] sm:$0xff] }
 0x34a   :  { %17605 = vst [vmem:[#allocation44_spill] sm:$0xff] %v14553_v6  ;;  %v4823_v12 = vmax.f32 %v4759_v56, 0.0  ;;  %v4689_v24 = vadd.f32 %v4507_v11, %v17606_v62  ;;  %v14556_v5 = vpop.f32.mrb[247].mxu0  ;;  %11309 = vmatprep.subr.bf16.mxu1 %v17591_v60  ;;  %6470 = vmatmul.mubr.f32.gmra.mrb[44].mxu0 %v14412_v35  ;;  %v17609_v6 = vld [vmem:[#allocation27_spill] sm:$0xff] }
 0x34b   :  { %17607 = vst [vmem:[#allocation50_spill] sm:$0xff] %v14556_v5  ;;  %v4126_v18 = vpop.f32.mrb[6].mxu1  ;;  %v14561_v57 = vld [vmem:[#allocation2 + $0x188] sm:$0xff]  ;;  %v14564_v54 = vld [vmem:[#allocation2 + $0x190] sm:$0x3]  ;;  %6474 = vmatprep.mubr.f32.mxu0 %v5857_v15 }
 0x34c   :  { %4887 = vst [vmem:[#allocation2 + $0x1d1] sm:$0xff] %v4823_v12  ;;  %v4760_v33 = vadd.f32 %v14479_v53, %v4689_v24  ;;  %v4512_v63 = vadd.f32 %v14381_v4, %v4126_v18  ;;  %v4128_v56 = vpop.f32.mrb[7].mxu1  ;;  %v6098_v11 = vrot.slane %v14561_v57, 2  ;;  %v6100_v35 = vrot.slane %v14564_v54, 2  ;;  %v5586_v18 = vld [vmem:[#allocation8 + $0xe0] sm:$0xff]  ;;  %v5587_v15 = vld [vmem:[#allocation8 + $0xe8] sm:$0xff] }
 0x34d   :  { %v14572_v55 = vpop.f32.mrb[248].mxu0  ;;  %11311 = vmatpush1.bf16.msra.mxu1 %v11310_v34  ;;  %v5860_v34 = vsel %vm468_vm1, %v5858_v28, %v5859_v22 }
 0x34e   :  { %17608 = vst [vmem:[#allocation52_spill] sm:$0xff] %v14572_v55  ;;  %v4824_v62 = vmax.f32 %v4760_v33, 0.0  ;;  %v4690_v5 = vadd.f32 %v4512_v63, %v17609_v6  ;;  %v6099_v12 = vsel %vm693_vm0, %v6097_v26, %v6098_v11  ;;  %v6101_v24 = vsel %vm693_vm0, %v6098_v11, %v6100_v35  ;;  %v14577_v4 = vpop.f32.mrb[249].mxu0  ;;  %11312 = vmatprep.subr.bf16.mxu1 %v17591_v60  ;;  %v17614_v55 = vld [vmem:[#allocation56_spill] sm:$0xff] }
 0x34f   :  { %v4131_v56 = vpop.f32.mrb[8].mxu1  ;;  %10646 = vmatprep.mubr.f32.mxu1 %v6099_v12  ;;  %6475 = vmatmul.mubr.f32.gmra.mrb[46].mxu0 %v14422_v25  ;;  %v14585_v33 = vld [vmem:[#allocation2 + $0x1c8] sm:$0xff]  ;;  %v11316_v11 = vpack.c.bf16 %v5587_v15, %v5586_v18  ;;  %v17611_v25 = vld [vmem:[#allocation55_spill] sm:$0xff]  ;;  %v5864_v18 = vrot.slane %v14493_v48, 1 }
 0x350   :  { %4888 = vst [vmem:[#allocation2 + $0x1e1] sm:$0xff] %v4824_v62  ;;  %v4761_v6 = vadd.f32 %v14479_v53, %v4690_v5  ;;  %v4517_v30 = vadd.f32 %v14405_v31, %v4131_v56  ;;  %10647 = vmatmul.mubr.f32.gmra.mrb[94].mxu1 %v6101_v24  ;;  %6479 = vmatprep.mubr.f32.mxu0 %v5860_v34  ;;  %v4133_v26 = vpop.f32.mrb[9].mxu1  ;;  %v5589_v5 = vld [vmem:[#allocation8 + $0xf8] sm:$0xff]  ;;  %v6102_v56 = vrot.slane %v14585_v33, 2 }
 0x351   :  { %v14587_v63 = vpop.f32.mrb[250].mxu0  ;;  %11314 = vmatpush1.bf16.msra.mxu1 %v11313_v23  ;;  %v5862_v31 = vsel %vm468_vm1, %v5859_v22, %v5861_v10  ;;  %v5604_v22 = vld [vmem:[#allocation8 + $0x170] sm:$0xff]  ;;  %v5605_v10 = vld [vmem:[#allocation8 + $0x178] sm:$0xff]  ;;  %v5863_v26 = vrot.slane %v14483_v47, 1 }
 0x352   :  { %17610 = vst [vmem:[#allocation48_spill] sm:$0xff] %v14587_v63  ;;  %v4825_v35 = vmax.f32 %v4761_v6, 0.0  ;;  %v4691_v12 = vadd.f32 %v4517_v30, %v17611_v25  ;;  %v14590_v28 = vpop.f32.mrb[251].mxu0  ;;  %11315 = vmatprep.subr.bf16.mxu1 %v17591_v60  ;;  %v11319_v63 = vpack.c.bf16 %v5589_v5, %v5588_v58 }
 0x353   :  { %17612 = vst [vmem:[#allocation53_spill] sm:$0xff] %v14590_v28  ;;  %v4136_v62 = vpop.f32.mrb[10].mxu1  ;;  %6480 = vmatmul.mubr.f32.gmra.mrb[48].mxu0 %v14445_v19  ;;  %v14595_v24 = vld [vmem:[#allocation2 + $0x1d0] sm:$0xff]  ;;  %v14598_v23 = vld [vmem:[#allocation2 + $0x1d8] sm:$0x3]  ;;  %v11349_v28 = vpack.c.bf16 %v5605_v10, %v5604_v22 }
 0x354   :  { %4889 = vst [vmem:[#allocation2 + $0x1e9] sm:$0xff] %v4825_v35  ;;  %v4762_v15 = vadd.f32 %v14479_v53, %v4691_v12  ;;  %v4522_v34 = vadd.f32 %v14400_v51, %v4136_v62  ;;  %6484 = vmatprep.mubr.f32.mxu0 %v5862_v31  ;;  %v4138_v6 = vpop.f32.mrb[11].mxu1  ;;  %v6103_v30 = vrot.slane %v14595_v24, 2  ;;  %v6105_v19 = vrot.slane %v14598_v23, 2 }
 0x355   :  { %v14606_v25 = vpop.f32.mrb[252].mxu0  ;;  %11317 = vmatpush1.bf16.msra.mxu1 %v11316_v11  ;;  %v5866_v11 = vrot.slane %v14496_v45, 1  ;;  %11350 = vmatprep.subr.bf16.mxu0 %v11349_v28 }
 0x356   :  { %17613 = vst [vmem:[#allocation58_spill] sm:$0xff] %v14606_v25  ;;  %v4826_v35 = vmax.f32 %v4762_v15, 0.0  ;;  %v4692_v12 = vadd.f32 %v4522_v34, %v17614_v55  ;;  %v6104_v51 = vsel %vm693_vm0, %v6102_v56, %v6103_v30  ;;  %v6106_v62 = vsel %vm693_vm0, %v6103_v30, %v6105_v19  ;;  %v14611_v31 = vpop.f32.mrb[253].mxu0  ;;  %11318 = vmatprep.subr.bf16.mxu1 %v17591_v60 }
 0x357   :  { %v4141_v6 = vpop.f32.mrb[12].mxu1  ;;  %10649 = vmatprep.mubr.f32.mxu1 %v6104_v51  ;;  %6485 = vmatmul.mubr.f32.gmra.mrb[50].mxu0 %v14455_v8  ;;  %v5865_v25 = vsel %vm468_vm1, %v5863_v26, %v5864_v18  ;;  %v14619_v56 = vld [vmem:[#allocation2 + $0x1e0] sm:$0xff] }
 0x358   :  { %4890 = vst [vmem:[#allocation2 + $0x1f9] sm:$0xff] %v4826_v35  ;;  %v4763_v58 = vadd.f32 %v14479_v53, %v4692_v12  ;;  %v4527_v55 = vadd.f32 %v14417_v59, %v4141_v6  ;;  %10650 = vmatmul.mubr.f32.gmra.mrb[96].mxu1 %v6106_v62  ;;  %6489 = vmatprep.mubr.f32.mxu0 %v5865_v25  ;;  %v4143_v5 = vpop.f32.mrb[13].mxu1  ;;  %v6107_v22 = vrot.slane %v14619_v56, 2  ;;  %v5868_v25 = vrot.slane %v14517_v14, 1  ;;  %v17615_v12 = vld [vmem:[#allocation29_spill] sm:$0xff] }
 0x359   :  { %v14621_v15 = vpop.f32.mrb[254].mxu0  ;;  %11320 = vmatpush1.bf16.msra.mxu1 %v11319_v63  ;;  %11352 = vmatpush3.bf16.msra.mxu0 %v11349_v28  ;;  %v5867_v59 = vsel %vm468_vm1, %v5864_v18, %v5866_v11  ;;  %v5869_v63 = vrot.slane %v14527_v52, 1 }
 0x35a   :  { %v4827_v34 = vmax.f32 %v4763_v58, 0.0  ;;  %v4693_v8 = vadd.f32 %v4527_v55, %v13965_v32  ;;  %v14624_v30 = vpop.f32.mrb[255].mxu0  ;;  %11353 = vmatprep.subr.bf16.mxu0 %v17591_v60  ;;  %v5871_v58 = vrot.slane %v14530_v37, 1 }
 0x35b   :  { %v4146_v45 = vpop.f32.mrb[14].mxu1  ;;  %6490 = vmatmul.mubr.f32.gmra.mrb[52].mxu0 %v14483_v47  ;;  %v14628_v19 = vld [vmem:[#allocation2 + $0x1e8] sm:$0xff]  ;;  %v14631_v10 = vld [vmem:[#allocation2 + $0x1f0] sm:$0x3] }
 0x35c   :  { %4891 = vst [vmem:[#allocation2 + $0x201] sm:$0xff] %v4827_v34  ;;  %v4764_v32 = vadd.f32 %v14479_v53, %v4693_v8  ;;  %v4532_v28 = vadd.f32 %v14414_v41, %v4146_v45  ;;  %6494 = vmatprep.mubr.f32.mxu0 %v5867_v59  ;;  %v4148_v26 = vpop.f32.mrb[15].mxu1  ;;  %v6108_v47 = vrot.slane %v14628_v19, 2  ;;  %v6110_v18 = vrot.slane %v14631_v10, 2 }
 0x35d   :  { %v5870_v41 = vsel %vm468_vm1, %v5868_v25, %v5869_v63 }
 0x35e   :  { %v4828_v35 = vmax.f32 %v4764_v32, 0.0  ;;  %v4694_v51 = vadd.f32 %v4532_v28, %v17615_v12  ;;  %v6109_v62 = vsel %vm693_vm0, %v6107_v22, %v6108_v47  ;;  %v6111_v6 = vsel %vm693_vm0, %v6108_v47, %v6110_v18 }
 0x35f   :  { %v4151_v11 = vpop.f32.mrb[16].mxu1  ;;  %10652 = vmatprep.mubr.f32.mxu1 %v6109_v62  ;;  %6495 = vmatmul.mubr.f32.gmra.mrb[54].mxu0 %v14493_v48  ;;  %v14648_v8 = vld [vmem:[#allocation2 + $0x1f8] sm:$0xff]  ;;  %v5872_v48 = vsel %vm468_vm1, %v5869_v63, %v5871_v58  ;;  %v5873_v63 = vrot.slane %v14551_v13, 1 }
 0x360   :  { %4892 = vst [vmem:[#allocation2 + $0x211] sm:$0xff] %v4828_v35  ;;  %v4765_v55 = vadd.f32 %v14479_v53, %v4694_v51  ;;  %v4537_v5 = vadd.f32 %v14438_v16, %v4151_v11  ;;  %10653 = vmatmul.mubr.f32.gmra.mrb[98].mxu1 %v6111_v6  ;;  %6499 = vmatprep.mubr.f32.mxu0 %v5870_v41  ;;  %v4153_v34 = vpop.f32.mrb[17].mxu1  ;;  %v6112_v37 = vrot.slane %v14648_v8, 2  ;;  %v5874_v16 = vrot.slane %v14561_v57, 1 }
 0x361   :  { %v5876_v6 = vrot.slane %v14564_v54, 1 }
 0x362   :  { %v4829_v45 = vmax.f32 %v4765_v55, 0.0  ;;  %v4695_v59 = vadd.f32 %v4537_v5, %v13977_v17 }
 0x363   :  { %v4156_v22 = vpop.f32.mrb[18].mxu1  ;;  %6500 = vmatmul.mubr.f32.gmra.mrb[56].mxu0 %v14517_v14  ;;  %v14653_v32 = vld [vmem:[#allocation2 + $0x200] sm:$0xff]  ;;  %v14656_v28 = vld [vmem:[#allocation2 + $0x208] sm:$0x3] }
 0x364   :  { %4893 = vst [vmem:[#allocation2 + $0x219] sm:$0xff] %v4829_v45  ;;  %v4766_v26 = vadd.f32 %v14479_v53, %v4695_v59  ;;  %v4542_v47 = vadd.f32 %v14433_v2, %v4156_v22  ;;  %6504 = vmatprep.mubr.f32.mxu0 %v5872_v48  ;;  %v4158_v17 = vpop.f32.mrb[19].mxu1  ;;  %v6113_v18 = vrot.slane %v14653_v32, 2  ;;  %v6115_v14 = vrot.slane %v14656_v28, 2 }
 0x365   :  { %v5875_v2 = vsel %vm468_vm1, %v5873_v63, %v5874_v16  ;;  %v5881_v63 = vrot.slane %v14598_v23, 1 }
 0x366   :  { %v4830_v25 = vmax.f32 %v4766_v26, 0.0  ;;  %v4696_v35 = vadd.f32 %v4542_v47, %v13972_v29  ;;  %v6114_v12 = vsel %vm693_vm0, %v6112_v37, %v6113_v18  ;;  %v6116_v51 = vsel %vm693_vm0, %v6113_v18, %v6115_v14 }
 0x367   :  { %v4161_v62 = vpop.f32.mrb[20].mxu1  ;;  %10655 = vmatprep.mubr.f32.mxu1 %v6114_v12  ;;  %6505 = vmatmul.mubr.f32.gmra.mrb[58].mxu0 %v14527_v52  ;;  %v14672_v58 = vld [vmem:[#allocation2 + $0x210] sm:$0xff]  ;;  %v5877_v52 = vsel %vm468_vm1, %v5874_v16, %v5876_v6  ;;  %v5878_v16 = vrot.slane %v14585_v33, 1 }
 0x368   :  { %4894 = vst [vmem:[#allocation2 + $0x229] sm:$0xff] %v4830_v25  ;;  %v4767_v11 = vadd.f32 %v14479_v53, %v4696_v35  ;;  %v4547_v41 = vadd.f32 %v14450_v1, %v4161_v62  ;;  %10656 = vmatmul.mubr.f32.gmra.mrb[100].mxu1 %v6116_v51  ;;  %6509 = vmatprep.mubr.f32.mxu0 %v5875_v2  ;;  %v4163_v29 = vpop.f32.mrb[21].mxu1  ;;  %v6117_v54 = vrot.slane %v14672_v58, 2  ;;  %v5879_v1 = vrot.slane %v14595_v24, 1 }
 0x36a   :  { %v4831_v55 = vmax.f32 %v4767_v11, 0.0  ;;  %v4697_v5 = vadd.f32 %v4547_v41, %v13990_v44 }
 0x36b   :  { %v4166_v34 = vpop.f32.mrb[22].mxu1  ;;  %6510 = vmatmul.mubr.f32.gmra.mrb[60].mxu0 %v14551_v13  ;;  %v14677_v45 = vld [vmem:[#allocation2 + $0x218] sm:$0xff]  ;;  %v14680_v59 = vld [vmem:[#allocation2 + $0x220] sm:$0x3] }
 0x36c   :  { %4895 = vst [vmem:[#allocation2 + $0x231] sm:$0xff] %v4831_v55  ;;  %v4768_v22 = vadd.f32 %v14479_v53, %v4697_v5  ;;  %v4552_v48 = vadd.f32 %v14447_v38, %v4166_v34  ;;  %6514 = vmatprep.mubr.f32.mxu0 %v5877_v52  ;;  %v4168_v44 = vpop.f32.mrb[23].mxu1  ;;  %v6118_v37 = vrot.slane %v14677_v45, 2  ;;  %v6120_v13 = vrot.slane %v14680_v59, 2  ;;  %v8508_v5 = vld [vmem:[#allocation8 + $0x400] sm:$0xff]  ;;  %v8509_v34 = vld [vmem:[#allocation8 + $0x408] sm:$0xff] }
 0x36d   :  { %v5880_v38 = vsel %vm468_vm1, %v5878_v16, %v5879_v1  ;;  %v5883_v52 = vrot.slane %v14619_v56, 1  ;;  %v14718_v16 = vpack.c.bf16 %v8509_v34, %v8508_v5 }
 0x36e   :  { %v4832_v26 = vmax.f32 %v4768_v22, 0.0  ;;  %v4698_v47 = vadd.f32 %v4552_v48, %v13984_v46  ;;  %v6119_v17 = vsel %vm693_vm0, %v6117_v54, %v6118_v37  ;;  %v6121_v18 = vsel %vm693_vm0, %v6118_v37, %v6120_v13 }
 0x36f   :  { %v4171_v14 = vpop.f32.mrb[24].mxu1  ;;  %10658 = vmatprep.mubr.f32.mxu1 %v6119_v17  ;;  %6515 = vmatmul.mubr.f32.gmra.mrb[62].mxu0 %v14561_v57  ;;  %v14696_v12 = vld [vmem:[#allocation2 + $0x228] sm:$0xff]  ;;  %v5882_v57 = vsel %vm468_vm1, %v5879_v1, %v5881_v63  ;;  %v5886_v13 = vrot.slane %v14631_v10, 1 }
 0x370   :  { %4896 = vst [vmem:[#allocation2 + $0x241] sm:$0xff] %v4832_v26  ;;  %v4769_v25 = vadd.f32 %v14479_v53, %v4698_v47  ;;  %v4557_v35 = vadd.f32 %v14471_v7, %v4171_v14  ;;  %10659 = vmatmul.mubr.f32.gmra.mrb[102].mxu1 %v6121_v18  ;;  %6519 = vmatprep.mubr.f32.mxu0 %v5880_v38  ;;  %v4173_v46 = vpop.f32.mrb[25].mxu1  ;;  %v6122_v23 = vrot.slane %v14696_v12, 2  ;;  %v5884_v7 = vrot.slane %v14628_v19, 1  ;;  %v17616_v1 = vld [vmem:[#allocation54_spill] sm:$0xff] }
 0x371   :  { %11402 = vmatprep.subr.bf16.mxu1 %v14718_v16 }
 0x372   :  { %v4833_v51 = vmax.f32 %v4769_v25, 0.0  ;;  %v4699_v62 = vadd.f32 %v4557_v35, %v14002_v42  ;;  %v5887_v10 = vsel %vm468_vm1, %v5884_v7, %v5886_v13  ;;  %v5889_v35 = vrot.slane %v14653_v32, 1 }
 0x373   :  { %v4176_v2 = vpop.f32.mrb[26].mxu1  ;;  %6520 = vmatmul.mubr.f32.gmra.mrb[64].mxu0 %v14585_v33  ;;  %v14701_v6 = vld [vmem:[#allocation2 + $0x230] sm:$0xff]  ;;  %v14704_v11 = vld [vmem:[#allocation2 + $0x238] sm:$0x3] }
 0x374   :  { %4897 = vst [vmem:[#allocation2 + $0x249] sm:$0xff] %v4833_v51  ;;  %v4770_v41 = vadd.f32 %v14479_v53, %v4699_v62  ;;  %v4562_v29 = vadd.f32 %v14466_v20, %v4176_v2  ;;  %6524 = vmatprep.mubr.f32.mxu0 %v5882_v57  ;;  %v4178_v42 = vpop.f32.mrb[27].mxu1  ;;  %v6123_v55 = vrot.slane %v14701_v6, 2  ;;  %v6125_v33 = vrot.slane %v14704_v11, 2 }
 0x375   :  { %v5885_v20 = vsel %vm468_vm1, %v5883_v52, %v5884_v7  ;;  %v5888_v2 = vrot.slane %v14648_v8, 1  ;;  %v5891_v42 = vrot.slane %v14656_v28, 1 }
 0x376   :  { %v4834_v54 = vmax.f32 %v4770_v41, 0.0  ;;  %v4700_v22 = vadd.f32 %v4562_v29, %v17616_v1  ;;  %v6124_v48 = vsel %vm693_vm0, %v6122_v23, %v6123_v55  ;;  %v6126_v44 = vsel %vm693_vm0, %v6123_v55, %v6125_v33 }
 0x377   :  { %v4181_v37 = vpop.f32.mrb[28].mxu1  ;;  %10661 = vmatprep.mubr.f32.mxu1 %v6124_v48  ;;  %6525 = vmatmul.mubr.f32.gmra.mrb[66].mxu0 %v14595_v24  ;;  %v14722_v18 = vld [vmem:[#allocation2 + $0x240] sm:$0xff] }
 0x378   :  { %4898 = vst [vmem:[#allocation2 + $0x259] sm:$0xff] %v4834_v54  ;;  %v4771_v26 = vadd.f32 %v14479_v53, %v4700_v22  ;;  %v4567_v47 = vadd.f32 %v14488_v50, %v4181_v37  ;;  %10662 = vmatmul.mubr.f32.gmra.mrb[104].mxu1 %v6126_v44  ;;  %6529 = vmatprep.mubr.f32.mxu0 %v5885_v20  ;;  %v4183_v17 = vpop.f32.mrb[29].mxu1  ;;  %v6127_v25 = vrot.slane %v14722_v18, 2  ;;  %v5893_v20 = vrot.slane %v14672_v58, 1 }
 0x37a   :  { %v4835_v14 = vmax.f32 %v4771_v26, 0.0  ;;  %v4701_v24 = vadd.f32 %v4567_v47, %v14015_v0 }
 0x37b   :  { %v4186_v38 = vpop.f32.mrb[30].mxu1  ;;  %6530 = vmatmul.mubr.f32.gmra.mrb[68].mxu0 %v14619_v56  ;;  %v14728_v63 = vld [vmem:[#allocation2 + $0x248] sm:$0xff]  ;;  %v14731_v50 = vld [vmem:[#allocation2 + $0x250] sm:$0x3] }
 0x37c   :  { %4899 = vst [vmem:[#allocation2 + $0x261] sm:$0xff] %v4835_v14  ;;  %v4772_v46 = vadd.f32 %v14479_v53, %v4701_v24  ;;  %v4572_v51 = vadd.f32 %v14485_v40, %v4186_v38  ;;  %6534 = vmatprep.mubr.f32.mxu0 %v5887_v10  ;;  %v4188_v0 = vpop.f32.mrb[31].mxu1  ;;  %v6128_v62 = vrot.slane %v14728_v63, 2  ;;  %v6130_v56 = vrot.slane %v14731_v50, 2 }
 0x37d   :  { %v5890_v40 = vsel %vm468_vm1, %v5888_v2, %v5889_v35  ;;  %v5896_v24 = vrot.slane %v14680_v59, 1  ;;  %v17617_v2 = vld [vmem:[#allocation49_spill] sm:$0xff] }
 0x37e   :  { %v4836_v57 = vmax.f32 %v4772_v46, 0.0  ;;  %v4702_v23 = vadd.f32 %v4572_v51, %v14009_v43  ;;  %v6129_v7 = vsel %vm693_vm0, %v6127_v25, %v6128_v62  ;;  %v6131_v41 = vsel %vm693_vm0, %v6128_v62, %v6130_v56 }
 0x37f   :  { %v4191_v29 = vpop.f32.mrb[32].mxu1  ;;  %10664 = vmatprep.mubr.f32.mxu1 %v6129_v7  ;;  %6535 = vmatmul.mubr.f32.gmra.mrb[70].mxu0 %v14628_v19  ;;  %v14747_v5 = vld [vmem:[#allocation2 + $0x258] sm:$0xff]  ;;  %v5892_v19 = vsel %vm468_vm1, %v5889_v35, %v5891_v42  ;;  %v5898_v7 = vrot.slane %v14696_v12, 1 }
 0x380   :  { %4900 = vst [vmem:[#allocation2 + $0x271] sm:$0xff] %v4836_v57  ;;  %v4773_v55 = vadd.f32 %v14479_v53, %v4702_v23  ;;  %v4577_v33 = vadd.f32 %v14509_v3, %v4191_v29  ;;  %10665 = vmatmul.mubr.f32.gmra.mrb[106].mxu1 %v6131_v41  ;;  %6539 = vmatprep.mubr.f32.mxu0 %v5890_v40  ;;  %v4193_v43 = vpop.f32.mrb[33].mxu1  ;;  %v6132_v28 = vrot.slane %v14747_v5, 2  ;;  %v5894_v3 = vrot.slane %v14677_v45, 1  ;;  %v17618_v29 = vld [vmem:[#allocation47_spill] sm:$0xff] }
 0x382   :  { %v4837_v34 = vmax.f32 %v4773_v55, 0.0  ;;  %v4703_v52 = vadd.f32 %v4577_v33, %v14027_v27 }
 0x383   :  { %v4196_v54 = vpop.f32.mrb[34].mxu1  ;;  %6540 = vmatmul.mubr.f32.gmra.mrb[72].mxu0 %v14648_v8  ;;  %v14752_v1 = vld [vmem:[#allocation2 + $0x260] sm:$0xff]  ;;  %v14755_v22 = vld [vmem:[#allocation2 + $0x268] sm:$0x3] }
 0x384   :  { %4901 = vst [vmem:[#allocation2 + $0x279] sm:$0xff] %v4837_v34  ;;  %v4774_v48 = vadd.f32 %v14479_v53, %v4703_v52  ;;  %v4582_v44 = vadd.f32 %v14504_v39, %v4196_v54  ;;  %6544 = vmatprep.mubr.f32.mxu0 %v5892_v19  ;;  %v4198_v27 = vpop.f32.mrb[35].mxu1  ;;  %v6133_v37 = vrot.slane %v14752_v1, 2  ;;  %v6135_v8 = vrot.slane %v14755_v22, 2 }
 0x385   :  { %v5895_v39 = vsel %vm468_vm1, %v5893_v20, %v5894_v3  ;;  %v5901_v34 = vrot.slane %v14704_v11, 1 }
 0x386   :  { %v4838_v13 = vmax.f32 %v4774_v48, 0.0  ;;  %v4704_v26 = vadd.f32 %v4582_v44, %v14022_v9  ;;  %v6134_v47 = vsel %vm693_vm0, %v6132_v28, %v6133_v37  ;;  %v6136_v17 = vsel %vm693_vm0, %v6133_v37, %v6135_v8  ;;  %v17619_v48 = vld [vmem:[#allocation38_spill] sm:$0xff] }
 0x387   :  { %v4201_v14 = vpop.f32.mrb[36].mxu1  ;;  %10667 = vmatprep.mubr.f32.mxu1 %v6134_v47  ;;  %6545 = vmatmul.mubr.f32.gmra.mrb[74].mxu0 %v14653_v32  ;;  %v14771_v25 = vld [vmem:[#allocation2 + $0x270] sm:$0xff]  ;;  %v5897_v32 = vsel %vm468_vm1, %v5894_v3, %v5896_v24 }
 0x388   :  { %4902 = vst [vmem:[#allocation2 + $0x289] sm:$0xff] %v4838_v13  ;;  %v4775_v38 = vadd.f32 %v14479_v53, %v4704_v26  ;;  %v4587_v10 = vadd.f32 %v14522_v36, %v4201_v14  ;;  %10668 = vmatmul.mubr.f32.gmra.mrb[108].mxu1 %v6136_v17  ;;  %6549 = vmatprep.mubr.f32.mxu0 %v5895_v39  ;;  %v4203_v9 = vpop.f32.mrb[37].mxu1  ;;  %v6137_v59 = vrot.slane %v14771_v25, 2  ;;  %v5899_v36 = vrot.slane %v14701_v6, 1  ;;  %v17620_v39 = vld [vmem:[#allocation23_spill] sm:$0xff] }
 0x389   :  { %v5903_v17 = vrot.slane %v14722_v18, 1 }
 0x38a   :  { %v4839_v35 = vmax.f32 %v4775_v38, 0.0  ;;  %v4705_v46 = vadd.f32 %v4587_v10, %v14039_v61  ;;  %v5900_v43 = vsel %vm468_vm1, %v5898_v7, %v5899_v36  ;;  %v5909_v7 = vrot.slane %v14752_v1, 1 }
 0x38b   :  { %v4206_v51 = vpop.f32.mrb[38].mxu1  ;;  %6550 = vmatmul.mubr.f32.gmra.mrb[76].mxu0 %v14672_v58  ;;  %v14776_v0 = vld [vmem:[#allocation2 + $0x278] sm:$0xff]  ;;  %v14779_v62 = vld [vmem:[#allocation2 + $0x280] sm:$0x3] }
 0x38c   :  { %4903 = vst [vmem:[#allocation2 + $0x291] sm:$0xff] %v4839_v35  ;;  %v4776_v56 = vadd.f32 %v14479_v53, %v4705_v46  ;;  %v4592_v57 = vadd.f32 %v17617_v2, %v4206_v51  ;;  %6554 = vmatprep.mubr.f32.mxu0 %v5897_v32  ;;  %v4208_v61 = vpop.f32.mrb[39].mxu1  ;;  %v6138_v23 = vrot.slane %v14776_v0, 2  ;;  %v6140_v58 = vrot.slane %v14779_v62, 2  ;;  %v17621_v51 = vld [vmem:[#allocation50_spill] sm:$0xff]  ;;  %v17622_v2 = vld [vmem:[#allocation33_spill] sm:$0xff] }
 0x38d   :  { %v5906_v35 = vrot.slane %v14731_v50, 1 }
 0x38e   :  { %v4840_v41 = vmax.f32 %v4776_v56, 0.0  ;;  %v4706_v40 = vadd.f32 %v4592_v57, %v17618_v29  ;;  %v6139_v42 = vsel %vm693_vm0, %v6137_v59, %v6138_v23  ;;  %v6141_v55 = vsel %vm693_vm0, %v6138_v23, %v6140_v58  ;;  %v17623_v29 = vld [vmem:[#allocation44_spill] sm:$0xff] }
 0x38f   :  { %v4211_v33 = vpop.f32.mrb[40].mxu1  ;;  %10670 = vmatprep.mubr.f32.mxu1 %v6139_v42  ;;  %6555 = vmatmul.mubr.f32.gmra.mrb[78].mxu0 %v14677_v45  ;;  %v14795_v28 = vld [vmem:[#allocation2 + $0x288] sm:$0xff]  ;;  %v5902_v45 = vsel %vm468_vm1, %v5899_v36, %v5901_v34  ;;  %v17624_v34 = vld [vmem:[#allocation31_spill] sm:$0xff] }
 0x390   :  { %4904 = vst [vmem:[#allocation2 + $0x2a1] sm:$0xff] %v4840_v41  ;;  %v4777_v52 = vadd.f32 %v14479_v53, %v4706_v40  ;;  %v4597_v54 = vadd.f32 %v14543_v49, %v4211_v33  ;;  %10671 = vmatmul.mubr.f32.gmra.mrb[110].mxu1 %v6141_v55  ;;  %6559 = vmatprep.mubr.f32.mxu0 %v5900_v43  ;;  %v4213_v19 = vpop.f32.mrb[41].mxu1  ;;  %v6142_v11 = vrot.slane %v14795_v28, 2  ;;  %v5904_v49 = vrot.slane %v14728_v63, 1 }
 0x391   :  { %v5908_v33 = vrot.slane %v14747_v5, 1 }
 0x392   :  { %v4841_v3 = vmax.f32 %v4777_v52, 0.0  ;;  %v4707_v44 = vadd.f32 %v4597_v54, %v17619_v48 }
 0x393   :  { %v4216_v27 = vpop.f32.mrb[42].mxu1  ;;  %6560 = vmatmul.mubr.f32.gmra.mrb[80].mxu0 %v14696_v12  ;;  %v14800_v37 = vld [vmem:[#allocation2 + $0x290] sm:$0xff]  ;;  %v14803_v8 = vld [vmem:[#allocation2 + $0x298] sm:$0x3]  ;;  %v5910_v48 = vsel %vm468_vm1, %v5908_v33, %v5909_v7 }
 0x394   :  { %4905 = vst [vmem:[#allocation2 + $0x2a9] sm:$0xff] %v4841_v3  ;;  %v4778_v20 = vadd.f32 %v14479_v53, %v4707_v44  ;;  %v4602_v13 = vadd.f32 %v14538_v21, %v4216_v27  ;;  %6564 = vmatprep.mubr.f32.mxu0 %v5902_v45  ;;  %v4218_v26 = vpop.f32.mrb[43].mxu1  ;;  %v6143_v47 = vrot.slane %v14800_v37, 2  ;;  %v6145_v12 = vrot.slane %v14803_v8, 2 }
 0x395   :  { %v5905_v21 = vsel %vm468_vm1, %v5903_v17, %v5904_v49  ;;  %v5911_v44 = vrot.slane %v14755_v22, 1  ;;  %v14857_v17 = vld [vmem:[%s17188_s2] ss:$0 sm:$0xff]  ;;  %v5919_v33 = vrot.slane %v14800_v37, 1 }
 0x396   :  { %v4842_v14 = vmax.f32 %v4778_v20, 0.0  ;;  %v4708_v24 = vadd.f32 %v4602_v13, %v17620_v39  ;;  %v6144_v38 = vsel %vm693_vm0, %v6142_v11, %v6143_v47  ;;  %v6146_v10 = vsel %vm693_vm0, %v6143_v47, %v6145_v12  ;;  %v17625_v13 = vld [vmem:[#allocation39_spill] sm:$0xff]  ;;  %v17626_v39 = vld [vmem:[#allocation52_spill] sm:$0xff] }
 0x397   :  { %v4221_v9 = vpop.f32.mrb[44].mxu1  ;;  %10673 = vmatprep.mubr.f32.mxu1 %v6144_v38  ;;  %6565 = vmatmul.mubr.f32.gmra.mrb[82].mxu0 %v14701_v6  ;;  %v14819_v36 = vld [vmem:[#allocation2 + $0x2a0] sm:$0xff]  ;;  %v5907_v6 = vsel %vm468_vm1, %v5904_v49, %v5906_v35 }
 0x398   :  { %4906 = vst [vmem:[#allocation2 + $0x2b9] sm:$0xff] %v4842_v14  ;;  %v4779_v46 = vadd.f32 %v14479_v53, %v4708_v24  ;;  %v4607_v32 = vadd.f32 %v17621_v51, %v4221_v9  ;;  %10674 = vmatmul.mubr.f32.gmra.mrb[112].mxu1 %v6146_v10  ;;  %6569 = vmatprep.mubr.f32.mxu0 %v5905_v21  ;;  %v4223_v59 = vpop.f32.mrb[45].mxu1  ;;  %v6147_v50 = vrot.slane %v14819_v36, 2  ;;  %v5913_v9 = vrot.slane %v14771_v25, 1  ;;  %v17627_v35 = vld [vmem:[#allocation37_spill] sm:$0xff] }
 0x39a   :  { %v4843_v56 = vmax.f32 %v4779_v46, 0.0  ;;  %v4709_v57 = vadd.f32 %v4607_v32, %v17622_v2  ;;  %v5916_v2 = vrot.slane %v14779_v62, 1 }
 0x39b   :  { %v4226_v61 = vpop.f32.mrb[46].mxu1  ;;  %6570 = vmatmul.mubr.f32.gmra.mrb[84].mxu0 %v14722_v18  ;;  %v14824_v23 = vld [vmem:[#allocation2 + $0x2a8] sm:$0xff]  ;;  %v14827_v58 = vld [vmem:[#allocation2 + $0x2b0] sm:$0x3] }
 0x39c   :  { %4907 = vst [vmem:[#allocation2 + $0x2c1] sm:$0xff] %v4843_v56  ;;  %v4780_v41 = vadd.f32 %v14479_v53, %v4709_v57  ;;  %v4612_v40 = vadd.f32 %v17623_v29, %v4226_v61  ;;  %6574 = vmatprep.mubr.f32.mxu0 %v5907_v6  ;;  %v4228_v42 = vpop.f32.mrb[47].mxu1  ;;  %v6148_v55 = vrot.slane %v14824_v23, 2  ;;  %v6150_v18 = vrot.slane %v14827_v58, 2  ;;  %v17628_v61 = vld [vmem:[#allocation53_spill] sm:$0xff]  ;;  %v17629_v29 = vld [vmem:[#allocation42_spill] sm:$0xff] }
 0x39e   :  { %v4844_v43 = vmax.f32 %v4780_v41, 0.0  ;;  %v4710_v52 = vadd.f32 %v4612_v40, %v17624_v34  ;;  %v6149_v54 = vsel %vm693_vm0, %v6147_v50, %v6148_v55  ;;  %v6151_v19 = vsel %vm693_vm0, %v6148_v55, %v6150_v18  ;;  %v17630_v34 = vld [vmem:[#allocation48_spill] sm:$0xff] }
 0x39f   :  { %v4231_v3 = vpop.f32.mrb[48].mxu1  ;;  %10676 = vmatprep.mubr.f32.mxu1 %v6149_v54  ;;  %6575 = vmatmul.mubr.f32.gmra.mrb[86].mxu0 %v14728_v63  ;;  %v14843_v49 = vld [vmem:[#allocation2 + $0x2b8] sm:$0xff]  ;;  %v5912_v63 = vsel %vm468_vm1, %v5909_v7, %v5911_v44  ;;  %v17631_v44 = vld [vmem:[#allocation35_spill] sm:$0xff] }
 0x3a0   :  { %4908 = vst [vmem:[#allocation2 + $0x2d1] sm:$0xff] %v4844_v43  ;;  %v4781_v27 = vadd.f32 %v14479_v53, %v4710_v52  ;;  %v4617_v45 = vadd.f32 %v14577_v4, %v4231_v3  ;;  %10677 = vmatmul.mubr.f32.gmra.mrb[114].mxu1 %v6151_v19  ;;  %6579 = vmatprep.mubr.f32.mxu0 %v5910_v48  ;;  %v4233_v11 = vpop.f32.mrb[49].mxu1  ;;  %v6152_v22 = vrot.slane %v14843_v49, 2  ;;  %v5914_v4 = vrot.slane %v14776_v0, 1 }
 0x3a1   :  { %v5918_v3 = vrot.slane %v14795_v28, 1 }
 0x3a2   :  { %v4845_v20 = vmax.f32 %v4781_v27, 0.0  ;;  %v4711_v26 = vadd.f32 %v4617_v45, %v17625_v13  ;;  %v5915_v56 = vsel %vm468_vm1, %v5913_v9, %v5914_v4 }
 0x3a3   :  { %v4236_v47 = vpop.f32.mrb[50].mxu1  ;;  %6580 = vmatmul.mubr.f32.gmra.mrb[88].mxu0 %v14747_v5  ;;  %v14848_v12 = vld [vmem:[#allocation2 + $0x2c0] sm:$0xff]  ;;  %v14851_v53 = vld [vmem:[#allocation2 + $0x2c8] sm:$0x3]  ;;  %v5920_v13 = vsel %vm468_vm1, %v5918_v3, %v5919_v33 }
 0x3a4   :  { %4909 = vst [vmem:[#allocation2 + $0x2d9] sm:$0xff] %v4845_v20  ;;  %v4782_v14 = vadd.f32 %v14857_v17, %v4711_v26  ;;  %v4622_v5 = vadd.f32 %v17626_v39, %v4236_v47  ;;  %6584 = vmatprep.mubr.f32.mxu0 %v5912_v63  ;;  %v4238_v24 = vpop.f32.mrb[51].mxu1  ;;  %v6153_v38 = vrot.slane %v14848_v12, 2  ;;  %v6155_v10 = vrot.slane %v14851_v53, 2  ;;  %v17632_v39 = vld [vmem:[#allocation65_spill] sm:$0xff] }
 0x3a5   :  { %v5921_v26 = vrot.slane %v14803_v8, 1 }
 0x3a6   :  { %v4846_v21 = vmax.f32 %v4782_v14, 0.0  ;;  %v4712_v46 = vadd.f32 %v4622_v5, %v17627_v35  ;;  %v6154_v51 = vsel %vm693_vm0, %v6152_v22, %v6153_v38  ;;  %v6156_v32 = vsel %vm693_vm0, %v6153_v38, %v6155_v10 }
 0x3a7   :  { %v4241_v59 = vpop.f32.mrb[52].mxu1  ;;  %10679 = vmatprep.mubr.f32.mxu1 %v6154_v51  ;;  %6585 = vmatmul.mubr.f32.gmra.mrb[90].mxu0 %v14752_v1  ;;  %v14872_v7 = vld [vmem:[#allocation2 + $0x2d0] sm:$0xff]  ;;  %v5917_v1 = vsel %vm468_vm1, %v5914_v4, %v5916_v2 }
 0x3a8   :  { %4910 = vst [vmem:[#allocation2 + $0x2e9] sm:$0xff] %v4846_v21  ;;  %v4783_v57 = vadd.f32 %v14857_v17, %v4712_v46  ;;  %v4627_v6 = vadd.f32 %v17628_v61, %v4241_v59  ;;  %10680 = vmatmul.mubr.f32.gmra.mrb[116].mxu1 %v6156_v32  ;;  %6589 = vmatprep.mubr.f32.mxu0 %v5915_v56  ;;  %v4243_v50 = vpop.f32.mrb[53].mxu1  ;;  %v6157_v62 = vrot.slane %v14872_v7, 2  ;;  %v17633_v21 = vld [vmem:[#allocation58_spill] sm:$0xff]  ;;  %v5923_v32 = vrot.slane %v14819_v36, 1 }
 0x3a9   :  { %v17634_v56 = vld [vmem:[#allocation46_spill] sm:$0xff] }
 0x3aa   :  { %v4847_v41 = vmax.f32 %v4783_v57, 0.0  ;;  %v4713_v40 = vadd.f32 %v4627_v6, %v17629_v29 }
 0x3ab   :  { %v4246_v42 = vpop.f32.mrb[54].mxu1  ;;  %6590 = vmatmul.mubr.f32.gmra.mrb[92].mxu0 %v14771_v25  ;;  %v14877_v55 = vld [vmem:[#allocation2 + $0x2d8] sm:$0xff]  ;;  %v14880_v18 = vld [vmem:[#allocation2 + $0x2e0] sm:$0x3] }
 0x3ac   :  { %4911 = vst [vmem:[#allocation2 + $0x2f1] sm:$0xff] %v4847_v41  ;;  %v4784_v43 = vadd.f32 %v14857_v17, %v4713_v40  ;;  %v4632_v52 = vadd.f32 %v17630_v34, %v4246_v42  ;;  %6594 = vmatprep.mubr.f32.mxu0 %v5917_v1  ;;  %v4248_v54 = vpop.f32.mrb[55].mxu1  ;;  %v6158_v19 = vrot.slane %v14877_v55, 2  ;;  %v6160_v25 = vrot.slane %v14880_v18, 2 }
 0x3ad   :  { %v5926_v41 = vrot.slane %v14827_v58, 1 }
 0x3ae   :  { %v4848_v48 = vmax.f32 %v4784_v43, 0.0  ;;  %v4714_v27 = vadd.f32 %v4632_v52, %v17631_v44  ;;  %v6159_v45 = vsel %vm693_vm0, %v6157_v62, %v6158_v19  ;;  %v6161_v11 = vsel %vm693_vm0, %v6158_v19, %v6160_v25 }
 0x3af   :  { %v4251_v20 = vpop.f32.mrb[56].mxu1  ;;  %10682 = vmatprep.mubr.f32.mxu1 %v6159_v45  ;;  %6595 = vmatmul.mubr.f32.gmra.mrb[94].mxu0 %v14776_v0  ;;  %v14896_v4 = vld [vmem:[#allocation2 + $0x2e8] sm:$0xff]  ;;  %v5922_v0 = vsel %vm468_vm1, %v5919_v33, %v5921_v26  ;;  %v17635_v33 = vld [vmem:[#allocation41_spill] sm:$0xff]  ;;  %v5928_v44 = vrot.slane %v14843_v49, 1  ;;  %v17636_v45 = vld [vmem:[#allocation43_spill] sm:$0xff]  ;;  %v5931_v26 = vrot.slane %v14851_v53, 1 }
 0x3b0   :  { %4912 = vst [vmem:[#allocation2 + $0x301] sm:$0xff] %v4848_v48  ;;  %v4785_v47 = vadd.f32 %v14857_v17, %v4714_v27  ;;  %v4637_v63 = vadd.f32 %v14611_v31, %v4251_v20  ;;  %10683 = vmatmul.mubr.f32.gmra.mrb[118].mxu1 %v6161_v11  ;;  %6599 = vmatprep.mubr.f32.mxu0 %v5920_v13  ;;  %v4253_v22 = vpop.f32.mrb[57].mxu1  ;;  %v6162_v8 = vrot.slane %v14896_v4, 2  ;;  %v5924_v31 = vrot.slane %v14824_v23, 1 }
 0x3b2   :  { %v4849_v14 = vmax.f32 %v4785_v47, 0.0  ;;  %v4715_v5 = vadd.f32 %v4637_v63, %v17632_v39  ;;  %v5925_v50 = vsel %vm468_vm1, %v5923_v32, %v5924_v31 }
 0x3b3   :  { %v4256_v24 = vpop.f32.mrb[58].mxu1  ;;  %6600 = vmatmul.mubr.f32.gmra.mrb[96].mxu0 %v14795_v28  ;;  %v14901_v38 = vld [vmem:[#allocation2 + $0x2f0] sm:$0xff]  ;;  %v14904_v10 = vld [vmem:[#allocation2 + $0x2f8] sm:$0x3] }
 0x3b4   :  { %4913 = vst [vmem:[#allocation2 + $0x309] sm:$0xff] %v4849_v14  ;;  %v4786_v9 = vadd.f32 %v14857_v17, %v4715_v5  ;;  %v4642_v35 = vadd.f32 %v17633_v21, %v4256_v24  ;;  %6604 = vmatprep.mubr.f32.mxu0 %v5922_v0  ;;  %v4258_v46 = vpop.f32.mrb[59].mxu1  ;;  %v6163_v51 = vrot.slane %v14901_v38, 2  ;;  %v6165_v28 = vrot.slane %v14904_v10, 2 }
 0x3b5   :  { %v5933_v0 = vrot.slane %v14872_v7, 1  ;;  %v5936_v46 = vrot.slane %v14880_v18, 1 }
 0x3b6   :  { %v4850_v59 = vmax.f32 %v4786_v9, 0.0  ;;  %v4716_v2 = vadd.f32 %v4642_v35, %v17634_v56  ;;  %v6164_v57 = vsel %vm693_vm0, %v6162_v8, %v6163_v51  ;;  %v6166_v61 = vsel %vm693_vm0, %v6163_v51, %v6165_v28  ;;  %v14963_v51 = vld [vmem:[#allocation2] sm:$0xff] }
 0x3b7   :  { %v4261_v6 = vpop.f32.mrb[60].mxu1  ;;  %10685 = vmatprep.mubr.f32.mxu1 %v6164_v57  ;;  %6605 = vmatmul.mubr.f32.gmra.mrb[98].mxu0 %v14800_v37  ;;  %v14920_v1 = vld [vmem:[#allocation2 + $0x300] sm:$0xff]  ;;  %v5927_v37 = vsel %vm468_vm1, %v5924_v31, %v5926_v41  ;;  %v14972_v57 = vld [vmem:[#allocation2 + $0x8] sm:$0xff] }
 0x3b8   :  { %4914 = vst [vmem:[#allocation2 + $0x319] sm:$0xff] %v4850_v59  ;;  %v4787_v29 = vadd.f32 %v14857_v17, %v4716_v2  ;;  %v4647_v40 = vadd.f32 %v14624_v30, %v4261_v6  ;;  %10686 = vmatmul.mubr.f32.gmra.mrb[120].mxu1 %v6166_v61  ;;  %6609 = vmatprep.mubr.f32.mxu0 %v5925_v50  ;;  %v4263_v42 = vpop.f32.mrb[61].mxu1  ;;  %v6167_v58 = vrot.slane %v14920_v1, 2  ;;  %v5929_v30 = vrot.slane %v14848_v12, 1  ;;  %v14975_v61 = vld [vmem:[#allocation2 + $0x10] sm:$0x3] }
 0x3b9   :  { %v5110_v2 = vrot.slane %v14963_v51, 1 }
 0x3ba   :  { %v4851_v62 = vmax.f32 %v4787_v29, 0.0  ;;  %v4717_v43 = vadd.f32 %v4647_v40, %v17635_v33  ;;  %v5932_v14 = vsel %vm468_vm1, %v5929_v30, %v5931_v26  ;;  %v5939_v40 = vrot.slane %v14901_v38, 1 }
 0x3bb   :  { %v4266_v34 = vpop.f32.mrb[62].mxu1  ;;  %6610 = vmatmul.mubr.f32.gmra.mrb[100].mxu0 %v14819_v36  ;;  %v14925_v52 = vld [vmem:[#allocation2 + $0x308] sm:$0xff]  ;;  %v14928_v54 = vld [vmem:[#allocation2 + $0x310] sm:$0x3] }
 0x3bc   :  { %4915 = vst [vmem:[#allocation2 + $0x321] sm:$0xff] %v4851_v62  ;;  %v4788_v19 = vadd.f32 %v14857_v17, %v4717_v43  ;;  %v4652_v25 = vadd.f32 %v14621_v15, %v4266_v34  ;;  %6614 = vmatprep.mubr.f32.mxu0 %v5927_v37  ;;  %v6168_v3 = vrot.slane %v14925_v52, 2  ;;  %v6170_v36 = vrot.slane %v14928_v54, 2  ;;  %v4268_v48 = vpop.f32.mrb[63].mxu1 }
 0x3bd   :  { %v5930_v15 = vsel %vm468_vm1, %v5928_v44, %v5929_v30  ;;  %v5938_v34 = vrot.slane %v14896_v4, 1  ;;  %v5941_v48 = vrot.slane %v14904_v10, 1  ;;  %v8510_v44 = vld [vmem:[#allocation8 + $0x410] sm:$0xff] }
 0x3be   :  { %v4852_v27 = vmax.f32 %v4788_v19, 0.0  ;;  %v4718_v11 = vadd.f32 %v4652_v25, %v17636_v45  ;;  %v6169_v20 = vsel %vm693_vm0, %v6167_v58, %v6168_v3  ;;  %v6171_v13 = vsel %vm693_vm0, %v6168_v3, %v6170_v36 }
 0x3bf   :  { %10688 = vmatprep.mubr.f32.mxu1 %v6169_v20  ;;  %6615 = vmatmul.mubr.f32.gmra.mrb[102].mxu0 %v14824_v23  ;;  %v14943_v63 = vld [vmem:[#allocation2 + $0x318] sm:$0xff]  ;;  %v5934_v23 = vrot.slane %v14877_v55, 1  ;;  %v5113_v19 = vrot.slane %v14975_v61, 1  ;;  %v5940_v36 = vsel %vm468_vm1, %v5938_v34, %v5939_v40  ;;  %v15007_v20 = vld [vmem:[#allocation2 + $0x20] sm:$0xff]  ;;  %v5942_v10 = vsel %vm468_vm1, %v5939_v40, %v5941_v48 }
 0x3c0   :  { %4916 = vst [vmem:[#allocation2 + $0x331] sm:$0xff] %v4852_v27  ;;  %v4789_v47 = vadd.f32 %v14857_v17, %v4718_v11  ;;  %10689 = vmatmul.mubr.f32.gmra.mrb[122].mxu1 %v6171_v13  ;;  %6619 = vmatprep.mubr.f32.mxu0 %v5930_v15  ;;  %v6172_v53 = vrot.slane %v14943_v63, 2  ;;  %v8511_v27 = vld [vmem:[#allocation8 + $0x418] sm:$0xff] }
 0x3c1   :  { %v5935_v35 = vsel %vm468_vm1, %v5933_v0, %v5934_v23  ;;  %v5937_v50 = vsel %vm468_vm1, %v5934_v23, %v5936_v46  ;;  %v15005_v11 = vld [vmem:[#allocation2 + $0x18] sm:$0xff]  ;;  %v8513_v23 = vld [vmem:[#allocation8 + $0x428] sm:$0xff]  ;;  %v5943_v0 = vrot.slane %v14920_v1, 1  ;;  %v5946_v46 = vrot.slane %v14928_v54, 1 }
 0x3c2   :  { %v4853_v22 = vmax.f32 %v4789_v47, 0.0  ;;  %v15040_v40 = vld [vmem:[#allocation2 + $0x38] sm:$0xff] }
 0x3c3   :  { %6620 = vmatmul.mubr.f32.gmra.mrb[104].mxu0 %v14843_v49  ;;  %v14947_v39 = vld [vmem:[#allocation2 + $0x320] sm:$0xff]  ;;  %v14949_v5 = vld [vmem:[#allocation2 + $0x328] sm:$0x3] }
 0x3c4   :  { %4917 = vst [vmem:[#allocation2 + $0x339] sm:$0xff] %v4853_v22  ;;  %6624 = vmatprep.mubr.f32.mxu0 %v5932_v14  ;;  %v6173_v17 = vrot.slane %v14947_v39, 2  ;;  %v6175_v24 = vrot.slane %v14949_v5, 2  ;;  %v6361_v8 = vpop.f32.mrb[0].mxu0  ;;  %v5944_v22 = vrot.slane %v14925_v52, 1  ;;  %v8512_v14 = vld [vmem:[#allocation8 + $0x420] sm:$0xff] }
 0x3c5   :  { %v14958_v9 = vpop.f32.mrb[64].mxu1  ;;  %v6363_v21 = vpop.f32.mrb[1].mxu0  ;;  %v5949_v34 = vrot.slane %v14947_v39, 1 }
 0x3c6   :  { %v6174_v49 = vsel %vm693_vm0, %v6172_v53, %v6173_v17  ;;  %v6176_v31 = vsel %vm693_vm0, %v6173_v17, %v6175_v24  ;;  %v6746_v28 = vpop.f32.mrb[65].mxu1  ;;  %v5115_v17 = vrot.slane %v15005_v11, 1  ;;  %v5116_v24 = vrot.slane %v15007_v20, 1 }
 0x3c7   :  { %10691 = vmatprep.mubr.f32.mxu1 %v6174_v49  ;;  %6625 = vmatmul.mubr.f32.gmra.mrb[106].mxu0 %v14848_v12  ;;  %v14965_v32 = vadd.f32 %v6746_v28, %v6361_v8  ;;  %v14967_v59 = vld [vmem:[#allocation2 + $0x330] sm:$0xff]  ;;  %v5111_v12 = vrot.slane %v14972_v57, 1  ;;  %v15023_v8 = vld [vmem:[#allocation2 + $0x28] sm:$0x3]  ;;  %v11409_v49 = vpack.c.bf16 %v8513_v23, %v8512_v14 }
 0x3c8   :  { %10692 = vmatmul.mubr.f32.gmra.mrb[124].mxu1 %v6176_v31  ;;  %6629 = vmatprep.mubr.f32.mxu0 %v5935_v35  ;;  %v14969_v56 = vpop.f32.mrb[2].mxu0  ;;  %v6177_v62 = vrot.slane %v14967_v59, 2  ;;  %v5945_v35 = vsel %vm468_vm1, %v5943_v0, %v5944_v22  ;;  %v8514_v28 = vld [vmem:[#allocation8 + $0x430] sm:$0xff] }
 0x3c9   :  { %17637 = vst [vmem:[#allocation51_spill] sm:$0xff] %v14965_v32  ;;  %v14977_v18 = vpop.f32.mrb[66].mxu1  ;;  %v6368_v6 = vpop.f32.mrb[3].mxu0  ;;  %v5112_v30 = vsel %vm468_vm1, %v5110_v2, %v5111_v12  ;;  %v5114_v15 = vsel %vm468_vm1, %v5111_v12, %v5113_v19  ;;  %v8515_v2 = vld [vmem:[#allocation8 + $0x438] sm:$0xff]  ;;  %v5121_v19 = vrot.slane %v15040_v40, 1  ;;  %v15072_v14 = vld [vmem:[#allocation2 + $0x50] sm:$0xff] }
 0x3ca   :  { %v14986_v42 = vpop.f32.mrb[67].mxu1  ;;  %v5118_v6 = vrot.slane %v15023_v8, 1  ;;  %v11413_v54 = vpack.c.bf16 %v8515_v2, %v8514_v28  ;;  %v15088_v28 = vld [vmem:[#allocation2 + $0x58] sm:$0x3]  ;;  %v8488_v32 = vld [vmem:[#allocation8 + $0x360] sm:$0xff] }
 0x3cb   :  { %6630 = vmatmul.mubr.f32.gmra.mrb[108].mxu0 %v14872_v7  ;;  %v14981_v41 = vld [vmem:[#allocation2 + $0x338] sm:$0xff]  ;;  %v14983_v29 = vld [vmem:[#allocation2 + $0x340] sm:$0x3] }
 0x3cc   :  { %6634 = vmatprep.mubr.f32.mxu0 %v5937_v50  ;;  %v6178_v33 = vrot.slane %v14981_v41, 2  ;;  %v6180_v43 = vrot.slane %v14983_v29, 2  ;;  %v14992_v7 = vpop.f32.mrb[4].mxu0  ;;  %v15038_v50 = vld [vmem:[#allocation2 + $0x30] sm:$0xff] }
 0x3cd   :  { %v14998_v25 = vpop.f32.mrb[68].mxu1  ;;  %v6373_v3 = vpop.f32.mrb[5].mxu0 }
 0x3ce   :  { %v6179_v37 = vsel %vm693_vm0, %v6177_v62, %v6178_v33  ;;  %v6181_v58 = vsel %vm693_vm0, %v6178_v33, %v6180_v43  ;;  %v15003_v45 = vpop.f32.mrb[69].mxu1  ;;  %v5947_v43 = vsel %vm468_vm1, %v5944_v22, %v5946_v46  ;;  %v5948_v3 = vrot.slane %v14943_v63, 1  ;;  %v15070_v22 = vld [vmem:[#allocation2 + $0x48] sm:$0xff] }
 0x3cf   :  { %10694 = vmatprep.mubr.f32.mxu1 %v6179_v37  ;;  %6635 = vmatmul.mubr.f32.gmra.mrb[110].mxu0 %v14877_v55  ;;  %v11405_v55 = vpack.c.bf16 %v8511_v27, %v8510_v44  ;;  %v5953_v46 = vrot.slane %v14967_v59, 1 }
 0x3d0   :  { %10695 = vmatmul.mubr.f32.gmra.mrb[126].mxu1 %v6181_v58  ;;  %6639 = vmatprep.mubr.f32.mxu0 %v5940_v36  ;;  %v15009_v13 = vpop.f32.mrb[6].mxu0  ;;  %v5119_v58 = vsel %vm468_vm1, %v5116_v24, %v5118_v6  ;;  %v15056_v36 = vld [vmem:[#allocation2 + $0x40] sm:$0x3]  ;;  %v5950_v27 = vsel %vm468_vm1, %v5948_v3, %v5949_v34  ;;  %v5956_v6 = vrot.slane %v14983_v29, 1 }
 0x3d1   :  { %7129 = vmatprep.mubr.f32.mxu1 %v5112_v30  ;;  %v15012_v26 = vpop.f32.mrb[70].mxu1  ;;  %v6378_v47 = vpop.f32.mrb[7].mxu0  ;;  %v5120_v30 = vrot.slane %v15038_v50, 1 }
 0x3d2   :  { %v15017_v53 = vpop.f32.mrb[71].mxu1 }
 0x3d3   :  { %6640 = vmatmul.mubr.f32.gmra.mrb[112].mxu0 %v14896_v4  ;;  %v5122_v47 = vsel %vm468_vm1, %v5120_v30, %v5121_v19 }
 0x3d4   :  { %7130 = vmatmul.mubr.f32.vlgmr.msra.gmra.mrb[128].mxu1 %v14963_v51  ;;  %6644 = vmatprep.mubr.f32.mxu0 %v5942_v10  ;;  %v15026_v4 = vpop.f32.mrb[8].mxu0  ;;  %v5123_v10 = vrot.slane %v15056_v36, 1 }
 0x3d5   :  { %7134 = vmatprep.mubr.f32.mxu1 %v5114_v15  ;;  %11404 = vmatpush3.bf16.msra.mxu1 %v14718_v16  ;;  %v15028_v31 = vpop.f32.mrb[72].mxu1  ;;  %v6383_v21 = vpop.f32.mrb[9].mxu0  ;;  %v5117_v16 = vsel %vm468_vm1, %v5115_v17, %v5116_v24  ;;  %v5951_v15 = vrot.slane %v14949_v5, 1  ;;  %v5954_v24 = vrot.slane %v14981_v41, 1 }
 0x3d6   :  { %11406 = vmatprep.subr.bf16.mxu1 %v11405_v55  ;;  %v15033_v12 = vpop.f32.mrb[73].mxu1  ;;  %v5125_v21 = vrot.slane %v15070_v22, 1 }
 0x3d7   :  { %6645 = vmatmul.mubr.f32.gmra.mrb[114].mxu0 %v14901_v38  ;;  %v5952_v17 = vsel %vm468_vm1, %v5949_v34, %v5951_v15  ;;  %v15100_v34 = vld [vmem:[#allocation2 + $0x68] sm:$0xff]  ;;  %v5957_v3 = vsel %vm468_vm1, %v5954_v24, %v5956_v6  ;;  %v15135_v6 = vld [vmem:[#allocation2 + $0x80] sm:$0xff] }
 0x3d8   :  { %7135 = vmatmul.mubr.f32.gmra.mrb[130].mxu1 %v14972_v57  ;;  %6649 = vmatprep.mubr.f32.mxu0 %v5945_v35  ;;  %v15042_v38 = vpop.f32.mrb[10].mxu0  ;;  %v5126_v35 = vrot.slane %v15072_v14, 1  ;;  %v5131_v15 = vrot.slane %v15100_v34, 1 }
 0x3d9   :  { %7139 = vmatprep.mubr.f32.mxu1 %v5117_v16  ;;  %11408 = vmatpush3.bf16.msra.mxu1 %v11405_v55  ;;  %v15044_v62 = vpop.f32.mrb[74].mxu1  ;;  %v6388_v33 = vpop.f32.mrb[11].mxu0  ;;  %v5955_v16 = vsel %vm468_vm1, %v5953_v46, %v5954_v24  ;;  %v5339_v24 = vrot.slane %v15005_v11, 2 }
 0x3da   :  { %11410 = vmatprep.subr.bf16.mxu1 %v11409_v49  ;;  %v15049_v37 = vpop.f32.mrb[75].mxu1  ;;  %v5128_v33 = vrot.slane %v15088_v28, 1 }
 0x3db   :  { %6650 = vmatmul.mubr.f32.gmra.mrb[116].mxu0 %v14920_v1 }
 0x3dc   :  { %7140 = vmatmul.mubr.f32.gmra.mrb[132].mxu1 %v15005_v11  ;;  %6654 = vmatprep.mubr.f32.mxu0 %v5947_v43  ;;  %v15058_v1 = vpop.f32.mrb[12].mxu0  ;;  %v15098_v43 = vld [vmem:[#allocation2 + $0x60] sm:$0xff] }
 0x3dd   :  { %7144 = vmatprep.mubr.f32.mxu1 %v5119_v58  ;;  %11412 = vmatpush3.bf16.msra.mxu1 %v11409_v49  ;;  %v15060_v48 = vpop.f32.mrb[76].mxu1  ;;  %v6393_v44 = vpop.f32.mrb[13].mxu0  ;;  %v5124_v49 = vsel %vm468_vm1, %v5121_v19, %v5123_v10  ;;  %v5334_v58 = vrot.slane %v14963_v51, 2  ;;  %v5129_v51 = vsel %vm468_vm1, %v5126_v35, %v5128_v33 }
 0x3de   :  { %11414 = vmatprep.subr.bf16.mxu1 %v11413_v54  ;;  %v15065_v55 = vpop.f32.mrb[77].mxu1  ;;  %v5337_v44 = vrot.slane %v14975_v61, 2  ;;  %v8476_v61 = vld [vmem:[#allocation8 + $0x300] sm:$0xff] }
 0x3df   :  { %6655 = vmatmul.mubr.f32.gmra.mrb[118].mxu0 %v14925_v52 }
 0x3e0   :  { %7145 = vmatmul.mubr.f32.gmra.mrb[134].mxu1 %v15007_v20  ;;  %6659 = vmatprep.mubr.f32.mxu0 %v5950_v27 }
 0x3e1   :  { %7149 = vmatprep.mubr.f32.mxu1 %v5122_v47  ;;  %11416 = vmatpush3.bf16.msra.mxu1 %v11413_v54  ;;  %v15074_v52 = vpop.f32.mrb[14].mxu0  ;;  %v5127_v54 = vsel %vm468_vm1, %v5125_v21, %v5126_v35 }
 0x3e2   :  { %v6398_v5 = vpop.f32.mrb[15].mxu0 }
 0x3e3   :  { %v15076_v23 = vpop.f32.mrb[78].mxu1  ;;  %6660 = vmatmul.mubr.f32.gmra.mrb[120].mxu0 %v14943_v63  ;;  %v8477_v5 = vld [vmem:[#allocation8 + $0x308] sm:$0xff] }
 0x3e4   :  { %v15081_v0 = vpop.f32.mrb[79].mxu1  ;;  %7150 = vmatmul.mubr.f32.gmra.mrb[136].mxu1 %v15038_v50  ;;  %6664 = vmatprep.mubr.f32.mxu0 %v5952_v17 }
 0x3e5   :  { %7154 = vmatprep.mubr.f32.mxu1 %v5124_v49  ;;  %v15090_v63 = vpop.f32.mrb[16].mxu0  ;;  %v5340_v49 = vrot.slane %v15007_v20, 2  ;;  %v8478_v20 = vld [vmem:[#allocation8 + $0x310] sm:$0xff] }
 0x3e6   :  { %v6403_v2 = vpop.f32.mrb[17].mxu0 }
 0x3e7   :  { %6665 = vmatmul.mubr.f32.gmra.mrb[122].mxu0 %v14947_v39  ;;  %v15104_v39 = vrot.slane %v14972_v57, 2  ;;  %v5130_v57 = vrot.slane %v15098_v43, 1  ;;  %v11354_v2 = vpack.c.bf16 %v8477_v5, %v8476_v61  ;;  %v5136_v5 = vrot.slane %v15135_v6, 1 }
 0x3e8   :  { %7155 = vmatmul.mubr.f32.gmra.mrb[138].mxu1 %v15040_v40  ;;  %6669 = vmatprep.mubr.f32.mxu0 %v5955_v16  ;;  %v15133_v16 = vld [vmem:[#allocation2 + $0x78] sm:$0xff] }
 0x3e9   :  { %7159 = vmatprep.mubr.f32.mxu1 %v5127_v54  ;;  %v15106_v30 = vpop.f32.mrb[18].mxu0  ;;  %v5336_v47 = vsel %vm693_vm0, %v5334_v58, %v15104_v39  ;;  %v5132_v21 = vsel %vm468_vm1, %v5130_v57, %v5131_v15  ;;  %v5338_v35 = vsel %vm693_vm0, %v15104_v39, %v5337_v44  ;;  %v8479_v54 = vld [vmem:[#allocation8 + $0x318] sm:$0xff]  ;;  %v5345_v44 = vrot.slane %v15040_v40, 2  ;;  %v8517_v57 = vld [vmem:[#allocation8 + $0x448] sm:$0xff] }
 0x3ea   :  { %v6408_v19 = vpop.f32.mrb[19].mxu0  ;;  %v5135_v61 = vrot.slane %v15133_v16, 1  ;;  %v5347_v40 = vrot.slane %v15056_v36, 2 }
 0x3eb   :  { %v15108_v29 = vpop.f32.mrb[80].mxu1  ;;  %6670 = vmatmul.mubr.f32.gmra.mrb[124].mxu0 %v14967_v59  ;;  %v15121_v59 = vld [vmem:[#allocation2 + $0x70] sm:$0x3]  ;;  %v5341_v19 = vsel %vm693_vm0, %v5339_v24, %v5340_v49  ;;  %v15151_v24 = vld [vmem:[#allocation2 + $0x88] sm:$0x3] }
 0x3ec   :  { %17638 = vst [vmem:[#allocation57_spill] sm:$0xff] %v15108_v29  ;;  %v15113_v27 = vpop.f32.mrb[81].mxu1  ;;  %7160 = vmatmul.mubr.f32.gmra.mrb[140].mxu1 %v15070_v22  ;;  %6674 = vmatprep.mubr.f32.mxu0 %v5957_v3  ;;  %v5133_v46 = vrot.slane %v15121_v59, 1  ;;  %v5344_v3 = vrot.slane %v15038_v50, 2  ;;  %v11357_v50 = vpack.c.bf16 %v8479_v54, %v8478_v20  ;;  %v5137_v36 = vsel %vm468_vm1, %v5135_v61, %v5136_v5  ;;  %v15166_v20 = vld [vmem:[#allocation2 + $0x98] sm:$0xff] }
 0x3ed   :  { %7164 = vmatprep.mubr.f32.mxu1 %v5129_v51  ;;  %v15123_v10 = vpop.f32.mrb[20].mxu0  ;;  %v8516_v51 = vld [vmem:[#allocation8 + $0x440] sm:$0xff]  ;;  %v15323_v29 = vld [vmem:[#allocation2 + $0x138] sm:$0xff] }
 0x3ee   :  { %v6413_v17 = vpop.f32.mrb[21].mxu0 }
 0x3ef   :  { %6675 = vmatmul.mubr.f32.gmra.mrb[126].mxu0 %v14981_v41  ;;  %v5342_v41 = vrot.slane %v15023_v8, 2  ;;  %v5134_v8 = vsel %vm468_vm1, %v5131_v15, %v5133_v46  ;;  %v11417_v17 = vpack.c.bf16 %v8517_v57, %v8516_v51  ;;  %v8480_v15 = vld [vmem:[#allocation8 + $0x320] sm:$0xff]  ;;  %v8481_v46 = vld [vmem:[#allocation8 + $0x328] sm:$0xff]  ;;  %v5350_v51 = vrot.slane %v15072_v14, 2  ;;  %v8482_v57 = vld [vmem:[#allocation8 + $0x330] sm:$0xff] }
 0x3f0   :  { %7165 = vmatmul.mubr.f32.gmra.mrb[142].mxu1 %v15072_v14  ;;  %10729 = vmatprep.mubr.f32.mxu0 %v5336_v47  ;;  %v11360_v54 = vpack.c.bf16 %v8481_v46, %v8480_v15  ;;  %v5348_v14 = vsel %vm693_vm0, %v5345_v44, %v5347_v40  ;;  %v5355_v15 = vrot.slane %v15100_v34, 2  ;;  %v5141_v40 = vrot.slane %v15166_v20, 1 }
 0x3f1   :  { %7169 = vmatprep.mubr.f32.mxu1 %v5132_v21  ;;  %v15138_v11 = vpop.f32.mrb[22].mxu0  ;;  %11418 = vmatprep.subr.bf16.mxu1 %v11417_v17 }
 0x3f2   :  { %v6418_v58 = vpop.f32.mrb[23].mxu0  ;;  %11420 = vmatpush3.bf16.msra.mxu1 %v11417_v17 }
 0x3f3   :  { %v15140_v33 = vpop.f32.mrb[82].mxu1  ;;  %10730 = vmatmul.mubr.f32.vlgmr.msra.gmra.mrb[128].mxu0 %v5338_v35  ;;  %v5343_v35 = vsel %vm693_vm0, %v5340_v49, %v5342_v41  ;;  %v5138_v49 = vrot.slane %v15151_v24, 1  ;;  %v15164_v41 = vld [vmem:[#allocation2 + $0x90] sm:$0xff] }
 0x3f4   :  { %17639 = vst [vmem:[#allocation66_spill] sm:$0xff] %v15140_v33  ;;  %v15145_v47 = vpop.f32.mrb[83].mxu1  ;;  %7170 = vmatmul.mubr.f32.gmra.mrb[144].mxu1 %v15098_v43  ;;  %10732 = vmatprep.mubr.f32.mxu0 %v5341_v19  ;;  %v5346_v19 = vsel %vm693_vm0, %v5344_v3, %v5345_v44  ;;  %v5352_v3 = vrot.slane %v15088_v28, 2  ;;  %v5140_v44 = vrot.slane %v15164_v41, 1 }
 0x3f5   :  { %17640 = vst [vmem:[#allocation68_spill] sm:$0xff] %v15145_v47  ;;  %7174 = vmatprep.mubr.f32.mxu1 %v5134_v8  ;;  %11355 = vmatpush1.bf16.msra.mxu0 %v11354_v2  ;;  %v15154_v21 = vpop.f32.mrb[24].mxu0  ;;  %v5349_v2 = vrot.slane %v15070_v22, 2  ;;  %v8483_v8 = vld [vmem:[#allocation8 + $0x338] sm:$0xff]  ;;  %v5139_v28 = vsel %vm468_vm1, %v5136_v5, %v5138_v49  ;;  %v8485_v5 = vld [vmem:[#allocation8 + $0x348] sm:$0xff]  ;;  %v15276_v47 = vld [vmem:[#allocation2 + $0x110] sm:$0xff] }
 0x3f6   :  { %11356 = vmatprep.subr.bf16.mxu0 %v17591_v60  ;;  %v6423_v58 = vpop.f32.mrb[25].mxu0 }
 0x3f7   :  { %10733 = vmatmul.mubr.f32.gmra.mrb[130].mxu0 %v5343_v35  ;;  %v5354_v35 = vrot.slane %v15098_v43, 2  ;;  %v15184_v58 = vld [vmem:[#allocation2 + $0xa0] sm:$0x3]  ;;  %v5357_v43 = vrot.slane %v15121_v59, 2  ;;  %v5142_v59 = vsel %vm468_vm1, %v5140_v44, %v5141_v40 }
 0x3f8   :  { %7175 = vmatmul.mubr.f32.gmra.mrb[146].mxu1 %v15100_v34  ;;  %10735 = vmatprep.mubr.f32.mxu0 %v5346_v19  ;;  %v11363_v19 = vpack.c.bf16 %v8483_v8, %v8482_v57  ;;  %v5353_v34 = vsel %vm693_vm0, %v5350_v51, %v5352_v3  ;;  %v15197_v3 = vld [vmem:[#allocation2 + $0xb0] sm:$0xff]  ;;  %v5362_v8 = vrot.slane %v15151_v24, 2 }
 0x3f9   :  { %7179 = vmatprep.mubr.f32.mxu1 %v5137_v36  ;;  %11358 = vmatpush1.bf16.msra.mxu0 %v11357_v50  ;;  %v15169_v22 = vpop.f32.mrb[26].mxu0  ;;  %v5351_v50 = vsel %vm693_vm0, %v5349_v2, %v5350_v51  ;;  %v8484_v36 = vld [vmem:[#allocation8 + $0x340] sm:$0xff]  ;;  %v4939_v51 = vld [vmem:[#allocation2 + $0xa8] sm:$0xff] }
 0x3fa   :  { %11359 = vmatprep.subr.bf16.mxu0 %v17591_v60  ;;  %v6428_v17 = vpop.f32.mrb[27].mxu0  ;;  %v11366_v57 = vpack.c.bf16 %v8485_v5, %v8484_v36  ;;  %v4941_v5 = vld [vmem:[#allocation2 + $0xb8] sm:$0x3] }
 0x3fb   :  { %v15173_v61 = vpop.f32.mrb[84].mxu1  ;;  %10736 = vmatmul.mubr.f32.gmra.mrb[132].mxu0 %v5348_v14  ;;  %v5356_v14 = vsel %vm693_vm0, %v5354_v35, %v5355_v15  ;;  %v5359_v17 = vrot.slane %v15133_v16, 2 }
 0x3fc   :  { %17641 = vst [vmem:[#allocation61_spill] sm:$0xff] %v15173_v61  ;;  %v15178_v46 = vpop.f32.mrb[85].mxu1  ;;  %7180 = vmatmul.mubr.f32.gmra.mrb[148].mxu1 %v15133_v16  ;;  %10738 = vmatprep.mubr.f32.mxu0 %v5351_v50  ;;  %v5360_v50 = vrot.slane %v15135_v6, 2  ;;  %v5358_v16 = vsel %vm693_vm0, %v5355_v15, %v5357_v43  ;;  %v5145_v15 = vrot.slane %v4939_v51, 1  ;;  %v5146_v43 = vrot.slane %v15197_v3, 1  ;;  %v15246_v61 = vld [vmem:[#allocation2 + $0xd8] sm:$0xff] }
 0x3fd   :  { %17642 = vst [vmem:[#allocation60_spill] sm:$0xff] %v15178_v46  ;;  %7184 = vmatprep.mubr.f32.mxu1 %v5139_v28  ;;  %11361 = vmatpush1.bf16.msra.mxu0 %v11360_v54  ;;  %v15187_v2 = vpop.f32.mrb[28].mxu0  ;;  %v5143_v54 = vrot.slane %v15184_v58, 1  ;;  %v8487_v28 = vld [vmem:[#allocation8 + $0x358] sm:$0xff] }
 0x3fe   :  { %11362 = vmatprep.subr.bf16.mxu0 %v17591_v60  ;;  %v6433_v49 = vpop.f32.mrb[29].mxu0 }
 0x3ff   :  { %10739 = vmatmul.mubr.f32.gmra.mrb[134].mxu0 %v5353_v34  ;;  %v5361_v49 = vsel %vm693_vm0, %v5359_v17, %v5360_v50  ;;  %v5144_v24 = vsel %vm468_vm1, %v5141_v40, %v5143_v54  ;;  %v5367_v17 = vrot.slane %v15184_v58, 2  ;;  %v5369_v54 = vrot.slane %v4939_v51, 2 }
 0x400   :  { %7185 = vmatmul.mubr.f32.gmra.mrb[150].mxu1 %v15135_v6  ;;  %10741 = vmatprep.mubr.f32.mxu0 %v5356_v14  ;;  %v8486_v6 = vld [vmem:[#allocation8 + $0x350] sm:$0xff]  ;;  %v5364_v14 = vrot.slane %v15164_v41, 2  ;;  %v5148_v58 = vrot.slane %v4941_v5, 1 }
 0x401   :  { %7189 = vmatprep.mubr.f32.mxu1 %v5142_v59  ;;  %11364 = vmatpush1.bf16.msra.mxu0 %v11363_v19  ;;  %v15200_v35 = vpop.f32.mrb[30].mxu0  ;;  %v5365_v19 = vrot.slane %v15166_v20, 2  ;;  %v11369_v59 = vpack.c.bf16 %v8487_v28, %v8486_v6  ;;  %v15223_v6 = vld [vmem:[#allocation2 + $0xc0] sm:$0xff] }
 0x402   :  { %11365 = vmatprep.subr.bf16.mxu0 %v17591_v60  ;;  %v6438_v34 = vpop.f32.mrb[31].mxu0 }
 0x403   :  { %v15204_v44 = vpop.f32.mrb[86].mxu1  ;;  %10742 = vmatmul.mubr.f32.gmra.mrb[136].mxu0 %v5358_v16  ;;  %v5363_v34 = vsel %vm693_vm0, %v5360_v50, %v5362_v8  ;;  %v5366_v40 = vsel %vm693_vm0, %v5364_v14, %v5365_v19  ;;  %v15225_v50 = vld [vmem:[#allocation2 + $0xc8] sm:$0xff]  ;;  %v5372_v14 = vrot.slane %v4941_v5, 2  ;;  %v5150_v5 = vrot.slane %v15223_v6, 1 }
 0x404   :  { %17643 = vst [vmem:[#allocation73_spill] sm:$0xff] %v15204_v44  ;;  %v15209_v36 = vpop.f32.mrb[87].mxu1  ;;  %7190 = vmatmul.mubr.f32.gmra.mrb[152].mxu1 %v15164_v41  ;;  %10744 = vmatprep.mubr.f32.mxu0 %v5361_v49  ;;  %v8489_v41 = vld [vmem:[#allocation8 + $0x368] sm:$0xff]  ;;  %v5370_v49 = vrot.slane %v15197_v3, 2 }
 0x405   :  { %17644 = vst [vmem:[#allocation18_spill] sm:$0xff] %v15209_v36  ;;  %7194 = vmatprep.mubr.f32.mxu1 %v5144_v24  ;;  %11367 = vmatpush1.bf16.msra.mxu0 %v11366_v57  ;;  %v15215_v16 = vpop.f32.mrb[32].mxu0  ;;  %v5147_v57 = vsel %vm468_vm1, %v5145_v15, %v5146_v43  ;;  %v11372_v8 = vpack.c.bf16 %v8489_v41, %v8488_v32  ;;  %v8490_v24 = vld [vmem:[#allocation8 + $0x370] sm:$0xff]  ;;  %v5374_v36 = vrot.slane %v15223_v6, 2 }
 0x406   :  { %11368 = vmatprep.subr.bf16.mxu0 %v17591_v60  ;;  %v6443_v44 = vpop.f32.mrb[33].mxu0  ;;  %v4944_v32 = vld [vmem:[#allocation2 + $0xd0] sm:$0x3] }
 0x407   :  { %10745 = vmatmul.mubr.f32.gmra.mrb[138].mxu0 %v5363_v34  ;;  %v5368_v44 = vsel %vm693_vm0, %v5365_v19, %v5367_v17  ;;  %v5149_v19 = vsel %vm468_vm1, %v5146_v43, %v5148_v58  ;;  %v5151_v17 = vrot.slane %v15225_v50, 1  ;;  %v8493_v43 = vld [vmem:[#allocation8 + $0x388] sm:$0xff] }
 0x408   :  { %7195 = vmatmul.mubr.f32.gmra.mrb[154].mxu1 %v15166_v20  ;;  %10747 = vmatprep.mubr.f32.mxu0 %v5366_v40  ;;  %v8491_v20 = vld [vmem:[#allocation8 + $0x378] sm:$0xff]  ;;  %v5371_v40 = vsel %vm693_vm0, %v5369_v54, %v5370_v49 }
 0x409   :  { %7199 = vmatprep.mubr.f32.mxu1 %v5147_v57  ;;  %11370 = vmatpush1.bf16.msra.mxu0 %v11369_v59  ;;  %v15227_v28 = vpop.f32.mrb[34].mxu0  ;;  %v5375_v59 = vrot.slane %v15225_v50, 2  ;;  %v15241_v57 = vld [vmem:[#allocation2 + $0xe0] sm:$0xff]  ;;  %v11375_v54 = vpack.c.bf16 %v8491_v20, %v8490_v24  ;;  %v5379_v24 = vrot.slane %v15246_v61, 2  ;;  %v15258_v20 = vld [vmem:[#allocation2 + $0xf0] sm:$0xff] }
 0x40a   :  { %11371 = vmatprep.subr.bf16.mxu0 %v17591_v60  ;;  %v6448_v15 = vpop.f32.mrb[35].mxu0 }
 0x40b   :  { %v15231_v34 = vpop.f32.mrb[88].mxu1  ;;  %10748 = vmatmul.mubr.f32.gmra.mrb[140].mxu0 %v5368_v44  ;;  %v5373_v15 = vsel %vm693_vm0, %v5370_v49, %v5372_v14  ;;  %v5153_v49 = vrot.slane %v4944_v32, 1  ;;  %v15255_v14 = vld [vmem:[#allocation2 + $0xf8] sm:$0xff] }
 0x40c   :  { %17645 = vst [vmem:[#allocation63_spill] sm:$0xff] %v15231_v34  ;;  %v15236_v41 = vpop.f32.mrb[89].mxu1  ;;  %7200 = vmatmul.mubr.f32.gmra.mrb[156].mxu1 %v4939_v51  ;;  %10750 = vmatprep.mubr.f32.mxu0 %v5371_v40  ;;  %v5377_v34 = vrot.slane %v4944_v32, 2  ;;  %v8492_v51 = vld [vmem:[#allocation8 + $0x380] sm:$0xff]  ;;  %v5376_v40 = vsel %vm693_vm0, %v5374_v36, %v5375_v59  ;;  %v8494_v32 = vld [vmem:[#allocation8 + $0x390] sm:$0xff] }
 0x40d   :  { %17646 = vst [vmem:[#allocation74_spill] sm:$0xff] %v15236_v41  ;;  %7204 = vmatprep.mubr.f32.mxu1 %v5149_v19  ;;  %11373 = vmatpush1.bf16.msra.mxu0 %v11372_v8  ;;  %v15243_v44 = vpop.f32.mrb[36].mxu0  ;;  %v5380_v41 = vrot.slane %v15241_v57, 2  ;;  %v15251_v19 = vld [vmem:[#allocation2 + $0xe8] sm:$0x3]  ;;  %v5152_v8 = vsel %vm468_vm1, %v5150_v5, %v5151_v17  ;;  %v8495_v5 = vld [vmem:[#allocation8 + $0x398] sm:$0xff] }
 0x40e   :  { %17647 = vst [vmem:[#allocation59_spill] sm:$0xff] %v15243_v44  ;;  %11374 = vmatprep.subr.bf16.mxu0 %v17591_v60  ;;  %v6453_v58 = vpop.f32.mrb[37].mxu0  ;;  %v5382_v46 = vrot.slane %v15251_v19, 2 }
 0x40f   :  { %10751 = vmatmul.mubr.f32.gmra.mrb[142].mxu0 %v5373_v15  ;;  %v11378_v15 = vpack.c.bf16 %v8493_v43, %v8492_v51  ;;  %v5378_v58 = vsel %vm693_vm0, %v5375_v59, %v5377_v34  ;;  %v5381_v33 = vsel %vm693_vm0, %v5379_v24, %v5380_v41  ;;  %v8518_v51 = vld [vmem:[#allocation8 + $0x450] sm:$0xff]  ;;  %v8519_v43 = vld [vmem:[#allocation8 + $0x458] sm:$0xff]  ;;  %v5154_v34 = vsel %vm468_vm1, %v5151_v17, %v5153_v49  ;;  %v15284_v17 = vld [vmem:[#allocation2 + $0x108] sm:$0xff] }
 0x410   :  { %7205 = vmatmul.mubr.f32.gmra.mrb[158].mxu1 %v15197_v3  ;;  %10753 = vmatprep.mubr.f32.mxu0 %v5376_v40  ;;  %v15264_v3 = vld [vmem:[#allocation2 + $0x100] sm:$0x3]  ;;  %v5156_v59 = vrot.slane %v15241_v57, 1  ;;  %v11381_v24 = vpack.c.bf16 %v8495_v5, %v8494_v32  ;;  %v5383_v44 = vsel %vm693_vm0, %v5380_v41, %v5382_v46  ;;  %v8497_v49 = vld [vmem:[#allocation8 + $0x3a8] sm:$0xff]  ;;  %v5390_v32 = vrot.slane %v15276_v47, 2 }
 0x411   :  { %7209 = vmatprep.mubr.f32.mxu1 %v5152_v8  ;;  %11376 = vmatpush1.bf16.msra.mxu0 %v11375_v54  ;;  %v15260_v36 = vpop.f32.mrb[38].mxu0  ;;  %v5385_v54 = vrot.slane %v15255_v14, 2  ;;  %v15289_v5 = vld [vmem:[#allocation2 + $0x118] sm:$0x3]  ;;  %v5158_v41 = vrot.slane %v15251_v19, 1 }
 0x412   :  { %17648 = vst [vmem:[#allocation62_spill] sm:$0xff] %v15260_v36  ;;  %11377 = vmatprep.subr.bf16.mxu0 %v17591_v60  ;;  %v6458_v8 = vpop.f32.mrb[39].mxu0 }
 0x413   :  { %v15267_v40 = vpop.f32.mrb[90].mxu1  ;;  %10754 = vmatmul.mubr.f32.gmra.mrb[144].mxu0 %v5378_v58  ;;  %v5384_v58 = vrot.slane %v15258_v20, 2 }
 0x414   :  { %17649 = vst [vmem:[#allocation77_spill] sm:$0xff] %v15267_v40  ;;  %v15271_v36 = vpop.f32.mrb[91].mxu1  ;;  %7210 = vmatmul.mubr.f32.gmra.mrb[160].mxu1 %v15223_v6  ;;  %10756 = vmatprep.mubr.f32.mxu0 %v5381_v33  ;;  %v11421_v40 = vpack.c.bf16 %v8519_v43, %v8518_v51  ;;  %v5387_v6 = vrot.slane %v15264_v3, 2  ;;  %v8496_v33 = vld [vmem:[#allocation8 + $0x3a0] sm:$0xff]  ;;  %v15294_v43 = vld [vmem:[#allocation2 + $0x128] sm:$0xff] }
 0x415   :  { %17650 = vst [vmem:[#allocation76_spill] sm:$0xff] %v15271_v36  ;;  %7214 = vmatprep.mubr.f32.mxu1 %v5154_v34  ;;  %11379 = vmatpush1.bf16.msra.mxu0 %v11378_v15  ;;  %v15279_v8 = vpop.f32.mrb[40].mxu0  ;;  %v5155_v36 = vrot.slane %v15246_v61, 1  ;;  %v5386_v15 = vsel %vm693_vm0, %v5384_v58, %v5385_v54  ;;  %v5389_v34 = vrot.slane %v15284_v17, 2 }
 0x416   :  { %17651 = vst [vmem:[#allocation64_spill] sm:$0xff] %v15279_v8  ;;  %11380 = vmatprep.subr.bf16.mxu0 %v17591_v60  ;;  %11422 = vmatprep.subr.bf16.mxu1 %v11421_v40  ;;  %v6463_v51 = vpop.f32.mrb[41].mxu0  ;;  %v15301_v8 = vld [vmem:[#allocation2 + $0x120] sm:$0xff] }
 0x417   :  { %10757 = vmatmul.mubr.f32.gmra.mrb[146].mxu0 %v5383_v44  ;;  %11424 = vmatpush3.bf16.msra.mxu1 %v11421_v40  ;;  %v5157_v46 = vsel %vm468_vm1, %v5155_v36, %v5156_v59  ;;  %v11384_v44 = vpack.c.bf16 %v8497_v49, %v8496_v33  ;;  %v5388_v51 = vsel %vm693_vm0, %v5385_v54, %v5387_v6  ;;  %v5392_v40 = vrot.slane %v15289_v5, 2  ;;  %v8499_v36 = vld [vmem:[#allocation8 + $0x3b8] sm:$0xff]  ;;  %v15308_v33 = vld [vmem:[#allocation2 + $0x130] sm:$0x3] }
 0x418   :  { %7215 = vmatmul.mubr.f32.gmra.mrb[162].mxu1 %v15225_v50  ;;  %10759 = vmatprep.mubr.f32.mxu0 %v5386_v15  ;;  %v8498_v50 = vld [vmem:[#allocation8 + $0x3b0] sm:$0xff]  ;;  %v5159_v54 = vsel %vm468_vm1, %v5156_v59, %v5158_v41  ;;  %v5161_v6 = vrot.slane %v15255_v14, 1  ;;  %v8500_v59 = vld [vmem:[#allocation8 + $0x3c0] sm:$0xff]  ;;  %v8501_v41 = vld [vmem:[#allocation8 + $0x3c8] sm:$0xff] }
 0x419   :  { %7219 = vmatprep.mubr.f32.mxu1 %v5157_v46  ;;  %11382 = vmatpush1.bf16.msra.mxu0 %v11381_v24  ;;  %v15297_v58 = vpop.f32.mrb[42].mxu0  ;;  %v5391_v46 = vsel %vm693_vm0, %v5389_v34, %v5390_v32  ;;  %v5395_v24 = vrot.slane %v15294_v43, 2  ;;  %v11387_v34 = vpack.c.bf16 %v8499_v36, %v8498_v50 }
 0x41a   :  { %17652 = vst [vmem:[#allocation67_spill] sm:$0xff] %v15297_v58  ;;  %11383 = vmatprep.subr.bf16.mxu0 %v17591_v60  ;;  %v6468_v15 = vpop.f32.mrb[43].mxu0  ;;  %v15315_v58 = vld [vmem:[#allocation2 + $0x140] sm:$0xff] }
 0x41b   :  { %v15304_v19 = vpop.f32.mrb[92].mxu1  ;;  %10760 = vmatmul.mubr.f32.gmra.mrb[148].mxu0 %v5388_v51  ;;  %v5394_v51 = vrot.slane %v15301_v8, 2 }
 0x41c   :  { %17653 = vst [vmem:[#allocation69_spill] sm:$0xff] %v15304_v19  ;;  %v15310_v49 = vpop.f32.mrb[93].mxu1  ;;  %7220 = vmatmul.mubr.f32.gmra.mrb[164].mxu1 %v15246_v61  ;;  %10762 = vmatprep.mubr.f32.mxu0 %v5391_v46  ;;  %v5393_v19 = vsel %vm693_vm0, %v5390_v32, %v5392_v40  ;;  %v5397_v61 = vrot.slane %v15308_v33, 2  ;;  %v15328_v46 = vadd.f32 %v14958_v9, %v14969_v56  ;;  %v5400_v32 = vrot.slane %v15315_v58, 2  ;;  %v15332_v40 = vld [vmem:[#allocation2 + $0x148] sm:$0x3] }
 0x41d   :  { %17654 = vst [vmem:[#allocation71_spill] sm:$0xff] %v15310_v49  ;;  %7224 = vmatprep.mubr.f32.mxu1 %v5159_v54  ;;  %11385 = vmatpush1.bf16.msra.mxu0 %v11384_v44  ;;  %v15318_v15 = vpop.f32.mrb[44].mxu0  ;;  %v5160_v49 = vrot.slane %v15258_v20, 1  ;;  %v5396_v50 = vsel %vm693_vm0, %v5394_v51, %v5395_v24  ;;  %v5163_v54 = vrot.slane %v15264_v3, 1  ;;  %v5399_v9 = vrot.slane %v15323_v29, 2 }
 0x41e   :  { %17655 = vst [vmem:[#allocation70_spill] sm:$0xff] %v15318_v15  ;;  %11386 = vmatprep.subr.bf16.mxu0 %v17591_v60  ;;  %17656 = vst [vmem:[#allocation72_spill] sm:$0xff] %v15328_v46  ;;  %v6473_v44 = vpop.f32.mrb[45].mxu0  ;;  %v15337_v15 = vld [vmem:[#allocation2 + $0x158] sm:$0xff]  ;;  %v11390_v56 = vpack.c.bf16 %v8501_v41, %v8500_v59  ;;  %v5398_v51 = vsel %vm693_vm0, %v5395_v24, %v5397_v61  ;;  %v15344_v46 = vld [vmem:[#allocation2 + $0x150] sm:$0xff]  ;;  %v15349_v3 = vadd.f32 %v14986_v42, %v14992_v7 }
 0x41f   :  { %10763 = vmatmul.mubr.f32.gmra.mrb[150].mxu0 %v5393_v19  ;;  %v5162_v36 = vsel %vm468_vm1, %v5160_v49, %v5161_v6  ;;  %v5402_v44 = vrot.slane %v15332_v40, 2  ;;  %v8503_v49 = vld [vmem:[#allocation8 + $0x3d8] sm:$0xff]  ;;  %v5401_v59 = vsel %vm693_vm0, %v5399_v9, %v5400_v32  ;;  %v5405_v24 = vrot.slane %v15337_v15, 2  ;;  %v15355_v61 = vld [vmem:[#allocation2 + $0x160] sm:$0x3]  ;;  %v15362_v7 = vld [vmem:[#allocation2 + $0x170] sm:$0xff] }
 0x420   :  { %7225 = vmatmul.mubr.f32.gmra.mrb[166].mxu1 %v15241_v57  ;;  %10765 = vmatprep.mubr.f32.mxu0 %v5396_v50  ;;  %v8502_v57 = vld [vmem:[#allocation8 + $0x3d0] sm:$0xff]  ;;  %17658 = vst [vmem:[#allocation22_spill] sm:$0xff] %v15349_v3  ;;  %v5166_v42 = vrot.slane %v15276_v47, 1 }
 0x421   :  { %7229 = vmatprep.mubr.f32.mxu1 %v5162_v36  ;;  %11388 = vmatpush1.bf16.msra.mxu0 %v11387_v34  ;;  %v5164_v36 = vsel %vm468_vm1, %v5161_v6, %v5163_v54  ;;  %v11393_v9 = vpack.c.bf16 %v8503_v49, %v8502_v57  ;;  %v5407_v6 = vrot.slane %v15355_v61, 2  ;;  %v15372_v54 = vld [vmem:[#allocation2 + $0x1b0] sm:$0xff] }
 0x422   :  { %v15340_v19 = vpop.f32.mrb[46].mxu0  ;;  %11389 = vmatprep.subr.bf16.mxu0 %v17591_v60 }
 0x423   :  { %17657 = vst [vmem:[#allocation75_spill] sm:$0xff] %v15340_v19  ;;  %v15351_v50 = vpop.f32.mrb[94].mxu1  ;;  %v6478_v34 = vpop.f32.mrb[47].mxu0  ;;  %10766 = vmatmul.mubr.f32.gmra.mrb[152].mxu0 %v5398_v51  ;;  %v5404_v51 = vrot.slane %v15344_v46, 2 }
 0x424   :  { %17659 = vst [vmem:[#allocation78_spill] sm:$0xff] %v15351_v50  ;;  %v15357_v41 = vpop.f32.mrb[95].mxu1  ;;  %7230 = vmatmul.mubr.f32.gmra.mrb[168].mxu1 %v15258_v20  ;;  %10768 = vmatprep.mubr.f32.mxu0 %v5401_v59  ;;  %v15365_v34 = vld [vmem:[#allocation2 + $0x168] sm:$0xff]  ;;  %v5403_v50 = vsel %vm693_vm0, %v5400_v32, %v5402_v44  ;;  %v5165_v20 = vrot.slane %v15284_v17, 1  ;;  %v8504_v59 = vld [vmem:[#allocation8 + $0x3e0] sm:$0xff]  ;;  %v5410_v32 = vrot.slane %v15362_v7, 2 }
 0x425   :  { %17660 = vst [vmem:[#allocation13_spill] sm:$0xff] %v15357_v41  ;;  %7234 = vmatprep.mubr.f32.mxu1 %v5164_v36  ;;  %11391 = vmatpush1.bf16.msra.mxu0 %v11390_v56  ;;  %v8505_v36 = vld [vmem:[#allocation8 + $0x3e8] sm:$0xff]  ;;  %v15377_v41 = vadd.f32 %v14977_v18, %v15009_v13  ;;  %v5406_v57 = vsel %vm693_vm0, %v5404_v51, %v5405_v24  ;;  %v15381_v44 = vld [vmem:[#allocation2 + $0x178] sm:$0x3]  ;;  %v5409_v19 = vrot.slane %v15365_v34, 2  ;;  %v5414_v18 = vrot.slane %v15372_v54, 2 }
 0x426   :  { %v15367_v3 = vpop.f32.mrb[48].mxu0  ;;  %11392 = vmatprep.subr.bf16.mxu0 %v17591_v60  ;;  %v5167_v49 = vsel %vm468_vm1, %v5165_v20, %v5166_v42  ;;  %v15388_v13 = vld [vmem:[#allocation2 + $0x1c0] sm:$0x3]  ;;  %v8506_v20 = vld [vmem:[#allocation8 + $0x3f0] sm:$0xff] }
 0x427   :  { %17661 = vst [vmem:[#allocation14_spill] sm:$0xff] %v15367_v3  ;;  %17662 = vst [vmem:[#allocation26_spill] sm:$0xff] %v15377_v41  ;;  %v6483_v56 = vpop.f32.mrb[49].mxu0  ;;  %10769 = vmatmul.mubr.f32.gmra.mrb[154].mxu0 %v5403_v50  ;;  %v5168_v3 = vrot.slane %v15289_v5, 1  ;;  %v11396_v50 = vpack.c.bf16 %v8505_v36, %v8504_v59  ;;  %v15397_v5 = vadd.f32 %v15003_v45, %v15026_v4  ;;  %v5417_v36 = vrot.slane %v15388_v13, 2 }
 0x428   :  { %7235 = vmatmul.mubr.f32.gmra.mrb[170].mxu1 %v15255_v14  ;;  %10771 = vmatprep.mubr.f32.mxu0 %v5406_v57  ;;  %v5408_v56 = vsel %vm693_vm0, %v5405_v24, %v5407_v6  ;;  %v5412_v14 = vrot.slane %v15381_v44, 2  ;;  %v8507_v57 = vld [vmem:[#allocation8 + $0x3f8] sm:$0xff]  ;;  %v5171_v6 = vrot.slane %v15294_v43, 1  ;;  %v5416_v45 = vsel %vm693_vm0, %v5414_v18, %v15104_v39 }
 0x429   :  { %7239 = vmatprep.mubr.f32.mxu1 %v5167_v49  ;;  %11394 = vmatpush1.bf16.msra.mxu0 %v11393_v9  ;;  %17664 = vst [vmem:[#allocation15_spill] sm:$0xff] %v15397_v5  ;;  %v5411_v9 = vsel %vm693_vm0, %v5409_v19, %v5410_v32  ;;  %v5169_v24 = vsel %vm468_vm1, %v5166_v42, %v5168_v3  ;;  %v15416_v3 = vld [vmem:[#allocation2 + $0x1c8] sm:$0xff] }
 0x42a   :  { %v15390_v51 = vpop.f32.mrb[50].mxu0  ;;  %11395 = vmatprep.subr.bf16.mxu0 %v17591_v60  ;;  %v11399_v4 = vpack.c.bf16 %v8507_v57, %v8506_v20  ;;  %v15421_v42 = vadd.f32 %v14998_v25, %v15042_v38  ;;  %v15431_v20 = vld [vmem:[#allocation2 + $0x1e8] sm:$0xff]  ;;  %v5419_v25 = vrot.slane %v15416_v3, 2 }
 0x42b   :  { %17663 = vst [vmem:[#allocation16_spill] sm:$0xff] %v15390_v51  ;;  %v15399_v49 = vpop.f32.mrb[96].mxu1  ;;  %v6488_v41 = vpop.f32.mrb[51].mxu0  ;;  %10772 = vmatmul.mubr.f32.gmra.mrb[156].mxu0 %v5408_v56  ;;  %v15408_v51 = vld [vmem:[#allocation2 + $0x1d0] sm:$0xff]  ;;  %v15507_v5 = vld [vmem:[#allocation2 + $0x228] sm:$0xff] }
 0x42c   :  { %v15402_v59 = vpop.f32.mrb[97].mxu1  ;;  %7240 = vmatmul.mubr.f32.gmra.mrb[172].mxu1 %v15284_v17  ;;  %10774 = vmatprep.mubr.f32.mxu0 %v5411_v9  ;;  %v5413_v41 = vsel %vm693_vm0, %v5410_v32, %v5412_v14  ;;  %v5170_v17 = vrot.slane %v15301_v8, 1  ;;  %17666 = vst [vmem:[#allocation20_spill] sm:$0xff] %v15421_v42  ;;  %v5420_v18 = vrot.slane %v15408_v51, 2  ;;  %v5418_v14 = vsel %vm693_vm0, %v15104_v39, %v5417_v36  ;;  %v15437_v9 = vld [vmem:[#allocation2 + $0x1e0] sm:$0xff]  ;;  %v15475_v42 = vld [vmem:[#allocation2 + $0x218] sm:$0xff] }
 0x42d   :  { %7244 = vmatprep.mubr.f32.mxu1 %v5169_v24  ;;  %11397 = vmatpush1.bf16.msra.mxu0 %v11396_v50  ;;  %v15424_v50 = vld [vmem:[#allocation2 + $0x1d8] sm:$0x3]  ;;  %v5425_v36 = vrot.slane %v15431_v20, 2 }
 0x42e   :  { %v15412_v19 = vpop.f32.mrb[52].mxu0  ;;  %11398 = vmatprep.subr.bf16.mxu0 %v17591_v60  ;;  %v5172_v32 = vsel %vm468_vm1, %v5170_v17, %v5171_v6  ;;  %v5173_v60 = vrot.slane %v15308_v33, 1  ;;  %v5422_v57 = vrot.slane %v15424_v50, 2  ;;  %v5421_v33 = vsel %vm693_vm0, %v5419_v25, %v5420_v18  ;;  %v8520_v17 = vld [vmem:[#allocation8 + $0x460] sm:$0xff] }
 0x42f   :  { %17665 = vst [vmem:[#allocation25_spill] sm:$0xff] %v15412_v19  ;;  %v6493_v56 = vpop.f32.mrb[53].mxu0  ;;  %10775 = vmatmul.mubr.f32.gmra.mrb[158].mxu0 %v5413_v41 }
 0x430   :  { %7245 = vmatmul.mubr.f32.gmra.mrb[174].mxu1 %v15276_v47  ;;  %10777 = vmatprep.mubr.f32.mxu0 %v5416_v45  ;;  %v15441_v47 = vadd.f32 %v15017_v53, %v15058_v1  ;;  %v15447_v45 = vld [vmem:[#allocation2 + $0x1f0] sm:$0x3]  ;;  %v5174_v41 = vsel %vm468_vm1, %v5171_v6, %v5173_v60  ;;  %v5176_v53 = vrot.slane %v15315_v58, 1  ;;  %v15454_v1 = vld [vmem:[#allocation2 + $0x200] sm:$0xff]  ;;  %v8521_v56 = vld [vmem:[#allocation8 + $0x468] sm:$0xff]  ;;  %v15466_v60 = vadd.f32 %v15012_v26, %v15074_v52 }
 0x431   :  { %7249 = vmatprep.mubr.f32.mxu1 %v5172_v32  ;;  %11400 = vmatpush1.bf16.msra.mxu0 %v11399_v4  ;;  %v5424_v32 = vrot.slane %v15437_v9, 2  ;;  %v15462_v6 = vld [vmem:[#allocation2 + $0x1f8] sm:$0xff] }
 0x432   :  { %v15434_v38 = vpop.f32.mrb[54].mxu0  ;;  %17668 = vst [vmem:[#allocation24_spill] sm:$0xff] %v15441_v47  ;;  %v5175_v47 = vrot.slane %v15323_v29, 1  ;;  %17670 = vst [vmem:[#allocation45_spill] sm:$0xff] %v15466_v60  ;;  %v5429_v26 = vrot.slane %v15462_v6, 2 }
 0x433   :  { %17667 = vst [vmem:[#allocation21_spill] sm:$0xff] %v15434_v38  ;;  %v15443_v24 = vpop.f32.mrb[98].mxu1  ;;  %v6498_v39 = vpop.f32.mrb[55].mxu0  ;;  %10778 = vmatmul.mubr.f32.gmra.mrb[160].mxu0 %v5418_v14  ;;  %v11425_v14 = vpack.c.bf16 %v8521_v56, %v8520_v17  ;;  %v5430_v17 = vrot.slane %v15454_v1, 2  ;;  %v15470_v56 = vld [vmem:[#allocation2 + $0x208] sm:$0x3] }
 0x434   :  { %v15449_v4 = vpop.f32.mrb[99].mxu1  ;;  %7250 = vmatmul.mubr.f32.gmra.mrb[176].mxu1 %v15301_v8  ;;  %10780 = vmatprep.mubr.f32.mxu0 %v5421_v33  ;;  %v5423_v39 = vsel %vm693_vm0, %v5420_v18, %v5422_v57  ;;  %v5427_v8 = vrot.slane %v15447_v45, 2  ;;  %v5177_v18 = vsel %vm468_vm1, %v5175_v47, %v5176_v53  ;;  %v5178_v57 = vrot.slane %v15332_v40, 1 }
 0x435   :  { %7254 = vmatprep.mubr.f32.mxu1 %v5174_v41  ;;  %v5426_v41 = vsel %vm693_vm0, %v5424_v32, %v5425_v36  ;;  %11426 = vmatprep.subr.bf16.mxu1 %v11425_v14 }
 0x436   :  { %v15457_v25 = vpop.f32.mrb[56].mxu0  ;;  %11428 = vmatpush3.bf16.msra.mxu1 %v11425_v14  ;;  %v5428_v32 = vsel %vm693_vm0, %v5425_v36, %v5427_v8  ;;  %v5435_v14 = vrot.slane %v15475_v42, 2  ;;  %v5179_v36 = vsel %vm468_vm1, %v5176_v53, %v5178_v57 }
 0x437   :  { %17669 = vst [vmem:[#allocation17_spill] sm:$0xff] %v15457_v25  ;;  %v6503_v33 = vpop.f32.mrb[57].mxu0  ;;  %10781 = vmatmul.mubr.f32.gmra.mrb[162].mxu0 %v5423_v39  ;;  %v5432_v39 = vrot.slane %v15470_v56, 2  ;;  %v15562_v25 = vld [vmem:[#allocation2 + $0x278] sm:$0xff] }
 0x438   :  { %7255 = vmatmul.mubr.f32.gmra.mrb[178].mxu1 %v15294_v43  ;;  %10783 = vmatprep.mubr.f32.mxu0 %v5426_v41  ;;  %v15482_v33 = vld [vmem:[#allocation2 + $0x210] sm:$0xff]  ;;  %v15486_v43 = vadd.f32 %v15033_v12, %v15090_v63  ;;  %v5431_v41 = vsel %vm693_vm0, %v5429_v26, %v5430_v17  ;;  %v5181_v12 = vrot.slane %v15337_v15, 1  ;;  %17680 = vst [vmem:[#allocation56_spill] sm:$0xff] %v15562_v25 }
 0x439   :  { %7259 = vmatprep.mubr.f32.mxu1 %v5177_v18  ;;  %v15492_v18 = vld [vmem:[#allocation2 + $0x220] sm:$0x3]  ;;  %v15499_v63 = vld [vmem:[#allocation2 + $0x230] sm:$0xff]  ;;  %v5434_v8 = vrot.slane %v15482_v33, 2  ;;  %v5433_v26 = vsel %vm693_vm0, %v5430_v17, %v5432_v39  ;;  %v5183_v39 = vrot.slane %v15355_v61, 1 }
 0x43a   :  { %v15478_v52 = vpop.f32.mrb[58].mxu0  ;;  %17672 = vst [vmem:[#allocation30_spill] sm:$0xff] %v15486_v43  ;;  %v5437_v43 = vrot.slane %v15492_v18, 2 }
 0x43b   :  { %17671 = vst [vmem:[#allocation28_spill] sm:$0xff] %v15478_v52  ;;  %v15488_v47 = vpop.f32.mrb[100].mxu1  ;;  %v6508_v40 = vpop.f32.mrb[59].mxu0  ;;  %10784 = vmatmul.mubr.f32.gmra.mrb[164].mxu0 %v5428_v32  ;;  %v5436_v57 = vsel %vm693_vm0, %v5434_v8, %v5435_v14  ;;  %v15550_v52 = vld [vmem:[#allocation2 + $0x258] sm:$0xff] }
 0x43c   :  { %v15494_v60 = vpop.f32.mrb[101].mxu1  ;;  %7260 = vmatmul.mubr.f32.gmra.mrb[180].mxu1 %v15323_v29  ;;  %10786 = vmatprep.mubr.f32.mxu0 %v5431_v41  ;;  %v5180_v40 = vrot.slane %v15344_v46, 1  ;;  %v15511_v29 = vadd.f32 %v15028_v31, %v15106_v30  ;;  %v5440_v41 = vrot.slane %v15499_v63, 2  ;;  %v5439_v31 = vrot.slane %v15507_v5, 2  ;;  %17677 = vst [vmem:[#allocation40_spill] sm:$0xff] %v15550_v52 }
 0x43d   :  { %7264 = vmatprep.mubr.f32.mxu1 %v5179_v36  ;;  %v15515_v36 = vld [vmem:[#allocation2 + $0x238] sm:$0x3]  ;;  %v5438_v8 = vsel %vm693_vm0, %v5435_v14, %v5437_v43  ;;  %v5184_v43 = vsel %vm468_vm1, %v5181_v12, %v5183_v39 }
 0x43e   :  { %v15502_v32 = vpop.f32.mrb[60].mxu0  ;;  %17674 = vst [vmem:[#allocation34_spill] sm:$0xff] %v15511_v29  ;;  %v5182_v17 = vsel %vm468_vm1, %v5180_v40, %v5181_v12  ;;  %v15537_v29 = vld [vmem:[#allocation2 + $0x250] sm:$0x3] }
 0x43f   :  { %17673 = vst [vmem:[#allocation32_spill] sm:$0xff] %v15502_v32  ;;  %v6513_v53 = vpop.f32.mrb[61].mxu0  ;;  %10787 = vmatmul.mubr.f32.gmra.mrb[166].mxu0 %v5433_v26  ;;  %v15520_v32 = vld [vmem:[#allocation2 + $0x248] sm:$0xff]  ;;  %v5442_v26 = vrot.slane %v15515_v36, 2 }
 0x440   :  { %7265 = vmatmul.mubr.f32.gmra.mrb[182].mxu1 %v15315_v58  ;;  %10789 = vmatprep.mubr.f32.mxu0 %v5436_v57  ;;  %v15527_v53 = vld [vmem:[#allocation2 + $0x240] sm:$0xff]  ;;  %v15531_v58 = vadd.f32 %v15049_v37, %v15123_v10  ;;  %v5441_v57 = vsel %vm693_vm0, %v5439_v31, %v5440_v41  ;;  %v5186_v37 = vrot.slane %v15362_v7, 1 }
 0x441   :  { %7269 = vmatprep.mubr.f32.mxu1 %v5182_v17  ;;  %v5445_v17 = vrot.slane %v15520_v32, 2  ;;  %v15544_v10 = vld [vmem:[#allocation2 + $0x260] sm:$0xff]  ;;  %v5444_v14 = vrot.slane %v15527_v53, 2  ;;  %v5443_v31 = vsel %vm693_vm0, %v5440_v41, %v5442_v26  ;;  %v5188_v26 = vrot.slane %v15381_v44, 1 }
 0x442   :  { %v15523_v30 = vpop.f32.mrb[62].mxu0  ;;  %17676 = vst [vmem:[#allocation36_spill] sm:$0xff] %v15531_v58  ;;  %v5447_v58 = vrot.slane %v15537_v29, 2 }
 0x443   :  { %17675 = vst [vmem:[#allocation19_spill] sm:$0xff] %v15523_v30  ;;  %v15533_v40 = vpop.f32.mrb[102].mxu1  ;;  %v6518_v61 = vpop.f32.mrb[63].mxu0  ;;  %10790 = vmatmul.mubr.f32.gmra.mrb[168].mxu0 %v5438_v8  ;;  %v5446_v39 = vsel %vm693_vm0, %v5444_v14, %v5445_v17 }
 0x444   :  { %v15539_v30 = vpop.f32.mrb[103].mxu1  ;;  %7270 = vmatmul.mubr.f32.gmra.mrb[184].mxu1 %v15344_v46  ;;  %10792 = vmatprep.mubr.f32.mxu0 %v5441_v57  ;;  %v5185_v61 = vrot.slane %v15365_v34, 1  ;;  %v5450_v57 = vrot.slane %v15544_v10, 2 }
 0x445   :  { %7274 = vmatprep.mubr.f32.mxu1 %v5184_v43  ;;  %v15557_v43 = vld [vmem:[#allocation2 + $0x268] sm:$0x3] }
 0x446   :  { %v6521_v8 = vpop.f32.mrb[64].mxu0  ;;  %17679 = vst [vmem:[#allocation55_spill] sm:$0xff] %v15557_v43  ;;  %v5187_v41 = vsel %vm468_vm1, %v5185_v61, %v5186_v37  ;;  %v5452_v14 = vrot.slane %v15557_v43, 2  ;;  %v5189_v43 = vsel %vm468_vm1, %v5186_v37, %v5188_v26  ;;  %v15600_v26 = vld [vmem:[#allocation2 + $0x298] sm:$0x3] }
 0x447   :  { %v15553_v46 = vadd.f32 %v15402_v59, %v6521_v8  ;;  %v6523_v12 = vpop.f32.mrb[65].mxu0  ;;  %10793 = vmatmul.mubr.f32.gmra.mrb[170].mxu0 %v5443_v31  ;;  %v5449_v59 = vrot.slane %v15550_v52, 2  ;;  %v5448_v31 = vsel %vm693_vm0, %v5445_v17, %v5447_v58  ;;  %v5455_v58 = vrot.slane %v15562_v25, 2  ;;  %v15580_v17 = vld [vmem:[#allocation2 + $0x280] sm:$0x3]  ;;  %v15586_v52 = vld [vmem:[#allocation2 + $0x290] sm:$0xff] }
 0x448   :  { %7275 = vmatmul.mubr.f32.gmra.mrb[186].mxu1 %v15337_v15  ;;  %10795 = vmatprep.mubr.f32.mxu0 %v5446_v39  ;;  %v15567_v12 = vld [vmem:[#allocation2 + $0x270] sm:$0xff]  ;;  %v15570_v15 = vld [vmem:[#allocation2 + $0x8] sm:$0xff]  ;;  %v5193_v25 = vrot.slane %v15388_v13, 1 }
 0x449   :  { %17678 = vst [vmem:[#allocation27_spill] sm:$0xff] %v15553_v46  ;;  %7279 = vmatprep.mubr.f32.mxu1 %v5187_v41  ;;  %v5190_v46 = vrot.slane %v15372_v54, 1  ;;  %v5191_v61 = vrot.slane %v15570_v15, 1  ;;  %v5451_v38 = vsel %vm693_vm0, %v5449_v59, %v5450_v57 }
 0x44a   :  { %v6526_v8 = vpop.f32.mrb[66].mxu0 }
 0x44b   :  { %v15574_v44 = vadd.f32 %v15399_v49, %v6526_v8  ;;  %v15576_v39 = vpop.f32.mrb[104].mxu1  ;;  %v6528_v41 = vpop.f32.mrb[67].mxu0  ;;  %10796 = vmatmul.mubr.f32.gmra.mrb[172].mxu0 %v5448_v31  ;;  %v5454_v49 = vrot.slane %v15567_v12, 2  ;;  %v5453_v31 = vsel %vm693_vm0, %v5450_v57, %v5452_v14  ;;  %v5192_v59 = vsel %vm468_vm1, %v5190_v46, %v5191_v61  ;;  %v15603_v46 = vld [vmem:[#allocation2 + $0x2a8] sm:$0xff]  ;;  %v8522_v57 = vld [vmem:[#allocation8 + $0x470] sm:$0xff]  ;;  %v8523_v14 = vld [vmem:[#allocation8 + $0x478] sm:$0xff] }
 0x44c   :  { %v15582_v19 = vpop.f32.mrb[105].mxu1  ;;  %7280 = vmatmul.mubr.f32.gmra.mrb[188].mxu1 %v15365_v34  ;;  %10798 = vmatprep.mubr.f32.mxu0 %v5451_v38  ;;  %v5457_v41 = vrot.slane %v15580_v17, 2 }
 0x44d   :  { %17681 = vst [vmem:[#allocation29_spill] sm:$0xff] %v15574_v44  ;;  %7284 = vmatprep.mubr.f32.mxu1 %v5189_v43  ;;  %v15592_v44 = vld [vmem:[#allocation2 + $0x288] sm:$0xff]  ;;  %v5456_v37 = vsel %vm693_vm0, %v5454_v49, %v5455_v58  ;;  %v5460_v43 = vrot.slane %v15586_v52, 2 }
 0x44e   :  { %v6531_v8 = vpop.f32.mrb[68].mxu0  ;;  %17682 = vst [vmem:[#allocation54_spill] sm:$0xff] %v15592_v44  ;;  %v5459_v13 = vrot.slane %v15592_v44, 2 }
 0x44f   :  { %v15596_v34 = vadd.f32 %v15449_v4, %v6531_v8  ;;  %v6533_v38 = vpop.f32.mrb[69].mxu0  ;;  %10799 = vmatmul.mubr.f32.gmra.mrb[174].mxu0 %v5453_v31  ;;  %v11429_v4 = vpack.c.bf16 %v8523_v14, %v8522_v57  ;;  %v15608_v8 = vadd.f32 %v15044_v62, %v15138_v11  ;;  %v5458_v31 = vsel %vm693_vm0, %v5455_v58, %v5457_v41  ;;  %v15622_v11 = vld [vmem:[#allocation2 + $0x2b0] sm:$0x3] }
 0x450   :  { %7285 = vmatmul.mubr.f32.gmra.mrb[190].mxu1 %v15362_v7  ;;  %10801 = vmatprep.mubr.f32.mxu0 %v5456_v37  ;;  %v5194_v38 = vsel %vm468_vm1, %v5191_v61, %v5193_v25  ;;  %v5462_v7 = vrot.slane %v15600_v26, 2  ;;  %v15613_v37 = vld [vmem:[#allocation2 + $0x2a0] sm:$0xff]  ;;  %v5461_v57 = vsel %vm693_vm0, %v5459_v13, %v5460_v43  ;;  %v5465_v62 = vrot.slane %v15603_v46, 2 }
 0x451   :  { %17683 = vst [vmem:[#allocation49_spill] sm:$0xff] %v15596_v34  ;;  %7289 = vmatprep.mubr.f32.mxu1 %v5192_v59  ;;  %11430 = vmatprep.subr.bf16.mxu1 %v11429_v4  ;;  %v5196_v25 = vrot.slane %v15408_v51, 1  ;;  %v5464_v61 = vrot.slane %v15613_v37, 2  ;;  %v5195_v13 = vrot.slane %v15416_v3, 1 }
 0x452   :  { %v6536_v49 = vpop.f32.mrb[70].mxu0  ;;  %11432 = vmatpush3.bf16.msra.mxu1 %v11429_v4  ;;  %v5463_v14 = vsel %vm693_vm0, %v5460_v43, %v5462_v7  ;;  %v5198_v43 = vrot.slane %v15424_v50, 1  ;;  %v15650_v7 = vld [vmem:[#allocation2 + $0x2d8] sm:$0xff] }
 0x453   :  { %v15616_v34 = vadd.f32 %v15443_v24, %v6536_v49  ;;  %v15618_v59 = vpop.f32.mrb[106].mxu1  ;;  %v6538_v44 = vpop.f32.mrb[71].mxu0  ;;  %10802 = vmatmul.mubr.f32.gmra.mrb[176].mxu0 %v5458_v31  ;;  %v15628_v24 = vld [vmem:[#allocation2 + $0x2c0] sm:$0xff]  ;;  %v15638_v49 = vld [vmem:[#allocation2 + $0x2b8] sm:$0xff]  ;;  %v5466_v4 = vsel %vm693_vm0, %v5464_v61, %v5465_v62 }
 0x454   :  { %v15624_v58 = vpop.f32.mrb[107].mxu1  ;;  %7290 = vmatmul.mubr.f32.gmra.mrb[192].mxu1 %v15372_v54  ;;  %10804 = vmatprep.mubr.f32.mxu0 %v5461_v57  ;;  %v15633_v44 = vadd.f32 %v15065_v55, %v15154_v21  ;;  %v5467_v54 = vrot.slane %v15622_v11, 2  ;;  %v5470_v57 = vrot.slane %v15628_v24, 2  ;;  %v15645_v55 = vld [vmem:[#allocation2 + $0x2c8] sm:$0x3]  ;;  %v5197_v21 = vsel %vm468_vm1, %v5195_v13, %v5196_v25 }
 0x455   :  { %17684 = vst [vmem:[#allocation47_spill] sm:$0xff] %v15616_v34  ;;  %7294 = vmatprep.mubr.f32.mxu1 %v5194_v38 }
 0x456   :  { %v6541_v41 = vpop.f32.mrb[72].mxu0 }
 0x457   :  { %v15641_v31 = vadd.f32 %v15494_v60, %v6541_v41  ;;  %v6543_v38 = vpop.f32.mrb[73].mxu0  ;;  %10805 = vmatmul.mubr.f32.gmra.mrb[178].mxu0 %v5463_v14  ;;  %v5469_v60 = vrot.slane %v15638_v49, 2  ;;  %v15655_v41 = vadd.f32 %v15060_v48, %v15169_v22  ;;  %v5468_v14 = vsel %vm693_vm0, %v5465_v62, %v5467_v54  ;;  %v15668_v48 = vld [vmem:[#allocation2 + $0x2e0] sm:$0x3]  ;;  %v15675_v54 = vld [vmem:[#allocation2 + $0x2f0] sm:$0xff] }
 0x458   :  { %7295 = vmatmul.mubr.f32.gmra.mrb[194].mxu1 %v15570_v15  ;;  %10807 = vmatprep.mubr.f32.mxu0 %v5466_v4  ;;  %v5472_v38 = vrot.slane %v15645_v55, 2  ;;  %v15659_v15 = vld [vmem:[#allocation2 + $0x2d0] sm:$0xff]  ;;  %v5199_v62 = vsel %vm468_vm1, %v5196_v25, %v5198_v43  ;;  %v15685_v25 = vld [vmem:[#allocation2 + $0x2e8] sm:$0xff]  ;;  %v5480_v34 = vrot.slane %v15675_v54, 2 }
 0x459   :  { %17685 = vst [vmem:[#allocation38_spill] sm:$0xff] %v15641_v31  ;;  %7299 = vmatprep.mubr.f32.mxu1 %v5197_v21  ;;  %17686 = vst [vmem:[#allocation23_spill] sm:$0xff] %v15655_v41  ;;  %v5471_v21 = vsel %vm693_vm0, %v5469_v60, %v5470_v57  ;;  %v5475_v31 = vrot.slane %v15650_v7, 2  ;;  %v15680_v60 = vadd.f32 %v15081_v0, %v15187_v2  ;;  %v15692_v0 = vld [vmem:[#allocation2 + $0x2f8] sm:$0x3] }
 0x45a   :  { %v6546_v61 = vpop.f32.mrb[74].mxu0 }
 0x45b   :  { %v15662_v13 = vadd.f32 %v15488_v47, %v6546_v61  ;;  %v15664_v50 = vpop.f32.mrb[108].mxu1  ;;  %v6548_v4 = vpop.f32.mrb[75].mxu0  ;;  %10808 = vmatmul.mubr.f32.gmra.mrb[180].mxu0 %v5468_v14  ;;  %v5201_v47 = vrot.slane %v15431_v20, 1  ;;  %v5474_v61 = vrot.slane %v15659_v15, 2  ;;  %17688 = vst [vmem:[#allocation33_spill] sm:$0xff] %v15680_v60  ;;  %v5208_v60 = vrot.slane %v15470_v56, 1 }
 0x45c   :  { %v15670_v22 = vpop.f32.mrb[109].mxu1  ;;  %7300 = vmatmul.mubr.f32.gmra.mrb[196].mxu1 %v15416_v3  ;;  %10810 = vmatprep.mubr.f32.mxu0 %v5471_v21  ;;  %v5473_v4 = vsel %vm693_vm0, %v5470_v57, %v5472_v38  ;;  %v5477_v3 = vrot.slane %v15668_v48, 2  ;;  %v5203_v57 = vrot.slane %v15447_v45, 1  ;;  %v15697_v38 = vld [vmem:[#allocation2 + $0x308] sm:$0xff] }
 0x45d   :  { %17687 = vst [vmem:[#allocation50_spill] sm:$0xff] %v15662_v13  ;;  %7304 = vmatprep.mubr.f32.mxu1 %v5199_v62  ;;  %v5200_v13 = vrot.slane %v15437_v9, 1  ;;  %v5476_v62 = vsel %vm693_vm0, %v5474_v61, %v5475_v31 }
 0x45e   :  { %v6551_v14 = vpop.f32.mrb[76].mxu0 }
 0x45f   :  { %v15688_v43 = vadd.f32 %v15539_v30, %v6551_v14  ;;  %v6553_v21 = vpop.f32.mrb[77].mxu0  ;;  %10811 = vmatmul.mubr.f32.gmra.mrb[182].mxu0 %v5473_v4  ;;  %v5202_v2 = vsel %vm468_vm1, %v5200_v13, %v5201_v47  ;;  %v5479_v30 = vrot.slane %v15685_v25, 2  ;;  %v15702_v14 = vadd.f32 %v15076_v23, %v15200_v35  ;;  %v15715_v23 = vld [vmem:[#allocation2 + $0x310] sm:$0x3] }
 0x460   :  { %7305 = vmatmul.mubr.f32.gmra.mrb[198].mxu1 %v15408_v51  ;;  %10813 = vmatprep.mubr.f32.mxu0 %v5476_v62  ;;  %v5478_v4 = vsel %vm693_vm0, %v5475_v31, %v5477_v3  ;;  %v5482_v21 = vrot.slane %v15692_v0, 2  ;;  %v15706_v51 = vld [vmem:[#allocation2 + $0x300] sm:$0xff]  ;;  %v5204_v31 = vsel %vm468_vm1, %v5201_v47, %v5203_v57 }
 0x461   :  { %17689 = vst [vmem:[#allocation44_spill] sm:$0xff] %v15688_v43  ;;  %7309 = vmatprep.mubr.f32.mxu1 %v5202_v2  ;;  %17690 = vst [vmem:[#allocation31_spill] sm:$0xff] %v15702_v14  ;;  %v5481_v2 = vsel %vm693_vm0, %v5479_v30, %v5480_v34  ;;  %v5485_v43 = vrot.slane %v15697_v38, 2  ;;  %v15722_v3 = vld [vmem:[#allocation2 + $0x320] sm:$0xff]  ;;  %v15728_v14 = vld [vmem:[#allocation2 + $0x318] sm:$0xff] }
 0x462   :  { %v6556_v61 = vpop.f32.mrb[78].mxu0  ;;  %v5483_v30 = vsel %vm693_vm0, %v5480_v34, %v5482_v21  ;;  %v15739_v34 = vld [vmem:[#allocation2 + $0x328] sm:$0x3] }
 0x463   :  { %v15709_v13 = vadd.f32 %v15533_v40, %v6556_v61  ;;  %v15711_v45 = vpop.f32.mrb[110].mxu1  ;;  %v6558_v62 = vpop.f32.mrb[79].mxu0  ;;  %10814 = vmatmul.mubr.f32.gmra.mrb[184].mxu0 %v5478_v4  ;;  %v5206_v40 = vrot.slane %v15454_v1, 1  ;;  %v5484_v61 = vrot.slane %v15706_v51, 2 }
 0x464   :  { %v15717_v35 = vpop.f32.mrb[111].mxu1  ;;  %7310 = vmatmul.mubr.f32.gmra.mrb[200].mxu1 %v15437_v9  ;;  %10816 = vmatprep.mubr.f32.mxu0 %v5481_v2  ;;  %v5205_v62 = vrot.slane %v15462_v6, 1  ;;  %v15732_v9 = vadd.f32 %v15113_v27, %v15215_v16  ;;  %v15744_v27 = vld [vmem:[#allocation2 + $0x30] sm:$0xff]  ;;  %v15746_v16 = vld [vmem:[#allocation2 + $0x38] sm:$0xff] }
 0x465   :  { %17691 = vst [vmem:[#allocation39_spill] sm:$0xff] %v15709_v13  ;;  %7314 = vmatprep.mubr.f32.mxu1 %v5204_v31  ;;  %v5487_v13 = vrot.slane %v15715_v23, 2  ;;  %v5486_v2 = vsel %vm693_vm0, %v5484_v61, %v5485_v43  ;;  %v5490_v31 = vrot.slane %v15722_v3, 2 }
 0x466   :  { %v6561_v4 = vpop.f32.mrb[80].mxu0  ;;  %17692 = vst [vmem:[#allocation52_spill] sm:$0xff] %v15732_v9  ;;  %v5207_v21 = vsel %vm468_vm1, %v5205_v62, %v5206_v40  ;;  %v8028_v9 = vrot.slane %v15746_v16, 1 }
 0x467   :  { %v15735_v47 = vadd.f32 %v15582_v19, %v6561_v4  ;;  %v6563_v57 = vpop.f32.mrb[81].mxu0  ;;  %10817 = vmatmul.mubr.f32.gmra.mrb[186].mxu0 %v5483_v30  ;;  %v5489_v19 = vrot.slane %v15728_v14, 2  ;;  %v5488_v61 = vsel %vm693_vm0, %v5485_v43, %v5487_v13  ;;  %v5492_v30 = vrot.slane %v15739_v34, 2  ;;  %v15768_v13 = vld [vmem:[#allocation2 + $0x40] sm:$0x3] }
 0x468   :  { %7315 = vmatmul.mubr.f32.gmra.mrb[202].mxu1 %v15431_v20  ;;  %10819 = vmatprep.mubr.f32.mxu0 %v5486_v2  ;;  %v17694_v57 = vld [vmem:[#allocation57_spill] sm:$0xff] }
 0x469   :  { %17693 = vst [vmem:[#allocation37_spill] sm:$0xff] %v15735_v47  ;;  %7319 = vmatprep.mubr.f32.mxu1 %v5207_v21  ;;  %v15753_v20 = vadd.f32 %v17694_v57, %v15227_v28  ;;  %v5491_v21 = vsel %vm693_vm0, %v5489_v19, %v5490_v31  ;;  %v8027_v47 = vrot.slane %v15744_v27, 1  ;;  %v5209_v28 = vsel %vm468_vm1, %v5206_v40, %v5208_v60  ;;  %v17697_v57 = vld [vmem:[#allocation59_spill] sm:$0xff] }
 0x46a   :  { %v6566_v4 = vpop.f32.mrb[82].mxu0  ;;  %v5210_v19 = vrot.slane %v15482_v33, 1  ;;  %v8030_v40 = vrot.slane %v15768_v13, 1 }
 0x46b   :  { %17695 = vst [vmem:[#allocation53_spill] sm:$0xff] %v15753_v20  ;;  %v15756_v62 = vadd.f32 %v15576_v39, %v6566_v4  ;;  %v15758_v56 = vpop.f32.mrb[112].mxu1  ;;  %v6568_v2 = vpop.f32.mrb[83].mxu0  ;;  %10820 = vmatmul.mubr.f32.gmra.mrb[188].mxu0 %v5488_v61  ;;  %v5211_v39 = vrot.slane %v15475_v42, 1  ;;  %v5493_v61 = vsel %vm693_vm0, %v5490_v31, %v5492_v30  ;;  %v8029_v60 = vsel %vm468_vm1, %v8027_v47, %v8028_v9  ;;  %v15784_v30 = vld [vmem:[#allocation2 + $0x48] sm:$0xff] }
 0x46c   :  { %v15763_v43 = vpop.f32.mrb[113].mxu1  ;;  %7320 = vmatmul.mubr.f32.gmra.mrb[204].mxu1 %v15462_v6  ;;  %10822 = vmatprep.mubr.f32.mxu0 %v5491_v21  ;;  %v17698_v2 = vld [vmem:[#allocation68_spill] sm:$0xff]  ;;  %v5213_v31 = vrot.slane %v15492_v18, 1  ;;  %v8031_v18 = vsel %vm468_vm1, %v8028_v9, %v8030_v40 }
 0x46d   :  { %17696 = vst [vmem:[#allocation42_spill] sm:$0xff] %v15756_v62  ;;  %7324 = vmatprep.mubr.f32.mxu1 %v5209_v28  ;;  %v15774_v62 = vadd.f32 %v17698_v2, %v17697_v57  ;;  %v5212_v21 = vsel %vm468_vm1, %v5210_v19, %v5211_v39  ;;  %v15786_v28 = vld [vmem:[#allocation2 + $0x50] sm:$0xff]  ;;  %v17702_v57 = vld [vmem:[#allocation66_spill] sm:$0xff]  ;;  %v8032_v19 = vrot.slane %v15784_v30, 1  ;;  %v17705_v9 = vld [vmem:[#allocation64_spill] sm:$0xff] }
 0x46e   :  { %v6571_v4 = vpop.f32.mrb[84].mxu0  ;;  %v17706_v40 = vld [vmem:[#allocation60_spill] sm:$0xff] }
 0x46f   :  { %17699 = vst [vmem:[#allocation48_spill] sm:$0xff] %v15774_v62  ;;  %v15777_v20 = vadd.f32 %v15624_v58, %v6571_v4  ;;  %v6573_v6 = vpop.f32.mrb[85].mxu0  ;;  %10823 = vmatmul.mubr.f32.gmra.mrb[190].mxu0 %v5493_v61  ;;  %v17701_v4 = vld [vmem:[#allocation62_spill] sm:$0xff]  ;;  %v15898_v62 = vld [vmem:[#allocation2 + $0x90] sm:$0xff] }
 0x470   :  { %7325 = vmatmul.mubr.f32.gmra.mrb[206].mxu1 %v15454_v1  ;;  %8588 = vmatprep.mubr.f32.mxu0 %v8029_v60  ;;  %v15790_v61 = vadd.f32 %v17702_v57, %v17701_v4  ;;  %v8033_v6 = vrot.slane %v15786_v28, 1  ;;  %v5215_v57 = vrot.slane %v15507_v5, 1 }
 0x471   :  { %17700 = vst [vmem:[#allocation35_spill] sm:$0xff] %v15777_v20  ;;  %7329 = vmatprep.mubr.f32.mxu1 %v5212_v21  ;;  %v5214_v21 = vsel %vm468_vm1, %v5211_v39, %v5213_v31 }
 0x472   :  { %v6576_v58 = vpop.f32.mrb[86].mxu0  ;;  %17703 = vst [vmem:[#allocation65_spill] sm:$0xff] %v15790_v61 }
 0x473   :  { %v15793_v47 = vadd.f32 %v15618_v59, %v6576_v58  ;;  %v15795_v2 = vpop.f32.mrb[114].mxu1  ;;  %v6578_v1 = vpop.f32.mrb[87].mxu0  ;;  %8589 = vmatmul.mubr.f32.vlgmr.msra.gmra.mrb[192].mxu0 %v15744_v27  ;;  %v5216_v59 = vrot.slane %v15499_v63, 1  ;;  %v15806_v58 = vld [vmem:[#allocation2 + $0x58] sm:$0x3] }
 0x474   :  { %v15801_v60 = vpop.f32.mrb[115].mxu1  ;;  %7330 = vmatmul.mubr.f32.gmra.mrb[208].mxu1 %v15482_v33  ;;  %8593 = vmatprep.mubr.f32.mxu0 %v8031_v18  ;;  %v15811_v1 = vadd.f32 %v17706_v40, %v17705_v9  ;;  %v8034_v33 = vsel %vm468_vm1, %v8032_v19, %v8033_v6  ;;  %v8035_v39 = vrot.slane %v15806_v58, 1  ;;  %v5218_v18 = vrot.slane %v15515_v36, 1  ;;  %v15824_v9 = vld [vmem:[#allocation2 + $0x68] sm:$0xff] }
 0x475   :  { %17704 = vst [vmem:[#allocation58_spill] sm:$0xff] %v15793_v47  ;;  %7334 = vmatprep.mubr.f32.mxu1 %v5214_v21  ;;  %v5217_v31 = vsel %vm468_vm1, %v5215_v57, %v5216_v59  ;;  %v15822_v21 = vld [vmem:[#allocation2 + $0x60] sm:$0xff] }
 0x476   :  { %v6581_v4 = vpop.f32.mrb[88].mxu0  ;;  %17707 = vst [vmem:[#allocation46_spill] sm:$0xff] %v15811_v1  ;;  %v8036_v36 = vsel %vm468_vm1, %v8033_v6, %v8035_v39  ;;  %v8037_v57 = vrot.slane %v15822_v21, 1  ;;  %v17713_v6 = vld [vmem:[#allocation70_spill] sm:$0xff] }
 0x477   :  { %v15814_v47 = vadd.f32 %v15670_v22, %v6581_v4  ;;  %v6583_v20 = vpop.f32.mrb[89].mxu0  ;;  %8594 = vmatmul.mubr.f32.gmra.mrb[194].mxu0 %v15746_v16  ;;  %v17710_v4 = vld [vmem:[#allocation61_spill] sm:$0xff]  ;;  %v17714_v39 = vld [vmem:[#allocation18_spill] sm:$0xff] }
 0x478   :  { %7335 = vmatmul.mubr.f32.gmra.mrb[210].mxu1 %v15475_v42  ;;  %8598 = vmatprep.mubr.f32.mxu0 %v8034_v33  ;;  %v17709_v20 = vld [vmem:[#allocation67_spill] sm:$0xff]  ;;  %v8038_v33 = vrot.slane %v15824_v9, 1 }
 0x479   :  { %17708 = vst [vmem:[#allocation41_spill] sm:$0xff] %v15814_v47  ;;  %7339 = vmatprep.mubr.f32.mxu1 %v5217_v31  ;;  %v15828_v40 = vadd.f32 %v17710_v4, %v17709_v20  ;;  %v5219_v20 = vsel %vm468_vm1, %v5216_v59, %v5218_v18 }
 0x47a   :  { %v6586_v22 = vpop.f32.mrb[90].mxu0 }
 0x47b   :  { %17711 = vst [vmem:[#allocation43_spill] sm:$0xff] %v15828_v40  ;;  %v15831_v19 = vadd.f32 %v15664_v50, %v6586_v22  ;;  %v15833_v47 = vpop.f32.mrb[116].mxu1  ;;  %v6588_v42 = vpop.f32.mrb[91].mxu0  ;;  %8599 = vmatmul.mubr.f32.gmra.mrb[196].mxu0 %v15784_v30  ;;  %v5221_v50 = vrot.slane %v15520_v32, 1  ;;  %v15844_v22 = vld [vmem:[#allocation2 + $0x70] sm:$0x3] }
 0x47c   :  { %v15839_v31 = vpop.f32.mrb[117].mxu1  ;;  %7340 = vmatmul.mubr.f32.gmra.mrb[212].mxu1 %v15507_v5  ;;  %8603 = vmatprep.mubr.f32.mxu0 %v8036_v36  ;;  %v5220_v42 = vrot.slane %v15527_v53, 1  ;;  %v8039_v5 = vsel %vm468_vm1, %v8037_v57, %v8038_v33  ;;  %v8040_v59 = vrot.slane %v15844_v22, 1  ;;  %v5223_v36 = vrot.slane %v15537_v29, 1 }
 0x47d   :  { %17712 = vst [vmem:[#allocation57_spill] sm:$0xff] %v15831_v19  ;;  %7344 = vmatprep.mubr.f32.mxu1 %v5219_v20  ;;  %v15849_v19 = vadd.f32 %v17714_v39, %v17713_v6  ;;  %v15860_v20 = vld [vmem:[#allocation2 + $0x78] sm:$0xff]  ;;  %v15862_v6 = vld [vmem:[#allocation2 + $0x80] sm:$0xff] }
 0x47e   :  { %v6591_v4 = vpop.f32.mrb[92].mxu0  ;;  %v5222_v18 = vsel %vm468_vm1, %v5220_v42, %v5221_v50  ;;  %v8041_v29 = vsel %vm468_vm1, %v8038_v33, %v8040_v59  ;;  %v8042_v42 = vrot.slane %v15860_v20, 1  ;;  %v17722_v33 = vld [vmem:[#allocation14_spill] sm:$0xff] }
 0x47f   :  { %17715 = vst [vmem:[#allocation59_spill] sm:$0xff] %v15849_v19  ;;  %v15852_v40 = vadd.f32 %v15717_v35, %v6591_v4  ;;  %v6593_v1 = vpop.f32.mrb[93].mxu0  ;;  %8604 = vmatmul.mubr.f32.gmra.mrb[198].mxu0 %v15786_v28  ;;  %v17718_v4 = vld [vmem:[#allocation73_spill] sm:$0xff]  ;;  %v17723_v59 = vld [vmem:[#allocation74_spill] sm:$0xff] }
 0x480   :  { %7345 = vmatmul.mubr.f32.gmra.mrb[214].mxu1 %v15499_v63  ;;  %8608 = vmatprep.mubr.f32.mxu0 %v8039_v5  ;;  %v17717_v1 = vld [vmem:[#allocation75_spill] sm:$0xff]  ;;  %v8043_v5 = vrot.slane %v15862_v6, 1 }
 0x481   :  { %17716 = vst [vmem:[#allocation68_spill] sm:$0xff] %v15852_v40  ;;  %7349 = vmatprep.mubr.f32.mxu1 %v5222_v18  ;;  %v15866_v39 = vadd.f32 %v17718_v4, %v17717_v1  ;;  %v5224_v1 = vsel %vm468_vm1, %v5221_v50, %v5223_v36 }
 0x482   :  { %v6596_v35 = vpop.f32.mrb[94].mxu0 }
 0x483   :  { %17719 = vst [vmem:[#allocation62_spill] sm:$0xff] %v15866_v39  ;;  %v15869_v57 = vadd.f32 %v15711_v45, %v6596_v35  ;;  %v15871_v40 = vpop.f32.mrb[118].mxu1  ;;  %v6598_v63 = vpop.f32.mrb[95].mxu0  ;;  %8609 = vmatmul.mubr.f32.gmra.mrb[200].mxu0 %v15822_v21  ;;  %v5226_v45 = vrot.slane %v15544_v10, 1  ;;  %v15882_v35 = vld [vmem:[#allocation2 + $0x88] sm:$0x3]  ;;  %v15887_v39 = vadd.f32 %v17723_v59, %v17722_v33 }
 0x484   :  { %v15877_v18 = vpop.f32.mrb[119].mxu1  ;;  %7350 = vmatmul.mubr.f32.gmra.mrb[216].mxu1 %v15527_v53  ;;  %8613 = vmatprep.mubr.f32.mxu0 %v8041_v29  ;;  %v17721_v63 = vld [vmem:[#allocation40_spill] sm:$0xff]  ;;  %v8044_v53 = vsel %vm468_vm1, %v8042_v42, %v8043_v5  ;;  %v8045_v50 = vrot.slane %v15882_v35, 1  ;;  %v17726_v29 = vld [vmem:[#allocation55_spill] sm:$0xff] }
 0x485   :  { %17720 = vst [vmem:[#allocation66_spill] sm:$0xff] %v15869_v57  ;;  %7354 = vmatprep.mubr.f32.mxu1 %v5224_v1  ;;  %v5225_v57 = vrot.slane %v17721_v63, 1  ;;  %17724 = vst [vmem:[#allocation64_spill] sm:$0xff] %v15887_v39  ;;  %v5228_v1 = vrot.slane %v17726_v29, 1  ;;  %v15900_v33 = vld [vmem:[#allocation2 + $0x98] sm:$0xff] }
 0x486   :  { %v6601_v4 = vpop.f32.mrb[96].mxu0  ;;  %v8048_v29 = vrot.slane %v15900_v33, 1 }
 0x487   :  { %v15890_v19 = vadd.f32 %v15763_v43, %v6601_v4  ;;  %v6603_v61 = vpop.f32.mrb[97].mxu0  ;;  %8614 = vmatmul.mubr.f32.gmra.mrb[202].mxu0 %v15824_v9  ;;  %v5227_v36 = vsel %vm468_vm1, %v5225_v57, %v5226_v45  ;;  %v17728_v4 = vld [vmem:[#allocation63_spill] sm:$0xff]  ;;  %v8046_v57 = vsel %vm468_vm1, %v8043_v5, %v8045_v50  ;;  %v17733_v5 = vld [vmem:[#allocation25_spill] sm:$0xff]  ;;  %v17734_v50 = vld [vmem:[#allocation76_spill] sm:$0xff] }
 0x488   :  { %7355 = vmatmul.mubr.f32.gmra.mrb[218].mxu1 %v15520_v32  ;;  %8618 = vmatprep.mubr.f32.mxu0 %v8044_v53  ;;  %v17727_v61 = vld [vmem:[#allocation16_spill] sm:$0xff]  ;;  %v8047_v53 = vrot.slane %v15898_v62, 1 }
 0x489   :  { %17725 = vst [vmem:[#allocation60_spill] sm:$0xff] %v15890_v19  ;;  %7359 = vmatprep.mubr.f32.mxu1 %v5227_v36  ;;  %v15904_v59 = vadd.f32 %v17728_v4, %v17727_v61  ;;  %v5229_v61 = vsel %vm468_vm1, %v5226_v45, %v5228_v1  ;;  %v15920_v4 = vld [vmem:[#allocation2 + $0xa0] sm:$0x3] }
 0x48a   :  { %v6606_v43 = vpop.f32.mrb[98].mxu0  ;;  %17732 = vst [vmem:[#allocation70_spill] sm:$0xff] %v15920_v4  ;;  %v8049_v45 = vsel %vm468_vm1, %v8047_v53, %v8048_v29 }
 0x48b   :  { %17729 = vst [vmem:[#allocation67_spill] sm:$0xff] %v15904_v59  ;;  %v15907_v42 = vadd.f32 %v15758_v56, %v6606_v43  ;;  %v15909_v19 = vpop.f32.mrb[120].mxu1  ;;  %v6608_v32 = vpop.f32.mrb[99].mxu0  ;;  %8619 = vmatmul.mubr.f32.gmra.mrb[204].mxu0 %v15860_v20  ;;  %v17731_v56 = vld [vmem:[#allocation56_spill] sm:$0xff]  ;;  %v15925_v59 = vadd.f32 %v17734_v50, %v17733_v5  ;;  %v15938_v5 = vld [vmem:[#allocation2 + $0xb0] sm:$0xff] }
 0x48c   :  { %v15915_v36 = vpop.f32.mrb[121].mxu1  ;;  %7360 = vmatmul.mubr.f32.gmra.mrb[220].mxu1 %v17721_v63  ;;  %8623 = vmatprep.mubr.f32.mxu0 %v8046_v57  ;;  %v5231_v43 = vrot.slane %v17731_v56, 1  ;;  %v8050_v63 = vrot.slane %v15920_v4, 1  ;;  %v5233_v57 = vrot.slane %v15580_v17, 1 }
 0x48d   :  { %17730 = vst [vmem:[#allocation61_spill] sm:$0xff] %v15907_v42  ;;  %7364 = vmatprep.mubr.f32.mxu1 %v5229_v61  ;;  %v5230_v42 = vrot.slane %v15567_v12, 1  ;;  %17735 = vst [vmem:[#allocation18_spill] sm:$0xff] %v15925_v59  ;;  %v15936_v61 = vld [vmem:[#allocation2 + $0xa8] sm:$0xff] }
 0x48e   :  { %v6611_v32 = vpop.f32.mrb[100].mxu0  ;;  %v8051_v17 = vsel %vm468_vm1, %v8048_v29, %v8050_v63  ;;  %v17742_v29 = vld [vmem:[#allocation17_spill] sm:$0xff]  ;;  %v17743_v63 = vld [vmem:[#allocation71_spill] sm:$0xff] }
 0x48f   :  { %v15928_v39 = vadd.f32 %v15801_v60, %v6611_v32  ;;  %v6613_v41 = vpop.f32.mrb[101].mxu0  ;;  %8624 = vmatmul.mubr.f32.gmra.mrb[206].mxu0 %v15862_v6  ;;  %v5232_v1 = vsel %vm468_vm1, %v5230_v42, %v5231_v43  ;;  %v17738_v32 = vld [vmem:[#allocation77_spill] sm:$0xff]  ;;  %v8052_v42 = vrot.slane %v15936_v61, 1 }
 0x490   :  { %7365 = vmatmul.mubr.f32.gmra.mrb[222].mxu1 %v15544_v10  ;;  %8628 = vmatprep.mubr.f32.mxu0 %v8049_v45  ;;  %v17737_v41 = vld [vmem:[#allocation21_spill] sm:$0xff]  ;;  %v8053_v45 = vrot.slane %v15938_v5, 1 }
 0x491   :  { %17736 = vst [vmem:[#allocation75_spill] sm:$0xff] %v15928_v39  ;;  %7369 = vmatprep.mubr.f32.mxu1 %v5232_v1  ;;  %v15942_v50 = vadd.f32 %v17738_v32, %v17737_v41  ;;  %v5234_v41 = vsel %vm468_vm1, %v5231_v43, %v5233_v57 }
 0x492   :  { %v6616_v60 = vpop.f32.mrb[102].mxu0 }
 0x493   :  { %17739 = vst [vmem:[#allocation73_spill] sm:$0xff] %v15942_v50  ;;  %v15945_v53 = vadd.f32 %v15795_v2, %v6616_v60  ;;  %v15947_v39 = vpop.f32.mrb[122].mxu1  ;;  %v6618_v10 = vpop.f32.mrb[103].mxu0  ;;  %8629 = vmatmul.mubr.f32.gmra.mrb[208].mxu0 %v15898_v62  ;;  %v5236_v2 = vrot.slane %v15586_v52, 1  ;;  %v15958_v60 = vld [vmem:[#allocation2 + $0xb8] sm:$0x3]  ;;  %v15963_v50 = vadd.f32 %v17743_v63, %v17742_v29 }
 0x494   :  { %v15953_v1 = vpop.f32.mrb[123].mxu1  ;;  %7370 = vmatmul.mubr.f32.gmra.mrb[224].mxu1 %v15567_v12  ;;  %8633 = vmatprep.mubr.f32.mxu0 %v8051_v17  ;;  %v17741_v10 = vld [vmem:[#allocation54_spill] sm:$0xff]  ;;  %v8054_v12 = vsel %vm468_vm1, %v8052_v42, %v8053_v45  ;;  %v8055_v43 = vrot.slane %v15958_v60, 1  ;;  %v5238_v17 = vrot.slane %v15600_v26, 1 }
 0x495   :  { %17740 = vst [vmem:[#allocation40_spill] sm:$0xff] %v15945_v53  ;;  %7374 = vmatprep.mubr.f32.mxu1 %v5234_v41  ;;  %v5235_v53 = vrot.slane %v17741_v10, 1  ;;  %17744 = vst [vmem:[#allocation14_spill] sm:$0xff] %v15963_v50  ;;  %v15974_v41 = vld [vmem:[#allocation2 + $0xc0] sm:$0xff]  ;;  %v15976_v29 = vld [vmem:[#allocation2 + $0xc8] sm:$0xff] }
 0x496   :  { %v6621_v32 = vpop.f32.mrb[104].mxu0  ;;  %v8056_v26 = vsel %vm468_vm1, %v8053_v45, %v8055_v43  ;;  %v17750_v45 = vld [vmem:[#allocation32_spill] sm:$0xff]  ;;  %v17751_v43 = vld [vmem:[#allocation13_spill] sm:$0xff] }
 0x497   :  { %v15966_v59 = vadd.f32 %v15839_v31, %v6621_v32  ;;  %v6623_v4 = vpop.f32.mrb[105].mxu0  ;;  %8634 = vmatmul.mubr.f32.gmra.mrb[210].mxu0 %v15900_v33  ;;  %v5237_v57 = vsel %vm468_vm1, %v5235_v53, %v5236_v2  ;;  %v17747_v32 = vld [vmem:[#allocation69_spill] sm:$0xff]  ;;  %v8057_v53 = vrot.slane %v15974_v41, 1 }
 0x498   :  { %7375 = vmatmul.mubr.f32.gmra.mrb[226].mxu1 %v17731_v56  ;;  %8638 = vmatprep.mubr.f32.mxu0 %v8054_v12  ;;  %v17746_v4 = vld [vmem:[#allocation28_spill] sm:$0xff]  ;;  %v8058_v12 = vrot.slane %v15976_v29, 1 }
 0x499   :  { %17745 = vst [vmem:[#allocation74_spill] sm:$0xff] %v15966_v59  ;;  %7379 = vmatprep.mubr.f32.mxu1 %v5237_v57  ;;  %v15980_v63 = vadd.f32 %v17747_v32, %v17746_v4  ;;  %v5239_v4 = vsel %vm468_vm1, %v5236_v2, %v5238_v17 }
 0x49a   :  { %v6626_v31 = vpop.f32.mrb[106].mxu0  ;;  %v8059_v2 = vsel %vm468_vm1, %v8057_v53, %v8058_v12 }
 0x49b   :  { %17748 = vst [vmem:[#allocation55_spill] sm:$0xff] %v15980_v63  ;;  %v15983_v42 = vadd.f32 %v15833_v47, %v6626_v31  ;;  %v15985_v59 = vpop.f32.mrb[124].mxu1  ;;  %v6628_v56 = vpop.f32.mrb[107].mxu0  ;;  %8639 = vmatmul.mubr.f32.gmra.mrb[212].mxu0 %v15936_v61  ;;  %v5241_v47 = vrot.slane %v15603_v46, 1  ;;  %v15996_v31 = vld [vmem:[#allocation2 + $0xd0] sm:$0x3] }
 0x49c   :  { %v15991_v57 = vpop.f32.mrb[125].mxu1  ;;  %7380 = vmatmul.mubr.f32.gmra.mrb[228].mxu1 %v17741_v10  ;;  %8643 = vmatprep.mubr.f32.mxu0 %v8056_v26  ;;  %v5240_v56 = vrot.slane %v15613_v37, 1  ;;  %v8060_v10 = vrot.slane %v15996_v31, 1  ;;  %v5243_v26 = vrot.slane %v15622_v11, 1 }
 0x49d   :  { %17749 = vst [vmem:[#allocation16_spill] sm:$0xff] %v15983_v42  ;;  %7384 = vmatprep.mubr.f32.mxu1 %v5239_v4  ;;  %v16001_v42 = vadd.f32 %v17751_v43, %v17750_v45  ;;  %v16012_v4 = vld [vmem:[#allocation2 + $0xe0] sm:$0xff] }
 0x49e   :  { %v6631_v32 = vpop.f32.mrb[108].mxu0  ;;  %v5242_v17 = vsel %vm468_vm1, %v5240_v56, %v5241_v47  ;;  %v8061_v11 = vsel %vm468_vm1, %v8058_v12, %v8060_v10  ;;  %v8063_v56 = vrot.slane %v16012_v4, 1 }
 0x49f   :  { %17752 = vst [vmem:[#allocation63_spill] sm:$0xff] %v16001_v42  ;;  %v16004_v63 = vadd.f32 %v15877_v18, %v6631_v32  ;;  %v6633_v50 = vpop.f32.mrb[109].mxu0  ;;  %8644 = vmatmul.mubr.f32.gmra.mrb[214].mxu0 %v15938_v5  ;;  %v16014_v18 = vld [vmem:[#allocation2 + $0xd8] sm:$0xff]  ;;  %v17755_v32 = vld [vmem:[#allocation78_spill] sm:$0xff] }
 0x4a0   :  { %7385 = vmatmul.mubr.f32.gmra.mrb[230].mxu1 %v15586_v52  ;;  %8648 = vmatprep.mubr.f32.mxu0 %v8059_v2  ;;  %v17754_v50 = vld [vmem:[#allocation19_spill] sm:$0xff] }
 0x4a1   :  { %17753 = vst [vmem:[#allocation56_spill] sm:$0xff] %v16004_v63  ;;  %7389 = vmatprep.mubr.f32.mxu1 %v5242_v17  ;;  %v16018_v43 = vadd.f32 %v17755_v32, %v17754_v50  ;;  %v5244_v17 = vsel %vm468_vm1, %v5241_v47, %v5243_v26  ;;  %v5246_v50 = vrot.slane %v15628_v24, 1  ;;  %v17759_v26 = vld [vmem:[#allocation51_spill] sm:$0xff] }
 0x4a2   :  { %v6636_v45 = vpop.f32.mrb[110].mxu0 }
 0x4a3   :  { %17756 = vst [vmem:[#allocation25_spill] sm:$0xff] %v16018_v43  ;;  %v16021_v53 = vadd.f32 %v15871_v40, %v6636_v45  ;;  %v16023_v63 = vpop.f32.mrb[126].mxu1  ;;  %v6638_v52 = vpop.f32.mrb[111].mxu0  ;;  %8649 = vmatmul.mubr.f32.gmra.mrb[216].mxu0 %v15974_v41  ;;  %v16033_v40 = vld [vmem:[#allocation2 + $0xe8] sm:$0x3]  ;;  %v8062_v45 = vrot.slane %v16014_v18, 1 }
 0x4a4   :  { %v16028_v2 = vpop.f32.mrb[127].mxu1  ;;  %7390 = vmatmul.mubr.f32.gmra.mrb[232].mxu1 %v15613_v37  ;;  %8653 = vmatprep.mubr.f32.mxu0 %v8061_v11  ;;  %v5245_v52 = vrot.slane %v15638_v49, 1  ;;  %v8065_v47 = vrot.slane %v16033_v40, 1 }
 0x4a5   :  { %17757 = vst [vmem:[#allocation76_spill] sm:$0xff] %v16021_v53  ;;  %7394 = vmatprep.mubr.f32.mxu1 %v5244_v17  ;;  %v8064_v37 = vsel %vm468_vm1, %v8062_v45, %v8063_v56 }
 0x4a6   :  { %v6641_v32 = vpop.f32.mrb[112].mxu0  ;;  %v5247_v17 = vsel %vm468_vm1, %v5245_v52, %v5246_v50 }
 0x4a7   :  { %v16038_v12 = vadd.f32 %v15915_v36, %v6641_v32  ;;  %v7131_v10 = vpop.f32.mrb[128].mxu1  ;;  %v6643_v53 = vpop.f32.mrb[113].mxu0  ;;  %8654 = vmatmul.mubr.f32.gmra.mrb[218].mxu0 %v15976_v29  ;;  %v5248_v36 = vrot.slane %v15645_v55, 1  ;;  %v16049_v32 = vld [vmem:[#allocation2 + $0xf8] sm:$0xff] }
 0x4a8   :  { %v16044_v11 = vadd.f32 %v7131_v10, %v17759_v26  ;;  %7395 = vmatmul.mubr.f32.gmra.mrb[234].mxu1 %v15603_v46  ;;  %8658 = vmatprep.mubr.f32.mxu0 %v8064_v37  ;;  %v7133_v43 = vpop.f32.mrb[129].mxu1  ;;  %v8066_v46 = vsel %vm468_vm1, %v8063_v56, %v8065_v47  ;;  %v8068_v52 = vrot.slane %v16049_v32, 1  ;;  %v5250_v56 = vrot.slane %v15659_v15, 1 }
 0x4a9   :  { %17758 = vst [vmem:[#allocation21_spill] sm:$0xff] %v16038_v12  ;;  %7399 = vmatprep.mubr.f32.mxu1 %v5247_v17  ;;  %v16051_v12 = vld [vmem:[#allocation2 + $0xf0] sm:$0xff]  ;;  %v17761_v43 = vld [vmem:[#allocation72_spill] sm:$0xff]  ;;  %v5249_v55 = vsel %vm468_vm1, %v5246_v50, %v5248_v36  ;;  %v16065_v17 = vld [vmem:[#allocation2 + $0x100] sm:$0x3] }
 0x4aa   :  { %v6646_v53 = vpop.f32.mrb[114].mxu0  ;;  %v8070_v50 = vrot.slane %v16065_v17, 1  ;;  %v17763_v36 = vld [vmem:[#allocation22_spill] sm:$0xff] }
 0x4ab   :  { %v16054_v45 = vadd.f32 %v15909_v19, %v6646_v53  ;;  %v7136_v42 = vpop.f32.mrb[130].mxu1  ;;  %v6648_v10 = vpop.f32.mrb[115].mxu0  ;;  %8659 = vmatmul.mubr.f32.gmra.mrb[220].mxu0 %v16014_v18  ;;  %v5251_v19 = vrot.slane %v15650_v7, 1  ;;  %v8067_v53 = vrot.slane %v16051_v12, 1 }
 0x4ac   :  { %v16060_v37 = vadd.f32 %v7136_v42, %v17761_v43  ;;  %7400 = vmatmul.mubr.f32.gmra.mrb[236].mxu1 %v15638_v49  ;;  %8663 = vmatprep.mubr.f32.mxu0 %v8066_v46  ;;  %v7138_v26 = vpop.f32.mrb[131].mxu1 }
 0x4ad   :  { %17760 = vst [vmem:[#allocation77_spill] sm:$0xff] %v16054_v45  ;;  %7404 = vmatprep.mubr.f32.mxu1 %v5249_v55  ;;  %v8069_v49 = vsel %vm468_vm1, %v8067_v53, %v8068_v52  ;;  %v5252_v26 = vsel %vm468_vm1, %v5250_v56, %v5251_v19 }
 0x4ae   :  { %v6651_v10 = vpop.f32.mrb[116].mxu0 }
 0x4af   :  { %v16070_v47 = vadd.f32 %v15953_v1, %v6651_v10  ;;  %v7141_v42 = vpop.f32.mrb[132].mxu1  ;;  %v6653_v43 = vpop.f32.mrb[117].mxu0  ;;  %8664 = vmatmul.mubr.f32.gmra.mrb[222].mxu0 %v16012_v4  ;;  %v5253_v1 = vrot.slane %v15668_v48, 1  ;;  %v16081_v10 = vld [vmem:[#allocation2 + $0x110] sm:$0xff] }
 0x4b0   :  { %v16076_v46 = vadd.f32 %v7141_v42, %v17763_v36  ;;  %v7143_v55 = vpop.f32.mrb[133].mxu1  ;;  %7405 = vmatmul.mubr.f32.gmra.mrb[238].mxu1 %v15628_v24  ;;  %8668 = vmatprep.mubr.f32.mxu0 %v8069_v49  ;;  %v8071_v24 = vsel %vm468_vm1, %v8068_v52, %v8070_v50  ;;  %v8073_v56 = vrot.slane %v16081_v10, 1  ;;  %v17765_v49 = vld [vmem:[#allocation26_spill] sm:$0xff]  ;;  %v5255_v52 = vrot.slane %v15685_v25, 1 }
 0x4b1   :  { %17762 = vst [vmem:[#allocation54_spill] sm:$0xff] %v16070_v47  ;;  %7409 = vmatprep.mubr.f32.mxu1 %v5252_v26  ;;  %v16083_v47 = vld [vmem:[#allocation2 + $0x108] sm:$0xff]  ;;  %v5254_v55 = vsel %vm468_vm1, %v5251_v19, %v5253_v1  ;;  %v16097_v26 = vld [vmem:[#allocation2 + $0x118] sm:$0x3]  ;;  %v17767_v1 = vld [vmem:[#allocation15_spill] sm:$0xff] }
 0x4b2   :  { %v6656_v43 = vpop.f32.mrb[118].mxu0  ;;  %v8075_v19 = vrot.slane %v16097_v26, 1 }
 0x4b3   :  { %v16086_v53 = vadd.f32 %v15947_v39, %v6656_v43  ;;  %v7146_v45 = vpop.f32.mrb[134].mxu1  ;;  %v6658_v42 = vpop.f32.mrb[119].mxu0  ;;  %8669 = vmatmul.mubr.f32.gmra.mrb[224].mxu0 %v16051_v12  ;;  %v5256_v39 = vrot.slane %v15675_v54, 1  ;;  %v8072_v43 = vrot.slane %v16083_v47, 1 }
 0x4b4   :  { %v16092_v36 = vadd.f32 %v7146_v45, %v17765_v49  ;;  %v7148_v48 = vpop.f32.mrb[135].mxu1  ;;  %7410 = vmatmul.mubr.f32.gmra.mrb[240].mxu1 %v15659_v15  ;;  %8673 = vmatprep.mubr.f32.mxu0 %v8071_v24 }
 0x4b5   :  { %17764 = vst [vmem:[#allocation17_spill] sm:$0xff] %v16086_v53  ;;  %7414 = vmatprep.mubr.f32.mxu1 %v5254_v55  ;;  %v8074_v15 = vsel %vm468_vm1, %v8072_v43, %v8073_v56  ;;  %v5257_v55 = vsel %vm468_vm1, %v5255_v52, %v5256_v39 }
 0x4b6   :  { %v6661_v42 = vpop.f32.mrb[120].mxu0 }
 0x4b7   :  { %v16102_v50 = vadd.f32 %v15991_v57, %v6661_v42  ;;  %v7151_v45 = vpop.f32.mrb[136].mxu1  ;;  %v6663_v49 = vpop.f32.mrb[121].mxu0  ;;  %8674 = vmatmul.mubr.f32.gmra.mrb[226].mxu0 %v16049_v32  ;;  %v5258_v57 = vrot.slane %v15692_v0, 1  ;;  %v16113_v42 = vld [vmem:[#allocation2 + $0x128] sm:$0xff] }
 0x4b8   :  { %v16108_v24 = vadd.f32 %v7151_v45, %v17767_v1  ;;  %v7153_v48 = vpop.f32.mrb[137].mxu1  ;;  %7415 = vmatmul.mubr.f32.gmra.mrb[242].mxu1 %v15650_v7  ;;  %8678 = vmatprep.mubr.f32.mxu0 %v8074_v15  ;;  %v8076_v7 = vsel %vm468_vm1, %v8073_v56, %v8075_v19  ;;  %v8078_v52 = vrot.slane %v16113_v42, 1  ;;  %v17769_v15 = vld [vmem:[#allocation20_spill] sm:$0xff]  ;;  %v5260_v56 = vrot.slane %v15706_v51, 1 }
 0x4b9   :  { %17766 = vst [vmem:[#allocation71_spill] sm:$0xff] %v16102_v50  ;;  %7419 = vmatprep.mubr.f32.mxu1 %v5257_v55  ;;  %v16115_v50 = vld [vmem:[#allocation2 + $0x120] sm:$0xff]  ;;  %v5259_v48 = vsel %vm468_vm1, %v5256_v39, %v5258_v57  ;;  %v16129_v55 = vld [vmem:[#allocation2 + $0x130] sm:$0x3]  ;;  %v17771_v57 = vld [vmem:[#allocation24_spill] sm:$0xff] }
 0x4ba   :  { %v6666_v49 = vpop.f32.mrb[122].mxu0  ;;  %v8080_v39 = vrot.slane %v16129_v55, 1 }
 0x4bb   :  { %v16118_v43 = vadd.f32 %v15985_v59, %v6666_v49  ;;  %v7156_v53 = vpop.f32.mrb[138].mxu1  ;;  %v6668_v45 = vpop.f32.mrb[123].mxu0  ;;  %8679 = vmatmul.mubr.f32.gmra.mrb[228].mxu0 %v16083_v47  ;;  %v5261_v59 = vrot.slane %v15697_v38, 1  ;;  %v8077_v49 = vrot.slane %v16115_v50, 1 }
 0x4bc   :  { %v16124_v1 = vadd.f32 %v7156_v53, %v17769_v15  ;;  %v7158_v0 = vpop.f32.mrb[139].mxu1  ;;  %7420 = vmatmul.mubr.f32.gmra.mrb[244].mxu1 %v15685_v25  ;;  %8683 = vmatprep.mubr.f32.mxu0 %v8076_v7 }
 0x4bd   :  { %17768 = vst [vmem:[#allocation28_spill] sm:$0xff] %v16118_v43  ;;  %7424 = vmatprep.mubr.f32.mxu1 %v5259_v48  ;;  %v8079_v25 = vsel %vm468_vm1, %v8077_v49, %v8078_v52  ;;  %v5262_v48 = vsel %vm468_vm1, %v5260_v56, %v5261_v59 }
 0x4be   :  { %v6671_v45 = vpop.f32.mrb[124].mxu0 }
 0x4bf   :  { %v16134_v19 = vadd.f32 %v16028_v2, %v6671_v45  ;;  %v7161_v53 = vpop.f32.mrb[140].mxu1  ;;  %v6673_v15 = vpop.f32.mrb[125].mxu0  ;;  %8684 = vmatmul.mubr.f32.gmra.mrb[230].mxu0 %v16081_v10  ;;  %v5263_v2 = vrot.slane %v15715_v23, 1  ;;  %v16145_v45 = vld [vmem:[#allocation2 + $0x140] sm:$0xff] }
 0x4c0   :  { %v16140_v7 = vadd.f32 %v7161_v53, %v17771_v57  ;;  %v7163_v0 = vpop.f32.mrb[141].mxu1  ;;  %7425 = vmatmul.mubr.f32.gmra.mrb[246].mxu1 %v15675_v54  ;;  %8688 = vmatprep.mubr.f32.mxu0 %v8079_v25  ;;  %v8081_v54 = vsel %vm468_vm1, %v8078_v52, %v8080_v39  ;;  %v8083_v56 = vrot.slane %v16145_v45, 1  ;;  %v17773_v25 = vld [vmem:[#allocation45_spill] sm:$0xff]  ;;  %v5265_v52 = vrot.slane %v15728_v14, 1 }
 0x4c1   :  { %17770 = vst [vmem:[#allocation69_spill] sm:$0xff] %v16134_v19  ;;  %7429 = vmatprep.mubr.f32.mxu1 %v5262_v48  ;;  %v16147_v19 = vld [vmem:[#allocation2 + $0x138] sm:$0xff]  ;;  %v5264_v0 = vsel %vm468_vm1, %v5261_v59, %v5263_v2  ;;  %v16161_v48 = vld [vmem:[#allocation2 + $0x148] sm:$0x3] }
 0x4c2   :  { %v6676_v15 = vpop.f32.mrb[126].mxu0  ;;  %17774 = vst [vmem:[#allocation13_spill] sm:$0xff] %v16161_v48  ;;  %v8085_v59 = vrot.slane %v16161_v48, 1  ;;  %v17776_v2 = vld [vmem:[#allocation30_spill] sm:$0xff] }
 0x4c3   :  { %v16150_v49 = vadd.f32 %v16023_v63, %v6676_v15  ;;  %v7166_v43 = vpop.f32.mrb[142].mxu1  ;;  %v6678_v53 = vpop.f32.mrb[127].mxu0  ;;  %8689 = vmatmul.mubr.f32.gmra.mrb[232].mxu0 %v16115_v50  ;;  %v5266_v63 = vrot.slane %v15722_v3, 1  ;;  %v8082_v15 = vrot.slane %v16147_v19, 1 }
 0x4c4   :  { %v16156_v57 = vadd.f32 %v7166_v43, %v17773_v25  ;;  %v7168_v23 = vpop.f32.mrb[143].mxu1  ;;  %7430 = vmatmul.mubr.f32.gmra.mrb[248].mxu1 %v15706_v51  ;;  %8693 = vmatprep.mubr.f32.mxu0 %v8081_v54 }
 0x4c5   :  { %17772 = vst [vmem:[#allocation32_spill] sm:$0xff] %v16150_v49  ;;  %7434 = vmatprep.mubr.f32.mxu1 %v5264_v0  ;;  %v8084_v51 = vsel %vm468_vm1, %v8082_v15, %v8083_v56  ;;  %v5267_v49 = vsel %vm468_vm1, %v5265_v52, %v5266_v63  ;;  %v8251_v52 = vrot.slane %v15744_v27, 2  ;;  %v8254_v27 = vrot.slane %v15768_v13, 2  ;;  %v17780_v13 = vld [vmem:[#allocation36_spill] sm:$0xff] }
 0x4c6   :  { %v10731_v53 = vpop.f32.mrb[128].mxu0 }
 0x4c7   :  { %v7171_v39 = vpop.f32.mrb[144].mxu1  ;;  %v16166_v43 = vadd.f32 %v10731_v53, %v16060_v37  ;;  %v7516_v25 = vpop.f32.mrb[129].mxu0  ;;  %8694 = vmatmul.mubr.f32.gmra.mrb[234].mxu0 %v16113_v42  ;;  %v5268_v37 = vrot.slane %v15739_v34, 1  ;;  %v16180_v53 = vld [vmem:[#allocation2 + $0x158] sm:$0xff]  ;;  %v16191_v34 = vld [vmem:[#allocation2 + $0x160] sm:$0x3] }
 0x4c8   :  { %v16172_v54 = vadd.f32 %v7171_v39, %v17776_v2  ;;  %v7173_v23 = vpop.f32.mrb[145].mxu1  ;;  %7435 = vmatmul.mubr.f32.gmra.mrb[250].mxu1 %v15697_v38  ;;  %v16176_v0 = vadd.f32 %v7516_v25, %v16044_v11  ;;  %8698 = vmatprep.mubr.f32.mxu0 %v8084_v51  ;;  %v8086_v38 = vsel %vm468_vm1, %v8083_v56, %v8085_v59  ;;  %v8088_v11 = vrot.slane %v16180_v53, 1  ;;  %v17778_v25 = vld [vmem:[#allocation34_spill] sm:$0xff] }
 0x4c9   :  { %17775 = vst [vmem:[#allocation19_spill] sm:$0xff] %v16166_v43  ;;  %7439 = vmatprep.mubr.f32.mxu1 %v5267_v49  ;;  %v16182_v43 = vld [vmem:[#allocation2 + $0x150] sm:$0xff] }
 0x4ca   :  { %v10734_v15 = vpop.f32.mrb[130].mxu0  ;;  %v8087_v56 = vrot.slane %v16182_v43, 1 }
 0x4cb   :  { %v7176_v48 = vpop.f32.mrb[146].mxu1  ;;  %v16185_v39 = vadd.f32 %v10734_v15, %v16092_v36  ;;  %v7526_v2 = vpop.f32.mrb[131].mxu0  ;;  %8699 = vmatmul.mubr.f32.gmra.mrb[236].mxu0 %v16147_v19  ;;  %v5269_v36 = vsel %vm468_vm1, %v5266_v63, %v5268_v37  ;;  %v8252_v15 = vrot.slane %v15746_v16, 2  ;;  %v8256_v63 = vrot.slane %v15784_v30, 2  ;;  %v16210_v37 = vld [vmem:[#allocation2 + $0x168] sm:$0xff] }
 0x4cc   :  { %v7177_v49 = vadd.f32 %v7176_v48, %v17778_v25  ;;  %v7178_v51 = vpop.f32.mrb[147].mxu1  ;;  %7440 = vmatmul.mubr.f32.gmra.mrb[252].mxu1 %v15728_v14  ;;  %v16196_v23 = vadd.f32 %v7526_v2, %v16076_v46  ;;  %8703 = vmatprep.mubr.f32.mxu0 %v8086_v38  ;;  %v8089_v46 = vsel %vm468_vm1, %v8087_v56, %v8088_v11  ;;  %v8257_v16 = vrot.slane %v15786_v28, 2  ;;  %v16212_v2 = vld [vmem:[#allocation2 + $0x170] sm:$0xff] }
 0x4cd   :  { %17777 = vst [vmem:[#allocation78_spill] sm:$0xff] %v16185_v39  ;;  %7444 = vmatprep.mubr.f32.mxu1 %v5269_v36  ;;  %v8090_v39 = vrot.slane %v16191_v34, 1  ;;  %v8253_v36 = vsel %vm693_vm0, %v8251_v52, %v8252_v15  ;;  %v8259_v30 = vrot.slane %v15806_v58, 2  ;;  %v8092_v28 = vrot.slane %v16210_v37, 1 }
 0x4ce   :  { %v10737_v59 = vpop.f32.mrb[132].mxu0  ;;  %v8258_v52 = vsel %vm693_vm0, %v8256_v63, %v8257_v16 }
 0x4cf   :  { %v7181_v48 = vpop.f32.mrb[148].mxu1  ;;  %v16204_v25 = vadd.f32 %v10737_v59, %v16124_v1  ;;  %v7536_v14 = vpop.f32.mrb[133].mxu0  ;;  %8704 = vmatmul.mubr.f32.gmra.mrb[238].mxu0 %v16145_v45  ;;  %v8093_v59 = vrot.slane %v16212_v2, 1 }
 0x4d0   :  { %v7182_v38 = vadd.f32 %v7181_v48, %v17780_v13  ;;  %v7183_v51 = vpop.f32.mrb[149].mxu1  ;;  %7445 = vmatmul.mubr.f32.gmra.mrb[254].mxu1 %v15722_v3  ;;  %v16217_v1 = vadd.f32 %v7536_v14, %v16108_v24  ;;  %8708 = vmatprep.mubr.f32.mxu0 %v8089_v46  ;;  %v8091_v24 = vsel %vm468_vm1, %v8088_v11, %v8090_v39 }
 0x4d1   :  { %17779 = vst [vmem:[#allocation51_spill] sm:$0xff] %v16204_v25  ;;  %10857 = vmatprep.mubr.f32.mxu1 %v8253_v36  ;;  %v8255_v25 = vsel %vm693_vm0, %v8252_v15, %v8254_v27  ;;  %v8261_v15 = vrot.slane %v15822_v21, 2  ;;  %v16236_v27 = vld [vmem:[#allocation2 + $0x178] sm:$0x3]  ;;  %v8264_v51 = vrot.slane %v15844_v22, 2  ;;  %v8260_v11 = vsel %vm693_vm0, %v8257_v16, %v8259_v30  ;;  %v16252_v16 = vld [vmem:[#allocation2 + $0x188] sm:$0xff] }
 0x4d2   :  { %v10740_v56 = vpop.f32.mrb[134].mxu0  ;;  %v8095_v21 = vrot.slane %v16236_v27, 1  ;;  %v8269_v30 = vrot.slane %v15882_v35, 2 }
 0x4d3   :  { %v7186_v48 = vpop.f32.mrb[150].mxu1  ;;  %v16225_v13 = vadd.f32 %v10740_v56, %v16156_v57  ;;  %v7546_v3 = vpop.f32.mrb[135].mxu0  ;;  %8709 = vmatmul.mubr.f32.gmra.mrb[240].mxu0 %v16182_v43  ;;  %v8262_v57 = vrot.slane %v15824_v9, 2  ;;  %v8266_v9 = vrot.slane %v15860_v20, 2 }
 0x4d4   :  { %v7187_v58 = vadd.f32 %v7186_v48, %v15608_v8  ;;  %v7188_v14 = vpop.f32.mrb[151].mxu1  ;;  %v16232_v46 = vadd.f32 %v7546_v3, %v16140_v7  ;;  %10858 = vmatmul.mubr.f32.vlgmr.msra.gmra.mrb[0].mxu1 %v8255_v25  ;;  %8713 = vmatprep.mubr.f32.mxu0 %v8091_v24  ;;  %v8094_v8 = vsel %vm468_vm1, %v8092_v28, %v8093_v59  ;;  %v8267_v25 = vrot.slane %v15862_v6, 2  ;;  %v16256_v3 = vld [vmem:[#allocation2 + $0x180] sm:$0xff] }
 0x4d5   :  { %10860 = vmatprep.mubr.f32.mxu1 %v8258_v52  ;;  %v8265_v20 = vsel %vm693_vm0, %v8262_v57, %v8264_v51  ;;  %v8098_v14 = vrot.slane %v16252_v16, 1  ;;  %v16269_v51 = vld [vmem:[#allocation2 + $0x190] sm:$0x3] }
 0x4d6   :  { %v10743_v39 = vpop.f32.mrb[136].mxu0  ;;  %v8268_v52 = vsel %vm693_vm0, %v8266_v9, %v8267_v25  ;;  %v16274_v9 = vld [vmem:[#allocation2 + $0x198] sm:$0xff] }
 0x4d7   :  { %v7191_v63 = vpop.f32.mrb[152].mxu1  ;;  %v16241_v36 = vadd.f32 %v10743_v39, %v7177_v49  ;;  %v7556_v7 = vpop.f32.mrb[137].mxu0  ;;  %8714 = vmatmul.mubr.f32.gmra.mrb[242].mxu0 %v16180_v53  ;;  %v8263_v49 = vsel %vm693_vm0, %v8261_v15, %v8262_v57  ;;  %v17783_v15 = vld [vmem:[#allocation23_spill] sm:$0xff]  ;;  %v8271_v57 = vrot.slane %v15898_v62, 2 }
 0x4d8   :  { %v7192_v56 = vadd.f32 %v7191_v63, %v15633_v44  ;;  %v7193_v22 = vpop.f32.mrb[153].mxu1  ;;  %v16249_v48 = vadd.f32 %v7556_v7, %v16172_v54  ;;  %10861 = vmatmul.mubr.f32.gmra.mrb[2].mxu1 %v8260_v11  ;;  %8718 = vmatprep.mubr.f32.mxu0 %v8094_v8  ;;  %v8096_v54 = vsel %vm468_vm1, %v8093_v59, %v8095_v21  ;;  %v8097_v59 = vrot.slane %v16256_v3, 1  ;;  %v17785_v8 = vld [vmem:[#allocation70_spill] sm:$0xff] }
 0x4d9   :  { %10863 = vmatprep.mubr.f32.mxu1 %v8263_v49  ;;  %v8274_v63 = vrot.slane %v17785_v8, 2  ;;  %v8270_v21 = vsel %vm693_vm0, %v8267_v25, %v8269_v30  ;;  %v8277_v30 = vrot.slane %v15938_v5, 2 }
 0x4da   :  { %17781 = vst [vmem:[#allocation72_spill] sm:$0xff] %v16249_v48  ;;  %v10746_v28 = vpop.f32.mrb[138].mxu0  ;;  %v8099_v62 = vsel %vm468_vm1, %v8097_v59, %v8098_v14  ;;  %v8279_v59 = vrot.slane %v15958_v60, 2  ;;  %v8282_v60 = vrot.slane %v15976_v29, 2 }
 0x4db   :  { %v7196_v6 = vpop.f32.mrb[154].mxu1  ;;  %v16258_v44 = vadd.f32 %v10746_v28, %v7187_v58  ;;  %v7566_v24 = vpop.f32.mrb[139].mxu0  ;;  %8719 = vmatmul.mubr.f32.gmra.mrb[244].mxu0 %v16210_v37  ;;  %v8272_v58 = vrot.slane %v15900_v33, 2  ;;  %v8100_v33 = vrot.slane %v16269_v51, 1  ;;  %v8276_v28 = vrot.slane %v15936_v61, 2 }
 0x4dc   :  { %v7197_v39 = vadd.f32 %v7196_v6, %v17783_v15  ;;  %v7198_v35 = vpop.f32.mrb[155].mxu1  ;;  %v16265_v11 = vadd.f32 %v7566_v24, %v7182_v38  ;;  %10864 = vmatmul.mubr.f32.gmra.mrb[4].mxu1 %v8265_v20  ;;  %8723 = vmatprep.mubr.f32.mxu0 %v8096_v54  ;;  %v17787_v20 = vld [vmem:[#allocation33_spill] sm:$0xff]  ;;  %v16288_v15 = vld [vmem:[#allocation2 + $0x8] sm:$0xff] }
 0x4dd   :  { %17782 = vst [vmem:[#allocation22_spill] sm:$0xff] %v16258_v44  ;;  %10866 = vmatprep.mubr.f32.mxu1 %v8268_v52  ;;  %v8273_v25 = vsel %vm693_vm0, %v8271_v57, %v8272_v58  ;;  %v8102_v52 = vrot.slane %v16274_v9, 1  ;;  %v16291_v61 = vld [vmem:[#allocation2 + $0x1a8] sm:$0x3]  ;;  %v8275_v57 = vsel %vm693_vm0, %v8272_v58, %v8274_v63  ;;  %v8101_v5 = vsel %vm468_vm1, %v8098_v14, %v8100_v33 }
 0x4de   :  { %17784 = vst [vmem:[#allocation26_spill] sm:$0xff] %v16265_v11  ;;  %v10749_v7 = vpop.f32.mrb[140].mxu0  ;;  %v8105_v58 = vrot.slane %v16291_v61, 1 }
 0x4df   :  { %v7201_v38 = vpop.f32.mrb[156].mxu1  ;;  %v16276_v22 = vadd.f32 %v10749_v7, %v7197_v39  ;;  %v7576_v49 = vpop.f32.mrb[141].mxu0  ;;  %8724 = vmatmul.mubr.f32.gmra.mrb[246].mxu0 %v16212_v2  ;;  %v8103_v39 = vrot.slane %v16288_v15, 1  ;;  %v8281_v7 = vrot.slane %v15974_v41, 2  ;;  %v8284_v41 = vrot.slane %v15996_v31, 2 }
 0x4e0   :  { %v7202_v6 = vadd.f32 %v7201_v38, %v17787_v20  ;;  %v7203_v24 = vpop.f32.mrb[157].mxu1  ;;  %v16283_v54 = vadd.f32 %v7576_v49, %v7192_v56  ;;  %10867 = vmatmul.mubr.f32.gmra.mrb[6].mxu1 %v8270_v21  ;;  %8728 = vmatprep.mubr.f32.mxu0 %v8099_v62  ;;  %v17789_v21 = vld [vmem:[#allocation31_spill] sm:$0xff]  ;;  %v8278_v20 = vsel %vm693_vm0, %v8276_v28, %v8277_v30 }
 0x4e1   :  { %17786 = vst [vmem:[#allocation15_spill] sm:$0xff] %v16276_v22  ;;  %10869 = vmatprep.mubr.f32.mxu1 %v8273_v25  ;;  %v8104_v24 = vsel %vm468_vm1, %v8102_v52, %v8103_v39  ;;  %v8283_v29 = vsel %vm693_vm0, %v8281_v7, %v8282_v60  ;;  %v8287_v52 = vrot.slane %v16012_v4, 2  ;;  %v8106_v31 = vsel %vm468_vm1, %v8103_v39, %v8105_v58 }
 0x4e2   :  { %17788 = vst [vmem:[#allocation20_spill] sm:$0xff] %v16283_v54  ;;  %v10752_v35 = vpop.f32.mrb[142].mxu0  ;;  %v8285_v4 = vsel %vm693_vm0, %v8282_v60, %v8284_v41  ;;  %v8291_v60 = vrot.slane %v16051_v12, 2  ;;  %v8294_v41 = vrot.slane %v16065_v17, 2  ;;  %v8297_v12 = vrot.slane %v16081_v10, 2  ;;  %v16344_v17 = vld [vmem:[#allocation2 + $0x200] sm:$0xff] }
 0x4e3   :  { %v7206_v56 = vpop.f32.mrb[158].mxu1  ;;  %v7586_v8 = vpop.f32.mrb[143].mxu0  ;;  %8729 = vmatmul.mubr.f32.gmra.mrb[248].mxu0 %v16256_v3 }
 0x4e4   :  { %v7207_v38 = vadd.f32 %v7206_v56, %v17789_v21  ;;  %v7208_v49 = vpop.f32.mrb[159].mxu1  ;;  %v16299_v62 = vadd.f32 %v7586_v8, %v7202_v6  ;;  %10870 = vmatmul.mubr.f32.gmra.mrb[8].mxu1 %v8275_v57  ;;  %8733 = vmatprep.mubr.f32.mxu0 %v8101_v5  ;;  %v8280_v6 = vsel %vm693_vm0, %v8277_v30, %v8279_v59  ;;  %v17792_v56 = vld [vmem:[#allocation52_spill] sm:$0xff]  ;;  %v8286_v21 = vrot.slane %v16014_v18, 2  ;;  %v16319_v30 = vld [vmem:[#allocation2 + $0x1e0] sm:$0xff] }
 0x4e5   :  { %10872 = vmatprep.mubr.f32.mxu1 %v8278_v20  ;;  %v8289_v59 = vrot.slane %v16033_v40, 2  ;;  %v17794_v20 = vld [vmem:[#allocation53_spill] sm:$0xff]  ;;  %v8292_v18 = vrot.slane %v16049_v32, 2  ;;  %v8107_v40 = vrot.slane %v16319_v30, 1 }
 0x4e6   :  { %17790 = vst [vmem:[#allocation24_spill] sm:$0xff] %v16299_v62  ;;  %v16305_v63 = vadd.f32 %v10752_v35, %v7207_v38  ;;  %v10755_v14 = vpop.f32.mrb[144].mxu0  ;;  %v16313_v35 = vld [vmem:[#allocation2 + $0x1e8] sm:$0xff]  ;;  %v8288_v58 = vsel %vm693_vm0, %v8286_v21, %v8287_v52 }
 0x4e7   :  { %v7211_v33 = vpop.f32.mrb[160].mxu1  ;;  %v7596_v25 = vpop.f32.mrb[145].mxu0  ;;  %8734 = vmatmul.mubr.f32.gmra.mrb[250].mxu0 %v16252_v16  ;;  %v8108_v7 = vrot.slane %v16313_v35, 1  ;;  %v8295_v10 = vsel %vm693_vm0, %v8292_v18, %v8294_v41  ;;  %v8304_v41 = vrot.slane %v16129_v55, 2  ;;  %v8307_v55 = vrot.slane %v16145_v45, 2 }
 0x4e8   :  { %17791 = vst [vmem:[#allocation45_spill] sm:$0xff] %v16305_v63  ;;  %v7212_v28 = vadd.f32 %v7211_v33, %v17792_v56  ;;  %v7213_v8 = vpop.f32.mrb[161].mxu1  ;;  %10873 = vmatmul.mubr.f32.gmra.mrb[10].mxu1 %v8280_v6  ;;  %8738 = vmatprep.mubr.f32.mxu0 %v8104_v24  ;;  %v16328_v33 = vld [vmem:[#allocation2 + $0x1f0] sm:$0x3] }
 0x4e9   :  { %10875 = vmatprep.mubr.f32.mxu1 %v8283_v29  ;;  %v8290_v8 = vsel %vm693_vm0, %v8287_v52, %v8289_v59  ;;  %v8109_v32 = vsel %vm468_vm1, %v8107_v40, %v8108_v7  ;;  %v8110_v29 = vrot.slane %v16328_v33, 1  ;;  %v8296_v52 = vrot.slane %v16083_v47, 2  ;;  %v16351_v59 = vld [vmem:[#allocation2 + $0x1f8] sm:$0xff] }
 0x4ea   :  { %v16316_v57 = vadd.f32 %v7596_v25, %v7212_v28  ;;  %v10758_v5 = vpop.f32.mrb[146].mxu0 }
 0x4eb   :  { %v7216_v38 = vpop.f32.mrb[162].mxu1  ;;  %v7606_v49 = vpop.f32.mrb[147].mxu0  ;;  %8739 = vmatmul.mubr.f32.gmra.mrb[252].mxu0 %v16274_v9  ;;  %v8111_v40 = vsel %vm468_vm1, %v8108_v7, %v8110_v29  ;;  %v8298_v47 = vsel %vm693_vm0, %v8296_v52, %v8297_v12  ;;  %v8301_v7 = vrot.slane %v16115_v50, 2 }
 0x4ec   :  { %17793 = vst [vmem:[#allocation30_spill] sm:$0xff] %v16316_v57  ;;  %v7217_v24 = vadd.f32 %v7216_v38, %v17794_v20  ;;  %v7218_v39 = vpop.f32.mrb[163].mxu1  ;;  %10876 = vmatmul.mubr.f32.gmra.mrb[12].mxu1 %v8285_v4  ;;  %8743 = vmatprep.mubr.f32.mxu0 %v8106_v31  ;;  %v17796_v31 = vld [vmem:[#allocation48_spill] sm:$0xff]  ;;  %v8293_v38 = vsel %vm693_vm0, %v8291_v60, %v8292_v18  ;;  %v17798_v60 = vld [vmem:[#allocation65_spill] sm:$0xff] }
 0x4ed   :  { %10878 = vmatprep.mubr.f32.mxu1 %v8288_v58 }
 0x4ee   :  { %v16331_v25 = vadd.f32 %v10755_v14, %v7217_v24  ;;  %v16333_v6 = vpop.f32.mrb[148].mxu0  ;;  %v8299_v24 = vrot.slane %v16097_v26, 2  ;;  %v8302_v26 = vrot.slane %v16113_v42, 2 }
 0x4ef   :  { %v7221_v56 = vpop.f32.mrb[164].mxu1  ;;  %v7616_v28 = vpop.f32.mrb[149].mxu0  ;;  %8744 = vmatmul.mubr.f32.gmra.mrb[254].mxu0 %v16288_v15 }
 0x4f0   :  { %17795 = vst [vmem:[#allocation34_spill] sm:$0xff] %v16331_v25  ;;  %v7222_v21 = vadd.f32 %v7221_v56, %v17796_v31  ;;  %v7223_v14 = vpop.f32.mrb[165].mxu1  ;;  %10879 = vmatmul.mubr.f32.gmra.mrb[14].mxu1 %v8290_v8  ;;  %8748 = vmatprep.mubr.f32.mxu0 %v8109_v32  ;;  %v16363_v32 = vld [vmem:[#allocation2 + $0x208] sm:$0x3]  ;;  %v8112_v31 = vrot.slane %v16351_v59, 1  ;;  %v8300_v42 = vsel %vm693_vm0, %v8297_v12, %v8299_v24  ;;  %v8306_v12 = vrot.slane %v16147_v19, 2 }
 0x4f1   :  { %10881 = vmatprep.mubr.f32.mxu1 %v8293_v38  ;;  %v8115_v52 = vrot.slane %v16363_v32, 1  ;;  %v8303_v50 = vsel %vm693_vm0, %v8301_v7, %v8302_v26  ;;  %v16388_v24 = vld [vmem:[#allocation2 + $0x210] sm:$0xff]  ;;  %v8305_v45 = vsel %vm693_vm0, %v8302_v26, %v8304_v41  ;;  %v8311_v41 = vrot.slane %v16182_v43, 2  ;;  %v16719_v25 = vld [vmem:[#allocation2 + $0x318] sm:$0xff] }
 0x4f2   :  { %v16346_v4 = vadd.f32 %v7606_v49, %v7222_v21  ;;  %v16348_v20 = vpop.f32.mrb[150].mxu0  ;;  %v8113_v49 = vrot.slane %v16344_v17, 1  ;;  %v8308_v19 = vsel %vm693_vm0, %v8306_v12, %v8307_v55 }
 0x4f3   :  { %v7226_v39 = vpop.f32.mrb[166].mxu1  ;;  %v16354_v58 = vpop.f32.mrb[151].mxu0  ;;  %8749 = vmatmul.mubr.f32.gmra.mrb[0].mxu0 %v16319_v30 }
 0x4f4   :  { %17797 = vst [vmem:[#allocation36_spill] sm:$0xff] %v16346_v4  ;;  %v7227_v56 = vadd.f32 %v7226_v39, %v17798_v60  ;;  %v7228_v8 = vpop.f32.mrb[167].mxu1  ;;  %10882 = vmatmul.mubr.f32.gmra.mrb[16].mxu1 %v8295_v10  ;;  %8753 = vmatprep.mubr.f32.mxu0 %v8111_v40  ;;  %v8114_v38 = vsel %vm468_vm1, %v8112_v31, %v8113_v49  ;;  %v17800_v39 = vld [vmem:[#allocation46_spill] sm:$0xff]  ;;  %v16381_v40 = vld [vmem:[#allocation2 + $0x218] sm:$0xff] }
 0x4f5   :  { %10884 = vmatprep.mubr.f32.mxu1 %v8298_v47  ;;  %v17802_v8 = vld [vmem:[#allocation13_spill] sm:$0xff]  ;;  %v8116_v7 = vsel %vm468_vm1, %v8113_v49, %v8115_v52  ;;  %v8314_v52 = vrot.slane %v16191_v34, 2  ;;  %v8317_v34 = vrot.slane %v16212_v2, 2 }
 0x4f6   :  { %v16366_v21 = vadd.f32 %v10758_v5, %v7227_v56  ;;  %v16368_v18 = vpop.f32.mrb[152].mxu0  ;;  %v8309_v47 = vrot.slane %v17802_v8, 2 }
 0x4f7   :  { %v7231_v29 = vpop.f32.mrb[168].mxu1  ;;  %v16372_v14 = vpop.f32.mrb[153].mxu0  ;;  %8754 = vmatmul.mubr.f32.gmra.mrb[2].mxu0 %v16313_v35 }
 0x4f8   :  { %17799 = vst [vmem:[#allocation23_spill] sm:$0xff] %v16366_v21  ;;  %v7232_v5 = vadd.f32 %v7231_v29, %v17800_v39  ;;  %v7233_v10 = vpop.f32.mrb[169].mxu1  ;;  %10885 = vmatmul.mubr.f32.gmra.mrb[18].mxu1 %v8300_v42  ;;  %8758 = vmatprep.mubr.f32.mxu0 %v8114_v38  ;;  %v17803_v42 = vld [vmem:[#allocation43_spill] sm:$0xff]  ;;  %v16680_v21 = vld [vmem:[#allocation2 + $0x2f8] sm:$0x3] }
 0x4f9   :  { %10887 = vmatprep.mubr.f32.mxu1 %v8303_v50  ;;  %v16400_v10 = vld [vmem:[#allocation2 + $0x220] sm:$0x3]  ;;  %v8117_v50 = vrot.slane %v16388_v24, 1 }
 0x4fa   :  { %v16383_v60 = vadd.f32 %v7616_v28, %v7232_v5  ;;  %v16385_v56 = vpop.f32.mrb[154].mxu0  ;;  %v8118_v28 = vrot.slane %v16381_v40, 1  ;;  %v8312_v5 = vrot.slane %v16180_v53, 2  ;;  %v8310_v53 = vsel %vm693_vm0, %v8307_v55, %v8309_v47 }
 0x4fb   :  { %v7236_v31 = vpop.f32.mrb[170].mxu1  ;;  %v16391_v29 = vpop.f32.mrb[155].mxu0  ;;  %8759 = vmatmul.mubr.f32.gmra.mrb[4].mxu0 %v16351_v59  ;;  %v8316_v47 = vrot.slane %v16210_v37, 2 }
 0x4fc   :  { %17801 = vst [vmem:[#allocation70_spill] sm:$0xff] %v16383_v60  ;;  %v7237_v38 = vadd.f32 %v7236_v31, %v17803_v42  ;;  %v7238_v39 = vpop.f32.mrb[171].mxu1  ;;  %10888 = vmatmul.mubr.f32.gmra.mrb[20].mxu1 %v8305_v45  ;;  %8763 = vmatprep.mubr.f32.mxu0 %v8116_v7  ;;  %v8119_v12 = vsel %vm468_vm1, %v8117_v50, %v8118_v28  ;;  %v8120_v45 = vrot.slane %v16400_v10, 1  ;;  %v17805_v7 = vld [vmem:[#allocation59_spill] sm:$0xff]  ;;  %v8319_v50 = vrot.slane %v16236_v27, 2 }
 0x4fd   :  { %10890 = vmatprep.mubr.f32.mxu1 %v8308_v19  ;;  %v8313_v43 = vsel %vm693_vm0, %v8311_v41, %v8312_v5  ;;  %v16427_v19 = vld [vmem:[#allocation2 + $0x228] sm:$0xff]  ;;  %v8315_v2 = vsel %vm693_vm0, %v8312_v5, %v8314_v52  ;;  %v8318_v37 = vsel %vm693_vm0, %v8316_v47, %v8317_v34  ;;  %v8322_v27 = vrot.slane %v16252_v16, 2  ;;  %v16659_v60 = vld [vmem:[#allocation2 + $0x2e0] sm:$0x3] }
 0x4fe   :  { %v16404_v26 = vadd.f32 %v16333_v6, %v7237_v38  ;;  %v16406_v49 = vpop.f32.mrb[156].mxu0  ;;  %v16419_v38 = vld [vmem:[#allocation2 + $0x230] sm:$0xff]  ;;  %v8121_v41 = vsel %vm468_vm1, %v8118_v28, %v8120_v45  ;;  %v8321_v52 = vrot.slane %v16256_v3, 2  ;;  %v8326_v45 = vrot.slane %v16274_v9, 2 }
 0x4ff   :  { %v7241_v8 = vpop.f32.mrb[172].mxu1  ;;  %v16410_v31 = vpop.f32.mrb[157].mxu0  ;;  %8764 = vmatmul.mubr.f32.gmra.mrb[6].mxu0 %v16344_v17  ;;  %v8324_v47 = vrot.slane %v16269_v51, 2  ;;  %v8329_v51 = vrot.slane %v16291_v61, 2 }
 0x500   :  { %17804 = vst [vmem:[#allocation33_spill] sm:$0xff] %v16404_v26  ;;  %v7242_v6 = vadd.f32 %v7241_v8, %v17805_v7  ;;  %v7243_v42 = vpop.f32.mrb[173].mxu1  ;;  %10891 = vmatmul.mubr.f32.gmra.mrb[22].mxu1 %v8310_v53  ;;  %8768 = vmatprep.mubr.f32.mxu0 %v8119_v12  ;;  %v17807_v12 = vld [vmem:[#allocation62_spill] sm:$0xff]  ;;  %v8323_v9 = vsel %vm693_vm0, %v8321_v52, %v8322_v27 }
 0x501   :  { %10893 = vmatprep.mubr.f32.mxu1 %v8313_v43  ;;  %v16439_v42 = vld [vmem:[#allocation2 + $0x238] sm:$0x3]  ;;  %v8122_v43 = vrot.slane %v16427_v19, 1  ;;  %v8325_v52 = vsel %vm693_vm0, %v8322_v27, %v8324_v47  ;;  %v8331_v47 = vrot.slane %v16319_v30, 2  ;;  %v8337_v30 = vrot.slane %v16344_v17, 2 }
 0x502   :  { %v16422_v39 = vadd.f32 %v16354_v58, %v7242_v6  ;;  %v16424_v55 = vpop.f32.mrb[158].mxu0  ;;  %v8123_v58 = vrot.slane %v16419_v38, 1 }
 0x503   :  { %v7246_v8 = vpop.f32.mrb[174].mxu1  ;;  %v16430_v53 = vpop.f32.mrb[159].mxu0  ;;  %8769 = vmatmul.mubr.f32.gmra.mrb[8].mxu0 %v16388_v24 }
 0x504   :  { %17806 = vst [vmem:[#allocation31_spill] sm:$0xff] %v16422_v39  ;;  %v7247_v7 = vadd.f32 %v7246_v8, %v17807_v12  ;;  %v7248_v6 = vpop.f32.mrb[175].mxu1  ;;  %10894 = vmatmul.mubr.f32.gmra.mrb[24].mxu1 %v8315_v2  ;;  %8773 = vmatprep.mubr.f32.mxu0 %v8121_v41  ;;  %v16450_v8 = vrot.slane %v16288_v15, 2  ;;  %v8320_v41 = vsel %vm693_vm0, %v8317_v34, %v8319_v50  ;;  %v8125_v12 = vrot.slane %v16439_v42, 1  ;;  %v16461_v15 = vld [vmem:[#allocation2 + $0x248] sm:$0xff] }
 0x505   :  { %10896 = vmatprep.mubr.f32.mxu1 %v8318_v37 }
 0x506   :  { %v16443_v5 = vadd.f32 %v16348_v20, %v7247_v7  ;;  %v16445_v28 = vpop.f32.mrb[160].mxu0  ;;  %v8124_v20 = vsel %vm468_vm1, %v8122_v43, %v8123_v58  ;;  %v17809_v7 = vld [vmem:[#allocation64_spill] sm:$0xff]  ;;  %v8328_v50 = vsel %vm693_vm0, %v8326_v45, %v16450_v8  ;;  %v16471_v43 = vld [vmem:[#allocation2 + $0x240] sm:$0xff]  ;;  %v8126_v61 = vsel %vm468_vm1, %v8123_v58, %v8125_v12 }
 0x507   :  { %v7251_v16 = vpop.f32.mrb[176].mxu1  ;;  %v16453_v2 = vpop.f32.mrb[161].mxu0  ;;  %8774 = vmatmul.mubr.f32.gmra.mrb[10].mxu0 %v16381_v40  ;;  %v8332_v45 = vrot.slane %v16313_v35, 2  ;;  %v8334_v12 = vrot.slane %v16328_v33, 2 }
 0x508   :  { %17808 = vst [vmem:[#allocation52_spill] sm:$0xff] %v16443_v5  ;;  %v7252_v3 = vadd.f32 %v7251_v16, %v17809_v7  ;;  %v7253_v6 = vpop.f32.mrb[177].mxu1  ;;  %10897 = vmatmul.mubr.f32.gmra.mrb[26].mxu1 %v8320_v41  ;;  %8778 = vmatprep.mubr.f32.mxu0 %v8124_v20  ;;  %v8128_v20 = vrot.slane %v16461_v15, 1  ;;  %v16642_v5 = vld [vmem:[#allocation2 + $0x2d8] sm:$0xff] }
 0x509   :  { %10899 = vmatprep.mubr.f32.mxu1 %v8323_v9  ;;  %v16481_v6 = vld [vmem:[#allocation2 + $0x250] sm:$0x3]  ;;  %v8330_v9 = vsel %vm693_vm0, %v16450_v8, %v8329_v51  ;;  %v8335_v17 = vsel %vm693_vm0, %v8332_v45, %v8334_v12  ;;  %v8341_v12 = vrot.slane %v16388_v24, 2 }
 0x50a   :  { %v16465_v37 = vadd.f32 %v16372_v14, %v7252_v3  ;;  %v16467_v34 = vpop.f32.mrb[162].mxu0  ;;  %v17811_v14 = vld [vmem:[#allocation67_spill] sm:$0xff]  ;;  %v8130_v51 = vrot.slane %v16481_v6, 1 }
 0x50b   :  { %v7256_v16 = vpop.f32.mrb[178].mxu1  ;;  %v16473_v41 = vpop.f32.mrb[163].mxu0  ;;  %8779 = vmatmul.mubr.f32.gmra.mrb[12].mxu0 %v16427_v19 }
 0x50c   :  { %17810 = vst [vmem:[#allocation53_spill] sm:$0xff] %v16465_v37  ;;  %v7257_v7 = vadd.f32 %v7256_v16, %v17811_v14  ;;  %v7258_v3 = vpop.f32.mrb[179].mxu1  ;;  %10900 = vmatmul.mubr.f32.gmra.mrb[28].mxu1 %v8325_v52  ;;  %8783 = vmatprep.mubr.f32.mxu0 %v8126_v61  ;;  %v8127_v37 = vrot.slane %v16471_v43, 1 }
 0x50d   :  { %10902 = vmatprep.mubr.f32.mxu1 %v8328_v50  ;;  %v17813_v50 = vld [vmem:[#allocation18_spill] sm:$0xff] }
 0x50e   :  { %v16487_v27 = vadd.f32 %v16368_v18, %v7257_v7  ;;  %v16489_v58 = vpop.f32.mrb[164].mxu0  ;;  %v8129_v35 = vsel %vm468_vm1, %v8127_v37, %v8128_v20  ;;  %v8333_v18 = vsel %vm693_vm0, %v8331_v47, %v8332_v45  ;;  %v16501_v7 = vld [vmem:[#allocation2 + $0x260] sm:$0xff]  ;;  %v8336_v37 = vrot.slane %v16351_v59, 2 }
 0x50f   :  { %v7261_v16 = vpop.f32.mrb[180].mxu1  ;;  %v16493_v52 = vpop.f32.mrb[165].mxu0  ;;  %8784 = vmatmul.mubr.f32.gmra.mrb[14].mxu0 %v16419_v38  ;;  %v8131_v47 = vsel %vm468_vm1, %v8128_v20, %v8130_v51  ;;  %v8344_v51 = vrot.slane %v16400_v10, 2  ;;  %v8347_v10 = vrot.slane %v16419_v38, 2 }
 0x510   :  { %17812 = vst [vmem:[#allocation48_spill] sm:$0xff] %v16487_v27  ;;  %v7262_v61 = vadd.f32 %v7261_v16, %v17813_v50  ;;  %v7263_v14 = vpop.f32.mrb[181].mxu1  ;;  %10903 = vmatmul.mubr.f32.gmra.mrb[30].mxu1 %v8330_v9  ;;  %8788 = vmatprep.mubr.f32.mxu0 %v8129_v35  ;;  %v16509_v27 = vld [vmem:[#allocation2 + $0x258] sm:$0xff]  ;;  %v8339_v16 = vrot.slane %v16363_v32, 2  ;;  %v17815_v50 = vld [vmem:[#allocation73_spill] sm:$0xff]  ;;  %v8338_v59 = vsel %vm693_vm0, %v8336_v37, %v8337_v30  ;;  %v8342_v32 = vrot.slane %v16381_v40, 2 }
 0x511   :  { %10905 = vmatprep.mubr.f32.mxu1 %v8333_v18  ;;  %v16521_v18 = vld [vmem:[#allocation2 + $0x268] sm:$0x3] }
 0x512   :  { %v16504_v33 = vadd.f32 %v16391_v29, %v7262_v61  ;;  %v16506_v3 = vpop.f32.mrb[166].mxu0  ;;  %v8133_v29 = vrot.slane %v16501_v7, 1  ;;  %v8340_v40 = vsel %vm693_vm0, %v8337_v30, %v8339_v16  ;;  %v8343_v24 = vsel %vm693_vm0, %v8341_v12, %v8342_v32  ;;  %v16548_v16 = vld [vmem:[#allocation2 + $0x270] sm:$0xff] }
 0x513   :  { %v7266_v9 = vpop.f32.mrb[182].mxu1  ;;  %v16512_v35 = vpop.f32.mrb[167].mxu0  ;;  %8789 = vmatmul.mubr.f32.gmra.mrb[16].mxu0 %v16471_v43  ;;  %v8345_v38 = vsel %vm693_vm0, %v8342_v32, %v8344_v51  ;;  %v8351_v51 = vrot.slane %v16471_v43, 2 }
 0x514   :  { %17814 = vst [vmem:[#allocation65_spill] sm:$0xff] %v16504_v33  ;;  %v7267_v61 = vadd.f32 %v7266_v9, %v17815_v50  ;;  %v7268_v14 = vpop.f32.mrb[183].mxu1  ;;  %10906 = vmatmul.mubr.f32.gmra.mrb[32].mxu1 %v8335_v17  ;;  %8793 = vmatprep.mubr.f32.mxu0 %v8131_v47  ;;  %v8132_v33 = vrot.slane %v16509_v27, 1  ;;  %v8135_v47 = vrot.slane %v16521_v18, 1  ;;  %v17817_v50 = vld [vmem:[#allocation14_spill] sm:$0xff] }
 0x515   :  { %10908 = vmatprep.mubr.f32.mxu1 %v8338_v59  ;;  %v16540_v14 = vld [vmem:[#allocation2 + $0x278] sm:$0xff] }
 0x516   :  { %v16525_v45 = vadd.f32 %v16385_v56, %v7267_v61  ;;  %v16527_v20 = vpop.f32.mrb[168].mxu0  ;;  %v8134_v37 = vsel %vm468_vm1, %v8132_v33, %v8133_v29  ;;  %v8346_v33 = vrot.slane %v16427_v19, 2  ;;  %v8136_v12 = vsel %vm468_vm1, %v8133_v29, %v8135_v47 }
 0x517   :  { %v7271_v9 = vpop.f32.mrb[184].mxu1  ;;  %v16531_v17 = vpop.f32.mrb[169].mxu0  ;;  %8794 = vmatmul.mubr.f32.gmra.mrb[18].mxu0 %v16461_v15  ;;  %v8354_v47 = vrot.slane %v16481_v6, 2  ;;  %v8357_v6 = vrot.slane %v16501_v7, 2 }
 0x518   :  { %17816 = vst [vmem:[#allocation46_spill] sm:$0xff] %v16525_v45  ;;  %v7272_v56 = vadd.f32 %v7271_v9, %v17817_v50  ;;  %v7273_v61 = vpop.f32.mrb[185].mxu1  ;;  %10909 = vmatmul.mubr.f32.gmra.mrb[34].mxu1 %v8340_v40  ;;  %8798 = vmatprep.mubr.f32.mxu0 %v8134_v37  ;;  %v8349_v9 = vrot.slane %v16439_v42, 2  ;;  %v17819_v50 = vld [vmem:[#allocation55_spill] sm:$0xff]  ;;  %v8348_v19 = vsel %vm693_vm0, %v8346_v33, %v8347_v10  ;;  %v8352_v42 = vrot.slane %v16461_v15, 2 }
 0x519   :  { %10911 = vmatprep.mubr.f32.mxu1 %v8343_v24  ;;  %v16560_v24 = vld [vmem:[#allocation2 + $0x280] sm:$0x3] }
 0x51a   :  { %v16543_v59 = vadd.f32 %v16410_v31, %v7272_v56  ;;  %v16545_v30 = vpop.f32.mrb[170].mxu0  ;;  %v8138_v31 = vrot.slane %v16540_v14, 1  ;;  %v8350_v15 = vsel %vm693_vm0, %v8347_v10, %v8349_v9  ;;  %v8353_v43 = vsel %vm693_vm0, %v8351_v51, %v8352_v42  ;;  %v7904_v9 = vld [vmem:[#allocation2 + $0x288] sm:$0xff] }
 0x51b   :  { %v7276_v40 = vpop.f32.mrb[186].mxu1  ;;  %v16551_v37 = vpop.f32.mrb[171].mxu0  ;;  %8799 = vmatmul.mubr.f32.gmra.mrb[20].mxu0 %v16509_v27 }
 0x51c   :  { %17818 = vst [vmem:[#allocation13_spill] sm:$0xff] %v16543_v59  ;;  %v7277_v56 = vadd.f32 %v7276_v40, %v17819_v50  ;;  %v7278_v61 = vpop.f32.mrb[187].mxu1  ;;  %10912 = vmatmul.mubr.f32.gmra.mrb[36].mxu1 %v8345_v38  ;;  %8803 = vmatprep.mubr.f32.mxu0 %v8136_v12  ;;  %v8137_v59 = vrot.slane %v16548_v16, 1  ;;  %v8140_v12 = vrot.slane %v16560_v24, 1  ;;  %v17821_v50 = vld [vmem:[#allocation63_spill] sm:$0xff] }
 0x51d   :  { %10914 = vmatprep.mubr.f32.mxu1 %v8348_v19  ;;  %v16579_v61 = vld [vmem:[#allocation2 + $0x290] sm:$0xff] }
 0x51e   :  { %v16564_v32 = vadd.f32 %v16406_v49, %v7277_v56  ;;  %v16566_v29 = vpop.f32.mrb[172].mxu0  ;;  %v8139_v33 = vsel %vm468_vm1, %v8137_v59, %v8138_v31  ;;  %v8356_v59 = vrot.slane %v16509_v27, 2  ;;  %v8141_v51 = vsel %vm468_vm1, %v8138_v31, %v8140_v12 }
 0x51f   :  { %v7281_v40 = vpop.f32.mrb[188].mxu1  ;;  %v16570_v38 = vpop.f32.mrb[173].mxu0  ;;  %8804 = vmatmul.mubr.f32.gmra.mrb[22].mxu0 %v16501_v7  ;;  %v8355_v7 = vsel %vm693_vm0, %v8352_v42, %v8354_v47  ;;  %v8361_v31 = vrot.slane %v16548_v16, 2  ;;  %v8364_v47 = vrot.slane %v16560_v24, 2  ;;  %v16612_v24 = vld [vmem:[#allocation2 + $0x2a8] sm:$0xff] }
 0x520   :  { %17820 = vst [vmem:[#allocation43_spill] sm:$0xff] %v16564_v32  ;;  %v7282_v49 = vadd.f32 %v7281_v40, %v17821_v50  ;;  %v7283_v56 = vpop.f32.mrb[189].mxu1  ;;  %10915 = vmatmul.mubr.f32.gmra.mrb[38].mxu1 %v8350_v15  ;;  %8808 = vmatprep.mubr.f32.mxu0 %v8139_v33  ;;  %v8359_v40 = vrot.slane %v16521_v18, 2  ;;  %v8143_v33 = vrot.slane %v16579_v61, 1  ;;  %v8358_v27 = vsel %vm693_vm0, %v8356_v59, %v8357_v6 }
 0x521   :  { %10917 = vmatprep.mubr.f32.mxu1 %v8353_v43  ;;  %v8362_v18 = vrot.slane %v16540_v14, 2  ;;  %v7906_v43 = vld [vmem:[#allocation2 + $0x298] sm:$0x3] }
 0x522   :  { %v16582_v19 = vadd.f32 %v16430_v53, %v7282_v49  ;;  %v16584_v10 = vpop.f32.mrb[174].mxu0  ;;  %v17823_v53 = vld [vmem:[#allocation25_spill] sm:$0xff]  ;;  %v8360_v59 = vsel %vm693_vm0, %v8357_v6, %v8359_v40  ;;  %v8366_v6 = vrot.slane %v7904_v9, 2 }
 0x523   :  { %v7286_v50 = vpop.f32.mrb[190].mxu1  ;;  %v16588_v15 = vpop.f32.mrb[175].mxu0  ;;  %8809 = vmatmul.mubr.f32.gmra.mrb[24].mxu0 %v16548_v16  ;;  %v8367_v16 = vrot.slane %v16579_v61, 2 }
 0x524   :  { %17822 = vst [vmem:[#allocation59_spill] sm:$0xff] %v16582_v19  ;;  %v7287_v49 = vadd.f32 %v7286_v50, %v17823_v53  ;;  %v7288_v56 = vpop.f32.mrb[191].mxu1  ;;  %10918 = vmatmul.mubr.f32.gmra.mrb[40].mxu1 %v8355_v7  ;;  %8813 = vmatprep.mubr.f32.mxu0 %v8141_v51  ;;  %v8142_v19 = vrot.slane %v7904_v9, 1  ;;  %v8145_v51 = vrot.slane %v7906_v43, 1  ;;  %v17825_v53 = vld [vmem:[#allocation27_spill] sm:$0xff] }
 0x525   :  { %10920 = vmatprep.mubr.f32.mxu1 %v8358_v27 }
 0x526   :  { %v16598_v32 = vadd.f32 %v16424_v55, %v7287_v49  ;;  %v16600_v42 = vpop.f32.mrb[176].mxu0  ;;  %v8144_v7 = vsel %vm468_vm1, %v8142_v19, %v8143_v33  ;;  %v8363_v55 = vsel %vm693_vm0, %v8361_v31, %v8362_v18  ;;  %v7907_v19 = vld [vmem:[#allocation2 + $0x2a0] sm:$0xff]  ;;  %v8146_v31 = vsel %vm468_vm1, %v8143_v33, %v8145_v51 }
 0x527   :  { %v7291_v12 = vpop.f32.mrb[192].mxu1  ;;  %v16604_v50 = vpop.f32.mrb[177].mxu0  ;;  %8814 = vmatmul.mubr.f32.gmra.mrb[26].mxu0 %v16540_v14  ;;  %v8147_v45 = vrot.slane %v7907_v19, 1 }
 0x528   :  { %17824 = vst [vmem:[#allocation62_spill] sm:$0xff] %v16598_v32  ;;  %v7292_v56 = vadd.f32 %v7291_v12, %v17825_v53  ;;  %10921 = vmatmul.mubr.f32.gmra.mrb[42].mxu1 %v8360_v59  ;;  %8818 = vmatprep.mubr.f32.mxu0 %v8144_v7  ;;  %v7293_v49 = vpop.f32.mrb[193].mxu1  ;;  %v8365_v12 = vsel %vm693_vm0, %v8362_v18, %v8364_v47  ;;  %v8369_v59 = vrot.slane %v7906_v43, 2  ;;  %v8148_v7 = vrot.slane %v16612_v24, 1  ;;  %v17827_v53 = vld [vmem:[#allocation29_spill] sm:$0xff] }
 0x529   :  { %10923 = vmatprep.mubr.f32.mxu1 %v8363_v55  ;;  %v8372_v49 = vrot.slane %v16612_v24, 2  ;;  %v8371_v43 = vrot.slane %v7907_v19, 2 }
 0x52a   :  { %v16615_v27 = vadd.f32 %v16453_v2, %v7292_v56  ;;  %v16617_v14 = vpop.f32.mrb[178].mxu0  ;;  %v8368_v2 = vsel %vm693_vm0, %v8366_v6, %v8367_v16  ;;  %v8370_v6 = vsel %vm693_vm0, %v8367_v16, %v8369_v59 }
 0x52b   :  { %v7296_v40 = vpop.f32.mrb[194].mxu1  ;;  %v16619_v32 = vpop.f32.mrb[179].mxu0  ;;  %8819 = vmatmul.mubr.f32.gmra.mrb[28].mxu0 %v7904_v9  ;;  %v16627_v9 = vld [vmem:[#allocation2 + $0x2c0] sm:$0xff] }
 0x52c   :  { %17826 = vst [vmem:[#allocation64_spill] sm:$0xff] %v16615_v27  ;;  %v7297_v55 = vadd.f32 %v7296_v40, %v17827_v53  ;;  %10924 = vmatmul.mubr.f32.gmra.mrb[44].mxu1 %v8365_v12  ;;  %8823 = vmatprep.mubr.f32.mxu0 %v8146_v31  ;;  %v7298_v56 = vpop.f32.mrb[195].mxu1  ;;  %v7909_v27 = vld [vmem:[#allocation2 + $0x2b0] sm:$0x3]  ;;  %v8149_v40 = vsel %vm468_vm1, %v8147_v45, %v8148_v7  ;;  %v7910_v53 = vld [vmem:[#allocation2 + $0x2b8] sm:$0xff] }
 0x52d   :  { %10926 = vmatprep.mubr.f32.mxu1 %v8368_v2  ;;  %v8374_v12 = vrot.slane %v7909_v27, 2  ;;  %v8150_v31 = vrot.slane %v7909_v27, 1  ;;  %v17829_v2 = vld [vmem:[#allocation49_spill] sm:$0xff]  ;;  %v8376_v16 = vrot.slane %v7910_v53, 2 }
 0x52e   :  { %v16630_v18 = vadd.f32 %v16445_v28, %v7297_v55  ;;  %v16632_v33 = vpop.f32.mrb[180].mxu0  ;;  %v8373_v28 = vsel %vm693_vm0, %v8371_v43, %v8372_v49  ;;  %v8377_v55 = vrot.slane %v16627_v9, 2 }
 0x52f   :  { %v7301_v47 = vpop.f32.mrb[196].mxu1  ;;  %v16634_v51 = vpop.f32.mrb[181].mxu0  ;;  %8824 = vmatmul.mubr.f32.gmra.mrb[30].mxu0 %v16579_v61  ;;  %v8151_v43 = vsel %vm468_vm1, %v8148_v7, %v8150_v31 }
 0x530   :  { %17828 = vst [vmem:[#allocation67_spill] sm:$0xff] %v16630_v18  ;;  %v7302_v56 = vadd.f32 %v7301_v47, %v17829_v2  ;;  %v7303_v39 = vpop.f32.mrb[197].mxu1  ;;  %10927 = vmatmul.mubr.f32.gmra.mrb[46].mxu1 %v8370_v6  ;;  %8828 = vmatprep.mubr.f32.mxu0 %v8149_v40  ;;  %v7912_v18 = vld [vmem:[#allocation2 + $0x2c8] sm:$0x3]  ;;  %v8153_v6 = vrot.slane %v16627_v9, 1  ;;  %v16654_v40 = vld [vmem:[#allocation2 + $0x2d0] sm:$0xff] }
 0x531   :  { %10929 = vmatprep.mubr.f32.mxu1 %v8373_v28  ;;  %v8375_v39 = vsel %vm693_vm0, %v8372_v49, %v8374_v12  ;;  %v8379_v47 = vrot.slane %v7912_v18, 2  ;;  %v17831_v2 = vld [vmem:[#allocation47_spill] sm:$0xff]  ;;  %v8381_v31 = vrot.slane %v16654_v40, 2 }
 0x532   :  { %v16645_v61 = vadd.f32 %v16473_v41, %v7302_v56  ;;  %v16647_v45 = vpop.f32.mrb[182].mxu0  ;;  %v8378_v56 = vsel %vm693_vm0, %v8376_v16, %v8377_v55  ;;  %v16661_v49 = vld [vmem:[#allocation2 + $0x2f0] sm:$0xff] }
 0x533   :  { %v7306_v27 = vpop.f32.mrb[198].mxu1  ;;  %v16649_v59 = vpop.f32.mrb[183].mxu0  ;;  %8829 = vmatmul.mubr.f32.gmra.mrb[32].mxu0 %v7907_v19  ;;  %v8152_v19 = vrot.slane %v7910_v53, 1  ;;  %v8380_v16 = vsel %vm693_vm0, %v8377_v55, %v8379_v47  ;;  %v8387_v4 = vrot.slane %v16661_v49, 2 }
 0x534   :  { %17830 = vst [vmem:[#allocation18_spill] sm:$0xff] %v16645_v61  ;;  %v7307_v28 = vadd.f32 %v7306_v27, %v17831_v2  ;;  %v7308_v41 = vpop.f32.mrb[199].mxu1  ;;  %10930 = vmatmul.mubr.f32.gmra.mrb[48].mxu1 %v8375_v39  ;;  %8833 = vmatprep.mubr.f32.mxu0 %v8151_v43  ;;  %v8382_v61 = vrot.slane %v16642_v5, 2  ;;  %v8384_v2 = vrot.slane %v16659_v60, 2 }
 0x535   :  { %10932 = vmatprep.mubr.f32.mxu1 %v8378_v56  ;;  %v8154_v43 = vsel %vm468_vm1, %v8152_v19, %v8153_v6  ;;  %v8155_v41 = vrot.slane %v7912_v18, 1  ;;  %v16675_v56 = vld [vmem:[#allocation2 + $0x2e8] sm:$0xff] }
 0x536   :  { %v16664_v7 = vadd.f32 %v16467_v34, %v7307_v28  ;;  %v16666_v12 = vpop.f32.mrb[184].mxu0  ;;  %v17833_v34 = vld [vmem:[#allocation38_spill] sm:$0xff]  ;;  %v8383_v26 = vsel %vm693_vm0, %v8381_v31, %v8382_v61  ;;  %v8386_v47 = vrot.slane %v16675_v56, 2  ;;  %v8385_v31 = vsel %vm693_vm0, %v8382_v61, %v8384_v2 }
 0x537   :  { %v7311_v27 = vpop.f32.mrb[200].mxu1  ;;  %v16669_v39 = vpop.f32.mrb[185].mxu0  ;;  %8834 = vmatmul.mubr.f32.gmra.mrb[34].mxu0 %v16612_v24  ;;  %v16682_v24 = vld [vmem:[#allocation2 + $0x308] sm:$0xff]  ;;  %v8157_v61 = vrot.slane %v16654_v40, 1 }
 0x538   :  { %17832 = vst [vmem:[#allocation73_spill] sm:$0xff] %v16664_v7  ;;  %v7312_v28 = vadd.f32 %v7311_v27, %v17833_v34  ;;  %v7313_v7 = vpop.f32.mrb[201].mxu1  ;;  %10933 = vmatmul.mubr.f32.gmra.mrb[50].mxu1 %v8380_v16  ;;  %8838 = vmatprep.mubr.f32.mxu0 %v8154_v43  ;;  %v8156_v27 = vsel %vm468_vm1, %v8153_v6, %v8155_v41  ;;  %v8389_v16 = vrot.slane %v16680_v21, 2  ;;  %v16696_v43 = vld [vmem:[#allocation2 + $0x300] sm:$0xff]  ;;  %v8392_v57 = vrot.slane %v16682_v24, 2 }
 0x539   :  { %10935 = vmatprep.mubr.f32.mxu1 %v8383_v26  ;;  %v8158_v26 = vrot.slane %v16642_v5, 1  ;;  %v16704_v6 = vld [vmem:[#allocation2 + $0x320] sm:$0xff] }
 0x53a   :  { %v16685_v55 = vadd.f32 %v16493_v52, %v7312_v28  ;;  %v16687_v18 = vpop.f32.mrb[186].mxu0  ;;  %v17835_v52 = vld [vmem:[#allocation50_spill] sm:$0xff]  ;;  %v8397_v63 = vrot.slane %v16704_v6, 2 }
 0x53b   :  { %v7316_v19 = vpop.f32.mrb[202].mxu1  ;;  %v16690_v7 = vpop.f32.mrb[187].mxu0  ;;  %8839 = vmatmul.mubr.f32.gmra.mrb[36].mxu0 %v7910_v53  ;;  %v16701_v53 = vld [vmem:[#allocation2 + $0x310] sm:$0x3] }
 0x53c   :  { %17834 = vst [vmem:[#allocation14_spill] sm:$0xff] %v16685_v55  ;;  %v7317_v34 = vadd.f32 %v7316_v19, %v17835_v52  ;;  %v7318_v28 = vpop.f32.mrb[203].mxu1  ;;  %10936 = vmatmul.mubr.f32.gmra.mrb[52].mxu1 %v8385_v31  ;;  %8843 = vmatprep.mubr.f32.mxu0 %v8156_v27  ;;  %v8388_v55 = vsel %vm693_vm0, %v8386_v47, %v8387_v4  ;;  %v8391_v19 = vrot.slane %v16696_v43, 2  ;;  %v8394_v52 = vrot.slane %v16701_v53, 2 }
 0x53d   :  { %10938 = vmatprep.mubr.f32.mxu1 %v8388_v55  ;;  %v8390_v47 = vsel %vm693_vm0, %v8387_v4, %v8389_v16  ;;  %v8159_v55 = vsel %vm468_vm1, %v8157_v61, %v8158_v26  ;;  %v8160_v28 = vrot.slane %v16659_v60, 1  ;;  %v16726_v4 = vld [vmem:[#allocation2 + $0x338] sm:$0xff]  ;;  %v8396_v61 = vrot.slane %v16719_v25, 2 }
 0x53e   :  { %v16707_v2 = vadd.f32 %v16489_v58, %v7317_v34  ;;  %v16709_v41 = vpop.f32.mrb[188].mxu0  ;;  %v17837_v58 = vld [vmem:[#allocation44_spill] sm:$0xff]  ;;  %v8393_v62 = vsel %vm693_vm0, %v8391_v19, %v8392_v57  ;;  %v8395_v19 = vsel %vm693_vm0, %v8392_v57, %v8394_v52  ;;  %v16748_v57 = vld [vmem:[#allocation2 + $0x340] sm:$0x3] }
 0x53f   :  { %v7321_v31 = vpop.f32.mrb[204].mxu1  ;;  %v16712_v27 = vpop.f32.mrb[189].mxu0  ;;  %8844 = vmatmul.mubr.f32.gmra.mrb[38].mxu0 %v16627_v9  ;;  %v16724_v9 = vld [vmem:[#allocation2 + $0x328] sm:$0x3]  ;;  %v8398_v22 = vsel %vm693_vm0, %v8396_v61, %v8397_v63 }
 0x540   :  { %17836 = vst [vmem:[#allocation55_spill] sm:$0xff] %v16707_v2  ;;  %v7322_v34 = vadd.f32 %v7321_v31, %v17837_v58  ;;  %v7323_v2 = vpop.f32.mrb[205].mxu1  ;;  %10939 = vmatmul.mubr.f32.gmra.mrb[54].mxu1 %v8390_v47  ;;  %8848 = vmatprep.mubr.f32.mxu0 %v8159_v55  ;;  %v8161_v47 = vsel %vm468_vm1, %v8158_v26, %v8160_v28  ;;  %v8163_v55 = vrot.slane %v16661_v49, 1  ;;  %v16741_v58 = vld [vmem:[#allocation2 + $0x330] sm:$0xff]  ;;  %v8162_v26 = vrot.slane %v16675_v56, 1 }
 0x541   :  { %10941 = vmatprep.mubr.f32.mxu1 %v8393_v62  ;;  %v8399_v62 = vrot.slane %v16724_v9, 2  ;;  %v8401_v11 = vrot.slane %v16741_v58, 2 }
 0x542   :  { %v16729_v16 = vadd.f32 %v16512_v35, %v7322_v34  ;;  %v16731_v60 = vpop.f32.mrb[190].mxu0  ;;  %v16743_v35 = vld [vmem:[#allocation2 + $0x348] sm:$0xff]  ;;  %v17839_v34 = vld [vmem:[#allocation39_spill] sm:$0xff] }
 0x543   :  { %v7326_v31 = vpop.f32.mrb[206].mxu1  ;;  %v16734_v2 = vpop.f32.mrb[191].mxu0  ;;  %8849 = vmatmul.mubr.f32.gmra.mrb[40].mxu0 %v16654_v40  ;;  %v8402_v40 = vrot.slane %v16726_v4, 2 }
 0x544   :  { %17838 = vst [vmem:[#allocation63_spill] sm:$0xff] %v16729_v16  ;;  %v7327_v16 = vadd.f32 %v7326_v31, %v17839_v34  ;;  %v7328_v54 = vpop.f32.mrb[207].mxu1  ;;  %10942 = vmatmul.mubr.f32.gmra.mrb[56].mxu1 %v8395_v19  ;;  %8853 = vmatprep.mubr.f32.mxu0 %v8161_v47  ;;  %v16758_v31 = vld [vmem:[#allocation2 + $0x358] sm:$0x3]  ;;  %v8400_v47 = vsel %vm693_vm0, %v8397_v63, %v8399_v62  ;;  %v8404_v34 = vrot.slane %v16748_v57, 2 }
 0x545   :  { %10944 = vmatprep.mubr.f32.mxu1 %v8398_v22  ;;  %v8406_v54 = vrot.slane %v16743_v35, 2  ;;  %v8164_v22 = vsel %vm468_vm1, %v8162_v26, %v8163_v55  ;;  %v8403_v48 = vsel %vm693_vm0, %v8401_v11, %v8402_v40  ;;  %v17842_v11 = vld [vmem:[#allocation42_spill] sm:$0xff] }
 0x546   :  { %v16752_v52 = vadd.f32 %v16506_v3, %v7327_v16  ;;  %v16754_v28 = vpop.f32.mrb[192].mxu0  ;;  %v8165_v3 = vrot.slane %v16680_v21, 1  ;;  %v17841_v16 = vld [vmem:[#allocation37_spill] sm:$0xff] }
 0x547   :  { %v7331_v19 = vpop.f32.mrb[208].mxu1  ;;  %v8592_v61 = vpop.f32.mrb[193].mxu0  ;;  %8854 = vmatmul.mubr.f32.gmra.mrb[42].mxu0 %v16642_v5  ;;  %v8408_v62 = vsel %vm693_vm0, %v8406_v54, %v16450_v8 }
 0x548   :  { %17840 = vst [vmem:[#allocation25_spill] sm:$0xff] %v16752_v52  ;;  %v7332_v52 = vadd.f32 %v7331_v19, %v17841_v16  ;;  %v7333_v44 = vpop.f32.mrb[209].mxu1  ;;  %10945 = vmatmul.mubr.f32.gmra.mrb[58].mxu1 %v8400_v47  ;;  %8858 = vmatprep.mubr.f32.mxu0 %v8164_v22  ;;  %v8409_v61 = vrot.slane %v16758_v31, 2  ;;  %v8166_v19 = vsel %vm468_vm1, %v8163_v55, %v8165_v3  ;;  %v8170_v3 = vrot.slane %v16701_v53, 1  ;;  %v17843_v16 = vld [vmem:[#allocation35_spill] sm:$0xff] }
 0x549   :  { %10947 = vmatprep.mubr.f32.mxu1 %v8403_v48  ;;  %v8405_v44 = vsel %vm693_vm0, %v8402_v40, %v8404_v34  ;;  %v8168_v48 = vrot.slane %v16682_v24, 1 }
 0x54a   :  { %v16769_v5 = vadd.f32 %v16531_v17, %v7332_v52  ;;  %v16771_v63 = vpop.f32.mrb[194].mxu0  ;;  %v8167_v17 = vrot.slane %v16696_v43, 1  ;;  %v8410_v52 = vsel %vm693_vm0, %v16450_v8, %v8409_v61 }
 0x54b   :  { %v7336_v26 = vpop.f32.mrb[210].mxu1  ;;  %v8597_v21 = vpop.f32.mrb[195].mxu0  ;;  %8859 = vmatmul.mubr.f32.gmra.mrb[44].mxu0 %v16675_v56 }
 0x54c   :  { %v7337_v47 = vadd.f32 %v7336_v26, %v17842_v11  ;;  %v7338_v22 = vpop.f32.mrb[211].mxu1  ;;  %10948 = vmatmul.mubr.f32.gmra.mrb[60].mxu1 %v8405_v44  ;;  %8863 = vmatprep.mubr.f32.mxu0 %v8166_v19  ;;  %v8169_v34 = vsel %vm468_vm1, %v8167_v17, %v8168_v48  ;;  %v8173_v44 = vrot.slane %v16704_v6, 1  ;;  %v17844_v19 = vld [vmem:[#allocation58_spill] sm:$0xff] }
 0x54d   :  { %10950 = vmatprep.mubr.f32.mxu1 %v8408_v62 }
 0x54e   :  { %v16784_v54 = vadd.f32 %v16527_v20, %v7337_v47  ;;  %v16786_v56 = vpop.f32.mrb[196].mxu0  ;;  %v8172_v47 = vrot.slane %v16719_v25, 1 }
 0x54f   :  { %v7341_v40 = vpop.f32.mrb[212].mxu1  ;;  %v8602_v55 = vpop.f32.mrb[197].mxu0  ;;  %8864 = vmatmul.mubr.f32.gmra.mrb[46].mxu0 %v16661_v49  ;;  %v8171_v49 = vsel %vm468_vm1, %v8168_v48, %v8170_v3  ;;  %v8175_v48 = vrot.slane %v16724_v9, 1 }
 0x550   :  { %v7342_v26 = vadd.f32 %v7341_v40, %v17843_v16  ;;  %v7343_v21 = vpop.f32.mrb[213].mxu1  ;;  %8868 = vmatprep.mubr.f32.mxu0 %v8169_v34  ;;  %10951 = vmatmul.mubr.f32.gmra.mrb[62].mxu1 %v8410_v52  ;;  %v17845_v40 = vld [vmem:[#allocation41_spill] sm:$0xff] }
 0x551   :  { %v8176_v21 = vsel %vm468_vm1, %v8173_v44, %v8175_v48  ;;  %v11494_v48 = vld [vmem:[#allocation2 + $0x8] sm:$0xff] }
 0x552   :  { %v16793_v8 = vadd.f32 %v16551_v37, %v7342_v26  ;;  %v16795_v20 = vpop.f32.mrb[198].mxu0 }
 0x553   :  { %v7346_v61 = vpop.f32.mrb[214].mxu1  ;;  %v8607_v62 = vpop.f32.mrb[199].mxu0  ;;  %8869 = vmatmul.mubr.f32.gmra.mrb[48].mxu0 %v16696_v43  ;;  %v8174_v43 = vsel %vm468_vm1, %v8172_v47, %v8173_v44  ;;  %v8180_v44 = vrot.slane %v16748_v57, 1  ;;  %v17847_v47 = vld [vmem:[#allocation68_spill] sm:$0xff]  ;;  %v17848_v57 = vld [vmem:[#allocation66_spill] sm:$0xff] }
 0x554   :  { %v7347_v53 = vadd.f32 %v7346_v61, %v17844_v19  ;;  %v7348_v11 = vpop.f32.mrb[215].mxu1  ;;  %8873 = vmatprep.mubr.f32.mxu0 %v8171_v49  ;;  %v17846_v61 = vld [vmem:[#allocation57_spill] sm:$0xff]  ;;  %v8177_v49 = vrot.slane %v16741_v58, 1 }
 0x556   :  { %v16803_v22 = vadd.f32 %v16545_v30, %v7347_v53  ;;  %v16805_v37 = vpop.f32.mrb[200].mxu0 }
 0x557   :  { %v7351_v17 = vpop.f32.mrb[216].mxu1  ;;  %v8612_v52 = vpop.f32.mrb[201].mxu0  ;;  %8874 = vmatmul.mubr.f32.gmra.mrb[50].mxu0 %v16682_v24  ;;  %v8178_v24 = vrot.slane %v16726_v4, 1 }
 0x558   :  { %v7352_v55 = vadd.f32 %v7351_v17, %v17845_v40  ;;  %v7353_v34 = vpop.f32.mrb[217].mxu1  ;;  %8878 = vmatprep.mubr.f32.mxu0 %v8174_v43  ;;  %v8182_v43 = vrot.slane %v16743_v35, 1  ;;  %v8183_v40 = vrot.slane %v11494_v48, 1 }
 0x55a   :  { %v16812_v3 = vadd.f32 %v16570_v38, %v7352_v55  ;;  %v16814_v16 = vpop.f32.mrb[202].mxu0 }
 0x55b   :  { %v7356_v30 = vpop.f32.mrb[218].mxu1  ;;  %v8617_v26 = vpop.f32.mrb[203].mxu0  ;;  %8879 = vmatmul.mubr.f32.gmra.mrb[52].mxu0 %v16719_v25  ;;  %v8179_v25 = vsel %vm468_vm1, %v8177_v49, %v8178_v24 }
 0x55c   :  { %v7357_v62 = vadd.f32 %v7356_v30, %v17846_v61  ;;  %v7358_v9 = vpop.f32.mrb[219].mxu1  ;;  %8883 = vmatprep.mubr.f32.mxu0 %v8176_v21  ;;  %v8184_v61 = vsel %vm468_vm1, %v8182_v43, %v8183_v40 }
 0x55e   :  { %v16822_v19 = vadd.f32 %v16566_v29, %v7357_v62  ;;  %v16824_v38 = vpop.f32.mrb[204].mxu0  ;;  %v8185_v62 = vrot.slane %v16758_v31, 1 }
 0x55f   :  { %v7361_v53 = vpop.f32.mrb[220].mxu1  ;;  %v8622_v11 = vpop.f32.mrb[205].mxu0  ;;  %8884 = vmatmul.mubr.f32.gmra.mrb[54].mxu0 %v16704_v6  ;;  %v8181_v6 = vsel %vm468_vm1, %v8178_v24, %v8180_v44 }
 0x560   :  { %v7362_v17 = vadd.f32 %v7361_v53, %v17847_v47  ;;  %v7363_v52 = vpop.f32.mrb[221].mxu1  ;;  %8888 = vmatprep.mubr.f32.mxu0 %v8179_v25  ;;  %v8186_v25 = vsel %vm468_vm1, %v8183_v40, %v8185_v62  ;;  %v17852_v62 = vld [vmem:[#allocation40_spill] sm:$0xff] }
 0x562   :  { %v16832_v29 = vadd.f32 %v16588_v15, %v7362_v17  ;;  %v16834_v55 = vpop.f32.mrb[206].mxu0  ;;  %v17850_v17 = vld [vmem:[#allocation61_spill] sm:$0xff] }
 0x563   :  { %v7366_v34 = vpop.f32.mrb[222].mxu1  ;;  %v8627_v30 = vpop.f32.mrb[207].mxu0  ;;  %8889 = vmatmul.mubr.f32.gmra.mrb[56].mxu0 %v16741_v58  ;;  %v17849_v58 = vld [vmem:[#allocation60_spill] sm:$0xff] }
 0x564   :  { %v7367_v26 = vadd.f32 %v7366_v34, %v17848_v57  ;;  %v7368_v21 = vpop.f32.mrb[223].mxu1  ;;  %8893 = vmatprep.mubr.f32.mxu0 %v8181_v6 }
 0x566   :  { %v16842_v9 = vadd.f32 %v16584_v10, %v7367_v26  ;;  %v16844_v15 = vpop.f32.mrb[208].mxu0 }
 0x567   :  { %v7371_v49 = vpop.f32.mrb[224].mxu1  ;;  %v8632_v53 = vpop.f32.mrb[209].mxu0  ;;  %8894 = vmatmul.mubr.f32.gmra.mrb[58].mxu0 %v16726_v4 }
 0x568   :  { %v7372_v11 = vadd.f32 %v7371_v49, %v17849_v58  ;;  %v7373_v24 = vpop.f32.mrb[225].mxu1  ;;  %8898 = vmatprep.mubr.f32.mxu0 %v8184_v61 }
 0x569   :  { %v17853_v24 = vld [vmem:[#allocation74_spill] sm:$0xff] }
 0x56a   :  { %v16850_v44 = vadd.f32 %v16604_v50, %v7372_v11  ;;  %v16852_v47 = vpop.f32.mrb[210].mxu0  ;;  %v17851_v50 = vld [vmem:[#allocation75_spill] sm:$0xff] }
 0x56b   :  { %v7376_v31 = vpop.f32.mrb[226].mxu1  ;;  %v8637_v10 = vpop.f32.mrb[211].mxu0  ;;  %8899 = vmatmul.mubr.f32.gmra.mrb[60].mxu0 %v16743_v35 }
 0x56c   :  { %v7377_v52 = vadd.f32 %v7376_v31, %v17850_v17  ;;  %v7378_v43 = vpop.f32.mrb[227].mxu1  ;;  %8903 = vmatprep.mubr.f32.mxu0 %v8186_v25 }
 0x56d   :  { %v17854_v43 = vld [vmem:[#allocation16_spill] sm:$0xff] }
 0x56e   :  { %v16857_v4 = vadd.f32 %v16600_v42, %v7377_v52  ;;  %v16859_v34 = vpop.f32.mrb[212].mxu0 }
 0x56f   :  { %v7381_v30 = vpop.f32.mrb[228].mxu1  ;;  %v8642_v40 = vpop.f32.mrb[213].mxu0  ;;  %8904 = vmatmul.mubr.f32.gmra.mrb[62].mxu0 %v11494_v48 }
 0x570   :  { %v7382_v6 = vadd.f32 %v7381_v30, %v17851_v50  ;;  %v7383_v57 = vpop.f32.mrb[229].mxu1 }
 0x572   :  { %v16863_v26 = vadd.f32 %v16619_v32, %v7382_v6  ;;  %v16865_v21 = vpop.f32.mrb[214].mxu0 }
 0x573   :  { %v7386_v35 = vpop.f32.mrb[230].mxu1  ;;  %v8647_v61 = vpop.f32.mrb[215].mxu0 }
 0x574   :  { %v7387_v49 = vadd.f32 %v7386_v35, %v17852_v62  ;;  %v7388_v53 = vpop.f32.mrb[231].mxu1  ;;  %v17856_v35 = vld [vmem:[#allocation56_spill] sm:$0xff] }
 0x576   :  { %v16869_v42 = vadd.f32 %v16617_v14, %v7387_v49  ;;  %v16871_v58 = vpop.f32.mrb[216].mxu0 }
 0x577   :  { %v7391_v11 = vpop.f32.mrb[232].mxu1  ;;  %v8652_v48 = vpop.f32.mrb[217].mxu0 }
 0x578   :  { %v7392_v25 = vadd.f32 %v7391_v11, %v17853_v24  ;;  %v7393_v31 = vpop.f32.mrb[233].mxu1  ;;  %v17858_v48 = vld [vmem:[#allocation76_spill] sm:$0xff] }
 0x57a   :  { %v16875_v32 = vadd.f32 %v16634_v51, %v7392_v25  ;;  %v16877_v10 = vpop.f32.mrb[218].mxu0 }
 0x57b   :  { %v7396_v17 = vpop.f32.mrb[234].mxu1  ;;  %v8657_v52 = vpop.f32.mrb[219].mxu0 }
 0x57c   :  { %v7397_v30 = vadd.f32 %v7396_v17, %v17854_v43  ;;  %v7398_v40 = vpop.f32.mrb[235].mxu1  ;;  %v17860_v43 = vld [vmem:[#allocation21_spill] sm:$0xff] }
 0x57e   :  { %v16881_v14 = vadd.f32 %v16632_v33, %v7397_v30  ;;  %v16883_v50 = vpop.f32.mrb[220].mxu0 }
 0x57f   :  { %v7401_v6 = vpop.f32.mrb[236].mxu1  ;;  %v8662_v57 = vpop.f32.mrb[221].mxu0 }
 0x580   :  { %17855 = vst [vmem:[#allocation27_spill] sm:$0xff] %v16881_v14  ;;  %v7402_v61 = vadd.f32 %v7401_v6, %v17856_v35  ;;  %v7403_v62 = vpop.f32.mrb[237].mxu1 }
 0x582   :  { %v16887_v51 = vadd.f32 %v16649_v59, %v7402_v61  ;;  %v16889_v49 = vpop.f32.mrb[222].mxu0  ;;  %v17862_v61 = vld [vmem:[#allocation77_spill] sm:$0xff] }
 0x583   :  { %v7406_v53 = vpop.f32.mrb[238].mxu1  ;;  %v8667_v11 = vpop.f32.mrb[223].mxu0 }
 0x584   :  { %17857 = vst [vmem:[#allocation29_spill] sm:$0xff] %v16887_v51  ;;  %v7407_v24 = vadd.f32 %v7406_v53, %v17858_v48  ;;  %v7408_v25 = vpop.f32.mrb[239].mxu1 }
 0x585   :  { %v17864_v25 = vld [vmem:[#allocation54_spill] sm:$0xff] }
 0x586   :  { %v16893_v33 = vadd.f32 %v16647_v45, %v7407_v24  ;;  %v16895_v31 = vpop.f32.mrb[224].mxu0 }
 0x587   :  { %v7411_v17 = vpop.f32.mrb[240].mxu1  ;;  %v8672_v52 = vpop.f32.mrb[225].mxu0 }
 0x588   :  { %17859 = vst [vmem:[#allocation49_spill] sm:$0xff] %v16893_v33  ;;  %v7412_v30 = vadd.f32 %v7411_v17, %v17860_v43  ;;  %v7413_v40 = vpop.f32.mrb[241].mxu1  ;;  %v9432_v33 = vld [vmem:[#allocation3 + $0x18] sm:$0xff] }
 0x58a   :  { %v16899_v59 = vadd.f32 %v16669_v39, %v7412_v30  ;;  %v16901_v6 = vpop.f32.mrb[226].mxu0 }
 0x58b   :  { %v7416_v57 = vpop.f32.mrb[242].mxu1  ;;  %v8677_v35 = vpop.f32.mrb[227].mxu0 }
 0x58c   :  { %17861 = vst [vmem:[#allocation47_spill] sm:$0xff] %v16899_v59  ;;  %v7417_v62 = vadd.f32 %v7416_v57, %v17862_v61  ;;  %v7418_v53 = vpop.f32.mrb[243].mxu1  ;;  %v17866_v35 = vld [vmem:[#allocation17_spill] sm:$0xff] }
 0x58e   :  { %v16905_v45 = vadd.f32 %v16666_v12, %v7417_v62  ;;  %v16907_v11 = vpop.f32.mrb[228].mxu0 }
 0x58f   :  { %v7421_v48 = vpop.f32.mrb[244].mxu1  ;;  %v8682_v24 = vpop.f32.mrb[229].mxu0 }
 0x590   :  { %17863 = vst [vmem:[#allocation38_spill] sm:$0xff] %v16905_v45  ;;  %v7422_v17 = vadd.f32 %v7421_v48, %v17864_v25  ;;  %v7423_v52 = vpop.f32.mrb[245].mxu1  ;;  %v17868_v45 = vld [vmem:[#allocation71_spill] sm:$0xff] }
 0x592   :  { %v16911_v39 = vadd.f32 %v16690_v7, %v7422_v17  ;;  %v16913_v43 = vpop.f32.mrb[230].mxu0 }
 0x593   :  { %v7426_v30 = vpop.f32.mrb[246].mxu1  ;;  %v8687_v40 = vpop.f32.mrb[231].mxu0 }
 0x594   :  { %17865 = vst [vmem:[#allocation50_spill] sm:$0xff] %v16911_v39  ;;  %v7427_v57 = vadd.f32 %v7426_v30, %v17866_v35  ;;  %v7428_v61 = vpop.f32.mrb[247].mxu1  ;;  %v17870_v39 = vld [vmem:[#allocation28_spill] sm:$0xff] }
 0x596   :  { %v16917_v12 = vadd.f32 %v16687_v18, %v7427_v57  ;;  %v16919_v62 = vpop.f32.mrb[232].mxu0 }
 0x597   :  { %v7431_v53 = vpop.f32.mrb[248].mxu1  ;;  %v8692_v24 = vpop.f32.mrb[233].mxu0 }
 0x598   :  { %17867 = vst [vmem:[#allocation44_spill] sm:$0xff] %v16917_v12  ;;  %v7432_v48 = vadd.f32 %v7431_v53, %v17868_v45  ;;  %v7433_v25 = vpop.f32.mrb[249].mxu1  ;;  %v17872_v12 = vld [vmem:[#allocation69_spill] sm:$0xff] }
 0x59a   :  { %v16923_v7 = vadd.f32 %v16712_v27, %v7432_v48  ;;  %v16925_v17 = vpop.f32.mrb[234].mxu0 }
 0x59b   :  { %v7436_v52 = vpop.f32.mrb[250].mxu1  ;;  %v8697_v40 = vpop.f32.mrb[235].mxu0 }
 0x59c   :  { %17869 = vst [vmem:[#allocation39_spill] sm:$0xff] %v16923_v7  ;;  %v7437_v30 = vadd.f32 %v7436_v52, %v17870_v39  ;;  %v7438_v35 = vpop.f32.mrb[251].mxu1  ;;  %v17874_v7 = vld [vmem:[#allocation32_spill] sm:$0xff] }
 0x59e   :  { %v16929_v18 = vadd.f32 %v16709_v41, %v7437_v30  ;;  %v16931_v57 = vpop.f32.mrb[236].mxu0 }
 0x59f   :  { %v7441_v61 = vpop.f32.mrb[252].mxu1  ;;  %v8702_v24 = vpop.f32.mrb[237].mxu0 }
 0x5a0   :  { %17871 = vst [vmem:[#allocation37_spill] sm:$0xff] %v16929_v18  ;;  %v7442_v45 = vadd.f32 %v7441_v61, %v17872_v12  ;;  %v7443_v53 = vpop.f32.mrb[253].mxu1 }
 0x5a1   :  { %v17876_v53 = vld [vmem:[#allocation19_spill] sm:$0xff] }
 0x5a2   :  { %v16935_v27 = vadd.f32 %v16734_v2, %v7442_v45  ;;  %v16937_v48 = vpop.f32.mrb[238].mxu0  ;;  %v16949_v2 = vld [vmem:[%s17190_s4] ss:$0 sm:$0xff] }
 0x5a3   :  { %v7446_v25 = vpop.f32.mrb[254].mxu1  ;;  %v8707_v40 = vpop.f32.mrb[239].mxu0 }
 0x5a4   :  { %17873 = vst [vmem:[#allocation42_spill] sm:$0xff] %v16935_v27  ;;  %v7447_v39 = vadd.f32 %v7446_v25, %v17874_v7  ;;  %v7448_v52 = vpop.f32.mrb[255].mxu1 }
 0x5a6   :  { %v16941_v41 = vadd.f32 %v16731_v60, %v7447_v39  ;;  %v16943_v30 = vpop.f32.mrb[240].mxu0  ;;  %v9430_v60 = vld [vmem:[#allocation3 + $0x8] sm:$0xff] }
 0x5a7   :  { %v10859_v35 = vpop.f32.mrb[0].mxu1  ;;  %v8712_v24 = vpop.f32.mrb[241].mxu0 }
 0x5a8   :  { %17875 = vst [vmem:[#allocation35_spill] sm:$0xff] %v16941_v41  ;;  %v8981_v12 = vadd.f32 %v10859_v35, %v16771_v63  ;;  %v8975_v61 = vpop.f32.mrb[1].mxu1  ;;  %v9429_v63 = vld [vmem:[#allocation3] sm:$0xff] }
 0x5a9   :  { %v8976_v45 = vadd.f32 %v8975_v61, %v16754_v28  ;;  %v17877_v61 = vld [vmem:[#allocation78_spill] sm:$0xff] }
 0x5aa   :  { %v9295_v7 = vadd.f32 %v8981_v12, %v17876_v53  ;;  %v16953_v25 = vpop.f32.mrb[242].mxu0 }
 0x5ab   :  { %v9294_v40 = vadd.f32 %v8976_v45, %v16176_v0  ;;  %v10862_v39 = vpop.f32.mrb[2].mxu1  ;;  %v8717_v52 = vpop.f32.mrb[243].mxu0 }
 0x5ac   :  { %v9366_v24 = vadd.f32 %v16949_v2, %v9295_v7  ;;  %v8991_v35 = vadd.f32 %v10862_v39, %v16795_v20  ;;  %v8985_v41 = vpop.f32.mrb[3].mxu1  ;;  %v9431_v20 = vld [vmem:[#allocation3 + $0x10] sm:$0xff] }
 0x5ad   :  { %v9365_v27 = vadd.f32 %v16949_v2, %v9294_v40  ;;  %v8986_v18 = vadd.f32 %v8985_v41, %v16786_v56 }
 0x5ae   :  { %v9494_v28 = vadd.f32 %v9430_v60, %v9366_v24  ;;  %v9297_v12 = vadd.f32 %v8991_v35, %v17877_v61  ;;  %v16961_v53 = vpop.f32.mrb[244].mxu0 }
 0x5af   :  { %v9493_v59 = vadd.f32 %v9429_v63, %v9365_v27  ;;  %v9296_v0 = vadd.f32 %v8986_v18, %v16196_v23  ;;  %v10865_v45 = vpop.f32.mrb[4].mxu1  ;;  %v8722_v52 = vpop.f32.mrb[245].mxu0  ;;  %v17878_v27 = vld [vmem:[#allocation51_spill] sm:$0xff]  ;;  %v9434_v18 = vld [vmem:[#allocation3 + $0x28] sm:$0xff] }
 0x5b0   :  { %v9558_v7 = vmax.f32 %v9494_v28, 0.0  ;;  %v9368_v51 = vadd.f32 %v16949_v2, %v9297_v12  ;;  %v9001_v39 = vadd.f32 %v10865_v45, %v16814_v16  ;;  %v8995_v40 = vpop.f32.mrb[5].mxu1  ;;  %v9433_v12 = vld [vmem:[#allocation3 + $0x20] sm:$0xff] }
 0x5b1   :  { %v9557_v14 = vmax.f32 %v9493_v59, 0.0  ;;  %v9367_v56 = vadd.f32 %v16949_v2, %v9296_v0  ;;  %v8996_v41 = vadd.f32 %v8995_v40, %v16805_v37 }
 0x5b2   :  { %9622 = vst [vmem:[#allocation9 + $0x8] sm:$0xff] %v9558_v7  ;;  %v9496_v60 = vadd.f32 %v9432_v33, %v9368_v51  ;;  %v9299_v24 = vadd.f32 %v9001_v39, %v17878_v27  ;;  %v16969_v63 = vpop.f32.mrb[246].mxu0 }
 0x5b3   :  { %9621 = vst [vmem:[#allocation9] sm:$0xff] %v9557_v14  ;;  %v9495_v23 = vadd.f32 %v9431_v20, %v9367_v56  ;;  %v9298_v35 = vadd.f32 %v8996_v41, %v16217_v1  ;;  %v10868_v28 = vpop.f32.mrb[6].mxu1  ;;  %v8727_v61 = vpop.f32.mrb[247].mxu0  ;;  %v9436_v20 = vld [vmem:[#allocation3 + $0x38] sm:$0xff] }
 0x5b4   :  { %v9560_v16 = vmax.f32 %v9496_v60, 0.0  ;;  %v9370_v59 = vadd.f32 %v16949_v2, %v9299_v24  ;;  %v9011_v0 = vadd.f32 %v10868_v28, %v16834_v55  ;;  %v9005_v37 = vpop.f32.mrb[7].mxu1  ;;  %v9435_v60 = vld [vmem:[#allocation3 + $0x30] sm:$0xff]  ;;  %v9438_v61 = vld [vmem:[#allocation3 + $0x48] sm:$0xff] }
 0x5b5   :  { %v9559_v45 = vmax.f32 %v9495_v23, 0.0  ;;  %v9369_v51 = vadd.f32 %v16949_v2, %v9298_v35  ;;  %v9006_v33 = vadd.f32 %v9005_v37, %v16824_v38 }
 0x5b6   :  { %9624 = vst [vmem:[#allocation9 + $0x18] sm:$0xff] %v9560_v16  ;;  %v9498_v14 = vadd.f32 %v9434_v18, %v9370_v59  ;;  %v9301_v52 = vadd.f32 %v9011_v0, %v16225_v13  ;;  %v16977_v7 = vpop.f32.mrb[248].mxu0  ;;  %v17879_v16 = vld [vmem:[#allocation72_spill] sm:$0xff] }
 0x5b7   :  { %9623 = vst [vmem:[#allocation9 + $0x10] sm:$0xff] %v9559_v45  ;;  %v9497_v1 = vadd.f32 %v9433_v12, %v9369_v51  ;;  %v9300_v39 = vadd.f32 %v9006_v33, %v16232_v46  ;;  %v10871_v40 = vpop.f32.mrb[8].mxu1  ;;  %v8732_v56 = vpop.f32.mrb[249].mxu0  ;;  %v9437_v45 = vld [vmem:[#allocation3 + $0x40] sm:$0xff] }
 0x5b8   :  { %v9562_v55 = vmax.f32 %v9498_v14, 0.0  ;;  %v9372_v41 = vadd.f32 %v16949_v2, %v9301_v52  ;;  %v9021_v27 = vadd.f32 %v10871_v40, %v16852_v47  ;;  %v9015_v38 = vpop.f32.mrb[9].mxu1  ;;  %v9440_v56 = vld [vmem:[#allocation3 + $0x58] sm:$0xff] }
 0x5b9   :  { %v9561_v24 = vmax.f32 %v9497_v1, 0.0  ;;  %v9371_v23 = vadd.f32 %v16949_v2, %v9300_v39  ;;  %v9016_v13 = vadd.f32 %v9015_v38, %v16844_v15  ;;  %v17880_v1 = vld [vmem:[#allocation22_spill] sm:$0xff] }
 0x5ba   :  { %9626 = vst [vmem:[#allocation9 + $0x28] sm:$0xff] %v9562_v55  ;;  %v9500_v18 = vadd.f32 %v9436_v20, %v9372_v41  ;;  %v9303_v35 = vadd.f32 %v9021_v27, %v16241_v36  ;;  %v16985_v28 = vpop.f32.mrb[250].mxu0  ;;  %v17881_v55 = vld [vmem:[#allocation26_spill] sm:$0xff] }
 0x5bb   :  { %9625 = vst [vmem:[#allocation9 + $0x20] sm:$0xff] %v9561_v24  ;;  %v9499_v46 = vadd.f32 %v9435_v60, %v9371_v23  ;;  %v9302_v59 = vadd.f32 %v9016_v13, %v17879_v16  ;;  %v10874_v12 = vpop.f32.mrb[10].mxu1  ;;  %v8737_v0 = vpop.f32.mrb[251].mxu0  ;;  %v9439_v24 = vld [vmem:[#allocation3 + $0x50] sm:$0xff] }
 0x5bc   :  { %v9564_v47 = vmax.f32 %v9500_v18, 0.0  ;;  %v9374_v37 = vadd.f32 %v16949_v2, %v9303_v35  ;;  %v9031_v51 = vadd.f32 %v10874_v12, %v16865_v21  ;;  %v9025_v15 = vpop.f32.mrb[11].mxu1  ;;  %v9442_v0 = vld [vmem:[#allocation3 + $0x68] sm:$0xff] }
 0x5bd   :  { %v9563_v33 = vmax.f32 %v9499_v46, 0.0  ;;  %v9373_v14 = vadd.f32 %v16949_v2, %v9302_v59  ;;  %v9026_v36 = vadd.f32 %v9025_v15, %v16859_v34 }
 0x5be   :  { %9628 = vst [vmem:[#allocation9 + $0x38] sm:$0xff] %v9564_v47  ;;  %v9502_v52 = vadd.f32 %v9438_v61, %v9374_v37  ;;  %v9305_v20 = vadd.f32 %v9031_v51, %v17880_v1  ;;  %v16993_v39 = vpop.f32.mrb[252].mxu0  ;;  %v17882_v61 = vld [vmem:[#allocation15_spill] sm:$0xff]  ;;  %v17883_v47 = vld [vmem:[#allocation20_spill] sm:$0xff] }
 0x5bf   :  { %9627 = vst [vmem:[#allocation9 + $0x30] sm:$0xff] %v9563_v33  ;;  %v9501_v40 = vadd.f32 %v9437_v45, %v9373_v14  ;;  %v9304_v41 = vadd.f32 %v9026_v36, %v17881_v55  ;;  %v10877_v60 = vpop.f32.mrb[12].mxu1  ;;  %v8742_v27 = vpop.f32.mrb[253].mxu0  ;;  %v9441_v33 = vld [vmem:[#allocation3 + $0x60] sm:$0xff] }
 0x5c0   :  { %v9566_v21 = vmax.f32 %v9502_v52, 0.0  ;;  %v9376_v38 = vadd.f32 %v16949_v2, %v9305_v20  ;;  %v9041_v23 = vadd.f32 %v10877_v60, %v16877_v10  ;;  %v9035_v34 = vpop.f32.mrb[13].mxu1  ;;  %v9444_v60 = vld [vmem:[#allocation3 + $0x78] sm:$0xff] }
 0x5c1   :  { %v9565_v13 = vmax.f32 %v9501_v40, 0.0  ;;  %v9375_v18 = vadd.f32 %v16949_v2, %v9304_v41  ;;  %v9036_v35 = vadd.f32 %v9035_v34, %v16871_v58  ;;  %v17884_v40 = vld [vmem:[#allocation45_spill] sm:$0xff]  ;;  %v17885_v27 = vld [vmem:[#allocation24_spill] sm:$0xff]  ;;  %v9443_v34 = vld [vmem:[#allocation3 + $0x70] sm:$0xff] }
 0x5c2   :  { %9630 = vst [vmem:[#allocation9 + $0x48] sm:$0xff] %v9566_v21  ;;  %v9504_v46 = vadd.f32 %v9440_v56, %v9376_v38  ;;  %v9307_v16 = vadd.f32 %v9041_v23, %v17882_v61  ;;  %v17001_v59 = vpop.f32.mrb[254].mxu0 }
 0x5c3   :  { %9629 = vst [vmem:[#allocation9 + $0x40] sm:$0xff] %v9565_v13  ;;  %v9503_v12 = vadd.f32 %v9439_v24, %v9375_v18  ;;  %v9306_v37 = vadd.f32 %v9036_v35, %v17883_v47  ;;  %v10880_v45 = vpop.f32.mrb[14].mxu1  ;;  %v8747_v51 = vpop.f32.mrb[255].mxu0 }
 0x5c4   :  { %v9568_v10 = vmax.f32 %v9504_v46, 0.0  ;;  %v9378_v15 = vadd.f32 %v16949_v2, %v9307_v16  ;;  %v9051_v14 = vadd.f32 %v10880_v45, %v16889_v49  ;;  %v9045_v58 = vpop.f32.mrb[15].mxu1  ;;  %v17886_v16 = vld [vmem:[#allocation34_spill] sm:$0xff] }
 0x5c5   :  { %v9567_v36 = vmax.f32 %v9503_v12, 0.0  ;;  %v9377_v52 = vadd.f32 %v16949_v2, %v9306_v37  ;;  %v9046_v1 = vadd.f32 %v9045_v58, %v16883_v50  ;;  %v9446_v37 = vld [vmem:[#allocation3 + $0x88] sm:$0xff] }
 0x5c6   :  { %9632 = vst [vmem:[#allocation9 + $0x58] sm:$0xff] %v9568_v10  ;;  %v9506_v20 = vadd.f32 %v9442_v0, %v9378_v15  ;;  %v9309_v56 = vadd.f32 %v9051_v14, %v17884_v40  ;;  %v17009_v55 = vpop.f32.mrb[0].mxu0  ;;  %v17887_v45 = vld [vmem:[#allocation30_spill] sm:$0xff]  ;;  %v9445_v14 = vld [vmem:[#allocation3 + $0x80] sm:$0xff]  ;;  %v17888_v40 = vld [vmem:[#allocation23_spill] sm:$0xff] }
 0x5c7   :  { %9631 = vst [vmem:[#allocation9 + $0x50] sm:$0xff] %v9567_v36  ;;  %v9505_v41 = vadd.f32 %v9441_v33, %v9377_v52  ;;  %v9308_v21 = vadd.f32 %v9046_v1, %v17885_v27  ;;  %v10883_v38 = vpop.f32.mrb[16].mxu1  ;;  %v8752_v24 = vpop.f32.mrb[1].mxu0  ;;  %v9448_v27 = vld [vmem:[#allocation3 + $0x98] sm:$0xff] }
 0x5c8   :  { %v9570_v49 = vmax.f32 %v9506_v20, 0.0  ;;  %v9380_v23 = vadd.f32 %v16949_v2, %v9309_v56  ;;  %v9061_v13 = vadd.f32 %v10883_v38, %v16901_v6  ;;  %v9055_v50 = vpop.f32.mrb[17].mxu1 }
 0x5c9   :  { %v9569_v18 = vmax.f32 %v9505_v41, 0.0  ;;  %v9379_v35 = vadd.f32 %v16949_v2, %v9308_v21  ;;  %v9056_v46 = vadd.f32 %v9055_v50, %v16895_v31  ;;  %v17889_v21 = vld [vmem:[#allocation36_spill] sm:$0xff] }
 0x5ca   :  { %9634 = vst [vmem:[#allocation9 + $0x68] sm:$0xff] %v9570_v49  ;;  %v9508_v61 = vadd.f32 %v9444_v60, %v9380_v23  ;;  %v9311_v12 = vadd.f32 %v9061_v13, %v17886_v16  ;;  %v17017_v0 = vpop.f32.mrb[2].mxu0 }
 0x5cb   :  { %9633 = vst [vmem:[#allocation9 + $0x60] sm:$0xff] %v9569_v18  ;;  %v9507_v47 = vadd.f32 %v9443_v34, %v9379_v35  ;;  %v9310_v51 = vadd.f32 %v9056_v46, %v17887_v45  ;;  %v10886_v10 = vpop.f32.mrb[18].mxu1  ;;  %v8757_v15 = vpop.f32.mrb[3].mxu0  ;;  %v9447_v34 = vld [vmem:[#allocation3 + $0x90] sm:$0xff]  ;;  %v17891_v45 = vld [vmem:[#allocation70_spill] sm:$0xff] }
 0x5cc   :  { %v9572_v6 = vmax.f32 %v9508_v61, 0.0  ;;  %v9382_v33 = vadd.f32 %v16949_v2, %v9311_v12  ;;  %v9071_v58 = vadd.f32 %v10886_v10, %v16913_v43  ;;  %v9065_v31 = vpop.f32.mrb[19].mxu1  ;;  %v17890_v61 = vld [vmem:[#allocation33_spill] sm:$0xff] }
 0x5cd   :  { %v9571_v36 = vmax.f32 %v9507_v47, 0.0  ;;  %v9381_v52 = vadd.f32 %v16949_v2, %v9310_v51  ;;  %v9066_v1 = vadd.f32 %v9065_v31, %v16907_v11 }
 0x5ce   :  { %9636 = vst [vmem:[#allocation9 + $0x78] sm:$0xff] %v9572_v6  ;;  %v9510_v20 = vadd.f32 %v9446_v37, %v9382_v33  ;;  %v9313_v56 = vadd.f32 %v9071_v58, %v17888_v40  ;;  %v17025_v41 = vpop.f32.mrb[4].mxu0  ;;  %v9450_v37 = vld [vmem:[#allocation3 + $0xa8] sm:$0xff]  ;;  %v9449_v33 = vld [vmem:[#allocation3 + $0xa0] sm:$0xff] }
 0x5cf   :  { %9635 = vst [vmem:[#allocation9 + $0x70] sm:$0xff] %v9571_v36  ;;  %v9509_v60 = vadd.f32 %v9445_v14, %v9381_v52  ;;  %v9312_v38 = vadd.f32 %v9066_v1, %v17889_v21  ;;  %v10889_v24 = vpop.f32.mrb[20].mxu1  ;;  %v8762_v49 = vpop.f32.mrb[5].mxu0  ;;  %v17892_v1 = vld [vmem:[#allocation52_spill] sm:$0xff] }
 0x5d0   :  { %v9574_v43 = vmax.f32 %v9510_v20, 0.0  ;;  %v9384_v23 = vadd.f32 %v16949_v2, %v9313_v56  ;;  %v9081_v13 = vadd.f32 %v10889_v24, %v16925_v17  ;;  %v9075_v11 = vpop.f32.mrb[21].mxu1 }
 0x5d1   :  { %v9573_v50 = vmax.f32 %v9509_v60, 0.0  ;;  %v9383_v18 = vadd.f32 %v16949_v2, %v9312_v38  ;;  %v9076_v35 = vadd.f32 %v9075_v11, %v16919_v62  ;;  %v9452_v60 = vld [vmem:[#allocation3 + $0xb8] sm:$0xff] }
 0x5d2   :  { %9638 = vst [vmem:[#allocation9 + $0x88] sm:$0xff] %v9574_v43  ;;  %v9512_v46 = vadd.f32 %v9448_v27, %v9384_v23  ;;  %v9315_v16 = vadd.f32 %v9081_v13, %v17890_v61  ;;  %v17033_v12 = vpop.f32.mrb[6].mxu0  ;;  %v17893_v27 = vld [vmem:[#allocation31_spill] sm:$0xff] }
 0x5d3   :  { %9637 = vst [vmem:[#allocation9 + $0x80] sm:$0xff] %v9573_v50  ;;  %v9511_v47 = vadd.f32 %v9447_v34, %v9383_v18  ;;  %v9314_v51 = vadd.f32 %v9076_v35, %v17891_v45  ;;  %v10892_v10 = vpop.f32.mrb[22].mxu1  ;;  %v8767_v15 = vpop.f32.mrb[7].mxu0  ;;  %v9451_v43 = vld [vmem:[#allocation3 + $0xb0] sm:$0xff]  ;;  %v17894_v18 = vld [vmem:[#allocation48_spill] sm:$0xff] }
 0x5d4   :  { %v9576_v17 = vmax.f32 %v9512_v46, 0.0  ;;  %v9386_v6 = vadd.f32 %v16949_v2, %v9315_v16  ;;  %v9091_v14 = vadd.f32 %v10892_v10, %v16937_v48  ;;  %v9085_v62 = vpop.f32.mrb[23].mxu1  ;;  %v9454_v16 = vld [vmem:[#allocation3 + $0xc8] sm:$0xff]  ;;  %v9453_v15 = vld [vmem:[#allocation3 + $0xc0] sm:$0xff] }
 0x5d5   :  { %v9575_v58 = vmax.f32 %v9511_v47, 0.0  ;;  %v9385_v31 = vadd.f32 %v16949_v2, %v9314_v51  ;;  %v9086_v36 = vadd.f32 %v9085_v62, %v16931_v57  ;;  %v17895_v47 = vld [vmem:[#allocation53_spill] sm:$0xff] }
 0x5d6   :  { %9640 = vst [vmem:[#allocation9 + $0x98] sm:$0xff] %v9576_v17  ;;  %v9514_v52 = vadd.f32 %v9450_v37, %v9386_v6  ;;  %v9317_v20 = vadd.f32 %v9091_v14, %v17892_v1  ;;  %v17041_v40 = vpop.f32.mrb[8].mxu0  ;;  %v9456_v1 = vld [vmem:[#allocation3 + $0xd8] sm:$0xff] }
 0x5d7   :  { %9639 = vst [vmem:[#allocation9 + $0x90] sm:$0xff] %v9575_v58  ;;  %v9513_v56 = vadd.f32 %v9449_v33, %v9385_v31  ;;  %v9316_v21 = vadd.f32 %v9086_v36, %v17893_v27  ;;  %v10895_v38 = vpop.f32.mrb[24].mxu1  ;;  %v8772_v24 = vpop.f32.mrb[9].mxu0  ;;  %v17896_v58 = vld [vmem:[#allocation46_spill] sm:$0xff] }
 0x5d8   :  { %v9578_v48 = vmax.f32 %v9514_v52, 0.0  ;;  %v9388_v49 = vadd.f32 %v16949_v2, %v9317_v20  ;;  %v9101_v23 = vadd.f32 %v10895_v38, %v16953_v25  ;;  %v9095_v57 = vpop.f32.mrb[25].mxu1  ;;  %v17897_v20 = vld [vmem:[#allocation65_spill] sm:$0xff]  ;;  %v9455_v38 = vld [vmem:[#allocation3 + $0xd0] sm:$0xff] }
 0x5d9   :  { %v9577_v34 = vmax.f32 %v9513_v56, 0.0  ;;  %v9387_v13 = vadd.f32 %v16949_v2, %v9316_v21  ;;  %v9096_v11 = vadd.f32 %v9095_v57, %v16943_v30  ;;  %v17898_v57 = vld [vmem:[#allocation43_spill] sm:$0xff] }
 0x5da   :  { %9642 = vst [vmem:[#allocation9 + $0xa8] sm:$0xff] %v9578_v48  ;;  %v9516_v50 = vadd.f32 %v9452_v60, %v9388_v49  ;;  %v9319_v35 = vadd.f32 %v9101_v23, %v17894_v18  ;;  %v17049_v46 = vpop.f32.mrb[10].mxu0  ;;  %v17899_v18 = vld [vmem:[#allocation13_spill] sm:$0xff] }
 0x5db   :  { %9641 = vst [vmem:[#allocation9 + $0xa0] sm:$0xff] %v9577_v34  ;;  %v9515_v61 = vadd.f32 %v9451_v43, %v9387_v13  ;;  %v9318_v37 = vadd.f32 %v9096_v11, %v17895_v47  ;;  %v10898_v45 = vpop.f32.mrb[26].mxu1  ;;  %v8777_v51 = vpop.f32.mrb[11].mxu0 }
 0x5dc   :  { %v9580_v25 = vmax.f32 %v9516_v50, 0.0  ;;  %v9390_v10 = vadd.f32 %v16949_v2, %v9319_v35  ;;  %v9111_v17 = vadd.f32 %v10898_v45, %v16969_v63  ;;  %v9105_v30 = vpop.f32.mrb[27].mxu1  ;;  %v9458_v50 = vld [vmem:[#allocation3 + $0xe8] sm:$0xff] }
 0x5dd   :  { %v9579_v6 = vmax.f32 %v9515_v61, 0.0  ;;  %v9389_v33 = vadd.f32 %v16949_v2, %v9318_v37  ;;  %v9106_v14 = vadd.f32 %v9105_v30, %v16961_v53  ;;  %v9457_v37 = vld [vmem:[#allocation3 + $0xe0] sm:$0xff] }
 0x5de   :  { %9644 = vst [vmem:[#allocation9 + $0xb8] sm:$0xff] %v9580_v25  ;;  %v9518_v62 = vadd.f32 %v9454_v16, %v9390_v10  ;;  %v9321_v31 = vadd.f32 %v9111_v17, %v17896_v58  ;;  %v17057_v36 = vpop.f32.mrb[12].mxu0  ;;  %v17900_v17 = vld [vmem:[#allocation62_spill] sm:$0xff] }
 0x5df   :  { %9643 = vst [vmem:[#allocation9 + $0xb0] sm:$0xff] %v9579_v6  ;;  %v9517_v52 = vadd.f32 %v9453_v15, %v9389_v33  ;;  %v9320_v56 = vadd.f32 %v9106_v14, %v17897_v20  ;;  %v10901_v60 = vpop.f32.mrb[28].mxu1  ;;  %v8782_v27 = vpop.f32.mrb[13].mxu0  ;;  %v9460_v14 = vld [vmem:[#allocation3 + $0xf8] sm:$0xff]  ;;  %v9459_v20 = vld [vmem:[#allocation3 + $0xf0] sm:$0xff] }
 0x5e0   :  { %v9582_v63 = vmax.f32 %v9518_v62, 0.0  ;;  %v9392_v21 = vadd.f32 %v16949_v2, %v9321_v31  ;;  %v9121_v24 = vadd.f32 %v10901_v60, %v16985_v28  ;;  %v9115_v53 = vpop.f32.mrb[29].mxu1  ;;  %v17901_v62 = vld [vmem:[#allocation59_spill] sm:$0xff] }
 0x5e1   :  { %v9581_v48 = vmax.f32 %v9517_v52, 0.0  ;;  %v9391_v49 = vadd.f32 %v16949_v2, %v9320_v56  ;;  %v9116_v43 = vadd.f32 %v9115_v53, %v16977_v7 }
 0x5e2   :  { %9646 = vst [vmem:[#allocation9 + $0xc8] sm:$0xff] %v9582_v63  ;;  %v9520_v23 = vadd.f32 %v9456_v1, %v9392_v21  ;;  %v9323_v34 = vadd.f32 %v9121_v24, %v17898_v57  ;;  %v17065_v13 = vpop.f32.mrb[14].mxu0 }
 0x5e3   :  { %9645 = vst [vmem:[#allocation9 + $0xc0] sm:$0xff] %v9581_v48  ;;  %v9519_v11 = vadd.f32 %v9455_v38, %v9391_v49  ;;  %v9322_v35 = vadd.f32 %v9116_v43, %v17899_v18  ;;  %v10904_v61 = vpop.f32.mrb[30].mxu1  ;;  %v8787_v16 = vpop.f32.mrb[15].mxu0  ;;  %v17902_v38 = vld [vmem:[#allocation67_spill] sm:$0xff]  ;;  %v9462_v49 = vld [vmem:[#allocation3 + $0x108] sm:$0xff]  ;;  %v17903_v43 = vld [vmem:[#allocation64_spill] sm:$0xff] }
 0x5e4   :  { %v9584_v28 = vmax.f32 %v9520_v23, 0.0  ;;  %v9394_v47 = vadd.f32 %v16949_v2, %v9323_v34  ;;  %v9131_v45 = vadd.f32 %v10904_v61, %v17001_v59  ;;  %v9125_v7 = vpop.f32.mrb[31].mxu1 }
 0x5e5   :  { %v9583_v51 = vmax.f32 %v9519_v11, 0.0  ;;  %v9393_v25 = vadd.f32 %v16949_v2, %v9322_v35  ;;  %v9126_v10 = vadd.f32 %v9125_v7, %v16993_v39 }
 0x5e6   :  { %9648 = vst [vmem:[#allocation9 + $0xd8] sm:$0xff] %v9584_v28  ;;  %v9522_v15 = vadd.f32 %v9458_v50, %v9394_v47  ;;  %v9325_v30 = vadd.f32 %v9131_v45, %v17900_v17  ;;  %v17073_v6 = vpop.f32.mrb[16].mxu0  ;;  %v9461_v50 = vld [vmem:[#allocation3 + $0x100] sm:$0xff] }
 0x5e7   :  { %9647 = vst [vmem:[#allocation9 + $0xd0] sm:$0xff] %v9583_v51  ;;  %v9521_v33 = vadd.f32 %v9457_v37, %v9393_v25  ;;  %v9324_v58 = vadd.f32 %v9126_v10, %v17901_v62  ;;  %v10907_v31 = vpop.f32.mrb[32].mxu1  ;;  %v8792_v52 = vpop.f32.mrb[17].mxu0  ;;  %v17904_v47 = vld [vmem:[#allocation73_spill] sm:$0xff]  ;;  %v9464_v51 = vld [vmem:[#allocation3 + $0x118] sm:$0xff]  ;;  %v17905_v25 = vld [vmem:[#allocation18_spill] sm:$0xff] }
 0x5e8   :  { %v9586_v59 = vmax.f32 %v9522_v15, 0.0  ;;  %v9396_v1 = vadd.f32 %v16949_v2, %v9325_v30  ;;  %v9141_v56 = vadd.f32 %v10907_v31, %v17017_v0  ;;  %v9135_v39 = vpop.f32.mrb[33].mxu1 }
 0x5e9   :  { %v9585_v60 = vmax.f32 %v9521_v33, 0.0  ;;  %v9395_v27 = vadd.f32 %v16949_v2, %v9324_v58  ;;  %v9136_v63 = vadd.f32 %v9135_v39, %v17009_v55  ;;  %v9463_v33 = vld [vmem:[#allocation3 + $0x110] sm:$0xff]  ;;  %v9466_v39 = vld [vmem:[#allocation3 + $0x128] sm:$0xff] }
 0x5ea   :  { %9650 = vst [vmem:[#allocation9 + $0xe8] sm:$0xff] %v9586_v59  ;;  %v9524_v21 = vadd.f32 %v9460_v14, %v9396_v1  ;;  %v9327_v24 = vadd.f32 %v9141_v56, %v17902_v38  ;;  %v17081_v53 = vpop.f32.mrb[18].mxu0  ;;  %v17906_v59 = vld [vmem:[#allocation55_spill] sm:$0xff] }
 0x5eb   :  { %9649 = vst [vmem:[#allocation9 + $0xe0] sm:$0xff] %v9585_v60  ;;  %v9523_v48 = vadd.f32 %v9459_v20, %v9395_v27  ;;  %v9326_v23 = vadd.f32 %v9136_v63, %v17903_v43  ;;  %v10910_v57 = vpop.f32.mrb[34].mxu1  ;;  %v8797_v34 = vpop.f32.mrb[19].mxu0  ;;  %v17907_v60 = vld [vmem:[#allocation14_spill] sm:$0xff] }
 0x5ec   :  { %v9588_v0 = vmax.f32 %v9524_v21, 0.0  ;;  %v9398_v11 = vadd.f32 %v16949_v2, %v9327_v24  ;;  %v9151_v18 = vadd.f32 %v10910_v57, %v17033_v12  ;;  %v9145_v55 = vpop.f32.mrb[35].mxu1  ;;  %v9465_v24 = vld [vmem:[#allocation3 + $0x120] sm:$0xff] }
 0x5ed   :  { %v9587_v35 = vmax.f32 %v9523_v48, 0.0  ;;  %v9397_v61 = vadd.f32 %v16949_v2, %v9326_v23  ;;  %v9146_v16 = vadd.f32 %v9145_v55, %v17025_v41  ;;  %v17908_v34 = vld [vmem:[#allocation25_spill] sm:$0xff]  ;;  %v17909_v55 = vld [vmem:[#allocation63_spill] sm:$0xff] }
 0x5ee   :  { %9652 = vst [vmem:[#allocation9 + $0xf8] sm:$0xff] %v9588_v0  ;;  %v9526_v28 = vadd.f32 %v9462_v49, %v9398_v11  ;;  %v9329_v37 = vadd.f32 %v9151_v18, %v17904_v47  ;;  %v17089_v45 = vpop.f32.mrb[20].mxu0  ;;  %v9468_v18 = vld [vmem:[#allocation3 + $0x138] sm:$0xff]  ;;  %v9467_v47 = vld [vmem:[#allocation3 + $0x130] sm:$0xff] }
 0x5ef   :  { %9651 = vst [vmem:[#allocation9 + $0xf0] sm:$0xff] %v9587_v35  ;;  %v9525_v7 = vadd.f32 %v9461_v50, %v9397_v61  ;;  %v9328_v10 = vadd.f32 %v9146_v16, %v17905_v25  ;;  %v10913_v15 = vpop.f32.mrb[36].mxu1  ;;  %v8802_v17 = vpop.f32.mrb[21].mxu0 }
 0x5f0   :  { %v9590_v12 = vmax.f32 %v9526_v28, 0.0  ;;  %v9400_v30 = vadd.f32 %v16949_v2, %v9329_v37  ;;  %v9161_v14 = vadd.f32 %v10913_v15, %v17049_v46  ;;  %v9155_v41 = vpop.f32.mrb[37].mxu1 }
 0x5f1   :  { %v9589_v62 = vmax.f32 %v9525_v7, 0.0  ;;  %v9399_v58 = vadd.f32 %v16949_v2, %v9328_v10  ;;  %v9156_v31 = vadd.f32 %v9155_v41, %v17041_v40 }
 0x5f2   :  { %9654 = vst [vmem:[#allocation9 + $0x108] sm:$0xff] %v9590_v12  ;;  %v9528_v52 = vadd.f32 %v9464_v51, %v9400_v30  ;;  %v9331_v1 = vadd.f32 %v9161_v14, %v17906_v59  ;;  %v8805_v20 = vpop.f32.mrb[22].mxu0  ;;  %v9470_v30 = vld [vmem:[#allocation3 + $0x148] sm:$0xff] }
 0x5f3   :  { %9653 = vst [vmem:[#allocation9 + $0x100] sm:$0xff] %v9589_v62  ;;  %v9527_v56 = vadd.f32 %v9463_v33, %v9399_v58  ;;  %v9330_v27 = vadd.f32 %v9156_v31, %v17907_v60  ;;  %v10916_v63 = vpop.f32.mrb[38].mxu1  ;;  %v8807_v21 = vpop.f32.mrb[23].mxu0  ;;  %v9469_v58 = vld [vmem:[#allocation3 + $0x140] sm:$0xff]  ;;  %v9472_v60 = vld [vmem:[#allocation3 + $0x158] sm:$0xff] }
 0x5f4   :  { %v9592_v38 = vmax.f32 %v9528_v52, 0.0  ;;  %v9402_v46 = vadd.f32 %v16949_v2, %v9331_v1  ;;  %v9171_v48 = vadd.f32 %v10916_v63, %v17065_v13  ;;  %v9165_v49 = vpop.f32.mrb[39].mxu1 }
 0x5f5   :  { %v9591_v40 = vmax.f32 %v9527_v56, 0.0  ;;  %v9401_v43 = vadd.f32 %v16949_v2, %v9330_v27  ;;  %v9166_v23 = vadd.f32 %v9165_v49, %v17057_v36 }
 0x5f6   :  { %9656 = vst [vmem:[#allocation9 + $0x118] sm:$0xff] %v9592_v38  ;;  %v9530_v57 = vadd.f32 %v9466_v39, %v9402_v46  ;;  %v9333_v0 = vadd.f32 %v9171_v48, %v17908_v34  ;;  %v8810_v11 = vpop.f32.mrb[24].mxu0  ;;  %v9471_v46 = vld [vmem:[#allocation3 + $0x150] sm:$0xff] }
 0x5f7   :  { %9655 = vst [vmem:[#allocation9 + $0x110] sm:$0xff] %v9591_v40  ;;  %v9529_v50 = vadd.f32 %v9465_v24, %v9401_v43  ;;  %v9332_v35 = vadd.f32 %v9166_v23, %v17909_v55  ;;  %v10919_v61 = vpop.f32.mrb[40].mxu1  ;;  %v8812_v16 = vpop.f32.mrb[25].mxu0 }
 0x5f8   :  { %v9594_v28 = vmax.f32 %v9530_v57, 0.0  ;;  %v9404_v13 = vadd.f32 %v16949_v2, %v9333_v0  ;;  %v9181_v37 = vadd.f32 %v10919_v61, %v17081_v53  ;;  %v9175_v7 = vpop.f32.mrb[41].mxu1 }
 0x5f9   :  { %v9593_v36 = vmax.f32 %v9529_v50, 0.0  ;;  %v9403_v51 = vadd.f32 %v16949_v2, %v9332_v35  ;;  %v9176_v25 = vadd.f32 %v9175_v7, %v17073_v6  ;;  %v9473_v35 = vld [vmem:[#allocation3 + $0x160] sm:$0xff] }
 0x5fa   :  { %9658 = vst [vmem:[#allocation9 + $0x128] sm:$0xff] %v9594_v28  ;;  %v9532_v10 = vadd.f32 %v9468_v18, %v9404_v13  ;;  %v9335_v15 = vadd.f32 %v9181_v37, %v16784_v54  ;;  %v8815_v17 = vpop.f32.mrb[26].mxu0 }
 0x5fb   :  { %9657 = vst [vmem:[#allocation9 + $0x120] sm:$0xff] %v9593_v36  ;;  %v9531_v12 = vadd.f32 %v9467_v47, %v9403_v51  ;;  %v9334_v33 = vadd.f32 %v9176_v25, %v16769_v5  ;;  %v10922_v14 = vpop.f32.mrb[42].mxu1  ;;  %v8817_v41 = vpop.f32.mrb[27].mxu0 }
 0x5fc   :  { %v9596_v62 = vmax.f32 %v9532_v10, 0.0  ;;  %v9406_v53 = vadd.f32 %v16949_v2, %v9335_v15  ;;  %v9191_v31 = vadd.f32 %v10922_v14, %v8805_v20  ;;  %v9185_v52 = vpop.f32.mrb[43].mxu1 }
 0x5fd   :  { %v9595_v59 = vmax.f32 %v9531_v12, 0.0  ;;  %v9405_v6 = vadd.f32 %v16949_v2, %v9334_v33  ;;  %v9186_v1 = vadd.f32 %v9185_v52, %v17089_v45 }
 0x5fe   :  { %9660 = vst [vmem:[#allocation9 + $0x138] sm:$0xff] %v9596_v62  ;;  %v9534_v54 = vadd.f32 %v9470_v30, %v9406_v53  ;;  %v9337_v56 = vadd.f32 %v9191_v31, %v16803_v22  ;;  %v8820_v39 = vpop.f32.mrb[28].mxu0 }
 0x5ff   :  { %9659 = vst [vmem:[#allocation9 + $0x130] sm:$0xff] %v9595_v59  ;;  %v9533_v5 = vadd.f32 %v9469_v58, %v9405_v6  ;;  %v9336_v27 = vadd.f32 %v9186_v1, %v16793_v8  ;;  %v10925_v63 = vpop.f32.mrb[44].mxu1  ;;  %v8822_v21 = vpop.f32.mrb[29].mxu0  ;;  %v9474_v8 = vld [vmem:[#allocation3 + $0x168] sm:$0xff]  ;;  %v9477_v59 = vld [vmem:[#allocation3 + $0x180] sm:$0xff] }
 0x600   :  { %v9598_v38 = vmax.f32 %v9534_v54, 0.0  ;;  %v9408_v20 = vadd.f32 %v16949_v2, %v9337_v56  ;;  %v9201_v24 = vadd.f32 %v10925_v63, %v8815_v17  ;;  %v9195_v48 = vpop.f32.mrb[45].mxu1  ;;  %v9475_v17 = vld [vmem:[#allocation3 + $0x170] sm:$0xff] }
 0x601   :  { %v9597_v49 = vmax.f32 %v9533_v5, 0.0  ;;  %v9407_v45 = vadd.f32 %v16949_v2, %v9336_v27  ;;  %v9196_v40 = vadd.f32 %v9195_v48, %v8810_v11  ;;  %v9479_v48 = vld [vmem:[#allocation3 + $0x190] sm:$0xff] }
 0x602   :  { %9662 = vst [vmem:[#allocation9 + $0x148] sm:$0xff] %v9598_v38  ;;  %v9536_v22 = vadd.f32 %v9472_v60, %v9408_v20  ;;  %v9339_v43 = vadd.f32 %v9201_v24, %v16822_v19  ;;  %v8825_v23 = vpop.f32.mrb[30].mxu0 }
 0x603   :  { %9661 = vst [vmem:[#allocation9 + $0x140] sm:$0xff] %v9597_v49  ;;  %v9535_v57 = vadd.f32 %v9471_v46, %v9407_v45  ;;  %v9338_v34 = vadd.f32 %v9196_v40, %v16812_v3  ;;  %v10928_v0 = vpop.f32.mrb[46].mxu1  ;;  %v8827_v50 = vpop.f32.mrb[31].mxu0  ;;  %v9476_v3 = vld [vmem:[#allocation3 + $0x178] sm:$0xff] }
 0x604   :  { %v9600_v18 = vmax.f32 %v9536_v22, 0.0  ;;  %v9410_v55 = vadd.f32 %v16949_v2, %v9339_v43  ;;  %v9211_v61 = vadd.f32 %v10928_v0, %v8825_v23  ;;  %v9205_v16 = vpop.f32.mrb[47].mxu1 }
 0x605   :  { %v9599_v28 = vmax.f32 %v9535_v57, 0.0  ;;  %v9409_v11 = vadd.f32 %v16949_v2, %v9338_v34  ;;  %v9206_v13 = vadd.f32 %v9205_v16, %v8820_v39  ;;  %v9478_v39 = vld [vmem:[#allocation3 + $0x188] sm:$0xff]  ;;  %v9480_v34 = vld [vmem:[#allocation3 + $0x198] sm:$0xff] }
 0x606   :  { %9664 = vst [vmem:[#allocation9 + $0x158] sm:$0xff] %v9600_v18  ;;  %v9538_v19 = vadd.f32 %v9474_v8, %v9410_v55  ;;  %v9341_v47 = vadd.f32 %v9211_v61, %v16842_v9  ;;  %v8830_v37 = vpop.f32.mrb[32].mxu0 }
 0x607   :  { %9663 = vst [vmem:[#allocation9 + $0x150] sm:$0xff] %v9599_v28  ;;  %v9537_v7 = vadd.f32 %v9473_v35, %v9409_v11  ;;  %v9340_v36 = vadd.f32 %v9206_v13, %v16832_v29  ;;  %v10931_v51 = vpop.f32.mrb[48].mxu1  ;;  %v8832_v25 = vpop.f32.mrb[33].mxu0  ;;  %v9481_v11 = vld [vmem:[#allocation3 + $0x1a0] sm:$0xff] }
 0x608   :  { %v9602_v10 = vmax.f32 %v9538_v19, 0.0  ;;  %v9412_v15 = vadd.f32 %v16949_v2, %v9341_v47  ;;  %v9215_v12 = vpop.f32.mrb[49].mxu1 }
 0x609   :  { %v9601_v30 = vmax.f32 %v9537_v7, 0.0  ;;  %v9411_v33 = vadd.f32 %v16949_v2, %v9340_v36  ;;  %v9216_v14 = vadd.f32 %v9215_v12, %v8830_v37 }
 0x60a   :  { %9666 = vst [vmem:[#allocation9 + $0x168] sm:$0xff] %v9602_v10  ;;  %v9540_v41 = vadd.f32 %v9476_v3, %v9412_v15  ;;  %v8835_v9 = vpop.f32.mrb[34].mxu0  ;;  %v9482_v10 = vld [vmem:[#allocation3 + $0x1a8] sm:$0xff] }
 0x60b   :  { %9665 = vst [vmem:[#allocation9 + $0x160] sm:$0xff] %v9601_v30  ;;  %v9539_v62 = vadd.f32 %v9475_v17, %v9411_v33  ;;  %v9342_v53 = vadd.f32 %v9216_v14, %v16850_v44  ;;  %v9221_v58 = vadd.f32 %v10931_v51, %v8835_v9  ;;  %v10934_v29 = vpop.f32.mrb[50].mxu1  ;;  %v8837_v31 = vpop.f32.mrb[35].mxu0  ;;  %v17910_v51 = vld [vmem:[#allocation27_spill] sm:$0xff]  ;;  %v17911_v9 = vld [vmem:[#allocation29_spill] sm:$0xff] }
 0x60c   :  { %v9604_v52 = vmax.f32 %v9540_v41, 0.0  ;;  %v9225_v6 = vpop.f32.mrb[51].mxu1 }
 0x60d   :  { %v9603_v1 = vmax.f32 %v9539_v62, 0.0  ;;  %v9413_v54 = vadd.f32 %v16949_v2, %v9342_v53  ;;  %v9343_v56 = vadd.f32 %v9221_v58, %v16857_v4  ;;  %v9483_v53 = vld [vmem:[#allocation3 + $0x1b0] sm:$0xff] }
 0x60e   :  { %9668 = vst [vmem:[#allocation9 + $0x178] sm:$0xff] %v9604_v52  ;;  %v8840_v5 = vpop.f32.mrb[36].mxu0 }
 0x60f   :  { %9667 = vst [vmem:[#allocation9 + $0x170] sm:$0xff] %v9603_v1  ;;  %v9541_v60 = vadd.f32 %v9477_v59, %v9413_v54  ;;  %v9414_v27 = vadd.f32 %v16949_v2, %v9343_v56  ;;  %v9226_v63 = vadd.f32 %v9225_v6, %v8840_v5  ;;  %v10937_v44 = vpop.f32.mrb[52].mxu1  ;;  %v8842_v21 = vpop.f32.mrb[37].mxu0  ;;  %v17912_v56 = vld [vmem:[#allocation49_spill] sm:$0xff]  ;;  %v9484_v5 = vld [vmem:[#allocation3 + $0x1b8] sm:$0xff] }
 0x610   :  { %v9235_v38 = vpop.f32.mrb[53].mxu1 }
 0x611   :  { %v9605_v20 = vmax.f32 %v9541_v60, 0.0  ;;  %v9542_v46 = vadd.f32 %v9478_v39, %v9414_v27  ;;  %v9344_v24 = vadd.f32 %v9226_v63, %v16863_v26  ;;  %v17149_v63 = vld [vmem:[%s17190_s4] ss:$0 sm:$0xff]  ;;  %s11597_s4 = smov [#allocation9]  }
 0x612   :  { %v8845_v49 = vpop.f32.mrb[38].mxu0  ;;  %s9690_s14 = sshll.u32 %s11597_s4, 4  ;;  %s9691_s14 = int_to_ptr.vmem [resolvable:$true] %s9690_s14 }
 0x613   :  { %9669 = vst [vmem:[#allocation9 + $0x180] sm:$0xff] %v9605_v20  ;;  %v9606_v45 = vmax.f32 %v9542_v46, 0.0  ;;  %v9415_v4 = vadd.f32 %v16949_v2, %v9344_v24  ;;  %v9231_v40 = vadd.f32 %v10934_v29, %v8845_v49  ;;  %v10940_v22 = vpop.f32.mrb[54].mxu1  ;;  %v8847_v43 = vpop.f32.mrb[39].mxu0  ;;  %v17913_v20 = vld [vmem:[#allocation47_spill] sm:$0xff]  ;;  %v9485_v24 = vld [vmem:[#allocation3 + $0x1c0] sm:$0xff]  ;;  %p11567_p11 = scmp.lt.s32.totalorder %s9691_s14, %s9691_s14 }
 0x614   :  { %v9245_v23 = vpop.f32.mrb[55].mxu1  ;;  %v17914_v43 = vld [vmem:[#allocation38_spill] sm:$0xff]  ;;  %s11562_s15 = scalar_lea.vmem %s9691_s14, 8192 }
 0x615   :  { %9670 = vst [vmem:[#allocation9 + $0x188] sm:$0xff] %v9606_v45  ;;  %v9543_v57 = vadd.f32 %v9479_v48, %v9415_v4  ;;  %v9345_v8 = vadd.f32 %v9231_v40, %v16869_v42  ;;  %p11563_p10 = scmp.ne.s32.totalorder %s9691_s14, %s11562_s15  ;;  %p11568_p12 = scmp.lt.s32.totalorder %s11562_s15, %s11562_s15 }
 0x616   :  { %v8850_v0 = vpop.f32.mrb[40].mxu0 }
 0x617   :  { %v9607_v50 = vmax.f32 %v9543_v57, 0.0  ;;  %v9416_v18 = vadd.f32 %v16949_v2, %v9345_v8  ;;  %v9236_v26 = vadd.f32 %v9235_v38, %v8850_v0  ;;  %v10943_v55 = vpop.f32.mrb[56].mxu1  ;;  %v8852_v35 = vpop.f32.mrb[41].mxu0  ;;  %v9486_v57 = vld [vmem:[#allocation3 + $0x1c8] sm:$0xff]  ;;  %p11569_p13 = por %p11568_p12, %p11567_p11 }
 0x618   :  { %v9255_v61 = vpop.f32.mrb[57].mxu1  ;;  %v17915_v35 = vld [vmem:[#allocation50_spill] sm:$0xff] }
 0x619   :  { %9671 = vst [vmem:[#allocation9 + $0x190] sm:$0xff] %v9607_v50  ;;  %v9544_v16 = vadd.f32 %v9480_v34, %v9416_v18  ;;  %v9346_v28 = vadd.f32 %v9236_v26, %v16875_v32  ;;  %p11570_p0 = pnand %p11569_p13, %p11563_p10 }
 0x61a   :  { %v8855_v13 = vpop.f32.mrb[42].mxu0 }
 0x61b   :  { %v9608_v19 = vmax.f32 %v9544_v16, 0.0  ;;  %v9417_v47 = vadd.f32 %v16949_v2, %v9346_v28  ;;  %v9241_v37 = vadd.f32 %v10937_v44, %v8855_v13  ;;  %v10946_v42 = vpop.f32.mrb[58].mxu1  ;;  %v8857_v7 = vpop.f32.mrb[43].mxu0  ;;  %v9487_v16 = vld [vmem:[#allocation3 + $0x1d0] sm:$0xff] }
 0x61c   :  { %v9265_v3 = vpop.f32.mrb[59].mxu1 }
 0x61d   :  { %9672 = vst [vmem:[#allocation9 + $0x198] sm:$0xff] %v9608_v19  ;;  %v9545_v36 = vadd.f32 %v9481_v11, %v9417_v47  ;;  %v9347_v25 = vadd.f32 %v9241_v37, %v17910_v51  ;;  %v17916_v37 = vld [vmem:[#allocation44_spill] sm:$0xff] }
 0x61e   :  { %v8860_v15 = vpop.f32.mrb[44].mxu0 }
 0x61f   :  { %v9609_v17 = vmax.f32 %v9545_v36, 0.0  ;;  %v9418_v12 = vadd.f32 %v16949_v2, %v9347_v25  ;;  %v9246_v30 = vadd.f32 %v9245_v23, %v8860_v15  ;;  %v17137_v32 = vpop.f32.mrb[60].mxu1  ;;  %v8862_v33 = vpop.f32.mrb[45].mxu0  ;;  %v9488_v36 = vld [vmem:[#allocation3 + $0x1d8] sm:$0xff] }
 0x620   :  { %v9275_v14 = vpop.f32.mrb[61].mxu1  ;;  %v9489_v33 = vld [vmem:[#allocation3 + $0x1e0] sm:$0xff] }
 0x621   :  { %9673 = vst [vmem:[#allocation9 + $0x1a0] sm:$0xff] %v9609_v17  ;;  %v9546_v41 = vadd.f32 %v9482_v10, %v9418_v12  ;;  %v9348_v62 = vadd.f32 %v9246_v30, %v17911_v9  ;;  %v17917_v12 = vld [vmem:[#allocation39_spill] sm:$0xff] }
 0x622   :  { %v8865_v58 = vpop.f32.mrb[46].mxu0 }
 0x623   :  { %v9610_v29 = vmax.f32 %v9546_v41, 0.0  ;;  %v9419_v31 = vadd.f32 %v16949_v2, %v9348_v62  ;;  %v9251_v52 = vadd.f32 %v10940_v22, %v8865_v58  ;;  %v8867_v59 = vpop.f32.mrb[47].mxu0  ;;  %v17141_v6 = vpop.f32.mrb[62].mxu1 }
 0x624   :  { %v17143_v1 = vpop.f32.mrb[63].mxu1 }
 0x625   :  { %9674 = vst [vmem:[#allocation9 + $0x1a8] sm:$0xff] %v9610_v29  ;;  %v9547_v54 = vadd.f32 %v9483_v53, %v9419_v31  ;;  %v9349_v39 = vadd.f32 %v9251_v52, %v17912_v56  ;;  %v17918_v29 = vld [vmem:[#allocation37_spill] sm:$0xff]  ;;  %v9490_v52 = vld [vmem:[#allocation3 + $0x1e8] sm:$0xff] }
 0x626   :  { %v8870_v60 = vpop.f32.mrb[48].mxu0 }
 0x627   :  { %v9611_v27 = vmax.f32 %v9547_v54, 0.0  ;;  %v9420_v2 = vadd.f32 %v17149_v63, %v9349_v39  ;;  %v9256_v44 = vadd.f32 %v9255_v61, %v8870_v60  ;;  %v8872_v21 = vpop.f32.mrb[49].mxu0  ;;  %v17919_v60 = vld [vmem:[#allocation42_spill] sm:$0xff] }
 0x629   :  { %9675 = vst [vmem:[#allocation9 + $0x1b0] sm:$0xff] %v9611_v27  ;;  %v9548_v38 = vadd.f32 %v9484_v5, %v9420_v2  ;;  %v9350_v46 = vadd.f32 %v9256_v44, %v17913_v20  ;;  %v9491_v2 = vld [vmem:[#allocation3 + $0x1f0] sm:$0xff] }
 0x62a   :  { %v8875_v48 = vpop.f32.mrb[50].mxu0 }
 0x62b   :  { %v9612_v49 = vmax.f32 %v9548_v38, 0.0  ;;  %v9421_v45 = vadd.f32 %v17149_v63, %v9350_v46  ;;  %v9261_v4 = vadd.f32 %v10943_v55, %v8875_v48  ;;  %v8877_v40 = vpop.f32.mrb[51].mxu0 }
 0x62d   :  { %9676 = vst [vmem:[#allocation9 + $0x1b8] sm:$0xff] %v9612_v49  ;;  %v9549_v22 = vadd.f32 %v9485_v24, %v9421_v45  ;;  %v9351_v23 = vadd.f32 %v9261_v4, %v17914_v43  ;;  %v17920_v24 = vld [vmem:[#allocation35_spill] sm:$0xff]  ;;  %v9492_v49 = vld [vmem:[#allocation3 + $0x1f8] sm:$0xff] }
 0x62e   :  { %v8880_v8 = vpop.f32.mrb[52].mxu0 }
 0x62f   :  { %v9613_v34 = vmax.f32 %v9549_v22, 0.0  ;;  %v9422_v0 = vadd.f32 %v17149_v63, %v9351_v23  ;;  %v9266_v50 = vadd.f32 %v9265_v3, %v8880_v8  ;;  %v8882_v18 = vpop.f32.mrb[53].mxu0 }
 0x631   :  { %9677 = vst [vmem:[#allocation9 + $0x1c0] sm:$0xff] %v9613_v34  ;;  %v9550_v26 = vadd.f32 %v9486_v57, %v9422_v0  ;;  %v9352_v61 = vadd.f32 %v9266_v50, %v17915_v35 }
 0x632   :  { %v8885_v28 = vpop.f32.mrb[54].mxu0 }
 0x633   :  { %v9614_v11 = vmax.f32 %v9550_v26, 0.0  ;;  %v9423_v55 = vadd.f32 %v17149_v63, %v9352_v61  ;;  %v9271_v13 = vadd.f32 %v10946_v42, %v8885_v28  ;;  %v8887_v19 = vpop.f32.mrb[55].mxu0 }
 0x635   :  { %9678 = vst [vmem:[#allocation9 + $0x1c8] sm:$0xff] %v9614_v11  ;;  %v9551_v47 = vadd.f32 %v9487_v16, %v9423_v55  ;;  %v9353_v7 = vadd.f32 %v9271_v13, %v17916_v37 }
 0x636   :  { %v8890_v51 = vpop.f32.mrb[56].mxu0 }
 0x637   :  { %v9615_v25 = vmax.f32 %v9551_v47, 0.0  ;;  %v9424_v3 = vadd.f32 %v17149_v63, %v9353_v7  ;;  %v9276_v10 = vadd.f32 %v9275_v14, %v8890_v51  ;;  %v8892_v15 = vpop.f32.mrb[57].mxu0 }
 0x639   :  { %9679 = vst [vmem:[#allocation9 + $0x1d0] sm:$0xff] %v9615_v25  ;;  %v9552_v17 = vadd.f32 %v9488_v36, %v9424_v3  ;;  %v9354_v30 = vadd.f32 %v9276_v10, %v17917_v12 }
 0x63a   :  { %v8895_v41 = vpop.f32.mrb[58].mxu0 }
 0x63b   :  { %v9616_v9 = vmax.f32 %v9552_v17, 0.0  ;;  %v9425_v42 = vadd.f32 %v17149_v63, %v9354_v30  ;;  %v9281_v62 = vadd.f32 %v17137_v32, %v8895_v41  ;;  %v8897_v53 = vpop.f32.mrb[59].mxu0 }
 0x63d   :  { %9680 = vst [vmem:[#allocation9 + $0x1d8] sm:$0xff] %v9616_v9  ;;  %v9553_v58 = vadd.f32 %v9489_v33, %v9425_v42  ;;  %v9355_v31 = vadd.f32 %v9281_v62, %v17918_v29 }
 0x63e   :  { %v8900_v59 = vpop.f32.mrb[60].mxu0 }
 0x63f   :  { %v9617_v14 = vmax.f32 %v9553_v58, 0.0  ;;  %v9426_v54 = vadd.f32 %v17149_v63, %v9355_v31  ;;  %v9286_v56 = vadd.f32 %v17143_v1, %v8900_v59  ;;  %v8902_v39 = vpop.f32.mrb[61].mxu0 }
 0x641   :  { %9681 = vst [vmem:[#allocation9 + $0x1e0] sm:$0xff] %v9617_v14  ;;  %v9554_v5 = vadd.f32 %v9490_v52, %v9426_v54  ;;  %v9356_v27 = vadd.f32 %v9286_v56, %v17919_v60 }
 0x642   :  { %v8905_v44 = vpop.f32.mrb[62].mxu0 }
 0x643   :  { %v9618_v32 = vmax.f32 %v9554_v5, 0.0  ;;  %v9427_v21 = vadd.f32 %v17149_v63, %v9356_v27  ;;  %v9291_v38 = vadd.f32 %v17141_v6, %v8905_v44  ;;  %v8907_v20 = vpop.f32.mrb[63].mxu0 }
 0x645   :  { %9682 = vst [vmem:[#allocation9 + $0x1e8] sm:$0xff] %v9618_v32  ;;  %v9555_v46 = vadd.f32 %v9491_v2, %v9427_v21  ;;  %v9357_v48 = vadd.f32 %v9291_v38, %v17920_v24 }
 0x647   :  { %v9619_v45 = vmax.f32 %v9555_v46, 0.0  ;;  %v9428_v1 = vadd.f32 %v17149_v63, %v9357_v48 }
 0x649   :  { %9683 = vst [vmem:[#allocation9 + $0x1f0] sm:$0xff] %v9619_v45  ;;  %v9556_v4 = vadd.f32 %v9492_v49, %v9428_v1 }
 0x64b   :  { %v9620_v40 = vmax.f32 %v9556_v4, 0.0 }
 0x64d   :  { %9684 = vst [vmem:[#allocation9 + $0x1f8] sm:$0xff] %v9620_v40 }
 0x64e   :  { %11573 = shalt.err (!%p11570_p0)
}
 0x64f   :  { %s11574_s17 = scalar_lea.hbm %s17191_s5, 8192 }
 0x650   :  { %p11575_p1 = scmp.ne.s32.totalorder %s17191_s5, %s11574_s17  ;;  %p11578_p2 = scmp.lt.u32.totalorder %s11574_s17, %s17191_s5 }
 0x652   :  { %p11580_p3 = pnand %p11578_p2, %p11575_p1 }
 0x654   :  { %11583 = shalt.err (!%p11580_p3)
}
 0x655   :  { %9696 = dma.vmem_to_hbm [thread:$0]  %s9691_s14, 8192, %s17191_s5, [#allocation5], %s11592_s30, %s11592_s30, %s11593_s6  }
 0x656   :  { %11588 = dma.done.wait [#allocation5], 8192  }
 0x657   :  { %11589 = vsyncadd [#allocation5], 4294959104 }
 0x658   :  { %9700 = vsyncpa [#allocation4], 1 }
 0x659   :  { %9701 = vsyncpa [#allocation7], 1 }
 0x65a   :  { %9702 = vsyncpa [#allocation5], 1 }

</bundles_post_ra>
